<compile_context>
chip_gen: v5e
topology: v5e:2x2
jax: 0.10.0
libtpu: 0.0.40
codegen_flags: <defaults>
</compile_context>

<pallas_src>
import functools

import jax
import jax.numpy as jnp
from jax import lax
from jax.experimental import pallas as pl
from jax.experimental.pallas import tpu as pltpu

_EPS = 1e-5
_LANE = 128


# ----------------------------------------------------------------------------- helpers
def _round_up(x, k):
    return ((x + k - 1) // k) * k


def _pick_tile_m(m, max_tile=1024):
    """Largest tile (multiple of 8) dividing M; big tiles amortize per-step overhead."""
    for t in (max_tile, 512, 256, 128, 64, 32, 16, 8):
        if t <= m and m % t == 0:
            return t
    return m


def _fold_bn(s, q, m, gamma, beta):
    """Fold batch stats + affine into per-channel (scale, bias), shape (1, C) f32."""
    mean = s / m
    var = jnp.maximum(q / m - mean * mean, 0.0)   # clamp guards E[x^2]-E[x]^2 cancellation
    inv = lax.rsqrt(var + _EPS)
    scale = gamma.reshape(1, -1).astype(jnp.float32) * inv
    bias = beta.reshape(1, -1).astype(jnp.float32) - mean * scale
    return scale, bias


# ----------------------------------------------------------------------------- kernels
def _stats_kernel(x_ref, sum_ref, sq_ref):
    """Per-channel sum / sum-of-squares, accumulated over the M grid axis."""
    @pl.when(pl.program_id(0) == 0)
    def _():
        sum_ref[...] = jnp.zeros_like(sum_ref)
        sq_ref[...] = jnp.zeros_like(sq_ref)

    x = x_ref[...].astype(jnp.float32)
    sum_ref[...] += jnp.sum(x, axis=0, keepdims=True)
    sq_ref[...] += jnp.sum(x * x, axis=0, keepdims=True)


def _conv1x1_kernel(*refs, n_seg):
    """Fused BN1(affine)+ReLU+1x1 conv over dense-connectivity segments.

    refs = [seg_0..seg_{n-1}, scale_0.., bias_0.., w_0.., y, bn2_sum, bn2_sq]
    Also emits per-channel sum / sum-of-squares of the f32 accumulator (BN2 statistics),
    so no separate stats pass over `hid` is needed.
    """
    segs = refs[0:n_seg]
    scales = refs[n_seg:2 * n_seg]
    biases = refs[2 * n_seg:3 * n_seg]
    ws = refs[3 * n_seg:4 * n_seg]
    y_ref, sum_ref, sq_ref = refs[4 * n_seg:4 * n_seg + 3]

    @pl.when(pl.program_id(0) == 0)
    def _():
        sum_ref[...] = jnp.zeros_like(sum_ref)
        sq_ref[...] = jnp.zeros_like(sq_ref)

    acc = None
    for s_ref, sc_ref, b_ref, w_ref in zip(segs, scales, biases, ws):
        xr = jnp.maximum(s_ref[...].astype(jnp.float32) * sc_ref[...] + b_ref[...], 0.0)
        part = jnp.dot(xr.astype(jnp.bfloat16), w_ref[...],
                       preferred_element_type=jnp.float32)
        acc = part if acc is None else acc + part

    y_ref[...] = acc.astype(y_ref.dtype)
    sum_ref[...] += jnp.sum(acc, axis=0, keepdims=True)
    sq_ref[...] += jnp.sum(acc * acc, axis=0, keepdims=True)


def _conv3x3_kernel(h_ref, scale_ref, bias_ref, w_ref, o_ref, sum_ref, sq_ref, pad_ref,
                    *, h, w, ci, g):
    """Fused BN2(affine)+ReLU+3x3 conv (pad=1) for one image + stats of the new segment.

    h_ref: (1, H, W, Ci) bf16 (Ci lane-padded to 128); w_ref: (9*Ci, G) rows ordered (ky,kx,c);
    pad_ref: VMEM scratch (H+2, W+2, Ci) f32 — zeroed once, interior rewritten every step.
    """
    @pl.when(pl.program_id(0) == 0)
    def _():
        pad_ref[...] = jnp.zeros_like(pad_ref)      # halo border stays 0 for all steps
        sum_ref[...] = jnp.zeros_like(sum_ref)
        sq_ref[...] = jnp.zeros_like(sq_ref)

    a = jnp.maximum(h_ref[0].astype(jnp.float32) * scale_ref[...] + bias_ref[...], 0.0)
    pad_ref[1:h + 1, 1:w + 1, :] = a                # interior only; no full re-zero

    acc = jnp.zeros((h * w, g), jnp.float32)
    for t in range(9):                              # 9 shifted matmuls, K = Ci (=128)
        dy, dx = divmod(t, 3)
        patch = pad_ref[dy:dy + h, dx:dx + w, :].astype(jnp.bfloat16).reshape(h * w, ci)
        acc = acc + jnp.dot(patch, w_ref[t * ci:(t + 1) * ci, :],
                            preferred_element_type=jnp.float32)

    o_ref[0] = acc.reshape(h, w, g).astype(o_ref.dtype)
    sum_ref[...] += jnp.sum(acc, axis=0, keepdims=True)
    sq_ref[...] += jnp.sum(acc * acc, axis=0, keepdims=True)


# ----------------------------------------------------------------------------- pallas_call wrappers
def _channel_stats(x2d, tm):
    """Per-channel (sum, sumsq) over M for the original input segment (runs once)."""
    m, c = x2d.shape
    return pl.pallas_call(
        _stats_kernel,
        out_shape=(jax.ShapeDtypeStruct((1, c), jnp.float32),
                   jax.ShapeDtypeStruct((1, c), jnp.float32)),
        grid=(m // tm,),
        in_specs=[pl.BlockSpec((tm, c), lambda i: (i, 0))],
        out_specs=(pl.BlockSpec((1, c), lambda i: (0, 0)),
                   pl.BlockSpec((1, c), lambda i: (0, 0))),
        compiler_params=pltpu.CompilerParams(dimension_semantics=("arbitrary",)),
    )(x2d)


def _bn_relu_conv1x1(segs, scales, biases, w_segs, tm, co):
    m = segs[0].shape[0]
    n_seg = len(segs)
    seg_specs = [pl.BlockSpec((tm, s.shape[1]), lambda i: (i, 0)) for s in segs]
    vec_specs = [pl.BlockSpec((1, s.shape[1]), lambda i: (0, 0)) for s in segs]
    w_specs = [pl.BlockSpec((s.shape[1], co), lambda i: (0, 0)) for s in segs]
    kernel = functools.partial(_conv1x1_kernel, n_seg=n_seg)
    return pl.pallas_call(
        kernel,
        out_shape=(jax.ShapeDtypeStruct((m, co), jnp.bfloat16),   # hid (lane-padded)
                   jax.ShapeDtypeStruct((1, co), jnp.float32),    # BN2 sum
                   jax.ShapeDtypeStruct((1, co), jnp.float32)),   # BN2 sumsq
        grid=(m // tm,),
        in_specs=seg_specs + vec_specs + vec_specs + w_specs,
        out_specs=(pl.BlockSpec((tm, co), lambda i: (i, 0)),
                   pl.BlockSpec((1, co), lambda i: (0, 0)),
                   pl.BlockSpec((1, co), lambda i: (0, 0))),
        compiler_params=pltpu.CompilerParams(dimension_semantics=("arbitrary",)),
    )(*segs, *scales, *biases, *w_segs)


def _bn_relu_conv3x3(hid4, scale, bias, w2, g_pad):
    n, h, w, ci = hid4.shape
    kernel = functools.partial(_conv3x3_kernel, h=h, w=w, ci=ci, g=g_pad)
    return pl.pallas_call(
        kernel,
        out_shape=(jax.ShapeDtypeStruct((n, h, w, g_pad), jnp.bfloat16),
                   jax.ShapeDtypeStruct((1, g_pad), jnp.float32),
                   jax.ShapeDtypeStruct((1, g_pad), jnp.float32)),
        grid=(n,),
        in_specs=[pl.BlockSpec((1, h, w, ci), lambda i: (i, 0, 0, 0)),
                  pl.BlockSpec((1, ci), lambda i: (0, 0)),
                  pl.BlockSpec((1, ci), lambda i: (0, 0)),
                  pl.BlockSpec((9 * ci, g_pad), lambda i: (0, 0))],
        out_specs=(pl.BlockSpec((1, h, w, g_pad), lambda i: (i, 0, 0, 0)),
                   pl.BlockSpec((1, g_pad), lambda i: (0, 0)),
                   pl.BlockSpec((1, g_pad), lambda i: (0, 0))),
        scratch_shapes=[pltpu.VMEM((h + 2, w + 2, ci), jnp.float32)],
        compiler_params=pltpu.CompilerParams(dimension_semantics=("arbitrary",)),
    )(hid4, scale, bias, w2)


# ----------------------------------------------------------------------------- module forward
def dense_block(x_nchw, params, *, tile_m=None):
    """DenseBlock forward. x_nchw: (N, Cin, H, W); params: list of per-block dicts."""
    n, cin, hh, ww = x_nchw.shape
    m = n * hh * ww
    tm = tile_m if tile_m is not None else _pick_tile_m(m)
    assert m % tm == 0

    # Channels-last once; bf16 storage for all activation segments.
    x = jnp.transpose(x_nchw, (0, 2, 3, 1)).astype(jnp.bfloat16)

    # Dense connectivity as segments: no per-block concat, stats cached per segment.
    segs = [x.reshape(m, cin)]
    seg_sizes = [cin]
    seg_stats = [_channel_stats(segs[0], tm)]

    for p in params:
        inter = p["w1"].shape[0]
        g_real = p["w2"].shape[0]
        inter_pad = _round_up(inter, _LANE)
        g_pad = _round_up(g_real, _LANE)

        # ---- BN1: fold cached per-segment stats into per-channel scale/bias.
        scales, biases = [], []
        off = 0
        for (ssum, ssq), c in zip(seg_stats, seg_sizes):
            sc, bi = _fold_bn(ssum, ssq, m, p["gamma1"][off:off + c], p["beta1"][off:off + c])
            scales.append(sc)
            biases.append(bi)
            off += c

        # ---- 1x1 weights: (C_total, inter_pad) lane-dense, split per segment.
        w1_full = p["w1"].reshape(inter, -1).T
        w1_full = jnp.pad(w1_full, ((0, 0), (0, inter_pad - inter))).astype(jnp.bfloat16)
        w1_segs = []
        off = 0
        for c in seg_sizes:
            w1_segs.append(w1_full[off:off + c, :])
            off += c

        # ---- Fused BN1+ReLU+1x1 conv; BN2 statistics come out of the same pass.
        hid, s2, q2 = _bn_relu_conv1x1(segs, scales, biases, w1_segs, tm, inter_pad)

        # ---- BN2 fold (real channels; padded channels are exactly 0 -> scale=bias=0).
        scale2, bias2 = _fold_bn(s2[:, :inter], q2[:, :inter], m, p["gamma2"], p["beta2"])
        scale2 = jnp.pad(scale2, ((0, 0), (0, inter_pad - inter)))
        bias2 = jnp.pad(bias2, ((0, 0), (0, inter_pad - inter)))

        # ---- 3x3 weights: (ky, kx, c_in, c_out) -> (9*inter_pad, g_pad), zero-padded.
        w2 = jnp.transpose(p["w2"], (2, 3, 1, 0))
        w2 = jnp.pad(w2, ((0, 0), (0, 0), (0, inter_pad - inter), (0, g_pad - g_real)))
        w2 = w2.reshape(9 * inter_pad, g_pad).astype(jnp.bfloat16)

        # ---- Fused BN2+ReLU+3x3 conv (pad=1); new segment's BN stats from its f32 acc.
        out4, so, qo = _bn_relu_conv3x3(hid.reshape(n, hh, ww, inter_pad), scale2, bias2, w2, g_pad)
        # TODO(synk): dropout omitted (identity) — stochastic training-time op.

        segs.append(out4[..., :g_real].reshape(m, g_real))      # strip lane padding
        seg_sizes.append(g_real)
        seg_stats.append((so[:, :g_real], qo[:, :g_real]))      # cached for later BN1 folds

    full = jnp.concatenate(segs, axis=-1).reshape(n, hh, ww, sum(seg_sizes))
    return jnp.transpose(full, (0, 3, 1, 2)).astype(jnp.float32)


# ----------------------------------------------------------------------------- reference
def _reference(x_nchw, params):
    """Pure-JAX mirror of the PyTorch forward (training-mode BN, dropout=identity)."""
    def bn(v, gamma, beta):
        mean = jnp.mean(v, axis=(0, 2, 3), keepdims=True)
        var = jnp.mean((v - mean) ** 2, axis=(0, 2, 3), keepdims=True)
        return ((v - mean) * lax.rsqrt(var + _EPS)
                * gamma.reshape(1, -1, 1, 1) + beta.reshape(1, -1, 1, 1))

    x = x_nchw.astype(jnp.float32)
    for p in params:
        h1 = jnp.maximum(bn(x, p["gamma1"], p["beta1"]), 0.0)
        h1 = lax.conv_general_dilated(h1, p["w1"].astype(jnp.float32), (1, 1), "VALID",
                                      dimension_numbers=("NCHW", "OIHW", "NCHW"))
        h2 = jnp.maximum(bn(h1, p["gamma2"], p["beta2"]), 0.0)
        h2 = lax.conv_general_dilated(h2, p["w2"].astype(jnp.float32), (1, 1),
                                      ((1, 1), (1, 1)),
                                      dimension_numbers=("NCHW", "OIHW", "NCHW"))
        x = jnp.concatenate([x, h2], axis=1)
    return x


# ----------------------------------------------------------------------------- main
if __name__ == "__main__":
    key = jax.random.PRNGKey(0)

    n, cin, hsp, wsp = 2, 4, 16, 16      # small NCHW input
    growth, depth = 8, 2                 # two bottleneck blocks
    inter = 3 * growth                   # num_bn=3 default

    params = []
    cur = cin
    for i in range(depth):
        ks = jax.random.split(jax.random.fold_in(key, i), 6)
        params.append(dict(
            gamma1=1.0 + 0.1 * jax.random.normal(ks[0], (cur,), jnp.float32),
            beta1=0.1 * jax.random.normal(ks[1], (cur,), jnp.float32),
            w1=jax.random.normal(ks[2], (inter, cur, 1, 1), jnp.float32)
                / jnp.sqrt(float(cur)),
            gamma2=1.0 + 0.1 * jax.random.normal(ks[3], (inter,), jnp.float32),
            beta2=0.1 * jax.random.normal(ks[4], (inter,), jnp.float32),
            w2=jax.random.normal(ks[5], (growth, inter, 3, 3), jnp.float32)
                / jnp.sqrt(9.0 * inter),
        ))
        cur += growth

    x = jax.random.normal(jax.random.fold_in(key, 100), (n, cin, hsp, wsp), jnp.float32)

    # tile_m=128 forces a multi-tile grid (M=512 -> 4 steps) so the accumulated-stats and
    # pipelined matmul paths are exercised; at real sizes the auto-picker uses 512-1024 rows.
    fwd = jax.jit(functools.partial(dense_block, tile_m=128))
    out = jax.block_until_ready(fwd(x, params))
    ref = _reference(x, params)

    assert out.shape == (n, cin + depth * growth, hsp, wsp), out.shape
    err = float(jnp.max(jnp.abs(out - ref)))
    assert jnp.allclose(out, ref, rtol=5e-2, atol=5e-2), f"max abs err {err}"
    print("KERNEL_OK")
</pallas_src>

<mosaic_0001>
module attributes {stable_mosaic.version = 11 : i64} {
  func.func @_conv1x1_kernel(%arg0: i32, %arg1: memref<128x4xbf16, #tpu.memory_space<vmem>>, %arg2: memref<1x4xf32, #tpu.memory_space<vmem>>, %arg3: memref<1x4xf32, #tpu.memory_space<vmem>>, %arg4: memref<4x128xbf16, #tpu.memory_space<vmem>>, %arg5: memref<128x128xbf16, #tpu.memory_space<vmem>>, %arg6: memref<1x128xf32, #tpu.memory_space<vmem>>, %arg7: memref<1x128xf32, #tpu.memory_space<vmem>>) attributes {dimension_semantics = [#tpu.dimension_semantics<arbitrary>], iteration_bounds = array<i64: 4>, scalar_prefetch = 0 : i64, scratch_operands = 0 : i64, tpu.core_type = #tpu.core_type<tc>, window_params = [{transform_indices = @transform_0, window_bounds = array<i64: 128, 4>}, {pipeline_mode = #tpu.pipeline_mode<synchronous>, transform_indices = @transform_1, window_bounds = array<i64: 1, 4>}, {pipeline_mode = #tpu.pipeline_mode<synchronous>, transform_indices = @transform_2, window_bounds = array<i64: 1, 4>}, {pipeline_mode = #tpu.pipeline_mode<synchronous>, transform_indices = @transform_3, window_bounds = array<i64: 4, 128>}, {transform_indices = @transform_4, window_bounds = array<i64: 128, 128>}, {pipeline_mode = #tpu.pipeline_mode<synchronous>, transform_indices = @transform_5, window_bounds = array<i64: 1, 128>}, {pipeline_mode = #tpu.pipeline_mode<synchronous>, transform_indices = @transform_6, window_bounds = array<i64: 1, 128>}]} {
    %c0_i32 = arith.constant 0 : i32
    %0 = arith.cmpi eq, %arg0, %c0_i32 : i32
    %1 = arith.extui %0 : i1 to i32
    %c0_i32_0 = arith.constant 0 : i32
    %2 = arith.cmpi ne, %1, %c0_i32_0 : i32
    scf.if %2 {
      %cst_21 = arith.constant 0.000000e+00 : f32
      %29 = vector.broadcast %cst_21 : f32 to vector<1x128xf32>
      %c0_22 = arith.constant 0 : index
      %c0_23 = arith.constant 0 : index
      %30 = vector.load %arg6[%c0_22, %c0_23] : memref<1x128xf32, #tpu.memory_space<vmem>>, vector<1x128xf32>
      tpu.vector_store %arg6[%c0_22, %c0_23], %29 {strides = array<i32>} : memref<1x128xf32, #tpu.memory_space<vmem>>, vector<1x128xf32>,
      %cst_24 = arith.constant 0.000000e+00 : f32
      %31 = vector.broadcast %cst_24 : f32 to vector<1x128xf32>
      %c0_25 = arith.constant 0 : index
      %c0_26 = arith.constant 0 : index
      %32 = vector.load %arg7[%c0_25, %c0_26] : memref<1x128xf32, #tpu.memory_space<vmem>>, vector<1x128xf32>
      tpu.vector_store %arg7[%c0_25, %c0_26], %31 {strides = array<i32>} : memref<1x128xf32, #tpu.memory_space<vmem>>, vector<1x128xf32>,
    } else {
    }
    %c0 = arith.constant 0 : index
    %c0_1 = arith.constant 0 : index
    %3 = vector.load %arg1[%c0, %c0_1] : memref<128x4xbf16, #tpu.memory_space<vmem>>, vector<128x4xbf16>
    %4 = arith.extf %3 : vector<128x4xbf16> to vector<128x4xf32>
    %c0_2 = arith.constant 0 : index
    %c0_3 = arith.constant 0 : index
    %5 = vector.load %arg2[%c0_2, %c0_3] : memref<1x4xf32, #tpu.memory_space<vmem>>, vector<1x4xf32>
    %6 = vector.broadcast %5 : vector<1x4xf32> to vector<128x4xf32>
    %7 = arith.mulf %4, %6 : vector<128x4xf32>
    %c0_4 = arith.constant 0 : index
    %c0_5 = arith.constant 0 : index
    %8 = vector.load %arg3[%c0_4, %c0_5] : memref<1x4xf32, #tpu.memory_space<vmem>>, vector<1x4xf32>
    %9 = vector.broadcast %8 : vector<1x4xf32> to vector<128x4xf32>
    %10 = arith.addf %7, %9 : vector<128x4xf32>
    %cst = arith.constant 0.000000e+00 : f32
    %11 = vector.broadcast %cst : f32 to vector<128x4xf32>
    %12 = arith.maximumf %10, %11 : vector<128x4xf32>
    %13 = arith.truncf %12 : vector<128x4xf32> to vector<128x4xbf16>
    %c0_6 = arith.constant 0 : index
    %c0_7 = arith.constant 0 : index
    %14 = vector.load %arg4[%c0_6, %c0_7] : memref<4x128xbf16, #tpu.memory_space<vmem>>, vector<4x128xbf16>
    %cst_8 = arith.constant dense<0.000000e+00> : vector<128x128xf32>
    %15 = tpu.matmul %13, %14, %cst_8 {dimension_numbers = #tpu.dot_dimension_numbers<[1], [0], [0], [1], [0, 0, 1, 1], [], []>} : vector<128x4xbf16>, vector<4x128xbf16>, vector<128x128xf32> -> vector<128x128xf32>
    %16 = arith.truncf %15 : vector<128x128xf32> to vector<128x128xbf16>
    %c0_9 = arith.constant 0 : index
    %c0_10 = arith.constant 0 : index
    %17 = vector.load %arg5[%c0_9, %c0_10] : memref<128x128xbf16, #tpu.memory_space<vmem>>, vector<128x128xbf16>
    tpu.vector_store %arg5[%c0_9, %c0_10], %16 {strides = array<i32>} : memref<128x128xbf16, #tpu.memory_space<vmem>>, vector<128x128xbf16>,
    %c0_11 = arith.constant 0 : index
    %c0_12 = arith.constant 0 : index
    %18 = vector.load %arg6[%c0_11, %c0_12] : memref<1x128xf32, #tpu.memory_space<vmem>>, vector<1x128xf32>
    %cst_13 = arith.constant dense<0.000000e+00> : vector<128xf32>
    %19 = vector.multi_reduction <add>, %15, %cst_13 [0] : vector<128x128xf32> to vector<128xf32>
    %20 = vector.shape_cast %19 : vector<128xf32> to vector<1x128xf32>
    %21 = arith.addf %18, %20 : vector<1x128xf32>
    %c0_14 = arith.constant 0 : index
    %c0_15 = arith.constant 0 : index
    %22 = vector.load %arg6[%c0_14, %c0_15] : memref<1x128xf32, #tpu.memory_space<vmem>>, vector<1x128xf32>
    tpu.vector_store %arg6[%c0_14, %c0_15], %21 {strides = array<i32>} : memref<1x128xf32, #tpu.memory_space<vmem>>, vector<1x128xf32>,
    %c0_16 = arith.constant 0 : index
    %c0_17 = arith.constant 0 : index
    %23 = vector.load %arg7[%c0_16, %c0_17] : memref<1x128xf32, #tpu.memory_space<vmem>>, vector<1x128xf32>
    %24 = arith.mulf %15, %15 : vector<128x128xf32>
    %cst_18 = arith.constant dense<0.000000e+00> : vector<128xf32>
    %25 = vector.multi_reduction <add>, %24, %cst_18 [0] : vector<128x128xf32> to vector<128xf32>
    %26 = vector.shape_cast %25 : vector<128xf32> to vector<1x128xf32>
    %27 = arith.addf %23, %26 : vector<1x128xf32>
    %c0_19 = arith.constant 0 : index
    %c0_20 = arith.constant 0 : index
    %28 = vector.load %arg7[%c0_19, %c0_20] : memref<1x128xf32, #tpu.memory_space<vmem>>, vector<1x128xf32>
    tpu.vector_store %arg7[%c0_19, %c0_20], %27 {strides = array<i32>} : memref<1x128xf32, #tpu.memory_space<vmem>>, vector<1x128xf32>,
    return
  }
  func.func @transform_0(%arg0: i32) -> (i32, i32) {
    %c0_i32 = arith.constant 0 : i32
    %c0_i32_0 = arith.constant 0 : i32
    return %arg0, %c0_i32 : i32, i32
  }
  func.func @transform_1(%arg0: i32) -> (i32, i32) {
    %c0_i32 = arith.constant 0 : i32
    %c0_i32_0 = arith.constant 0 : i32
    %c0_i32_1 = arith.constant 0 : i32
    return %c0_i32, %c0_i32_0 : i32, i32
  }
  func.func @transform_2(%arg0: i32) -> (i32, i32) {
    %c0_i32 = arith.constant 0 : i32
    %c0_i32_0 = arith.constant 0 : i32
    %c0_i32_1 = arith.constant 0 : i32
    return %c0_i32, %c0_i32_0 : i32, i32
  }
  func.func @transform_3(%arg0: i32) -> (i32, i32) {
    %c0_i32 = arith.constant 0 : i32
    %c0_i32_0 = arith.constant 0 : i32
    %c0_i32_1 = arith.constant 0 : i32
    return %c0_i32, %c0_i32_0 : i32, i32
  }
  func.func @transform_4(%arg0: i32) -> (i32, i32) {
    %c0_i32 = arith.constant 0 : i32
    %c0_i32_0 = arith.constant 0 : i32
    return %arg0, %c0_i32 : i32, i32
  }
  func.func @transform_5(%arg0: i32) -> (i32, i32) {
    %c0_i32 = arith.constant 0 : i32
    %c0_i32_0 = arith.constant 0 : i32
    %c0_i32_1 = arith.constant 0 : i32
    return %c0_i32, %c0_i32_0 : i32, i32
  }
  func.func @transform_6(%arg0: i32) -> (i32, i32) {
    %c0_i32 = arith.constant 0 : i32
    %c0_i32_0 = arith.constant 0 : i32
    %c0_i32_1 = arith.constant 0 : i32
    return %c0_i32, %c0_i32_0 : i32, i32
  }
}

module attributes {stable_mosaic.version = 11 : i64} {
  func.func @_conv3x3_kernel(%arg0: i32, %arg1: memref<1x16x16x128xbf16, #tpu.memory_space<vmem>>, %arg2: memref<1x128xf32, #tpu.memory_space<vmem>>, %arg3: memref<1x128xf32, #tpu.memory_space<vmem>>, %arg4: memref<1152x128xbf16, #tpu.memory_space<vmem>>, %arg5: memref<1x16x16x128xbf16, #tpu.memory_space<vmem>>, %arg6: memref<1x128xf32, #tpu.memory_space<vmem>>, %arg7: memref<1x128xf32, #tpu.memory_space<vmem>>, %arg8: memref<18x18x128xf32, #tpu.memory_space<vmem>>) attributes {dimension_semantics = [#tpu.dimension_semantics<arbitrary>], iteration_bounds = array<i64: 2>, scalar_prefetch = 0 : i64, scratch_operands = 1 : i64, tpu.core_type = #tpu.core_type<tc>, window_params = [{transform_indices = @transform_0, window_bounds = array<i64: 1, 16, 16, 128>}, {pipeline_mode = #tpu.pipeline_mode<synchronous>, transform_indices = @transform_1, window_bounds = array<i64: 1, 128>}, {pipeline_mode = #tpu.pipeline_mode<synchronous>, transform_indices = @transform_2, window_bounds = array<i64: 1, 128>}, {pipeline_mode = #tpu.pipeline_mode<synchronous>, transform_indices = @transform_3, window_bounds = array<i64: 1152, 128>}, {transform_indices = @transform_4, window_bounds = array<i64: 1, 16, 16, 128>}, {pipeline_mode = #tpu.pipeline_mode<synchronous>, transform_indices = @transform_5, window_bounds = array<i64: 1, 128>}, {pipeline_mode = #tpu.pipeline_mode<synchronous>, transform_indices = @transform_6, window_bounds = array<i64: 1, 128>}]} {
    %c0_i32 = arith.constant 0 : i32
    %0 = arith.cmpi eq, %arg0, %c0_i32 : i32
    %1 = arith.extui %0 : i1 to i32
    %c0_i32_0 = arith.constant 0 : i32
    %2 = arith.cmpi ne, %1, %c0_i32_0 : i32
    scf.if %2 {
      %cst_70 = arith.constant 0.000000e+00 : f32
      %88 = vector.broadcast %cst_70 : f32 to vector<18x18x128xf32>
      %c0_71 = arith.constant 0 : index
      %c0_72 = arith.constant 0 : index
      %c0_73 = arith.constant 0 : index
      %89 = vector.load %arg8[%c0_71, %c0_72, %c0_73] : memref<18x18x128xf32, #tpu.memory_space<vmem>>, vector<18x18x128xf32>
      tpu.vector_store %arg8[%c0_71, %c0_72, %c0_73], %88 {strides = array<i32>} : memref<18x18x128xf32, #tpu.memory_space<vmem>>, vector<18x18x128xf32>,
      %cst_74 = arith.constant 0.000000e+00 : f32
      %90 = vector.broadcast %cst_74 : f32 to vector<1x128xf32>
      %c0_75 = arith.constant 0 : index
      %c0_76 = arith.constant 0 : index
      %91 = vector.load %arg6[%c0_75, %c0_76] : memref<1x128xf32, #tpu.memory_space<vmem>>, vector<1x128xf32>
      tpu.vector_store %arg6[%c0_75, %c0_76], %90 {strides = array<i32>} : memref<1x128xf32, #tpu.memory_space<vmem>>, vector<1x128xf32>,
      %cst_77 = arith.constant 0.000000e+00 : f32
      %92 = vector.broadcast %cst_77 : f32 to vector<1x128xf32>
      %c0_78 = arith.constant 0 : index
      %c0_79 = arith.constant 0 : index
      %93 = vector.load %arg7[%c0_78, %c0_79] : memref<1x128xf32, #tpu.memory_space<vmem>>, vector<1x128xf32>
      tpu.vector_store %arg7[%c0_78, %c0_79], %92 {strides = array<i32>} : memref<1x128xf32, #tpu.memory_space<vmem>>, vector<1x128xf32>,
    } else {
    }
    %c0 = arith.constant 0 : index
    %c0_1 = arith.constant 0 : index
    %c0_2 = arith.constant 0 : index
    %c0_3 = arith.constant 0 : index
    %3 = vector.load %arg1[%c0, %c0_1, %c0_2, %c0_3] : memref<1x16x16x128xbf16, #tpu.memory_space<vmem>>, vector<1x16x16x128xbf16>
    %4 = vector.shape_cast %3 : vector<1x16x16x128xbf16> to vector<16x16x128xbf16>
    %5 = arith.extf %4 : vector<16x16x128xbf16> to vector<16x16x128xf32>
    %c0_4 = arith.constant 0 : index
    %c0_5 = arith.constant 0 : index
    %6 = vector.load %arg2[%c0_4, %c0_5] : memref<1x128xf32, #tpu.memory_space<vmem>>, vector<1x128xf32>
    %7 = vector.shape_cast %6 : vector<1x128xf32> to vector<1x1x128xf32>
    %8 = vector.broadcast %7 : vector<1x1x128xf32> to vector<16x16x128xf32>
    %9 = arith.mulf %5, %8 : vector<16x16x128xf32>
    %c0_6 = arith.constant 0 : index
    %c0_7 = arith.constant 0 : index
    %10 = vector.load %arg3[%c0_6, %c0_7] : memref<1x128xf32, #tpu.memory_space<vmem>>, vector<1x128xf32>
    %11 = vector.shape_cast %10 : vector<1x128xf32> to vector<1x1x128xf32>
    %12 = vector.broadcast %11 : vector<1x1x128xf32> to vector<16x16x128xf32>
    %13 = arith.addf %9, %12 : vector<16x16x128xf32>
    %cst = arith.constant 0.000000e+00 : f32
    %14 = vector.broadcast %cst : f32 to vector<16x16x128xf32>
    %15 = arith.maximumf %13, %14 : vector<16x16x128xf32>
    %c1 = arith.constant 1 : index
    %c1_8 = arith.constant 1 : index
    %c0_9 = arith.constant 0 : index
    %16 = vector.load %arg8[%c1, %c1_8, %c0_9] : memref<18x18x128xf32, #tpu.memory_space<vmem>>, vector<16x16x128xf32>
    tpu.vector_store %arg8[%c1, %c1_8, %c0_9], %15 {strides = array<i32>} : memref<18x18x128xf32, #tpu.memory_space<vmem>>, vector<16x16x128xf32>,
    %cst_10 = arith.constant 0.000000e+00 : f32
    %17 = vector.broadcast %cst_10 : f32 to vector<256x128xf32>
    %c0_11 = arith.constant 0 : index
    %c0_12 = arith.constant 0 : index
    %c0_13 = arith.constant 0 : index
    %18 = vector.load %arg8[%c0_11, %c0_12, %c0_13] : memref<18x18x128xf32, #tpu.memory_space<vmem>>, vector<16x16x128xf32>
    %19 = arith.truncf %18 : vector<16x16x128xf32> to vector<16x16x128xbf16>
    %20 = vector.shape_cast %19 : vector<16x16x128xbf16> to vector<256x128xbf16>
    %c0_14 = arith.constant 0 : index
    %c0_15 = arith.constant 0 : index
    %21 = vector.load %arg4[%c0_14, %c0_15] : memref<1152x128xbf16, #tpu.memory_space<vmem>>, vector<128x128xbf16>
    %cst_16 = arith.constant dense<0.000000e+00> : vector<256x128xf32>
    %22 = tpu.matmul %20, %21, %cst_16 {dimension_numbers = #tpu.dot_dimension_numbers<[1], [0], [0], [1], [0, 0, 1, 1], [], []>} : vector<256x128xbf16>, vector<128x128xbf16>, vector<256x128xf32> -> vector<256x128xf32>
    %23 = arith.addf %17, %22 : vector<256x128xf32>
    %c0_17 = arith.constant 0 : index
    %c1_18 = arith.constant 1 : index
    %c0_19 = arith.constant 0 : index
    %24 = vector.load %arg8[%c0_17, %c1_18, %c0_19] : memref<18x18x128xf32, #tpu.memory_space<vmem>>, vector<16x16x128xf32>
    %25 = arith.truncf %24 : vector<16x16x128xf32> to vector<16x16x128xbf16>
    %26 = vector.shape_cast %25 : vector<16x16x128xbf16> to vector<256x128xbf16>
    %c128 = arith.constant 128 : index
    %c0_20 = arith.constant 0 : index
    %27 = vector.load %arg4[%c128, %c0_20] : memref<1152x128xbf16, #tpu.memory_space<vmem>>, vector<128x128xbf16>
    %cst_21 = arith.constant dense<0.000000e+00> : vector<256x128xf32>
    %28 = tpu.matmul %26, %27, %cst_21 {dimension_numbers = #tpu.dot_dimension_numbers<[1], [0], [0], [1], [0, 0, 1, 1], [], []>} : vector<256x128xbf16>, vector<128x128xbf16>, vector<256x128xf32> -> vector<256x128xf32>
    %29 = arith.addf %23, %28 : vector<256x128xf32>
    %c0_22 = arith.constant 0 : index
    %c2 = arith.constant 2 : index
    %c0_23 = arith.constant 0 : index
    %30 = vector.load %arg8[%c0_22, %c2, %c0_23] : memref<18x18x128xf32, #tpu.memory_space<vmem>>, vector<16x16x128xf32>
    %31 = arith.truncf %30 : vector<16x16x128xf32> to vector<16x16x128xbf16>
    %32 = vector.shape_cast %31 : vector<16x16x128xbf16> to vector<256x128xbf16>
    %c256 = arith.constant 256 : index
    %c0_24 = arith.constant 0 : index
    %33 = vector.load %arg4[%c256, %c0_24] : memref<1152x128xbf16, #tpu.memory_space<vmem>>, vector<128x128xbf16>
    %cst_25 = arith.constant dense<0.000000e+00> : vector<256x128xf32>
    %34 = tpu.matmul %32, %33, %cst_25 {dimension_numbers = #tpu.dot_dimension_numbers<[1], [0], [0], [1], [0, 0, 1, 1], [], []>} : vector<256x128xbf16>, vector<128x128xbf16>, vector<256x128xf32> -> vector<256x128xf32>
    %35 = arith.addf %29, %34 : vector<256x128xf32>
    %c1_26 = arith.constant 1 : index
    %c0_27 = arith.constant 0 : index
    %c0_28 = arith.constant 0 : index
    %36 = vector.load %arg8[%c1_26, %c0_27, %c0_28] : memref<18x18x128xf32, #tpu.memory_space<vmem>>, vector<16x16x128xf32>
    %37 = arith.truncf %36 : vector<16x16x128xf32> to vector<16x16x128xbf16>
    %38 = vector.shape_cast %37 : vector<16x16x128xbf16> to vector<256x128xbf16>
    %c384 = arith.constant 384 : index
    %c0_29 = arith.constant 0 : index
    %39 = vector.load %arg4[%c384, %c0_29] : memref<1152x128xbf16, #tpu.memory_space<vmem>>, vector<128x128xbf16>
    %cst_30 = arith.constant dense<0.000000e+00> : vector<256x128xf32>
    %40 = tpu.matmul %38, %39, %cst_30 {dimension_numbers = #tpu.dot_dimension_numbers<[1], [0], [0], [1], [0, 0, 1, 1], [], []>} : vector<256x128xbf16>, vector<128x128xbf16>, vector<256x128xf32> -> vector<256x128xf32>
    %41 = arith.addf %35, %40 : vector<256x128xf32>
    %c1_31 = arith.constant 1 : index
    %c1_32 = arith.constant 1 : index
    %c0_33 = arith.constant 0 : index
    %42 = vector.load %arg8[%c1_31, %c1_32, %c0_33] : memref<18x18x128xf32, #tpu.memory_space<vmem>>, vector<16x16x128xf32>
    %43 = arith.truncf %42 : vector<16x16x128xf32> to vector<16x16x128xbf16>
    %44 = vector.shape_cast %43 : vector<16x16x128xbf16> to vector<256x128xbf16>
    %c512 = arith.constant 512 : index
    %c0_34 = arith.constant 0 : index
    %45 = vector.load %arg4[%c512, %c0_34] : memref<1152x128xbf16, #tpu.memory_space<vmem>>, vector<128x128xbf16>
    %cst_35 = arith.constant dense<0.000000e+00> : vector<256x128xf32>
    %46 = tpu.matmul %44, %45, %cst_35 {dimension_numbers = #tpu.dot_dimension_numbers<[1], [0], [0], [1], [0, 0, 1, 1], [], []>} : vector<256x128xbf16>, vector<128x128xbf16>, vector<256x128xf32> -> vector<256x128xf32>
    %47 = arith.addf %41, %46 : vector<256x128xf32>
    %c1_36 = arith.constant 1 : index
    %c2_37 = arith.constant 2 : index
    %c0_38 = arith.constant 0 : index
    %48 = vector.load %arg8[%c1_36, %c2_37, %c0_38] : memref<18x18x128xf32, #tpu.memory_space<vmem>>, vector<16x16x128xf32>
    %49 = arith.truncf %48 : vector<16x16x128xf32> to vector<16x16x128xbf16>
    %50 = vector.shape_cast %49 : vector<16x16x128xbf16> to vector<256x128xbf16>
    %c640 = arith.constant 640 : index
    %c0_39 = arith.constant 0 : index
    %51 = vector.load %arg4[%c640, %c0_39] : memref<1152x128xbf16, #tpu.memory_space<vmem>>, vector<128x128xbf16>
    %cst_40 = arith.constant dense<0.000000e+00> : vector<256x128xf32>
    %52 = tpu.matmul %50, %51, %cst_40 {dimension_numbers = #tpu.dot_dimension_numbers<[1], [0], [0], [1], [0, 0, 1, 1], [], []>} : vector<256x128xbf16>, vector<128x128xbf16>, vector<256x128xf32> -> vector<256x128xf32>
    %53 = arith.addf %47, %52 : vector<256x128xf32>
    %c2_41 = arith.constant 2 : index
    %c0_42 = arith.constant 0 : index
    %c0_43 = arith.constant 0 : index
    %54 = vector.load %arg8[%c2_41, %c0_42, %c0_43] : memref<18x18x128xf32, #tpu.memory_space<vmem>>, vector<16x16x128xf32>
    %55 = arith.truncf %54 : vector<16x16x128xf32> to vector<16x16x128xbf16>
    %56 = vector.shape_cast %55 : vector<16x16x128xbf16> to vector<256x128xbf16>
    %c768 = arith.constant 768 : index
    %c0_44 = arith.constant 0 : index
    %57 = vector.load %arg4[%c768, %c0_44] : memref<1152x128xbf16, #tpu.memory_space<vmem>>, vector<128x128xbf16>
    %cst_45 = arith.constant dense<0.000000e+00> : vector<256x128xf32>
    %58 = tpu.matmul %56, %57, %cst_45 {dimension_numbers = #tpu.dot_dimension_numbers<[1], [0], [0], [1], [0, 0, 1, 1], [], []>} : vector<256x128xbf16>, vector<128x128xbf16>, vector<256x128xf32> -> vector<256x128xf32>
    %59 = arith.addf %53, %58 : vector<256x128xf32>
    %c2_46 = arith.constant 2 : index
    %c1_47 = arith.constant 1 : index
    %c0_48 = arith.constant 0 : index
    %60 = vector.load %arg8[%c2_46, %c1_47, %c0_48] : memref<18x18x128xf32, #tpu.memory_space<vmem>>, vector<16x16x128xf32>
    %61 = arith.truncf %60 : vector<16x16x128xf32> to vector<16x16x128xbf16>
    %62 = vector.shape_cast %61 : vector<16x16x128xbf16> to vector<256x128xbf16>
    %c896 = arith.constant 896 : index
    %c0_49 = arith.constant 0 : index
    %63 = vector.load %arg4[%c896, %c0_49] : memref<1152x128xbf16, #tpu.memory_space<vmem>>, vector<128x128xbf16>
    %cst_50 = arith.constant dense<0.000000e+00> : vector<256x128xf32>
    %64 = tpu.matmul %62, %63, %cst_50 {dimension_numbers = #tpu.dot_dimension_numbers<[1], [0], [0], [1], [0, 0, 1, 1], [], []>} : vector<256x128xbf16>, vector<128x128xbf16>, vector<256x128xf32> -> vector<256x128xf32>
    %65 = arith.addf %59, %64 : vector<256x128xf32>
    %c2_51 = arith.constant 2 : index
    %c2_52 = arith.constant 2 : index
    %c0_53 = arith.constant 0 : index
    %66 = vector.load %arg8[%c2_51, %c2_52, %c0_53] : memref<18x18x128xf32, #tpu.memory_space<vmem>>, vector<16x16x128xf32>
    %67 = arith.truncf %66 : vector<16x16x128xf32> to vector<16x16x128xbf16>
    %68 = vector.shape_cast %67 : vector<16x16x128xbf16> to vector<256x128xbf16>
    %c1024 = arith.constant 1024 : index
    %c0_54 = arith.constant 0 : index
    %69 = vector.load %arg4[%c1024, %c0_54] : memref<1152x128xbf16, #tpu.memory_space<vmem>>, vector<128x128xbf16>
    %cst_55 = arith.constant dense<0.000000e+00> : vector<256x128xf32>
    %70 = tpu.matmul %68, %69, %cst_55 {dimension_numbers = #tpu.dot_dimension_numbers<[1], [0], [0], [1], [0, 0, 1, 1], [], []>} : vector<256x128xbf16>, vector<128x128xbf16>, vector<256x128xf32> -> vector<256x128xf32>
    %71 = arith.addf %65, %70 : vector<256x128xf32>
    %72 = vector.shape_cast %71 : vector<256x128xf32> to vector<16x16x128xf32>
    %73 = arith.truncf %72 : vector<16x16x128xf32> to vector<16x16x128xbf16>
    %c0_56 = arith.constant 0 : index
    %c0_57 = arith.constant 0 : index
    %c0_58 = arith.constant 0 : index
    %c0_59 = arith.constant 0 : index
    %74 = vector.load %arg5[%c0_56, %c0_57, %c0_58, %c0_59] : memref<1x16x16x128xbf16, #tpu.memory_space<vmem>>, vector<1x16x16x128xbf16>
    %75 = vector.shape_cast %74 : vector<1x16x16x128xbf16> to vector<16x16x128xbf16>
    %76 = vector.shape_cast %73 : vector<16x16x128xbf16> to vector<1x16x16x128xbf16>
    tpu.vector_store %arg5[%c0_56, %c0_57, %c0_58, %c0_59], %76 {strides = array<i32>} : memref<1x16x16x128xbf16, #tpu.memory_space<vmem>>, vector<1x16x16x128xbf16>,
    %c0_60 = arith.constant 0 : index
    %c0_61 = arith.constant 0 : index
    %77 = vector.load %arg6[%c0_60, %c0_61] : memref<1x128xf32, #tpu.memory_space<vmem>>, vector<1x128xf32>
    %cst_62 = arith.constant dense<0.000000e+00> : vector<128xf32>
    %78 = vector.multi_reduction <add>, %71, %cst_62 [0] : vector<256x128xf32> to vector<128xf32>
    %79 = vector.shape_cast %78 : vector<128xf32> to vector<1x128xf32>
    %80 = arith.addf %77, %79 : vector<1x128xf32>
    %c0_63 = arith.constant 0 : index
    %c0_64 = arith.constant 0 : index
    %81 = vector.load %arg6[%c0_63, %c0_64] : memref<1x128xf32, #tpu.memory_space<vmem>>, vector<1x128xf32>
    tpu.vector_store %arg6[%c0_63, %c0_64], %80 {strides = array<i32>} : memref<1x128xf32, #tpu.memory_space<vmem>>, vector<1x128xf32>,
    %c0_65 = arith.constant 0 : index
    %c0_66 = arith.constant 0 : index
    %82 = vector.load %arg7[%c0_65, %c0_66] : memref<1x128xf32, #tpu.memory_space<vmem>>, vector<1x128xf32>
    %83 = arith.mulf %71, %71 : vector<256x128xf32>
    %cst_67 = arith.constant dense<0.000000e+00> : vector<128xf32>
    %84 = vector.multi_reduction <add>, %83, %cst_67 [0] : vector<256x128xf32> to vector<128xf32>
    %85 = vector.shape_cast %84 : vector<128xf32> to vector<1x128xf32>
    %86 = arith.addf %82, %85 : vector<1x128xf32>
    %c0_68 = arith.constant 0 : index
    %c0_69 = arith.constant 0 : index
    %87 = vector.load %arg7[%c0_68, %c0_69] : memref<1x128xf32, #tpu.memory_space<vmem>>, vector<1x128xf32>
    tpu.vector_store %arg7[%c0_68, %c0_69], %86 {strides = array<i32>} : memref<1x128xf32, #tpu.memory_space<vmem>>, vector<1x128xf32>,
    return
  }
  func.func @transform_0(%arg0: i32) -> (i32, i32, i32, i32) {
    %c0_i32 = arith.constant 0 : i32
    %c0_i32_0 = arith.constant 0 : i32
    %c0_i32_1 = arith.constant 0 : i32
    %c0_i32_2 = arith.constant 0 : i32
    return %arg0, %c0_i32, %c0_i32_0, %c0_i32_1 : i32, i32, i32, i32
  }
  func.func @transform_1(%arg0: i32) -> (i32, i32) {
    %c0_i32 = arith.constant 0 : i32
    %c0_i32_0 = arith.constant 0 : i32
    %c0_i32_1 = arith.constant 0 : i32
    return %c0_i32, %c0_i32_0 : i32, i32
  }
  func.func @transform_2(%arg0: i32) -> (i32, i32) {
    %c0_i32 = arith.constant 0 : i32
    %c0_i32_0 = arith.constant 0 : i32
    %c0_i32_1 = arith.constant 0 : i32
    return %c0_i32, %c0_i32_0 : i32, i32
  }
  func.func @transform_3(%arg0: i32) -> (i32, i32) {
    %c0_i32 = arith.constant 0 : i32
    %c0_i32_0 = arith.constant 0 : i32
    %c0_i32_1 = arith.constant 0 : i32
    return %c0_i32, %c0_i32_0 : i32, i32
  }
  func.func @transform_4(%arg0: i32) -> (i32, i32, i32, i32) {
    %c0_i32 = arith.constant 0 : i32
    %c0_i32_0 = arith.constant 0 : i32
    %c0_i32_1 = arith.constant 0 : i32
    %c0_i32_2 = arith.constant 0 : i32
    return %arg0, %c0_i32, %c0_i32_0, %c0_i32_1 : i32, i32, i32, i32
  }
  func.func @transform_5(%arg0: i32) -> (i32, i32) {
    %c0_i32 = arith.constant 0 : i32
    %c0_i32_0 = arith.constant 0 : i32
    %c0_i32_1 = arith.constant 0 : i32
    return %c0_i32, %c0_i32_0 : i32, i32
  }
  func.func @transform_6(%arg0: i32) -> (i32, i32) {
    %c0_i32 = arith.constant 0 : i32
    %c0_i32_0 = arith.constant 0 : i32
    %c0_i32_1 = arith.constant 0 : i32
    return %c0_i32, %c0_i32_0 : i32, i32
  }
}

module attributes {stable_mosaic.version = 11 : i64} {
  func.func @_stats_kernel(%arg0: i32, %arg1: memref<128x4xbf16, #tpu.memory_space<vmem>>, %arg2: memref<1x4xf32, #tpu.memory_space<vmem>>, %arg3: memref<1x4xf32, #tpu.memory_space<vmem>>) attributes {dimension_semantics = [#tpu.dimension_semantics<arbitrary>], iteration_bounds = array<i64: 4>, scalar_prefetch = 0 : i64, scratch_operands = 0 : i64, tpu.core_type = #tpu.core_type<tc>, window_params = [{transform_indices = @transform_0, window_bounds = array<i64: 128, 4>}, {pipeline_mode = #tpu.pipeline_mode<synchronous>, transform_indices = @transform_1, window_bounds = array<i64: 1, 4>}, {pipeline_mode = #tpu.pipeline_mode<synchronous>, transform_indices = @transform_2, window_bounds = array<i64: 1, 4>}]} {
    %c0_i32 = arith.constant 0 : i32
    %0 = arith.cmpi eq, %arg0, %c0_i32 : i32
    %1 = arith.extui %0 : i1 to i32
    %c0_i32_0 = arith.constant 0 : i32
    %2 = arith.cmpi ne, %1, %c0_i32_0 : i32
    scf.if %2 {
      %cst_11 = arith.constant 0.000000e+00 : f32
      %16 = vector.broadcast %cst_11 : f32 to vector<1x4xf32>
      %c0_12 = arith.constant 0 : index
      %c0_13 = arith.constant 0 : index
      %17 = vector.load %arg2[%c0_12, %c0_13] : memref<1x4xf32, #tpu.memory_space<vmem>>, vector<1x4xf32>
      tpu.vector_store %arg2[%c0_12, %c0_13], %16 {strides = array<i32>} : memref<1x4xf32, #tpu.memory_space<vmem>>, vector<1x4xf32>,
      %cst_14 = arith.constant 0.000000e+00 : f32
      %18 = vector.broadcast %cst_14 : f32 to vector<1x4xf32>
      %c0_15 = arith.constant 0 : index
      %c0_16 = arith.constant 0 : index
      %19 = vector.load %arg3[%c0_15, %c0_16] : memref<1x4xf32, #tpu.memory_space<vmem>>, vector<1x4xf32>
      tpu.vector_store %arg3[%c0_15, %c0_16], %18 {strides = array<i32>} : memref<1x4xf32, #tpu.memory_space<vmem>>, vector<1x4xf32>,
    } else {
    }
    %c0 = arith.constant 0 : index
    %c0_1 = arith.constant 0 : index
    %3 = vector.load %arg1[%c0, %c0_1] : memref<128x4xbf16, #tpu.memory_space<vmem>>, vector<128x4xbf16>
    %4 = arith.extf %3 : vector<128x4xbf16> to vector<128x4xf32>
    %c0_2 = arith.constant 0 : index
    %c0_3 = arith.constant 0 : index
    %5 = vector.load %arg2[%c0_2, %c0_3] : memref<1x4xf32, #tpu.memory_space<vmem>>, vector<1x4xf32>
    %cst = arith.constant dense<0.000000e+00> : vector<4xf32>
    %6 = vector.multi_reduction <add>, %4, %cst [0] : vector<128x4xf32> to vector<4xf32>
    %7 = vector.shape_cast %6 : vector<4xf32> to vector<1x4xf32>
    %8 = arith.addf %5, %7 : vector<1x4xf32>
    %c0_4 = arith.constant 0 : index
    %c0_5 = arith.constant 0 : index
    %9 = vector.load %arg2[%c0_4, %c0_5] : memref<1x4xf32, #tpu.memory_space<vmem>>, vector<1x4xf32>
    tpu.vector_store %arg2[%c0_4, %c0_5], %8 {strides = array<i32>} : memref<1x4xf32, #tpu.memory_space<vmem>>, vector<1x4xf32>,
    %c0_6 = arith.constant 0 : index
    %c0_7 = arith.constant 0 : index
    %10 = vector.load %arg3[%c0_6, %c0_7] : memref<1x4xf32, #tpu.memory_space<vmem>>, vector<1x4xf32>
    %11 = arith.mulf %4, %4 : vector<128x4xf32>
    %cst_8 = arith.constant dense<0.000000e+00> : vector<4xf32>
    %12 = vector.multi_reduction <add>, %11, %cst_8 [0] : vector<128x4xf32> to vector<4xf32>
    %13 = vector.shape_cast %12 : vector<4xf32> to vector<1x4xf32>
    %14 = arith.addf %10, %13 : vector<1x4xf32>
    %c0_9 = arith.constant 0 : index
    %c0_10 = arith.constant 0 : index
    %15 = vector.load %arg3[%c0_9, %c0_10] : memref<1x4xf32, #tpu.memory_space<vmem>>, vector<1x4xf32>
    tpu.vector_store %arg3[%c0_9, %c0_10], %14 {strides = array<i32>} : memref<1x4xf32, #tpu.memory_space<vmem>>, vector<1x4xf32>,
    return
  }
  func.func @transform_0(%arg0: i32) -> (i32, i32) {
    %c0_i32 = arith.constant 0 : i32
    %c0_i32_0 = arith.constant 0 : i32
    return %arg0, %c0_i32 : i32, i32
  }
  func.func @transform_1(%arg0: i32) -> (i32, i32) {
    %c0_i32 = arith.constant 0 : i32
    %c0_i32_0 = arith.constant 0 : i32
    %c0_i32_1 = arith.constant 0 : i32
    return %c0_i32, %c0_i32_0 : i32, i32
  }
  func.func @transform_2(%arg0: i32) -> (i32, i32) {
    %c0_i32 = arith.constant 0 : i32
    %c0_i32_0 = arith.constant 0 : i32
    %c0_i32_1 = arith.constant 0 : i32
    return %c0_i32, %c0_i32_0 : i32, i32
  }
}

module attributes {stable_mosaic.version = 11 : i64} {
  func.func @_conv1x1_kernel(%arg0: i32, %arg1: memref<128x4xbf16, #tpu.memory_space<vmem>>, %arg2: memref<128x8xbf16, #tpu.memory_space<vmem>>, %arg3: memref<1x4xf32, #tpu.memory_space<vmem>>, %arg4: memref<1x8xf32, #tpu.memory_space<vmem>>, %arg5: memref<1x4xf32, #tpu.memory_space<vmem>>, %arg6: memref<1x8xf32, #tpu.memory_space<vmem>>, %arg7: memref<4x128xbf16, #tpu.memory_space<vmem>>, %arg8: memref<8x128xbf16, #tpu.memory_space<vmem>>, %arg9: memref<128x128xbf16, #tpu.memory_space<vmem>>, %arg10: memref<1x128xf32, #tpu.memory_space<vmem>>, %arg11: memref<1x128xf32, #tpu.memory_space<vmem>>) attributes {dimension_semantics = [#tpu.dimension_semantics<arbitrary>], iteration_bounds = array<i64: 4>, scalar_prefetch = 0 : i64, scratch_operands = 0 : i64, tpu.core_type = #tpu.core_type<tc>, window_params = [{transform_indices = @transform_0, window_bounds = array<i64: 128, 4>}, {transform_indices = @transform_1, window_bounds = array<i64: 128, 8>}, {pipeline_mode = #tpu.pipeline_mode<synchronous>, transform_indices = @transform_2, window_bounds = array<i64: 1, 4>}, {pipeline_mode = #tpu.pipeline_mode<synchronous>, transform_indices = @transform_3, window_bounds = array<i64: 1, 8>}, {pipeline_mode = #tpu.pipeline_mode<synchronous>, transform_indices = @transform_4, window_bounds = array<i64: 1, 4>}, {pipeline_mode = #tpu.pipeline_mode<synchronous>, transform_indices = @transform_5, window_bounds = array<i64: 1, 8>}, {pipeline_mode = #tpu.pipeline_mode<synchronous>, transform_indices = @transform_6, window_bounds = array<i64: 4, 128>}, {pipeline_mode = #tpu.pipeline_mode<synchronous>, transform_indices = @transform_7, window_bounds = array<i64: 8, 128>}, {transform_indices = @transform_8, window_bounds = array<i64: 128, 128>}, {pipeline_mode = #tpu.pipeline_mode<synchronous>, transform_indices = @transform_9, window_bounds = array<i64: 1, 128>}, {pipeline_mode = #tpu.pipeline_mode<synchronous>, transform_indices = @transform_10, window_bounds = array<i64: 1, 128>}]} {
    %c0_i32 = arith.constant 0 : i32
    %0 = arith.cmpi eq, %arg0, %c0_i32 : i32
    %1 = arith.extui %0 : i1 to i32
    %c0_i32_0 = arith.constant 0 : i32
    %2 = arith.cmpi ne, %1, %c0_i32_0 : i32
    scf.if %2 {
      %cst_31 = arith.constant 0.000000e+00 : f32
      %43 = vector.broadcast %cst_31 : f32 to vector<1x128xf32>
      %c0_32 = arith.constant 0 : index
      %c0_33 = arith.constant 0 : index
      %44 = vector.load %arg10[%c0_32, %c0_33] : memref<1x128xf32, #tpu.memory_space<vmem>>, vector<1x128xf32>
      tpu.vector_store %arg10[%c0_32, %c0_33], %43 {strides = array<i32>} : memref<1x128xf32, #tpu.memory_space<vmem>>, vector<1x128xf32>,
      %cst_34 = arith.constant 0.000000e+00 : f32
      %45 = vector.broadcast %cst_34 : f32 to vector<1x128xf32>
      %c0_35 = arith.constant 0 : index
      %c0_36 = arith.constant 0 : index
      %46 = vector.load %arg11[%c0_35, %c0_36] : memref<1x128xf32, #tpu.memory_space<vmem>>, vector<1x128xf32>
      tpu.vector_store %arg11[%c0_35, %c0_36], %45 {strides = array<i32>} : memref<1x128xf32, #tpu.memory_space<vmem>>, vector<1x128xf32>,
    } else {
    }
    %c0 = arith.constant 0 : index
    %c0_1 = arith.constant 0 : index
    %3 = vector.load %arg1[%c0, %c0_1] : memref<128x4xbf16, #tpu.memory_space<vmem>>, vector<128x4xbf16>
    %4 = arith.extf %3 : vector<128x4xbf16> to vector<128x4xf32>
    %c0_2 = arith.constant 0 : index
    %c0_3 = arith.constant 0 : index
    %5 = vector.load %arg3[%c0_2, %c0_3] : memref<1x4xf32, #tpu.memory_space<vmem>>, vector<1x4xf32>
    %6 = vector.broadcast %5 : vector<1x4xf32> to vector<128x4xf32>
    %7 = arith.mulf %4, %6 : vector<128x4xf32>
    %c0_4 = arith.constant 0 : index
    %c0_5 = arith.constant 0 : index
    %8 = vector.load %arg5[%c0_4, %c0_5] : memref<1x4xf32, #tpu.memory_space<vmem>>, vector<1x4xf32>
    %9 = vector.broadcast %8 : vector<1x4xf32> to vector<128x4xf32>
    %10 = arith.addf %7, %9 : vector<128x4xf32>
    %cst = arith.constant 0.000000e+00 : f32
    %11 = vector.broadcast %cst : f32 to vector<128x4xf32>
    %12 = arith.maximumf %10, %11 : vector<128x4xf32>
    %13 = arith.truncf %12 : vector<128x4xf32> to vector<128x4xbf16>
    %c0_6 = arith.constant 0 : index
    %c0_7 = arith.constant 0 : index
    %14 = vector.load %arg7[%c0_6, %c0_7] : memref<4x128xbf16, #tpu.memory_space<vmem>>, vector<4x128xbf16>
    %cst_8 = arith.constant dense<0.000000e+00> : vector<128x128xf32>
    %15 = tpu.matmul %13, %14, %cst_8 {dimension_numbers = #tpu.dot_dimension_numbers<[1], [0], [0], [1], [0, 0, 1, 1], [], []>} : vector<128x4xbf16>, vector<4x128xbf16>, vector<128x128xf32> -> vector<128x128xf32>
    %c0_9 = arith.constant 0 : index
    %c0_10 = arith.constant 0 : index
    %16 = vector.load %arg2[%c0_9, %c0_10] : memref<128x8xbf16, #tpu.memory_space<vmem>>, vector<128x8xbf16>
    %17 = arith.extf %16 : vector<128x8xbf16> to vector<128x8xf32>
    %c0_11 = arith.constant 0 : index
    %c0_12 = arith.constant 0 : index
    %18 = vector.load %arg4[%c0_11, %c0_12] : memref<1x8xf32, #tpu.memory_space<vmem>>, vector<1x8xf32>
    %19 = vector.broadcast %18 : vector<1x8xf32> to vector<128x8xf32>
    %20 = arith.mulf %17, %19 : vector<128x8xf32>
    %c0_13 = arith.constant 0 : index
    %c0_14 = arith.constant 0 : index
    %21 = vector.load %arg6[%c0_13, %c0_14] : memref<1x8xf32, #tpu.memory_space<vmem>>, vector<1x8xf32>
    %22 = vector.broadcast %21 : vector<1x8xf32> to vector<128x8xf32>
    %23 = arith.addf %20, %22 : vector<128x8xf32>
    %cst_15 = arith.constant 0.000000e+00 : f32
    %24 = vector.broadcast %cst_15 : f32 to vector<128x8xf32>
    %25 = arith.maximumf %23, %24 : vector<128x8xf32>
    %26 = arith.truncf %25 : vector<128x8xf32> to vector<128x8xbf16>
    %c0_16 = arith.constant 0 : index
    %c0_17 = arith.constant 0 : index
    %27 = vector.load %arg8[%c0_16, %c0_17] : memref<8x128xbf16, #tpu.memory_space<vmem>>, vector<8x128xbf16>
    %cst_18 = arith.constant dense<0.000000e+00> : vector<128x128xf32>
    %28 = tpu.matmul %26, %27, %cst_18 {dimension_numbers = #tpu.dot_dimension_numbers<[1], [0], [0], [1], [0, 0, 1, 1], [], []>} : vector<128x8xbf16>, vector<8x128xbf16>, vector<128x128xf32> -> vector<128x128xf32>
    %29 = arith.addf %15, %28 : vector<128x128xf32>
    %30 = arith.truncf %29 : vector<128x128xf32> to vector<128x128xbf16>
    %c0_19 = arith.constant 0 : index
    %c0_20 = arith.constant 0 : index
    %31 = vector.load %arg9[%c0_19, %c0_20] : memref<128x128xbf16, #tpu.memory_space<vmem>>, vector<128x128xbf16>
    tpu.vector_store %arg9[%c0_19, %c0_20], %30 {strides = array<i32>} : memref<128x128xbf16, #tpu.memory_space<vmem>>, vector<128x128xbf16>,
    %c0_21 = arith.constant 0 : index
    %c0_22 = arith.constant 0 : index
    %32 = vector.load %arg10[%c0_21, %c0_22] : memref<1x128xf32, #tpu.memory_space<vmem>>, vector<1x128xf32>
    %cst_23 = arith.constant dense<0.000000e+00> : vector<128xf32>
    %33 = vector.multi_reduction <add>, %29, %cst_23 [0] : vector<128x128xf32> to vector<128xf32>
    %34 = vector.shape_cast %33 : vector<128xf32> to vector<1x128xf32>
    %35 = arith.addf %32, %34 : vector<1x128xf32>
    %c0_24 = arith.constant 0 : index
    %c0_25 = arith.constant 0 : index
    %36 = vector.load %arg10[%c0_24, %c0_25] : memref<1x128xf32, #tpu.memory_space<vmem>>, vector<1x128xf32>
    tpu.vector_store %arg10[%c0_24, %c0_25], %35 {strides = array<i32>} : memref<1x128xf32, #tpu.memory_space<vmem>>, vector<1x128xf32>,
    %c0_26 = arith.constant 0 : index
    %c0_27 = arith.constant 0 : index
    %37 = vector.load %arg11[%c0_26, %c0_27] : memref<1x128xf32, #tpu.memory_space<vmem>>, vector<1x128xf32>
    %38 = arith.mulf %29, %29 : vector<128x128xf32>
    %cst_28 = arith.constant dense<0.000000e+00> : vector<128xf32>
    %39 = vector.multi_reduction <add>, %38, %cst_28 [0] : vector<128x128xf32> to vector<128xf32>
    %40 = vector.shape_cast %39 : vector<128xf32> to vector<1x128xf32>
    %41 = arith.addf %37, %40 : vector<1x128xf32>
    %c0_29 = arith.constant 0 : index
    %c0_30 = arith.constant 0 : index
    %42 = vector.load %arg11[%c0_29, %c0_30] : memref<1x128xf32, #tpu.memory_space<vmem>>, vector<1x128xf32>
    tpu.vector_store %arg11[%c0_29, %c0_30], %41 {strides = array<i32>} : memref<1x128xf32, #tpu.memory_space<vmem>>, vector<1x128xf32>,
    return
  }
  func.func @transform_0(%arg0: i32) -> (i32, i32) {
    %c0_i32 = arith.constant 0 : i32
    %c0_i32_0 = arith.constant 0 : i32
    return %arg0, %c0_i32 : i32, i32
  }
  func.func @transform_1(%arg0: i32) -> (i32, i32) {
    %c0_i32 = arith.constant 0 : i32
    %c0_i32_0 = arith.constant 0 : i32
    return %arg0, %c0_i32 : i32, i32
  }
  func.func @transform_2(%arg0: i32) -> (i32, i32) {
    %c0_i32 = arith.constant 0 : i32
    %c0_i32_0 = arith.constant 0 : i32
    %c0_i32_1 = arith.constant 0 : i32
    return %c0_i32, %c0_i32_0 : i32, i32
  }
  func.func @transform_3(%arg0: i32) -> (i32, i32) {
    %c0_i32 = arith.constant 0 : i32
    %c0_i32_0 = arith.constant 0 : i32
    %c0_i32_1 = arith.constant 0 : i32
    return %c0_i32, %c0_i32_0 : i32, i32
  }
  func.func @transform_4(%arg0: i32) -> (i32, i32) {
    %c0_i32 = arith.constant 0 : i32
    %c0_i32_0 = arith.constant 0 : i32
    %c0_i32_1 = arith.constant 0 : i32
    return %c0_i32, %c0_i32_0 : i32, i32
  }
  func.func @transform_5(%arg0: i32) -> (i32, i32) {
    %c0_i32 = arith.constant 0 : i32
    %c0_i32_0 = arith.constant 0 : i32
    %c0_i32_1 = arith.constant 0 : i32
    return %c0_i32, %c0_i32_0 : i32, i32
  }
  func.func @transform_6(%arg0: i32) -> (i32, i32) {
    %c0_i32 = arith.constant 0 : i32
    %c0_i32_0 = arith.constant 0 : i32
    %c0_i32_1 = arith.constant 0 : i32
    return %c0_i32, %c0_i32_0 : i32, i32
  }
  func.func @transform_7(%arg0: i32) -> (i32, i32) {
    %c0_i32 = arith.constant 0 : i32
    %c0_i32_0 = arith.constant 0 : i32
    %c0_i32_1 = arith.constant 0 : i32
    return %c0_i32, %c0_i32_0 : i32, i32
  }
  func.func @transform_8(%arg0: i32) -> (i32, i32) {
    %c0_i32 = arith.constant 0 : i32
    %c0_i32_0 = arith.constant 0 : i32
    return %arg0, %c0_i32 : i32, i32
  }
  func.func @transform_9(%arg0: i32) -> (i32, i32) {
    %c0_i32 = arith.constant 0 : i32
    %c0_i32_0 = arith.constant 0 : i32
    %c0_i32_1 = arith.constant 0 : i32
    return %c0_i32, %c0_i32_0 : i32, i32
  }
  func.func @transform_10(%arg0: i32) -> (i32, i32) {
    %c0_i32 = arith.constant 0 : i32
    %c0_i32_0 = arith.constant 0 : i32
    %c0_i32_1 = arith.constant 0 : i32
    return %c0_i32, %c0_i32_0 : i32, i32
  }
}

module attributes {stable_mosaic.version = 11 : i64} {
  func.func @_conv3x3_kernel(%arg0: i32, %arg1: memref<1x16x16x128xbf16, #tpu.memory_space<vmem>>, %arg2: memref<1x128xf32, #tpu.memory_space<vmem>>, %arg3: memref<1x128xf32, #tpu.memory_space<vmem>>, %arg4: memref<1152x128xbf16, #tpu.memory_space<vmem>>, %arg5: memref<1x16x16x128xbf16, #tpu.memory_space<vmem>>, %arg6: memref<1x128xf32, #tpu.memory_space<vmem>>, %arg7: memref<1x128xf32, #tpu.memory_space<vmem>>, %arg8: memref<18x18x128xf32, #tpu.memory_space<vmem>>) attributes {dimension_semantics = [#tpu.dimension_semantics<arbitrary>], iteration_bounds = array<i64: 2>, scalar_prefetch = 0 : i64, scratch_operands = 1 : i64, tpu.core_type = #tpu.core_type<tc>, window_params = [{transform_indices = @transform_0, window_bounds = array<i64: 1, 16, 16, 128>}, {pipeline_mode = #tpu.pipeline_mode<synchronous>, transform_indices = @transform_1, window_bounds = array<i64: 1, 128>}, {pipeline_mode = #tpu.pipeline_mode<synchronous>, transform_indices = @transform_2, window_bounds = array<i64: 1, 128>}, {pipeline_mode = #tpu.pipeline_mode<synchronous>, transform_indices = @transform_3, window_bounds = array<i64: 1152, 128>}, {transform_indices = @transform_4, window_bounds = array<i64: 1, 16, 16, 128>}, {pipeline_mode = #tpu.pipeline_mode<synchronous>, transform_indices = @transform_5, window_bounds = array<i64: 1, 128>}, {pipeline_mode = #tpu.pipeline_mode<synchronous>, transform_indices = @transform_6, window_bounds = array<i64: 1, 128>}]} {
    %c0_i32 = arith.constant 0 : i32
    %0 = arith.cmpi eq, %arg0, %c0_i32 : i32
    %1 = arith.extui %0 : i1 to i32
    %c0_i32_0 = arith.constant 0 : i32
    %2 = arith.cmpi ne, %1, %c0_i32_0 : i32
    scf.if %2 {
      %cst_70 = arith.constant 0.000000e+00 : f32
      %88 = vector.broadcast %cst_70 : f32 to vector<18x18x128xf32>
      %c0_71 = arith.constant 0 : index
      %c0_72 = arith.constant 0 : index
      %c0_73 = arith.constant 0 : index
      %89 = vector.load %arg8[%c0_71, %c0_72, %c0_73] : memref<18x18x128xf32, #tpu.memory_space<vmem>>, vector<18x18x128xf32>
      tpu.vector_store %arg8[%c0_71, %c0_72, %c0_73], %88 {strides = array<i32>} : memref<18x18x128xf32, #tpu.memory_space<vmem>>, vector<18x18x128xf32>,
      %cst_74 = arith.constant 0.000000e+00 : f32
      %90 = vector.broadcast %cst_74 : f32 to vector<1x128xf32>
      %c0_75 = arith.constant 0 : index
      %c0_76 = arith.constant 0 : index
      %91 = vector.load %arg6[%c0_75, %c0_76] : memref<1x128xf32, #tpu.memory_space<vmem>>, vector<1x128xf32>
      tpu.vector_store %arg6[%c0_75, %c0_76], %90 {strides = array<i32>} : memref<1x128xf32, #tpu.memory_space<vmem>>, vector<1x128xf32>,
      %cst_77 = arith.constant 0.000000e+00 : f32
      %92 = vector.broadcast %cst_77 : f32 to vector<1x128xf32>
      %c0_78 = arith.constant 0 : index
      %c0_79 = arith.constant 0 : index
      %93 = vector.load %arg7[%c0_78, %c0_79] : memref<1x128xf32, #tpu.memory_space<vmem>>, vector<1x128xf32>
      tpu.vector_store %arg7[%c0_78, %c0_79], %92 {strides = array<i32>} : memref<1x128xf32, #tpu.memory_space<vmem>>, vector<1x128xf32>,
    } else {
    }
    %c0 = arith.constant 0 : index
    %c0_1 = arith.constant 0 : index
    %c0_2 = arith.constant 0 : index
    %c0_3 = arith.constant 0 : index
    %3 = vector.load %arg1[%c0, %c0_1, %c0_2, %c0_3] : memref<1x16x16x128xbf16, #tpu.memory_space<vmem>>, vector<1x16x16x128xbf16>
    %4 = vector.shape_cast %3 : vector<1x16x16x128xbf16> to vector<16x16x128xbf16>
    %5 = arith.extf %4 : vector<16x16x128xbf16> to vector<16x16x128xf32>
    %c0_4 = arith.constant 0 : index
    %c0_5 = arith.constant 0 : index
    %6 = vector.load %arg2[%c0_4, %c0_5] : memref<1x128xf32, #tpu.memory_space<vmem>>, vector<1x128xf32>
    %7 = vector.shape_cast %6 : vector<1x128xf32> to vector<1x1x128xf32>
    %8 = vector.broadcast %7 : vector<1x1x128xf32> to vector<16x16x128xf32>
    %9 = arith.mulf %5, %8 : vector<16x16x128xf32>
    %c0_6 = arith.constant 0 : index
    %c0_7 = arith.constant 0 : index
    %10 = vector.load %arg3[%c0_6, %c0_7] : memref<1x128xf32, #tpu.memory_space<vmem>>, vector<1x128xf32>
    %11 = vector.shape_cast %10 : vector<1x128xf32> to vector<1x1x128xf32>
    %12 = vector.broadcast %11 : vector<1x1x128xf32> to vector<16x16x128xf32>
    %13 = arith.addf %9, %12 : vector<16x16x128xf32>
    %cst = arith.constant 0.000000e+00 : f32
    %14 = vector.broadcast %cst : f32 to vector<16x16x128xf32>
    %15 = arith.maximumf %13, %14 : vector<16x16x128xf32>
    %c1 = arith.constant 1 : index
    %c1_8 = arith.constant 1 : index
    %c0_9 = arith.constant 0 : index
    %16 = vector.load %arg8[%c1, %c1_8, %c0_9] : memref<18x18x128xf32, #tpu.memory_space<vmem>>, vector<16x16x128xf32>
    tpu.vector_store %arg8[%c1, %c1_8, %c0_9], %15 {strides = array<i32>} : memref<18x18x128xf32, #tpu.memory_space<vmem>>, vector<16x16x128xf32>,
    %cst_10 = arith.constant 0.000000e+00 : f32
    %17 = vector.broadcast %cst_10 : f32 to vector<256x128xf32>
    %c0_11 = arith.constant 0 : index
    %c0_12 = arith.constant 0 : index
    %c0_13 = arith.constant 0 : index
    %18 = vector.load %arg8[%c0_11, %c0_12, %c0_13] : memref<18x18x128xf32, #tpu.memory_space<vmem>>, vector<16x16x128xf32>
    %19 = arith.truncf %18 : vector<16x16x128xf32> to vector<16x16x128xbf16>
    %20 = vector.shape_cast %19 : vector<16x16x128xbf16> to vector<256x128xbf16>
    %c0_14 = arith.constant 0 : index
    %c0_15 = arith.constant 0 : index
    %21 = vector.load %arg4[%c0_14, %c0_15] : memref<1152x128xbf16, #tpu.memory_space<vmem>>, vector<128x128xbf16>
    %cst_16 = arith.constant dense<0.000000e+00> : vector<256x128xf32>
    %22 = tpu.matmul %20, %21, %cst_16 {dimension_numbers = #tpu.dot_dimension_numbers<[1], [0], [0], [1], [0, 0, 1, 1], [], []>} : vector<256x128xbf16>, vector<128x128xbf16>, vector<256x128xf32> -> vector<256x128xf32>
    %23 = arith.addf %17, %22 : vector<256x128xf32>
    %c0_17 = arith.constant 0 : index
    %c1_18 = arith.constant 1 : index
    %c0_19 = arith.constant 0 : index
    %24 = vector.load %arg8[%c0_17, %c1_18, %c0_19] : memref<18x18x128xf32, #tpu.memory_space<vmem>>, vector<16x16x128xf32>
    %25 = arith.truncf %24 : vector<16x16x128xf32> to vector<16x16x128xbf16>
    %26 = vector.shape_cast %25 : vector<16x16x128xbf16> to vector<256x128xbf16>
    %c128 = arith.constant 128 : index
    %c0_20 = arith.constant 0 : index
    %27 = vector.load %arg4[%c128, %c0_20] : memref<1152x128xbf16, #tpu.memory_space<vmem>>, vector<128x128xbf16>
    %cst_21 = arith.constant dense<0.000000e+00> : vector<256x128xf32>
    %28 = tpu.matmul %26, %27, %cst_21 {dimension_numbers = #tpu.dot_dimension_numbers<[1], [0], [0], [1], [0, 0, 1, 1], [], []>} : vector<256x128xbf16>, vector<128x128xbf16>, vector<256x128xf32> -> vector<256x128xf32>
    %29 = arith.addf %23, %28 : vector<256x128xf32>
    %c0_22 = arith.constant 0 : index
    %c2 = arith.constant 2 : index
    %c0_23 = arith.constant 0 : index
    %30 = vector.load %arg8[%c0_22, %c2, %c0_23] : memref<18x18x128xf32, #tpu.memory_space<vmem>>, vector<16x16x128xf32>
    %31 = arith.truncf %30 : vector<16x16x128xf32> to vector<16x16x128xbf16>
    %32 = vector.shape_cast %31 : vector<16x16x128xbf16> to vector<256x128xbf16>
    %c256 = arith.constant 256 : index
    %c0_24 = arith.constant 0 : index
    %33 = vector.load %arg4[%c256, %c0_24] : memref<1152x128xbf16, #tpu.memory_space<vmem>>, vector<128x128xbf16>
    %cst_25 = arith.constant dense<0.000000e+00> : vector<256x128xf32>
    %34 = tpu.matmul %32, %33, %cst_25 {dimension_numbers = #tpu.dot_dimension_numbers<[1], [0], [0], [1], [0, 0, 1, 1], [], []>} : vector<256x128xbf16>, vector<128x128xbf16>, vector<256x128xf32> -> vector<256x128xf32>
    %35 = arith.addf %29, %34 : vector<256x128xf32>
    %c1_26 = arith.constant 1 : index
    %c0_27 = arith.constant 0 : index
    %c0_28 = arith.constant 0 : index
    %36 = vector.load %arg8[%c1_26, %c0_27, %c0_28] : memref<18x18x128xf32, #tpu.memory_space<vmem>>, vector<16x16x128xf32>
    %37 = arith.truncf %36 : vector<16x16x128xf32> to vector<16x16x128xbf16>
    %38 = vector.shape_cast %37 : vector<16x16x128xbf16> to vector<256x128xbf16>
    %c384 = arith.constant 384 : index
    %c0_29 = arith.constant 0 : index
    %39 = vector.load %arg4[%c384, %c0_29] : memref<1152x128xbf16, #tpu.memory_space<vmem>>, vector<128x128xbf16>
    %cst_30 = arith.constant dense<0.000000e+00> : vector<256x128xf32>
    %40 = tpu.matmul %38, %39, %cst_30 {dimension_numbers = #tpu.dot_dimension_numbers<[1], [0], [0], [1], [0, 0, 1, 1], [], []>} : vector<256x128xbf16>, vector<128x128xbf16>, vector<256x128xf32> -> vector<256x128xf32>
    %41 = arith.addf %35, %40 : vector<256x128xf32>
    %c1_31 = arith.constant 1 : index
    %c1_32 = arith.constant 1 : index
    %c0_33 = arith.constant 0 : index
    %42 = vector.load %arg8[%c1_31, %c1_32, %c0_33] : memref<18x18x128xf32, #tpu.memory_space<vmem>>, vector<16x16x128xf32>
    %43 = arith.truncf %42 : vector<16x16x128xf32> to vector<16x16x128xbf16>
    %44 = vector.shape_cast %43 : vector<16x16x128xbf16> to vector<256x128xbf16>
    %c512 = arith.constant 512 : index
    %c0_34 = arith.constant 0 : index
    %45 = vector.load %arg4[%c512, %c0_34] : memref<1152x128xbf16, #tpu.memory_space<vmem>>, vector<128x128xbf16>
    %cst_35 = arith.constant dense<0.000000e+00> : vector<256x128xf32>
    %46 = tpu.matmul %44, %45, %cst_35 {dimension_numbers = #tpu.dot_dimension_numbers<[1], [0], [0], [1], [0, 0, 1, 1], [], []>} : vector<256x128xbf16>, vector<128x128xbf16>, vector<256x128xf32> -> vector<256x128xf32>
    %47 = arith.addf %41, %46 : vector<256x128xf32>
    %c1_36 = arith.constant 1 : index
    %c2_37 = arith.constant 2 : index
    %c0_38 = arith.constant 0 : index
    %48 = vector.load %arg8[%c1_36, %c2_37, %c0_38] : memref<18x18x128xf32, #tpu.memory_space<vmem>>, vector<16x16x128xf32>
    %49 = arith.truncf %48 : vector<16x16x128xf32> to vector<16x16x128xbf16>
    %50 = vector.shape_cast %49 : vector<16x16x128xbf16> to vector<256x128xbf16>
    %c640 = arith.constant 640 : index
    %c0_39 = arith.constant 0 : index
    %51 = vector.load %arg4[%c640, %c0_39] : memref<1152x128xbf16, #tpu.memory_space<vmem>>, vector<128x128xbf16>
    %cst_40 = arith.constant dense<0.000000e+00> : vector<256x128xf32>
    %52 = tpu.matmul %50, %51, %cst_40 {dimension_numbers = #tpu.dot_dimension_numbers<[1], [0], [0], [1], [0, 0, 1, 1], [], []>} : vector<256x128xbf16>, vector<128x128xbf16>, vector<256x128xf32> -> vector<256x128xf32>
    %53 = arith.addf %47, %52 : vector<256x128xf32>
    %c2_41 = arith.constant 2 : index
    %c0_42 = arith.constant 0 : index
    %c0_43 = arith.constant 0 : index
    %54 = vector.load %arg8[%c2_41, %c0_42, %c0_43] : memref<18x18x128xf32, #tpu.memory_space<vmem>>, vector<16x16x128xf32>
    %55 = arith.truncf %54 : vector<16x16x128xf32> to vector<16x16x128xbf16>
    %56 = vector.shape_cast %55 : vector<16x16x128xbf16> to vector<256x128xbf16>
    %c768 = arith.constant 768 : index
    %c0_44 = arith.constant 0 : index
    %57 = vector.load %arg4[%c768, %c0_44] : memref<1152x128xbf16, #tpu.memory_space<vmem>>, vector<128x128xbf16>
    %cst_45 = arith.constant dense<0.000000e+00> : vector<256x128xf32>
    %58 = tpu.matmul %56, %57, %cst_45 {dimension_numbers = #tpu.dot_dimension_numbers<[1], [0], [0], [1], [0, 0, 1, 1], [], []>} : vector<256x128xbf16>, vector<128x128xbf16>, vector<256x128xf32> -> vector<256x128xf32>
    %59 = arith.addf %53, %58 : vector<256x128xf32>
    %c2_46 = arith.constant 2 : index
    %c1_47 = arith.constant 1 : index
    %c0_48 = arith.constant 0 : index
    %60 = vector.load %arg8[%c2_46, %c1_47, %c0_48] : memref<18x18x128xf32, #tpu.memory_space<vmem>>, vector<16x16x128xf32>
    %61 = arith.truncf %60 : vector<16x16x128xf32> to vector<16x16x128xbf16>
    %62 = vector.shape_cast %61 : vector<16x16x128xbf16> to vector<256x128xbf16>
    %c896 = arith.constant 896 : index
    %c0_49 = arith.constant 0 : index
    %63 = vector.load %arg4[%c896, %c0_49] : memref<1152x128xbf16, #tpu.memory_space<vmem>>, vector<128x128xbf16>
    %cst_50 = arith.constant dense<0.000000e+00> : vector<256x128xf32>
    %64 = tpu.matmul %62, %63, %cst_50 {dimension_numbers = #tpu.dot_dimension_numbers<[1], [0], [0], [1], [0, 0, 1, 1], [], []>} : vector<256x128xbf16>, vector<128x128xbf16>, vector<256x128xf32> -> vector<256x128xf32>
    %65 = arith.addf %59, %64 : vector<256x128xf32>
    %c2_51 = arith.constant 2 : index
    %c2_52 = arith.constant 2 : index
    %c0_53 = arith.constant 0 : index
    %66 = vector.load %arg8[%c2_51, %c2_52, %c0_53] : memref<18x18x128xf32, #tpu.memory_space<vmem>>, vector<16x16x128xf32>
    %67 = arith.truncf %66 : vector<16x16x128xf32> to vector<16x16x128xbf16>
    %68 = vector.shape_cast %67 : vector<16x16x128xbf16> to vector<256x128xbf16>
    %c1024 = arith.constant 1024 : index
    %c0_54 = arith.constant 0 : index
    %69 = vector.load %arg4[%c1024, %c0_54] : memref<1152x128xbf16, #tpu.memory_space<vmem>>, vector<128x128xbf16>
    %cst_55 = arith.constant dense<0.000000e+00> : vector<256x128xf32>
    %70 = tpu.matmul %68, %69, %cst_55 {dimension_numbers = #tpu.dot_dimension_numbers<[1], [0], [0], [1], [0, 0, 1, 1], [], []>} : vector<256x128xbf16>, vector<128x128xbf16>, vector<256x128xf32> -> vector<256x128xf32>
    %71 = arith.addf %65, %70 : vector<256x128xf32>
    %72 = vector.shape_cast %71 : vector<256x128xf32> to vector<16x16x128xf32>
    %73 = arith.truncf %72 : vector<16x16x128xf32> to vector<16x16x128xbf16>
    %c0_56 = arith.constant 0 : index
    %c0_57 = arith.constant 0 : index
    %c0_58 = arith.constant 0 : index
    %c0_59 = arith.constant 0 : index
    %74 = vector.load %arg5[%c0_56, %c0_57, %c0_58, %c0_59] : memref<1x16x16x128xbf16, #tpu.memory_space<vmem>>, vector<1x16x16x128xbf16>
    %75 = vector.shape_cast %74 : vector<1x16x16x128xbf16> to vector<16x16x128xbf16>
    %76 = vector.shape_cast %73 : vector<16x16x128xbf16> to vector<1x16x16x128xbf16>
    tpu.vector_store %arg5[%c0_56, %c0_57, %c0_58, %c0_59], %76 {strides = array<i32>} : memref<1x16x16x128xbf16, #tpu.memory_space<vmem>>, vector<1x16x16x128xbf16>,
    %c0_60 = arith.constant 0 : index
    %c0_61 = arith.constant 0 : index
    %77 = vector.load %arg6[%c0_60, %c0_61] : memref<1x128xf32, #tpu.memory_space<vmem>>, vector<1x128xf32>
    %cst_62 = arith.constant dense<0.000000e+00> : vector<128xf32>
    %78 = vector.multi_reduction <add>, %71, %cst_62 [0] : vector<256x128xf32> to vector<128xf32>
    %79 = vector.shape_cast %78 : vector<128xf32> to vector<1x128xf32>
    %80 = arith.addf %77, %79 : vector<1x128xf32>
    %c0_63 = arith.constant 0 : index
    %c0_64 = arith.constant 0 : index
    %81 = vector.load %arg6[%c0_63, %c0_64] : memref<1x128xf32, #tpu.memory_space<vmem>>, vector<1x128xf32>
    tpu.vector_store %arg6[%c0_63, %c0_64], %80 {strides = array<i32>} : memref<1x128xf32, #tpu.memory_space<vmem>>, vector<1x128xf32>,
    %c0_65 = arith.constant 0 : index
    %c0_66 = arith.constant 0 : index
    %82 = vector.load %arg7[%c0_65, %c0_66] : memref<1x128xf32, #tpu.memory_space<vmem>>, vector<1x128xf32>
    %83 = arith.mulf %71, %71 : vector<256x128xf32>
    %cst_67 = arith.constant dense<0.000000e+00> : vector<128xf32>
    %84 = vector.multi_reduction <add>, %83, %cst_67 [0] : vector<256x128xf32> to vector<128xf32>
    %85 = vector.shape_cast %84 : vector<128xf32> to vector<1x128xf32>
    %86 = arith.addf %82, %85 : vector<1x128xf32>
    %c0_68 = arith.constant 0 : index
    %c0_69 = arith.constant 0 : index
    %87 = vector.load %arg7[%c0_68, %c0_69] : memref<1x128xf32, #tpu.memory_space<vmem>>, vector<1x128xf32>
    tpu.vector_store %arg7[%c0_68, %c0_69], %86 {strides = array<i32>} : memref<1x128xf32, #tpu.memory_space<vmem>>, vector<1x128xf32>,
    return
  }
  func.func @transform_0(%arg0: i32) -> (i32, i32, i32, i32) {
    %c0_i32 = arith.constant 0 : i32
    %c0_i32_0 = arith.constant 0 : i32
    %c0_i32_1 = arith.constant 0 : i32
    %c0_i32_2 = arith.constant 0 : i32
    return %arg0, %c0_i32, %c0_i32_0, %c0_i32_1 : i32, i32, i32, i32
  }
  func.func @transform_1(%arg0: i32) -> (i32, i32) {
    %c0_i32 = arith.constant 0 : i32
    %c0_i32_0 = arith.constant 0 : i32
    %c0_i32_1 = arith.constant 0 : i32
    return %c0_i32, %c0_i32_0 : i32, i32
  }
  func.func @transform_2(%arg0: i32) -> (i32, i32) {
    %c0_i32 = arith.constant 0 : i32
    %c0_i32_0 = arith.constant 0 : i32
    %c0_i32_1 = arith.constant 0 : i32
    return %c0_i32, %c0_i32_0 : i32, i32
  }
  func.func @transform_3(%arg0: i32) -> (i32, i32) {
    %c0_i32 = arith.constant 0 : i32
    %c0_i32_0 = arith.constant 0 : i32
    %c0_i32_1 = arith.constant 0 : i32
    return %c0_i32, %c0_i32_0 : i32, i32
  }
  func.func @transform_4(%arg0: i32) -> (i32, i32, i32, i32) {
    %c0_i32 = arith.constant 0 : i32
    %c0_i32_0 = arith.constant 0 : i32
    %c0_i32_1 = arith.constant 0 : i32
    %c0_i32_2 = arith.constant 0 : i32
    return %arg0, %c0_i32, %c0_i32_0, %c0_i32_1 : i32, i32, i32, i32
  }
  func.func @transform_5(%arg0: i32) -> (i32, i32) {
    %c0_i32 = arith.constant 0 : i32
    %c0_i32_0 = arith.constant 0 : i32
    %c0_i32_1 = arith.constant 0 : i32
    return %c0_i32, %c0_i32_0 : i32, i32
  }
  func.func @transform_6(%arg0: i32) -> (i32, i32) {
    %c0_i32 = arith.constant 0 : i32
    %c0_i32_0 = arith.constant 0 : i32
    %c0_i32_1 = arith.constant 0 : i32
    return %c0_i32, %c0_i32_0 : i32, i32
  }
}

</mosaic_0001>

<bundles_post_ra>
// kernel: dense_block.5
= control target key start
LH: loop header
LB: loop body
LE: loop exit
PB: predicated region body
PF: predicated region fallthrough
CT: control target
= control target key end

     0   :  { %s381_s9 = smov 0   ;;  %s455_s0 = inlined_call_operand.vmem [shape: bf16[512,4], index: 0, kind: input, shape index: {}]   ;;  %s456_s1 = inlined_call_operand.vmem [shape: f32[1,4], index: 1, kind: output, shape index: {0}]   ;;  %s457_s2 = inlined_call_operand.vmem [shape: f32[1,4], index: 2, kind: output, shape index: {1}]  }
   0x1 LB: > { %s300_s10 = sadd.s32 4294967295, %s363_s9   ;;  %p303_p0 = scmp.ge.s32.totalorder %s363_s9, 1  ;;  %s363_s9 = sphi %s381_s9, %s13_s9  }
   0x2   : > { %p106_p1 = scmp.lt.s32.totalorder %s363_s9, 5 }
   0x4   : > { %p107_p2 = pnand %p303_p0, %p106_p1 }
   0x5   : > { %s304_s11 = sshll.u32 (!%p107_p2), %s300_s10, 4  ;;  %p306_p4 = scmp.ne.s32.totalorder (!%p107_p2), %s300_s10, 0 }
   0x6   : > { %110 = sbr.rel (%p107_p2) target bundleno = 71 (0x47), region = 24  ;;  %p124_p3 = scmp.lt.s32.totalorder (!%p107_p2), %s304_s11, 63 }
   0xb   : > { %s459_s11 = smov (!%p124_p3, %s304_s11), 63  ;;  %132 = sbr.rel (%p306_p4) target bundleno = 19 (0x13), region = 28 }
   0xc   : > { %s305_s12 = sshll.u32 %s459_s11, 2 }
   0xd   : > { %s392_s15 = scalar_lea.vmem %s455_s0, %s305_s12 }
  0x10   : > { %vm133_vm0 = vcmask 24576   ;;  %v365_v0 = vmov 0.0  }
  0x11   : > { %134 = vst.msk [vmem:[%s456_s1] sm:$0x1] %vm133_vm0, %v365_v0 }
  0x12   : > { %135 = vst.msk [vmem:[%s457_s2] sm:$0x1] %vm133_vm0, %v365_v0 }
  0x13 PF: > { %v310_v1 = vld [vmem:[%s392_s15] sm:$0xff]   ;;  %v341_v2 = vld [vmem:[%s392_s15 + $0x8] sm:$0xff]   ;;  %vm169_vm1 = vcmask 31744   ;;  %v342_v6 = vld [vmem:[%s392_s15 + $0x10] sm:$0xff]   ;;  %vm208_vm2 = vcmask 24576  }
  0x14   : > { %v311_v3 = vunpack.c.l.bf16 %v310_v1  ;;  %v312_v4 = vunpack.c.h.bf16 %v310_v1  ;;  %v315_v5 = vunpack.c.l.bf16 %v341_v2  ;;  %v316_v7 = vunpack.c.h.bf16 %v341_v2  ;;  %v343_v14 = vld [vmem:[%s392_s15 + $0x18] sm:$0xff]   ;;  %v344_v24 = vld [vmem:[%s392_s15 + $0x20] sm:$0xff]   ;;  %v345_v37 = vld [vmem:[%s392_s15 + $0x28] sm:$0xff]  }
  0x15   : > { %v319_v12 = vunpack.c.l.bf16 %v342_v6  ;;  %v320_v16 = vunpack.c.h.bf16 %v342_v6  ;;  %v323_v22 = vunpack.c.l.bf16 %v343_v14  ;;  %v324_v27 = vunpack.c.h.bf16 %v343_v14  ;;  %v346_v50 = vld [vmem:[%s392_s15 + $0x30] sm:$0xff]   ;;  %v347_v63 = vld [vmem:[%s392_s15 + $0x38] sm:$0xff]  }
  0x16   : > { %v170_v8 = vsel %vm169_vm1, %v311_v3, 0.0  ;;  %v171_v9 = vsel %vm169_vm1, %v312_v4, 0.0  ;;  %v173_v10 = vsel %vm169_vm1, %v315_v5, 0.0  ;;  %v175_v13 = vsel %vm169_vm1, %v316_v7, 0.0 }
  0x17   : > { %v172_v11 = vadd.f32 %v171_v9, %v170_v8  ;;  %v177_v17 = vsel %vm169_vm1, %v319_v12, 0.0  ;;  %v211_v19 = vmul.f32 %v311_v3, %v311_v3  ;;  %v212_v20 = vmul.f32 %v312_v4, %v312_v4 }
  0x18   : > { %v213_v21 = vmul.f32 %v315_v5, %v315_v5  ;;  %v179_v23 = vsel %vm169_vm1, %v320_v16, 0.0  ;;  %v214_v26 = vmul.f32 %v316_v7, %v316_v7  ;;  %v181_v28 = vsel %vm169_vm1, %v323_v22, 0.0 }
  0x19   : > { %v174_v15 = vadd.f32 %v173_v10, %v172_v11  ;;  %v215_v29 = vmul.f32 %v319_v12, %v319_v12  ;;  %v227_v31 = vsel %vm169_vm1, %v211_v19, 0.0  ;;  %v228_v32 = vsel %vm169_vm1, %v212_v20, 0.0 }
  0x1a   : > { %v230_v33 = vsel %vm169_vm1, %v213_v21, 0.0  ;;  %v327_v34 = vunpack.c.l.bf16 %v344_v24  ;;  %v183_v35 = vsel %vm169_vm1, %v324_v27, 0.0  ;;  %v229_v36 = vadd.f32 %v228_v32, %v227_v31 }
  0x1b   : > { %v176_v18 = vadd.f32 %v175_v13, %v174_v15  ;;  %v216_v39 = vmul.f32 %v320_v16, %v320_v16  ;;  %v232_v40 = vsel %vm169_vm1, %v214_v26, 0.0  ;;  %v328_v41 = vunpack.c.h.bf16 %v344_v24 }
  0x1c   : > { %v185_v42 = vsel %vm169_vm1, %v327_v34, 0.0  ;;  %v231_v43 = vadd.f32 %v230_v33, %v229_v36  ;;  %v217_v45 = vmul.f32 %v323_v22, %v323_v22  ;;  %v234_v46 = vsel %vm169_vm1, %v215_v29, 0.0 }
  0x1d   : > { %v178_v25 = vadd.f32 %v177_v17, %v176_v18  ;;  %v331_v47 = vunpack.c.l.bf16 %v345_v37  ;;  %v187_v48 = vsel %vm169_vm1, %v328_v41, 0.0  ;;  %v218_v52 = vmul.f32 %v324_v27, %v324_v27 }
  0x1e   : > { %v233_v49 = vadd.f32 %v232_v40, %v231_v43  ;;  %v236_v53 = vsel %vm169_vm1, %v216_v39, 0.0  ;;  %v332_v54 = vunpack.c.h.bf16 %v345_v37  ;;  %v219_v58 = vmul.f32 %v327_v34, %v327_v34 }
  0x1f   : > { %v180_v30 = vadd.f32 %v179_v23, %v178_v25  ;;  %v189_v55 = vsel %vm169_vm1, %v331_v47, 0.0  ;;  %v238_v59 = vsel %vm169_vm1, %v217_v45, 0.0  ;;  %v335_v60 = vunpack.c.l.bf16 %v346_v50 }
  0x20   : > { %v235_v56 = vadd.f32 %v234_v46, %v233_v49  ;;  %v191_v61 = vsel %vm169_vm1, %v332_v54, 0.0  ;;  %v220_v1 = vmul.f32 %v328_v41, %v328_v41  ;;  %v240_v2 = vsel %vm169_vm1, %v218_v52, 0.0  ;;  %v210_v52 = vld [vmem:[%s457_s2] sm:$0x1] }
  0x21   : > { %v182_v38 = vadd.f32 %v181_v28, %v180_v30  ;;  %v336_v3 = vunpack.c.h.bf16 %v346_v50  ;;  %v193_v4 = vsel %vm169_vm1, %v335_v60, 0.0  ;;  %v221_v7 = vmul.f32 %v331_v47, %v331_v47 }
  0x22   : > { %v237_v62 = vadd.f32 %v236_v53, %v235_v56  ;;  %v242_v8 = vsel %vm169_vm1, %v219_v58, 0.0  ;;  %v339_v9 = vunpack.c.l.bf16 %v347_v63  ;;  %v222_v13 = vmul.f32 %v332_v54, %v332_v54 }
  0x23   : > { %v184_v44 = vadd.f32 %v183_v35, %v182_v38  ;;  %v195_v10 = vsel %vm169_vm1, %v336_v3, 0.0  ;;  %v244_v14 = vsel %vm169_vm1, %v220_v1, 0.0  ;;  %v340_v15 = vunpack.c.h.bf16 %v347_v63 }
  0x24   : > { %v239_v5 = vadd.f32 %v238_v59, %v237_v62  ;;  %v197_v16 = vsel %vm169_vm1, %v339_v9, 0.0  ;;  %v223_v19 = vmul.f32 %v335_v60, %v335_v60  ;;  %v246_v20 = vsel %vm169_vm1, %v221_v7, 0.0 }
  0x25   : > { %v186_v51 = vadd.f32 %v185_v42, %v184_v44  ;;  %v199_v21 = vsel %vm169_vm1, %v340_v15, 0.0  ;;  %v224_v24 = vmul.f32 %v336_v3, %v336_v3  ;;  %v248_v25 = vsel %vm169_vm1, %v222_v13, 0.0  ;;  %v168_v44 = vld [vmem:[%s456_s1] sm:$0x1] }
  0x26   : > { %v241_v11 = vadd.f32 %v240_v2, %v239_v5  ;;  %v225_v28 = vmul.f32 %v339_v9, %v339_v9  ;;  %v250_v29 = vsel %vm169_vm1, %v223_v19, 0.0  ;;  %v226_v32 = vmul.f32 %v340_v15, %v340_v15 }
  0x27   : > { %v188_v57 = vadd.f32 %v187_v48, %v186_v51  ;;  %v252_v33 = vsel %vm169_vm1, %v224_v24, 0.0 }
  0x28   : > { %v243_v17 = vadd.f32 %v242_v8, %v241_v11  ;;  %v254_v36 = vsel %vm169_vm1, %v225_v28, 0.0  ;;  %v256_v39 = vsel %vm169_vm1, %v226_v32, 0.0 }
  0x29   : > { %v190_v0 = vadd.f32 %v189_v55, %v188_v57 }
  0x2a   : > { %v245_v22 = vadd.f32 %v244_v14, %v243_v17 }
  0x2b   : > { %v192_v6 = vadd.f32 %v191_v61, %v190_v0 }
  0x2c   : > { %v247_v26 = vadd.f32 %v246_v20, %v245_v22 }
  0x2d   : > { %v194_v12 = vadd.f32 %v193_v4, %v192_v6 }
  0x2e   : > { %v249_v30 = vadd.f32 %v248_v25, %v247_v26 }
  0x2f   : > { %v196_v18 = vadd.f32 %v195_v10, %v194_v12 }
  0x30   : > { %v251_v34 = vadd.f32 %v250_v29, %v249_v30 }
  0x31   : > { %v198_v23 = vadd.f32 %v197_v16, %v196_v18 }
  0x32   : > { %v253_v37 = vadd.f32 %v252_v33, %v251_v34 }
  0x33   : > { %v200_v27 = vadd.f32 %v199_v21, %v198_v23 }
  0x34   : > { %v255_v40 = vadd.f32 %v254_v36, %v253_v37 }
  0x35   : > { %v201_v31 = vrot.slane %v200_v27, 4 }
  0x36   : > { %v257_v42 = vadd.f32 %v256_v39, %v255_v40 }
  0x37   : > { %v202_v35 = vadd.f32 %v201_v31, %v200_v27 }
  0x38   : > { %v258_v45 = vrot.slane %v257_v42, 4 }
  0x39   : > { %v203_v38 = vrot.slane %v202_v35, 2 }
  0x3a   : > { %v259_v47 = vadd.f32 %v258_v45, %v257_v42 }
  0x3b   : > { %v204_v41 = vadd.f32 %v203_v38, %v202_v35 }
  0x3c   : > { %v260_v49 = vrot.slane %v259_v47, 2 }
  0x3d   : > { %v205_v43 = vrot.slane %v204_v41, 1 }
  0x3e   : > { %v261_v50 = vadd.f32 %v260_v49, %v259_v47 }
  0x3f   : > { %v206_v46 = vadd.f32 %v205_v43, %v204_v41 }
  0x40   : > { %v262_v51 = vrot.slane %v261_v50, 1 }
  0x41   : > { %v207_v48 = vadd.f32 %v206_v46, %v168_v44 }
  0x42   : > { %v263_v53 = vadd.f32 %v262_v51, %v261_v50 }
  0x43   : > { %209 = vst.msk [vmem:[%s456_s1] sm:$0x1] %vm208_vm2, %v207_v48 }
  0x44   : > { %v264_v54 = vadd.f32 %v263_v53, %v210_v52 }
  0x46   : > { %265 = vst.msk [vmem:[%s457_s2] sm:$0x1] %vm208_vm2, %v264_v54 }
  0x47 PF: > { %s13_s9 = sadd.s32 1, %s363_s9  }
  0x48   : > { %p10_p5 = scmp.ge.s32.totalorder %s13_s9, 6  }
  0x4a   :  { %12 = sbr.rel (!%p10_p5) target bundleno = 1 (0x1), region = 62 }

// kernel: dense_block.6
= control target key start
LH: loop header
LB: loop body
LE: loop exit
PB: predicated region body
PF: predicated region fallthrough
CT: control target
= control target key end

     0   :  { %s760_s21 = smov 0   ;;  %s868_s0 = inlined_call_operand.vmem [shape: bf16[512,4], index: 0, kind: input, shape index: {}]   ;;  %s869_s1 = inlined_call_operand.vmem [shape: f32[1,4], index: 1, kind: input, shape index: {}]   ;;  %s870_s2 = inlined_call_operand.vmem [shape: f32[1,4], index: 2, kind: input, shape index: {}]   ;;  %s871_s3 = inlined_call_operand.vmem [shape: bf16[4,128], index: 3, kind: input, shape index: {}]   ;;  %s872_s4 = inlined_call_operand.vmem [shape: bf16[512,128], index: 4, kind: output, shape index: {0}]   ;;  %s873_s5 = inlined_call_operand.vmem [shape: f32[1,128], index: 5, kind: output, shape index: {1}]   ;;  %s874_s6 = inlined_call_operand.vmem [shape: f32[1,128], index: 6, kind: output, shape index: {2}]  }
   0x1 LB: > { %s596_s22 = sadd.s32 4294967295, %s722_s21   ;;  %p600_p0 = scmp.ge.s32.totalorder %s722_s21, 1  ;;  %s722_s21 = sphi %s760_s21, %s17_s21  }
   0x2   : > { %p208_p1 = scmp.lt.s32.totalorder %s722_s21, 5 }
   0x4   : > { %p209_p2 = pnand %p600_p0, %p208_p1 }
   0x5   : > { %s601_s23 = sshll.u32 (!%p209_p2), %s596_s22, 4  ;;  %p605_p4 = scmp.ne.s32.totalorder (!%p209_p2), %s596_s22, 0 }
   0x6   : > { %212 = sbr.rel (%p209_p2) target bundleno = 224 (0xe0), region = 36  ;;  %p239_p3 = scmp.lt.s32.totalorder (!%p209_p2), %s601_s23, 63 }
   0xb   : > { %s876_s23 = smov (!%p239_p3, %s601_s23), 63  ;;  %254 = sbr.rel (%p605_p4) target bundleno = 19 (0x13), region = 40 }
   0xc   : > { %s602_s24 = sshll.u32 %s876_s23, 2 }
   0xd   : > { %s771_s27 = scalar_lea.vmem %s868_s0, %s602_s24  ;;  %s776_s30 = scalar_lea.vmem %s872_s4, %s602_s24 }
  0x10   : > { %v724_v0 = vmov 0.0  }
  0x11   : > { %255 = vst [vmem:[%s873_s5] sm:$0x1] %v724_v0 }
  0x12   : > { %256 = vst [vmem:[%s874_s6] sm:$0x1] %v724_v0 }
  0x13 PF: > { %v353_v1 = vld [vmem:[%s871_s3] sm:$0x3]  ;;  %vm379_vm0 = vcmask 1041408   ;;  %vm354_vm1 = vcmask 31744   ;;  %v689_v8 = vld [vmem:[%s771_s27 + $0x10] sm:$0xff]   ;;  %v688_v27 = vld [vmem:[%s771_s27 + $0x8] sm:$0xff]  }
  0x14   : > { %v617_v2 = vld [vmem:[%s771_s27] sm:$0xff]   ;;  %v381_v3 = vsel %vm379_vm0, %v353_v1, 0  ;;  %v626_v12 = vunpack.c.l.bf16 %v689_v8  ;;  %v627_v13 = vunpack.c.h.bf16 %v689_v8  ;;  %v693_v14 = vld [vmem:[%s771_s27 + $0x30] sm:$0xff]   ;;  %v690_v36 = vld [vmem:[%s771_s27 + $0x18] sm:$0xff]   ;;  %v622_v40 = vunpack.c.l.bf16 %v688_v27 }
  0x15   : > { %v618_v4 = vunpack.c.l.bf16 %v617_v2  ;;  %v619_v5 = vunpack.c.h.bf16 %v617_v2  ;;  %v791_v6 = vld [vmem:[%s869_s1] ss:$0 sm:$0xff]  ;;  %390 = vmatpush.bf16.msra.mxu0 %v381_v3  ;;  %702 = vmatpush.bf16.msra.mxu1 %v381_v3  ;;  %v642_v17 = vunpack.c.l.bf16 %v693_v14  ;;  %v643_v18 = vunpack.c.h.bf16 %v693_v14  ;;  %v692_v41 = vld [vmem:[%s771_s27 + $0x28] sm:$0xff]   ;;  %v694_v50 = vld [vmem:[%s771_s27 + $0x38] sm:$0xff]  }
  0x16   : > { %v796_v7 = vld [vmem:[%s870_s2] ss:$0 sm:$0xff]  ;;  %703 = vmatpush.bf16.msra.mxu2 %v381_v3  ;;  %704 = vmatpush.bf16.msra.mxu3 %v381_v3  ;;  %v297_v21 = vmul.f32 %v791_v6, %v626_v12  ;;  %v298_v22 = vmul.f32 %v791_v6, %v627_v13  ;;  %v623_v47 = vunpack.c.h.bf16 %v688_v27  ;;  %v295_v48 = vmul.f32 %v791_v6, %v622_v40 }
  0x17   : > { %v691_v9 = vld [vmem:[%s771_s27 + $0x20] sm:$0xff]   ;;  %v293_v10 = vmul.f32 %v791_v6, %v618_v4  ;;  %v294_v11 = vmul.f32 %v791_v6, %v619_v5  ;;  %v305_v25 = vmul.f32 %v791_v6, %v642_v17  ;;  %v306_v26 = vmul.f32 %v791_v6, %v643_v18 }
  0x18   : > { %v634_v15 = vunpack.c.l.bf16 %v691_v9  ;;  %v635_v16 = vunpack.c.h.bf16 %v691_v9  ;;  %v317_v30 = vadd.f32 %v796_v7, %v297_v21  ;;  %v318_v31 = vadd.f32 %v796_v7, %v298_v22 }
  0x19   : > { %v313_v19 = vadd.f32 %v796_v7, %v293_v10  ;;  %v314_v20 = vadd.f32 %v796_v7, %v294_v11  ;;  %v325_v34 = vadd.f32 %v796_v7, %v305_v25  ;;  %v326_v35 = vadd.f32 %v796_v7, %v306_v26 }
  0x1a   : > { %v301_v23 = vmul.f32 %v791_v6, %v634_v15  ;;  %v302_v24 = vmul.f32 %v791_v6, %v635_v16  ;;  %v333_v38 = vmax.f32 %v317_v30, 0.0  ;;  %v334_v39 = vmax.f32 %v318_v31, 0.0 }
  0x1b   : > { %v329_v28 = vmax.f32 %v313_v19, 0.0  ;;  %v330_v29 = vmax.f32 %v314_v20, 0.0  ;;  %v341_v44 = vmax.f32 %v325_v34, 0.0  ;;  %v342_v45 = vmax.f32 %v326_v35, 0.0 }
  0x1c   : > { %v321_v32 = vadd.f32 %v796_v7, %v301_v23  ;;  %v322_v33 = vadd.f32 %v796_v7, %v302_v24  ;;  %v347_v46 = vpack.c.bf16 %v334_v39, %v333_v38  ;;  %v630_v49 = vunpack.c.l.bf16 %v690_v36 }
  0x1d   : > { %v345_v37 = vpack.c.bf16 %v330_v29, %v329_v28  ;;  %v351_v52 = vpack.c.bf16 %v342_v45, %v341_v44  ;;  %v631_v53 = vunpack.c.h.bf16 %v690_v36  ;;  %v638_v54 = vunpack.c.l.bf16 %v692_v41 }
  0x1e   : > { %v337_v42 = vmax.f32 %v321_v32, 0.0  ;;  %v338_v43 = vmax.f32 %v322_v33, 0.0  ;;  %608 = vmatmul.msk.bf16.vlgmr.msra.gmra.mxu1 %vm354_vm1, %v347_v46  ;;  %v296_v55 = vmul.f32 %v791_v6, %v623_v47  ;;  %v299_v56 = vmul.f32 %v791_v6, %v630_v49 }
  0x1f   : > { %606 = vmatmul.msk.bf16.vlgmr.msra.gmra.mxu0 %vm354_vm1, %v345_v37  ;;  %v639_v57 = vunpack.c.h.bf16 %v692_v41  ;;  %612 = vmatmul.msk.bf16.vlgmr.msra.gmra.mxu3 %vm354_vm1, %v351_v52  ;;  %v300_v58 = vmul.f32 %v791_v6, %v631_v53  ;;  %v303_v59 = vmul.f32 %v791_v6, %v638_v54  ;;  %v646_v60 = vunpack.c.l.bf16 %v694_v50 }
  0x20   : > { %v349_v51 = vpack.c.bf16 %v338_v43, %v337_v42  ;;  %v647_v61 = vunpack.c.h.bf16 %v694_v50  ;;  %v315_v62 = vadd.f32 %v796_v7, %v295_v48  ;;  %v316_v63 = vadd.f32 %v796_v7, %v296_v55 }
  0x21   : > { %v304_v0 = vmul.f32 %v791_v6, %v639_v57  ;;  %v307_v1 = vmul.f32 %v791_v6, %v646_v60  ;;  %v319_v3 = vadd.f32 %v796_v7, %v299_v56  ;;  %v320_v4 = vadd.f32 %v796_v7, %v300_v58 }
  0x22   : > { %610 = vmatmul.msk.bf16.vlgmr.msra.gmra.mxu2 %vm354_vm1, %v349_v51  ;;  %v308_v2 = vmul.f32 %v791_v6, %v647_v61  ;;  %v323_v5 = vadd.f32 %v796_v7, %v303_v59  ;;  %v331_v11 = vmax.f32 %v315_v62, 0.0  ;;  %v332_v12 = vmax.f32 %v316_v63, 0.0 }
  0x23   : > { %v324_v8 = vadd.f32 %v796_v7, %v304_v0  ;;  %v327_v9 = vadd.f32 %v796_v7, %v307_v1  ;;  %v335_v13 = vmax.f32 %v319_v3, 0.0  ;;  %v336_v14 = vmax.f32 %v320_v4, 0.0 }
  0x24   : > { %v328_v10 = vadd.f32 %v796_v7, %v308_v2  ;;  %v339_v15 = vmax.f32 %v323_v5, 0.0  ;;  %v346_v18 = vpack.c.bf16 %v332_v12, %v331_v11 }
  0x25   : > { %v340_v16 = vmax.f32 %v324_v8, 0.0  ;;  %v343_v17 = vmax.f32 %v327_v9, 0.0  ;;  %v348_v19 = vpack.c.bf16 %v336_v14, %v335_v13 }
  0x26   : > { %v344_v6 = vmax.f32 %v328_v10, 0.0 }
  0x27   : > { %v350_v20 = vpack.c.bf16 %v340_v16, %v339_v15 }
  0x28   : > { %v352_v21 = vpack.c.bf16 %v344_v6, %v343_v17 }
  0x2e   : > { %609 = vmatmul.msk.bf16.gmra.mxu1 %vm354_vm1, %v348_v19 }
  0x2f   : > { %607 = vmatmul.msk.bf16.gmra.mxu0 %vm354_vm1, %v346_v18  ;;  %613 = vmatmul.msk.bf16.gmra.mxu3 %vm354_vm1, %v352_v21 }
  0x32   : > { %611 = vmatmul.msk.bf16.gmra.mxu2 %vm354_vm1, %v350_v20 }
  0x9b   : > { %v402_v22 = vpop.f32.mrf.mxu1 }
  0x9c   : > { %v392_v7 = vpop.f32.mrf.mxu0  ;;  %v493_v49 = vmul.f32 %v402_v22, %v402_v22 }
  0x9d   : > { %v489_v36 = vmul.f32 %v392_v7, %v392_v7 }
  0xa2   : > { %v422_v26 = vpop.f32.mrf.mxu3 }
  0xa3   : > { %v404_v27 = vpop.f32.mrf.mxu1  ;;  %v501_v16 = vmul.f32 %v422_v26, %v422_v26 }
  0xa4   : > { %v394_v23 = vpop.f32.mrf.mxu0  ;;  %v661_v28 = vpack.c.bf16 %v404_v27, %v402_v22  ;;  %v494_v53 = vmul.f32 %v404_v27, %v404_v27 }
  0xa5   : > { %v651_v24 = vpack.c.bf16 %v394_v23, %v392_v7  ;;  %v412_v25 = vpop.f32.mrf.mxu2  ;;  %v490_v35 = vmul.f32 %v394_v23, %v394_v23  ;;  %v465_v37 = vadd.f32 %v394_v23, %v392_v7 }
  0xa6   : > { %696 = vst [vmem:[%s776_s30 + $0x10] sm:$0xff] %v661_v28   ;;  %v497_v2 = vmul.f32 %v412_v25, %v412_v25 }
  0xa7   : > { %652 = vst [vmem:[%s776_s30] sm:$0xff] %v651_v24   ;;  %v505_v39 = vadd.f32 %v490_v35, %v489_v36 }
  0xaa   : > { %v424_v31 = vpop.f32.mrf.mxu3 }
  0xab   : > { %v407_v32 = vpop.f32.mrf.mxu1  ;;  %v681_v34 = vpack.c.bf16 %v424_v31, %v422_v26  ;;  %v502_v18 = vmul.f32 %v424_v31, %v424_v31 }
  0xac   : > { %v397_v29 = vpop.f32.mrf.mxu0  ;;  %v495_v56 = vmul.f32 %v407_v32, %v407_v32 }
  0xad   : > { %v414_v30 = vpop.f32.mrf.mxu2  ;;  %v491_v38 = vmul.f32 %v397_v29, %v397_v29  ;;  %700 = vst [vmem:[%s776_s30 + $0x30] sm:$0xff] %v681_v34   ;;  %v466_v40 = vadd.f32 %v465_v37, %v397_v29 }
  0xae   : > { %v671_v33 = vpack.c.bf16 %v414_v30, %v412_v25  ;;  %v498_v5 = vmul.f32 %v414_v30, %v414_v30 }
  0xaf   : > { %v506_v42 = vadd.f32 %v505_v39, %v491_v38  ;;  %v488_v39 = vld [vmem:[%s874_s6] sm:$0x1] }
  0xb0   : > { %698 = vst [vmem:[%s776_s30 + $0x20] sm:$0xff] %v671_v33  }
  0xb2   : > { %v427_v47 = vpop.f32.mrf.mxu3 }
  0xb3   : > { %v409_v48 = vpop.f32.mrf.mxu1  ;;  %v503_v7 = vmul.f32 %v427_v47, %v427_v47 }
  0xb4   : > { %v399_v41 = vpop.f32.mrf.mxu0  ;;  %v666_v52 = vpack.c.bf16 %v409_v48, %v407_v32  ;;  %v496_v60 = vmul.f32 %v409_v48, %v409_v48 }
  0xb5   : > { %v656_v43 = vpack.c.bf16 %v399_v41, %v397_v29  ;;  %v467_v44 = vadd.f32 %v466_v40, %v399_v41  ;;  %v492_v45 = vmul.f32 %v399_v41, %v399_v41  ;;  %v417_v46 = vpop.f32.mrf.mxu2 }
  0xb6   : > { %697 = vst [vmem:[%s776_s30 + $0x18] sm:$0xff] %v666_v52   ;;  %v499_v11 = vmul.f32 %v417_v46, %v417_v46 }
  0xb7   : > { %695 = vst [vmem:[%s776_s30 + $0x8] sm:$0xff] %v656_v43   ;;  %v468_v50 = vadd.f32 %v467_v44, %v402_v22  ;;  %v507_v51 = vadd.f32 %v506_v42, %v492_v45 }
  0xb9   : > { %v508_v54 = vadd.f32 %v507_v51, %v493_v49  ;;  %v469_v55 = vadd.f32 %v468_v50, %v404_v27 }
  0xba   : > { %v429_v63 = vpop.f32.mrf.mxu3 }
  0xbb   : > { %v470_v57 = vadd.f32 %v469_v55, %v407_v32  ;;  %v509_v58 = vadd.f32 %v508_v54, %v494_v53  ;;  %v686_v1 = vpack.c.bf16 %v429_v63, %v427_v47 }
  0xbd   : > { %v471_v59 = vadd.f32 %v470_v57, %v409_v48  ;;  %v510_v61 = vadd.f32 %v509_v58, %v495_v56  ;;  %v419_v62 = vpop.f32.mrf.mxu2  ;;  %701 = vst [vmem:[%s776_s30 + $0x38] sm:$0xff] %v686_v1  }
  0xbe   : > { %v676_v0 = vpack.c.bf16 %v419_v62, %v417_v46  ;;  %v500_v15 = vmul.f32 %v419_v62, %v419_v62 }
  0xbf   : > { %v472_v3 = vadd.f32 %v471_v59, %v412_v25  ;;  %v511_v4 = vadd.f32 %v510_v61, %v496_v60  ;;  %v504_v25 = vmul.f32 %v429_v63, %v429_v63 }
  0xc0   : > { %699 = vst [vmem:[%s776_s30 + $0x28] sm:$0xff] %v676_v0  }
  0xc1   : > { %v512_v8 = vadd.f32 %v511_v4, %v497_v2  ;;  %v473_v9 = vadd.f32 %v472_v3, %v414_v30 }
  0xc3   : > { %v474_v10 = vadd.f32 %v473_v9, %v417_v46  ;;  %v513_v12 = vadd.f32 %v512_v8, %v498_v5 }
  0xc5   : > { %v514_v13 = vadd.f32 %v513_v12, %v499_v11  ;;  %v475_v14 = vadd.f32 %v474_v10, %v419_v62 }
  0xc7   : > { %v476_v17 = vadd.f32 %v475_v14, %v422_v26  ;;  %v515_v6 = vadd.f32 %v514_v13, %v500_v15 }
  0xc9   : > { %v516_v19 = vadd.f32 %v515_v6, %v501_v16  ;;  %v477_v20 = vadd.f32 %v476_v17, %v424_v31  ;;  %v464_v31 = vld [vmem:[%s873_s5] sm:$0x1] }
  0xcb   : > { %v478_v21 = vadd.f32 %v477_v20, %v427_v47  ;;  %v517_v22 = vadd.f32 %v516_v19, %v502_v18 }
  0xcd   : > { %v518_v23 = vadd.f32 %v517_v22, %v503_v7  ;;  %v479_v24 = vadd.f32 %v478_v21, %v429_v63 }
  0xcf   : > { %v480_v27 = vrot.slane %v479_v24, 4  ;;  %v519_v28 = vadd.f32 %v518_v23, %v504_v25 }
  0xd1   : > { %v481_v29 = vadd.f32 %v480_v27, %v479_v24  ;;  %v520_v30 = vrot.slane %v519_v28, 4 }
  0xd3   : > { %v482_v32 = vrot.slane %v481_v29, 2  ;;  %v521_v33 = vadd.f32 %v520_v30, %v519_v28 }
  0xd5   : > { %v483_v34 = vadd.f32 %v482_v32, %v481_v29  ;;  %v522_v35 = vrot.slane %v521_v33, 2 }
  0xd7   : > { %v484_v36 = vrot.slane %v483_v34, 1  ;;  %v523_v26 = vadd.f32 %v522_v35, %v521_v33 }
  0xd9   : > { %v485_v37 = vadd.f32 %v484_v36, %v483_v34  ;;  %v524_v38 = vrot.slane %v523_v26, 1 }
  0xdb   : > { %v486_v40 = vadd.f32 %v485_v37, %v464_v31  ;;  %v525_v41 = vadd.f32 %v524_v38, %v523_v26 }
  0xdd   : > { %487 = vst [vmem:[%s873_s5] sm:$0x1] %v486_v40  ;;  %v526_v42 = vadd.f32 %v525_v41, %v488_v39 }
  0xdf   : > { %527 = vst [vmem:[%s874_s6] sm:$0x1] %v526_v42 }
  0xe0 PF: > { %s17_s21 = sadd.s32 1, %s722_s21  }
  0xe1   : > { %p14_p5 = scmp.ge.s32.totalorder %s17_s21, 6  }
  0xe3   :  { %16 = sbr.rel (!%p14_p5) target bundleno = 1 (0x1), region = 86 }

// kernel: dense_block.8
= control target key start
LH: loop header
LB: loop body
LE: loop exit
PB: predicated region body
PF: predicated region fallthrough
CT: control target
= control target key end

     0   :  { %s1147_s13 = smov 0   ;;  %s1339_s0 = inlined_call_operand.vmem [shape: bf16[512,4], index: 0, kind: input, shape index: {}]   ;;  %s1340_s1 = inlined_call_operand.vmem [shape: bf16[512,8], index: 1, kind: input, shape index: {}]   ;;  %s1341_s2 = inlined_call_operand.vmem [shape: f32[1,4], index: 2, kind: input, shape index: {}]   ;;  %s1342_s3 = inlined_call_operand.vmem [shape: f32[1,8], index: 3, kind: input, shape index: {}]   ;;  %s1343_s4 = inlined_call_operand.vmem [shape: f32[1,4], index: 4, kind: input, shape index: {}]   ;;  %s1344_s5 = inlined_call_operand.vmem [shape: f32[1,8], index: 5, kind: input, shape index: {}]   ;;  %s1345_s6 = inlined_call_operand.vmem [shape: bf16[4,128], index: 6, kind: input, shape index: {}]   ;;  %s1346_s7 = inlined_call_operand.vmem [shape: bf16[8,128], index: 7, kind: input, shape index: {}]   ;;  %s1347_s8 = inlined_call_operand.vmem [shape: bf16[512,128], index: 8, kind: output, shape index: {0}]   ;;  %s1348_s9 = inlined_call_operand.vmem [shape: f32[1,128], index: 9, kind: output, shape index: {1}]   ;;  %s1349_s10 = inlined_call_operand.vmem [shape: f32[1,128], index: 10, kind: output, shape index: {2}]  }
   0x1 LB: > { %s913_s14 = sadd.s32 4294967295, %s1089_s13   ;;  %p917_p0 = scmp.ge.s32.totalorder %s1089_s13, 1  ;;  %s1089_s13 = sphi %s1147_s13, %s21_s13  }
   0x2   : > { %p319_p1 = scmp.lt.s32.totalorder %s1089_s13, 5 }
   0x4   : > { %p320_p2 = pnand %p917_p0, %p319_p1 }
   0x5   : > { %s918_s15 = sshll.u32 (!%p320_p2), %s913_s14, 4  ;;  %p924_p4 = scmp.ne.s32.totalorder (!%p320_p2), %s913_s14, 0 }
   0x6   : > { %323 = sbr.rel (%p320_p2) target bundleno = 254 (0xfe), region = 52  ;;  %p363_p3 = scmp.lt.s32.totalorder (!%p320_p2), %s918_s15, 63 }
   0xb   : > { %s1351_s15 = smov (!%p363_p3, %s918_s15), 63  ;;  %384 = sbr.rel (%p924_p4) target bundleno = 19 (0x13), region = 56 }
   0xc   : > { %s919_s16 = sshll.u32 %s1351_s15, 2 }
   0xd   : > { %s1158_s19 = scalar_lea.vmem %s1339_s0, %s919_s16  ;;  %s1163_s22 = scalar_lea.vmem %s1340_s1, %s919_s16 }
   0xe   : > { %s1168_s25 = scalar_lea.vmem %s1347_s8, %s919_s16 }
  0x10   : > { %v1091_v0 = vmov 0.0  }
  0x11   : > { %385 = vst [vmem:[%s1348_s9] sm:$0x1] %v1091_v0 }
  0x12   : > { %386 = vst [vmem:[%s1349_s10] sm:$0x1] %v1091_v0 }
  0x13 PF: > { %v580_v1 = vld [vmem:[%s1346_s7] sm:$0xf]  ;;  %vm606_vm0 = vcmask 1043456   ;;  %vm684_vm1 = vcmask 1041408   ;;  %vm581_vm2 = vcmask 64512   ;;  %vm659_vm3 = vcmask 31744  }
  0x14   : > { %v483_v2 = vld [vmem:[%s1345_s6] sm:$0x3]  ;;  %v608_v3 = vsel %vm606_vm0, %v580_v1, 0  ;;  %v1054_v29 = vld [vmem:[%s1163_s22 + $0x8] sm:$0xff]  }
  0x15   : > { %v686_v4 = vsel %vm684_vm1, %v483_v2, 0  ;;  %v976_v5 = vld [vmem:[%s1163_s22] sm:$0xff]   ;;  %617 = vmatpush.bf16.msra.mxu0 %v608_v3  ;;  %1068 = vmatpush.bf16.msra.mxu2 %v608_v3  ;;  %v1047_v38 = vld [vmem:[%s1158_s19 + $0x8] sm:$0xff]   ;;  %v981_v42 = vunpack.c.l.bf16 %v1054_v29  ;;  %v982_v49 = vunpack.c.h.bf16 %v1054_v29 }
  0x16   : > { %695 = vmatpush.bf16.msra.mxu1 %v686_v4  ;;  %v977_v6 = vunpack.c.l.bf16 %v976_v5  ;;  %v978_v7 = vunpack.c.h.bf16 %v976_v5  ;;  %v1186_v8 = vld [vmem:[%s1342_s3] ss:$0 sm:$0xff]  ;;  %1069 = vmatpush.bf16.msra.mxu3 %v686_v4  ;;  %v1058_v47 = vld [vmem:[%s1163_s22 + $0x28] sm:$0xff]   ;;  %v949_v51 = vunpack.c.l.bf16 %v1047_v38  ;;  %v950_v56 = vunpack.c.h.bf16 %v1047_v38 }
  0x17   : > { %v1191_v9 = vld [vmem:[%s1344_s5] ss:$0 sm:$0xff]  ;;  %v522_v50 = vmul.f32 %v1186_v8, %v981_v42  ;;  %v1051_v52 = vld [vmem:[%s1158_s19 + $0x28] sm:$0xff]   ;;  %v523_v57 = vmul.f32 %v1186_v8, %v982_v49  ;;  %v997_v59 = vunpack.c.l.bf16 %v1058_v47  ;;  %v998_v62 = vunpack.c.h.bf16 %v1058_v47 }
  0x18   : > { %v944_v10 = vld [vmem:[%s1158_s19] sm:$0xff]   ;;  %v520_v12 = vmul.f32 %v1186_v8, %v977_v6  ;;  %v521_v13 = vmul.f32 %v1186_v8, %v978_v7  ;;  %v965_v63 = vunpack.c.l.bf16 %v1051_v52  ;;  %v966_v4 = vunpack.c.h.bf16 %v1051_v52 }
  0x19   : > { %v1197_v11 = vld [vmem:[%s1341_s2] ss:$0 sm:$0xff]  ;;  %v945_v14 = vunpack.c.l.bf16 %v944_v10  ;;  %v946_v15 = vunpack.c.h.bf16 %v944_v10  ;;  %v542_v0 = vadd.f32 %v1191_v9, %v522_v50  ;;  %v543_v1 = vadd.f32 %v1191_v9, %v523_v57 }
  0x1a   : > { %v1204_v16 = vld [vmem:[%s1343_s4] ss:$0 sm:$0xff]  ;;  %v540_v21 = vadd.f32 %v1191_v9, %v520_v12  ;;  %v541_v22 = vadd.f32 %v1191_v9, %v521_v13  ;;  %v425_v58 = vmul.f32 %v1197_v11, %v949_v51  ;;  %v426_v61 = vmul.f32 %v1197_v11, %v950_v56 }
  0x1b   : > { %v1057_v17 = vld [vmem:[%s1163_s22 + $0x20] sm:$0xff]   ;;  %v423_v23 = vmul.f32 %v1197_v11, %v945_v14  ;;  %v424_v24 = vmul.f32 %v1197_v11, %v946_v15  ;;  %v530_v2 = vmul.f32 %v1186_v8, %v997_v59  ;;  %v531_v3 = vmul.f32 %v1186_v8, %v998_v62  ;;  %v1056_v59 = vld [vmem:[%s1163_s22 + $0x18] sm:$0xff]  }
  0x1c   : > { %v993_v18 = vunpack.c.l.bf16 %v1057_v17  ;;  %v994_v19 = vunpack.c.h.bf16 %v1057_v17  ;;  %v1050_v20 = vld [vmem:[%s1158_s19 + $0x20] sm:$0xff]   ;;  %v556_v30 = vmax.f32 %v540_v21, 0.0  ;;  %v557_v31 = vmax.f32 %v541_v22, 0.0 }
  0x1d   : > { %v961_v27 = vunpack.c.l.bf16 %v1050_v20  ;;  %v962_v28 = vunpack.c.h.bf16 %v1050_v20  ;;  %v443_v32 = vadd.f32 %v1204_v16, %v423_v23  ;;  %v444_v33 = vadd.f32 %v1204_v16, %v424_v24  ;;  %v1048_v24 = vld [vmem:[%s1158_s19 + $0x10] sm:$0xff]  }
  0x1e   : > { %v528_v25 = vmul.f32 %v1186_v8, %v993_v18  ;;  %v529_v26 = vmul.f32 %v1186_v8, %v994_v19  ;;  %v572_v39 = vpack.c.bf16 %v557_v31, %v556_v30  ;;  %v433_v5 = vmul.f32 %v1197_v11, %v965_v63  ;;  %v1055_v19 = vld [vmem:[%s1163_s22 + $0x10] sm:$0xff]  }
  0x1f   : > { %v431_v36 = vmul.f32 %v1197_v11, %v961_v27  ;;  %v432_v37 = vmul.f32 %v1197_v11, %v962_v28  ;;  %v459_v40 = vmax.f32 %v443_v32, 0.0  ;;  %v460_v41 = vmax.f32 %v444_v33, 0.0  ;;  %v1059_v28 = vld [vmem:[%s1163_s22 + $0x30] sm:$0xff]  }
  0x20   : > { %v548_v34 = vadd.f32 %v1191_v9, %v528_v25  ;;  %v549_v35 = vadd.f32 %v1191_v9, %v529_v26  ;;  %925 = vmatmul.msk.bf16.vlgmr.msra.gmra.mxu0 %vm581_vm2, %v572_v39  ;;  %v445_v6 = vadd.f32 %v1204_v16, %v425_v58  ;;  %v446_v7 = vadd.f32 %v1204_v16, %v426_v61 }
  0x21   : > { %v451_v45 = vadd.f32 %v1204_v16, %v431_v36  ;;  %v452_v46 = vadd.f32 %v1204_v16, %v432_v37  ;;  %v475_v48 = vpack.c.bf16 %v460_v41, %v459_v40  ;;  %v550_v10 = vadd.f32 %v1191_v9, %v530_v2 }
  0x22   : > { %v564_v43 = vmax.f32 %v548_v34, 0.0  ;;  %v565_v44 = vmax.f32 %v549_v35, 0.0  ;;  %v551_v12 = vadd.f32 %v1191_v9, %v531_v3  ;;  %v434_v13 = vmul.f32 %v1197_v11, %v966_v4  ;;  %v1052_v34 = vld [vmem:[%s1158_s19 + $0x30] sm:$0xff]   ;;  %v1060_v4 = vld [vmem:[%s1163_s22 + $0x38] sm:$0xff]  }
  0x23   : > { %v467_v54 = vmax.f32 %v451_v45, 0.0  ;;  %v468_v55 = vmax.f32 %v452_v46, 0.0  ;;  %933 = vmatmul.msk.bf16.vlgmr.msra.gmra.mxu1 %vm659_vm3, %v475_v48  ;;  %v558_v14 = vmax.f32 %v542_v0, 0.0  ;;  %v559_v15 = vmax.f32 %v543_v1, 0.0  ;;  %v1049_v0 = vld [vmem:[%s1158_s19 + $0x18] sm:$0xff]  }
  0x24   : > { %v576_v53 = vpack.c.bf16 %v565_v44, %v564_v43  ;;  %v453_v17 = vadd.f32 %v1204_v16, %v433_v5  ;;  %v454_v18 = vadd.f32 %v1204_v16, %v434_v13  ;;  %v461_v20 = vmax.f32 %v445_v6, 0.0  ;;  %v1053_v13 = vld [vmem:[%s1158_s19 + $0x38] sm:$0xff]  }
  0x25   : > { %v479_v60 = vpack.c.bf16 %v468_v55, %v467_v54  ;;  %v462_v21 = vmax.f32 %v446_v7, 0.0  ;;  %v566_v22 = vmax.f32 %v550_v10, 0.0  ;;  %v567_v23 = vmax.f32 %v551_v12, 0.0 }
  0x26   : > { %929 = vmatmul.msk.bf16.vlgmr.msra.gmra.mxu2 %vm581_vm2, %v576_v53  ;;  %v573_v25 = vpack.c.bf16 %v559_v15, %v558_v14  ;;  %v985_v26 = vunpack.c.l.bf16 %v1055_v19  ;;  %v986_v27 = vunpack.c.h.bf16 %v1055_v19  ;;  %v469_v29 = vmax.f32 %v453_v17, 0.0 }
  0x27   : > { %937 = vmatmul.msk.bf16.vlgmr.msra.gmra.mxu3 %vm659_vm3, %v479_v60  ;;  %v470_v30 = vmax.f32 %v454_v18, 0.0  ;;  %v476_v31 = vpack.c.bf16 %v462_v21, %v461_v20  ;;  %v953_v32 = vunpack.c.l.bf16 %v1048_v24  ;;  %v954_v33 = vunpack.c.h.bf16 %v1048_v24 }
  0x28   : > { %v577_v35 = vpack.c.bf16 %v567_v23, %v566_v22  ;;  %v1001_v36 = vunpack.c.l.bf16 %v1059_v28  ;;  %v1002_v37 = vunpack.c.h.bf16 %v1059_v28  ;;  %v524_v38 = vmul.f32 %v1186_v8, %v985_v26 }
  0x29   : > { %v525_v39 = vmul.f32 %v1186_v8, %v986_v27  ;;  %v480_v40 = vpack.c.bf16 %v470_v30, %v469_v29  ;;  %v969_v41 = vunpack.c.l.bf16 %v1052_v34  ;;  %v970_v42 = vunpack.c.h.bf16 %v1052_v34 }
  0x2a   : > { %v427_v43 = vmul.f32 %v1197_v11, %v953_v32  ;;  %v428_v44 = vmul.f32 %v1197_v11, %v954_v33  ;;  %v532_v45 = vmul.f32 %v1186_v8, %v1001_v36  ;;  %v533_v46 = vmul.f32 %v1186_v8, %v1002_v37 }
  0x2b   : > { %v544_v47 = vadd.f32 %v1191_v9, %v524_v38  ;;  %v545_v48 = vadd.f32 %v1191_v9, %v525_v39  ;;  %v435_v49 = vmul.f32 %v1197_v11, %v969_v41  ;;  %v436_v50 = vmul.f32 %v1197_v11, %v970_v42 }
  0x2c   : > { %v447_v51 = vadd.f32 %v1204_v16, %v427_v43  ;;  %v448_v52 = vadd.f32 %v1204_v16, %v428_v44  ;;  %v552_v53 = vadd.f32 %v1191_v9, %v532_v45  ;;  %v553_v54 = vadd.f32 %v1191_v9, %v533_v46 }
  0x2d   : > { %v560_v55 = vmax.f32 %v544_v47, 0.0  ;;  %v561_v56 = vmax.f32 %v545_v48, 0.0  ;;  %v455_v57 = vadd.f32 %v1204_v16, %v435_v49  ;;  %v456_v58 = vadd.f32 %v1204_v16, %v436_v50 }
  0x2e   : > { %v463_v60 = vmax.f32 %v447_v51, 0.0  ;;  %v464_v61 = vmax.f32 %v448_v52, 0.0  ;;  %v568_v62 = vmax.f32 %v552_v53, 0.0  ;;  %v569_v63 = vmax.f32 %v553_v54, 0.0 }
  0x2f   : > { %v574_v1 = vpack.c.bf16 %v561_v56, %v560_v55  ;;  %v989_v2 = vunpack.c.l.bf16 %v1056_v59  ;;  %v990_v3 = vunpack.c.h.bf16 %v1056_v59  ;;  %v471_v5 = vmax.f32 %v455_v57, 0.0 }
  0x30   : > { %926 = vmatmul.msk.bf16.gmra.mxu0 %vm581_vm2, %v573_v25  ;;  %v472_v6 = vmax.f32 %v456_v58, 0.0  ;;  %v477_v7 = vpack.c.bf16 %v464_v61, %v463_v60  ;;  %v957_v10 = vunpack.c.l.bf16 %v1049_v0  ;;  %v958_v12 = vunpack.c.h.bf16 %v1049_v0 }
  0x31   : > { %v578_v14 = vpack.c.bf16 %v569_v63, %v568_v62  ;;  %v1005_v15 = vunpack.c.l.bf16 %v1060_v4  ;;  %v1006_v17 = vunpack.c.h.bf16 %v1060_v4  ;;  %v526_v18 = vmul.f32 %v1186_v8, %v989_v2 }
  0x32   : > { %v527_v19 = vmul.f32 %v1186_v8, %v990_v3  ;;  %v481_v20 = vpack.c.bf16 %v472_v6, %v471_v5  ;;  %v973_v21 = vunpack.c.l.bf16 %v1053_v13  ;;  %v974_v22 = vunpack.c.h.bf16 %v1053_v13 }
  0x33   : > { %934 = vmatmul.msk.bf16.gmra.mxu1 %vm659_vm3, %v476_v31  ;;  %v429_v23 = vmul.f32 %v1197_v11, %v957_v10  ;;  %v430_v24 = vmul.f32 %v1197_v11, %v958_v12  ;;  %v534_v25 = vmul.f32 %v1186_v8, %v1005_v15  ;;  %v535_v26 = vmul.f32 %v1186_v8, %v1006_v17 }
  0x34   : > { %v546_v27 = vadd.f32 %v1191_v9, %v526_v18  ;;  %v547_v28 = vadd.f32 %v1191_v9, %v527_v19  ;;  %v437_v29 = vmul.f32 %v1197_v11, %v973_v21  ;;  %v438_v30 = vmul.f32 %v1197_v11, %v974_v22 }
  0x35   : > { %v449_v31 = vadd.f32 %v1204_v16, %v429_v23  ;;  %v450_v32 = vadd.f32 %v1204_v16, %v430_v24  ;;  %v554_v33 = vadd.f32 %v1191_v9, %v534_v25  ;;  %v555_v34 = vadd.f32 %v1191_v9, %v535_v26 }
  0x36   : > { %930 = vmatmul.msk.bf16.gmra.mxu2 %vm581_vm2, %v577_v35  ;;  %v562_v35 = vmax.f32 %v546_v27, 0.0  ;;  %v563_v8 = vmax.f32 %v547_v28, 0.0  ;;  %v457_v36 = vadd.f32 %v1204_v16, %v437_v29  ;;  %v458_v37 = vadd.f32 %v1204_v16, %v438_v30 }
  0x37   : > { %938 = vmatmul.msk.bf16.gmra.mxu3 %vm659_vm3, %v480_v40  ;;  %v465_v38 = vmax.f32 %v449_v31, 0.0  ;;  %v466_v39 = vmax.f32 %v450_v32, 0.0  ;;  %v570_v40 = vmax.f32 %v554_v33, 0.0  ;;  %v571_v41 = vmax.f32 %v555_v34, 0.0 }
  0x38   : > { %v575_v42 = vpack.c.bf16 %v563_v8, %v562_v35  ;;  %v473_v11 = vmax.f32 %v457_v36, 0.0  ;;  %v474_v43 = vmax.f32 %v458_v37, 0.0 }
  0x39   : > { %v478_v44 = vpack.c.bf16 %v466_v39, %v465_v38  ;;  %v579_v45 = vpack.c.bf16 %v571_v41, %v570_v40 }
  0x3a   : > { %v482_v46 = vpack.c.bf16 %v474_v43, %v473_v11 }
  0x40   : > { %927 = vmatmul.msk.bf16.gmra.mxu0 %vm581_vm2, %v574_v1 }
  0x43   : > { %935 = vmatmul.msk.bf16.gmra.mxu1 %vm659_vm3, %v477_v7 }
  0x46   : > { %931 = vmatmul.msk.bf16.gmra.mxu2 %vm581_vm2, %v578_v14 }
  0x47   : > { %939 = vmatmul.msk.bf16.gmra.mxu3 %vm659_vm3, %v481_v20 }
  0x50   : > { %928 = vmatmul.msk.bf16.gmra.mxu0 %vm581_vm2, %v575_v42 }
  0x53   : > { %936 = vmatmul.msk.bf16.gmra.mxu1 %vm659_vm3, %v478_v44 }
  0x56   : > { %932 = vmatmul.msk.bf16.gmra.mxu2 %vm581_vm2, %v579_v45 }
  0x57   : > { %940 = vmatmul.msk.bf16.gmra.mxu3 %vm659_vm3, %v482_v46 }
  0x9d   : > { %v619_v9 = vpop.f32.mrf.mxu0 }
  0xa0   : > { %v697_v16 = vpop.f32.mrf.mxu1 }
  0xa1   : > { %v698_v50 = vadd.f32 %v697_v16, %v619_v9 }
  0xa3   : > { %v794_v24 = vmul.f32 %v698_v50, %v698_v50 }
  0xa5   : > { %v621_v47 = vpop.f32.mrf.mxu0 }
  0xa8   : > { %v699_v49 = vpop.f32.mrf.mxu1 }
  0xa9   : > { %v639_v48 = vpop.f32.mrf.mxu2  ;;  %v700_v51 = vadd.f32 %v699_v49, %v621_v47 }
  0xaa   : > { %v717_v52 = vpop.f32.mrf.mxu3 }
  0xab   : > { %v1010_v53 = vpack.c.bf16 %v700_v51, %v698_v50  ;;  %v1299_v56 = vadd.f32 %v717_v52, %v639_v48  ;;  %v795_v22 = vmul.f32 %v700_v51, %v700_v51  ;;  %v770_v25 = vadd.f32 %v700_v51, %v698_v50 }
  0xad   : > { %1011 = vst [vmem:[%s1168_s25] sm:$0xff] %v1010_v53   ;;  %v624_v54 = vpop.f32.mrf.mxu0  ;;  %v810_v30 = vadd.f32 %v795_v22, %v794_v24  ;;  %v802_v53 = vmul.f32 %v1299_v56, %v1299_v56 }
  0xb0   : > { %v702_v57 = vpop.f32.mrf.mxu1 }
  0xb1   : > { %v641_v55 = vpop.f32.mrf.mxu2  ;;  %v703_v0 = vadd.f32 %v702_v57, %v624_v54 }
  0xb2   : > { %v719_v58 = vpop.f32.mrf.mxu3 }
  0xb3   : > { %v1301_v59 = vadd.f32 %v719_v58, %v641_v55  ;;  %v796_v26 = vmul.f32 %v703_v0, %v703_v0  ;;  %v771_v31 = vadd.f32 %v770_v25, %v703_v0 }
  0xb5   : > { %v1030_v60 = vpack.c.bf16 %v1301_v59, %v1299_v56  ;;  %v626_v61 = vpop.f32.mrf.mxu0  ;;  %v811_v35 = vadd.f32 %v810_v30, %v796_v26  ;;  %v803_v57 = vmul.f32 %v1301_v59, %v1301_v59 }
  0xb7   : > { %1064 = vst [vmem:[%s1168_s25 + $0x20] sm:$0xff] %v1030_v60  }
  0xb8   : > { %v704_v63 = vpop.f32.mrf.mxu1 }
  0xb9   : > { %v644_v62 = vpop.f32.mrf.mxu2  ;;  %v705_v1 = vadd.f32 %v704_v63, %v626_v61 }
  0xba   : > { %v722_v2 = vpop.f32.mrf.mxu3 }
  0xbb   : > { %v1015_v3 = vpack.c.bf16 %v705_v1, %v703_v0  ;;  %v723_v6 = vadd.f32 %v722_v2, %v644_v62  ;;  %v797_v32 = vmul.f32 %v705_v1, %v705_v1  ;;  %v772_v8 = vadd.f32 %v771_v31, %v705_v1 }
  0xbd   : > { %1061 = vst [vmem:[%s1168_s25 + $0x8] sm:$0xff] %v1015_v3   ;;  %v629_v4 = vpop.f32.mrf.mxu0  ;;  %v812_v39 = vadd.f32 %v811_v35, %v797_v32  ;;  %v804_v63 = vmul.f32 %v723_v6, %v723_v6  ;;  %v769_v32 = vld [vmem:[%s1348_s9] sm:$0x1] }
  0xbe   : > { %v793_v35 = vld [vmem:[%s1349_s10] sm:$0x1] }
  0xc0   : > { %v707_v7 = vpop.f32.mrf.mxu1 }
  0xc1   : > { %v646_v5 = vpop.f32.mrf.mxu2  ;;  %v708_v18 = vadd.f32 %v707_v7, %v629_v4 }
  0xc2   : > { %v724_v10 = vpop.f32.mrf.mxu3 }
  0xc3   : > { %v1307_v12 = vadd.f32 %v724_v10, %v646_v5  ;;  %v798_v36 = vmul.f32 %v708_v18, %v708_v18  ;;  %v773_v40 = vadd.f32 %v772_v8, %v708_v18 }
  0xc5   : > { %v1035_v13 = vpack.c.bf16 %v1307_v12, %v723_v6  ;;  %v631_v14 = vpop.f32.mrf.mxu0  ;;  %v813_v11 = vadd.f32 %v812_v39, %v798_v36  ;;  %v805_v4 = vmul.f32 %v1307_v12, %v1307_v12 }
  0xc7   : > { %1065 = vst [vmem:[%s1168_s25 + $0x28] sm:$0xff] %v1035_v13  }
  0xc8   : > { %v709_v17 = vpop.f32.mrf.mxu1 }
  0xc9   : > { %v649_v15 = vpop.f32.mrf.mxu2  ;;  %v710_v19 = vadd.f32 %v709_v17, %v631_v14 }
  0xca   : > { %v727_v20 = vpop.f32.mrf.mxu3 }
  0xcb   : > { %v1020_v21 = vpack.c.bf16 %v710_v19, %v708_v18  ;;  %v728_v28 = vadd.f32 %v727_v20, %v649_v15  ;;  %v799_v41 = vmul.f32 %v710_v19, %v710_v19  ;;  %v774_v43 = vadd.f32 %v773_v40, %v710_v19 }
  0xcd   : > { %1062 = vst [vmem:[%s1168_s25 + $0x10] sm:$0xff] %v1020_v21   ;;  %v634_v23 = vpop.f32.mrf.mxu0  ;;  %v814_v9 = vadd.f32 %v813_v11, %v799_v41  ;;  %v806_v10 = vmul.f32 %v728_v28, %v728_v28 }
  0xd0   : > { %v712_v29 = vpop.f32.mrf.mxu1 }
  0xd1   : > { %v651_v27 = vpop.f32.mrf.mxu2  ;;  %v713_v37 = vadd.f32 %v712_v29, %v634_v23 }
  0xd2   : > { %v729_v33 = vpop.f32.mrf.mxu3 }
  0xd3   : > { %v730_v34 = vadd.f32 %v729_v33, %v651_v27  ;;  %v800_v44 = vmul.f32 %v713_v37, %v713_v37  ;;  %v775_v16 = vadd.f32 %v774_v43, %v713_v37 }
  0xd5   : > { %v1040_v38 = vpack.c.bf16 %v730_v34, %v728_v28  ;;  %v636_v42 = vpop.f32.mrf.mxu0  ;;  %v815_v49 = vadd.f32 %v814_v9, %v800_v44 }
  0xd7   : > { %1066 = vst [vmem:[%s1168_s25 + $0x30] sm:$0xff] %v1040_v38  }
  0xd8   : > { %v714_v46 = vpop.f32.mrf.mxu1 }
  0xd9   : > { %v654_v45 = vpop.f32.mrf.mxu2  ;;  %v715_v47 = vadd.f32 %v714_v46, %v636_v42 }
  0xda   : > { %v732_v48 = vpop.f32.mrf.mxu3 }
  0xdb   : > { %v1025_v50 = vpack.c.bf16 %v715_v47, %v713_v37  ;;  %v776_v51 = vadd.f32 %v775_v16, %v715_v47  ;;  %v801_v52 = vmul.f32 %v715_v47, %v715_v47  ;;  %v733_v62 = vadd.f32 %v732_v48, %v654_v45 }
  0xdd   : > { %1063 = vst [vmem:[%s1168_s25 + $0x18] sm:$0xff] %v1025_v50   ;;  %v777_v54 = vadd.f32 %v776_v51, %v1299_v56  ;;  %v816_v55 = vadd.f32 %v815_v49, %v801_v52  ;;  %v808_v19 = vmul.f32 %v733_v62, %v733_v62 }
  0xdf   : > { %v778_v58 = vadd.f32 %v777_v54, %v1301_v59  ;;  %v817_v60 = vadd.f32 %v816_v55, %v802_v53  ;;  %v807_v59 = vmul.f32 %v730_v34, %v730_v34 }
  0xe1   : > { %v656_v61 = vpop.f32.mrf.mxu2  ;;  %v779_v0 = vadd.f32 %v778_v58, %v723_v6  ;;  %v818_v1 = vadd.f32 %v817_v60, %v803_v57 }
  0xe2   : > { %v734_v2 = vpop.f32.mrf.mxu3 }
  0xe3   : > { %v735_v3 = vadd.f32 %v734_v2, %v656_v61  ;;  %v819_v5 = vadd.f32 %v818_v1, %v804_v63  ;;  %v780_v56 = vadd.f32 %v779_v0, %v1307_v12 }
  0xe5   : > { %v1045_v7 = vpack.c.bf16 %v735_v3, %v733_v62  ;;  %v781_v13 = vadd.f32 %v780_v56, %v728_v28  ;;  %v820_v14 = vadd.f32 %v819_v5, %v805_v4  ;;  %v809_v22 = vmul.f32 %v735_v3, %v735_v3 }
  0xe7   : > { %1067 = vst [vmem:[%s1168_s25 + $0x38] sm:$0xff] %v1045_v7   ;;  %v782_v15 = vadd.f32 %v781_v13, %v730_v34  ;;  %v821_v17 = vadd.f32 %v820_v14, %v806_v10 }
  0xe9   : > { %v783_v18 = vadd.f32 %v782_v15, %v733_v62  ;;  %v822_v6 = vadd.f32 %v821_v17, %v807_v59 }
  0xeb   : > { %v823_v20 = vadd.f32 %v822_v6, %v808_v19  ;;  %v784_v21 = vadd.f32 %v783_v18, %v735_v3 }
  0xed   : > { %v785_v23 = vrot.slane %v784_v21, 4  ;;  %v824_v24 = vadd.f32 %v823_v20, %v809_v22 }
  0xef   : > { %v786_v25 = vadd.f32 %v785_v23, %v784_v21  ;;  %v825_v26 = vrot.slane %v824_v24, 4 }
  0xf1   : > { %v787_v27 = vrot.slane %v786_v25, 2  ;;  %v826_v12 = vadd.f32 %v825_v26, %v824_v24 }
  0xf3   : > { %v788_v29 = vadd.f32 %v787_v27, %v786_v25  ;;  %v827_v30 = vrot.slane %v826_v12, 2 }
  0xf5   : > { %v789_v28 = vrot.slane %v788_v29, 1  ;;  %v828_v31 = vadd.f32 %v827_v30, %v826_v12 }
  0xf7   : > { %v790_v33 = vadd.f32 %v789_v28, %v788_v29  ;;  %v829_v34 = vrot.slane %v828_v31, 1 }
  0xf9   : > { %v791_v8 = vadd.f32 %v790_v33, %v769_v32  ;;  %v830_v36 = vadd.f32 %v829_v34, %v828_v31 }
  0xfb   : > { %792 = vst [vmem:[%s1348_s9] sm:$0x1] %v791_v8  ;;  %v831_v37 = vadd.f32 %v830_v36, %v793_v35 }
  0xfd   : > { %832 = vst [vmem:[%s1349_s10] sm:$0x1] %v831_v37 }
  0xfe PF: > { %s21_s13 = sadd.s32 1, %s1089_s13  }
  0xff   : > { %p18_p5 = scmp.ge.s32.totalorder %s21_s13, 6  }
 0x101   :  { %20 = sbr.rel (!%p18_p5) target bundleno = 1 (0x1), region = 105 }

// kernel: dense_block.7
= control target key start
LH: loop header
LB: loop body
LE: loop exit
PB: predicated region body
PF: predicated region fallthrough
CT: control target
= control target key end

     0   :  { %s4422_s21 = smov 0   ;;  %s5163_s0 = inlined_call_operand.vmem [shape: bf16[2,16,16,128], index: 0, kind: input, shape index: {}]   ;;  %s5164_s1 = inlined_call_operand.vmem [shape: f32[1,128], index: 1, kind: input, shape index: {}]   ;;  %s5165_s2 = inlined_call_operand.vmem [shape: f32[1,128], index: 2, kind: input, shape index: {}]   ;;  %s5166_s3 = inlined_call_operand.vmem [shape: bf16[1152,128], index: 3, kind: input, shape index: {}]   ;;  %s5167_s4 = inlined_call_operand.vmem [shape: bf16[2,16,16,128], index: 4, kind: output, shape index: {0}]   ;;  %s5168_s5 = inlined_call_operand.vmem [shape: f32[1,128], index: 5, kind: output, shape index: {1}]   ;;  %s5169_s6 = inlined_call_operand.vmem [shape: f32[1,128], index: 6, kind: output, shape index: {2}]  }
   0x1 LB: > { %s3793_s22 = sadd.s32 4294967295, %s4384_s21   ;;  %p3797_p0 = scmp.ge.s32.totalorder %s4384_s21, 1  ;;  %s4384_s21 = sphi %s4422_s21, %s17_s21  }
   0x2   : > { %p207_p1 = scmp.lt.s32.totalorder %s4384_s21, 3 }
   0x4   : > { %p208_p2 = pnand %p3797_p0, %p207_p1 }
   0x5   : > { %p237_p3 = scmp.lt.s32.totalorder (!%p208_p2), %s3793_s22, 1  ;;  %p3802_p4 = scmp.ne.s32.totalorder (!%p208_p2), %s3793_s22, 0 }
   0x6   : > { %211 = sbr.rel (%p208_p2) target bundleno = 831 (0x33f), region = 36 }
   0xb   : > { %s238_s23 = scalar_select %p237_p3, %s3793_s22, 1 }
   0xc   : > { %250 = sbr.rel (%p3802_p4) target bundleno = 74 (0x4a), region = 40 }
   0xd   : > { %s4093_s24 = sshll.u32 %s238_s23, 7 }
   0xe   : > { %s4433_s27 = scalar_lea.vmem %s5163_s0, %s4093_s24  ;;  %s4438_s30 = scalar_lea.vmem %s5167_s4, %s4093_s24 }
  0x11   : > { %v4386_v0 = vmov 0.0  }
  0x12   : > { %251 = vst [vmem:[#allocation2] sm:$0xff] %v4386_v0 }
  0x13   : > { %252 = vst [vmem:[#allocation2 + $0x8] sm:$0xff] %v4386_v0 }
  0x14   : > { %253 = vst [vmem:[#allocation2 + $0x10] sm:$0x3] %v4386_v0 }
  0x15   : > { %254 = vst [vmem:[#allocation2 + $0x18] sm:$0xff] %v4386_v0 }
  0x16   : > { %255 = vst [vmem:[#allocation2 + $0x20] sm:$0xff] %v4386_v0 }
  0x17   : > { %256 = vst [vmem:[#allocation2 + $0x28] sm:$0x3] %v4386_v0 }
  0x18   : > { %257 = vst [vmem:[#allocation2 + $0x30] sm:$0xff] %v4386_v0 }
  0x19   : > { %258 = vst [vmem:[#allocation2 + $0x38] sm:$0xff] %v4386_v0 }
  0x1a   : > { %259 = vst [vmem:[#allocation2 + $0x40] sm:$0x3] %v4386_v0 }
  0x1b   : > { %260 = vst [vmem:[#allocation2 + $0x48] sm:$0xff] %v4386_v0 }
  0x1c   : > { %261 = vst [vmem:[#allocation2 + $0x50] sm:$0xff] %v4386_v0 }
  0x1d   : > { %262 = vst [vmem:[#allocation2 + $0x58] sm:$0x3] %v4386_v0 }
  0x1e   : > { %263 = vst [vmem:[#allocation2 + $0x60] sm:$0xff] %v4386_v0 }
  0x1f   : > { %264 = vst [vmem:[#allocation2 + $0x68] sm:$0xff] %v4386_v0 }
  0x20   : > { %265 = vst [vmem:[#allocation2 + $0x70] sm:$0x3] %v4386_v0 }
  0x21   : > { %266 = vst [vmem:[#allocation2 + $0x78] sm:$0xff] %v4386_v0 }
  0x22   : > { %267 = vst [vmem:[#allocation2 + $0x80] sm:$0xff] %v4386_v0 }
  0x23   : > { %268 = vst [vmem:[#allocation2 + $0x88] sm:$0x3] %v4386_v0 }
  0x24   : > { %269 = vst [vmem:[#allocation2 + $0x90] sm:$0xff] %v4386_v0 }
  0x25   : > { %270 = vst [vmem:[#allocation2 + $0x98] sm:$0xff] %v4386_v0 }
  0x26   : > { %271 = vst [vmem:[#allocation2 + $0xa0] sm:$0x3] %v4386_v0 }
  0x27   : > { %272 = vst [vmem:[#allocation2 + $0xa8] sm:$0xff] %v4386_v0 }
  0x28   : > { %273 = vst [vmem:[#allocation2 + $0xb0] sm:$0xff] %v4386_v0 }
  0x29   : > { %274 = vst [vmem:[#allocation2 + $0xb8] sm:$0x3] %v4386_v0 }
  0x2a   : > { %275 = vst [vmem:[#allocation2 + $0xc0] sm:$0xff] %v4386_v0 }
  0x2b   : > { %276 = vst [vmem:[#allocation2 + $0xc8] sm:$0xff] %v4386_v0 }
  0x2c   : > { %277 = vst [vmem:[#allocation2 + $0xd0] sm:$0x3] %v4386_v0 }
  0x2d   : > { %278 = vst [vmem:[#allocation2 + $0xd8] sm:$0xff] %v4386_v0 }
  0x2e   : > { %279 = vst [vmem:[#allocation2 + $0xe0] sm:$0xff] %v4386_v0 }
  0x2f   : > { %280 = vst [vmem:[#allocation2 + $0xe8] sm:$0x3] %v4386_v0 }
  0x30   : > { %281 = vst [vmem:[#allocation2 + $0xf0] sm:$0xff] %v4386_v0 }
  0x31   : > { %282 = vst [vmem:[#allocation2 + $0xf8] sm:$0xff] %v4386_v0 }
  0x32   : > { %283 = vst [vmem:[#allocation2 + $0x100] sm:$0x3] %v4386_v0 }
  0x33   : > { %284 = vst [vmem:[#allocation2 + $0x108] sm:$0xff] %v4386_v0 }
  0x34   : > { %285 = vst [vmem:[#allocation2 + $0x110] sm:$0xff] %v4386_v0 }
  0x35   : > { %286 = vst [vmem:[#allocation2 + $0x118] sm:$0x3] %v4386_v0 }
  0x36   : > { %287 = vst [vmem:[#allocation2 + $0x120] sm:$0xff] %v4386_v0 }
  0x37   : > { %288 = vst [vmem:[#allocation2 + $0x128] sm:$0xff] %v4386_v0 }
  0x38   : > { %289 = vst [vmem:[#allocation2 + $0x130] sm:$0x3] %v4386_v0 }
  0x39   : > { %290 = vst [vmem:[#allocation2 + $0x138] sm:$0xff] %v4386_v0 }
  0x3a   : > { %291 = vst [vmem:[#allocation2 + $0x140] sm:$0xff] %v4386_v0 }
  0x3b   : > { %292 = vst [vmem:[#allocation2 + $0x148] sm:$0x3] %v4386_v0 }
  0x3c   : > { %293 = vst [vmem:[#allocation2 + $0x150] sm:$0xff] %v4386_v0 }
  0x3d   : > { %294 = vst [vmem:[#allocation2 + $0x158] sm:$0xff] %v4386_v0 }
  0x3e   : > { %295 = vst [vmem:[#allocation2 + $0x160] sm:$0x3] %v4386_v0 }
  0x3f   : > { %296 = vst [vmem:[#allocation2 + $0x168] sm:$0xff] %v4386_v0 }
  0x40   : > { %297 = vst [vmem:[#allocation2 + $0x170] sm:$0xff] %v4386_v0 }
  0x41   : > { %298 = vst [vmem:[#allocation2 + $0x178] sm:$0x3] %v4386_v0 }
  0x42   : > { %299 = vst [vmem:[#allocation2 + $0x180] sm:$0xff] %v4386_v0 }
  0x43   : > { %300 = vst [vmem:[#allocation2 + $0x188] sm:$0xff] %v4386_v0 }
  0x44   : > { %301 = vst [vmem:[#allocation2 + $0x190] sm:$0x3] %v4386_v0 }
  0x45   : > { %302 = vst [vmem:[#allocation2 + $0x198] sm:$0xff] %v4386_v0 }
  0x46   : > { %303 = vst [vmem:[#allocation2 + $0x1a0] sm:$0xff] %v4386_v0 }
  0x47   : > { %304 = vst [vmem:[#allocation2 + $0x1a8] sm:$0x3] %v4386_v0 }
  0x48   : > { %305 = vst [vmem:[%s5168_s5] sm:$0x1] %v4386_v0 }
  0x49   : > { %306 = vst [vmem:[%s5169_s6] sm:$0x1] %v4386_v0 }
  0x4a PF: > { %v4110_v1 = vld [vmem:[%s5166_s3 + $0x78] sm:$0xff]  ;;  %v4109_v2 = vld [vmem:[%s5166_s3 + $0x70] sm:$0xff]  ;;  %v4456_v6 = vld [vmem:[%s5164_s1] ss:$0 sm:$0xff] }
  0x4b   : > { %4341 = vmatpush.bf16.msra.mxu1 %v4110_v1  ;;  %4342 = vmatpush.bf16.msra.mxu2 %v4110_v1  ;;  %v4313_v3 = vld [vmem:[%s4433_s27 + $0x18] sm:$0xff]   ;;  %v4461_v7 = vld [vmem:[%s5165_s2] ss:$0 sm:$0xff]  ;;  %v4108_v14 = vld [vmem:[%s5166_s3 + $0x68] sm:$0xff] }
  0x4c   : > { %4343 = vmatpush.bf16.msra.mxu3 %v4110_v1  ;;  %812 = vmatpush.bf16.msra.mxu0 %v4110_v1  ;;  %v4181_v4 = vunpack.c.l.bf16 %v4313_v3  ;;  %v4182_v5 = vunpack.c.h.bf16 %v4313_v3  ;;  %v4317_v8 = vld [vmem:[%s4433_s27 + $0x38] sm:$0xff]   ;;  %v4314_v23 = vld [vmem:[%s4433_s27 + $0x20] sm:$0xff]   ;;  %v589_v38 = vld [vmem:[#allocation2 + $0x9] sm:$0xff] }
  0x4d   : > { %v4321_v9 = vld [vmem:[%s4433_s27 + $0x58] sm:$0xff]   ;;  %v4197_v12 = vunpack.c.l.bf16 %v4317_v8  ;;  %v4198_v13 = vunpack.c.h.bf16 %v4317_v8  ;;  %v4107_v27 = vld [vmem:[%s5166_s3 + $0x60] sm:$0xff]  ;;  %v4185_v31 = vunpack.c.l.bf16 %v4314_v23  ;;  %v4186_v33 = vunpack.c.h.bf16 %v4314_v23  ;;  %v4105_v55 = vld [vmem:[%s5166_s3 + $0x50] sm:$0xff] }
  0x4e   : > { %v381_v10 = vmul.f32 %v4456_v6, %v4181_v4  ;;  %v382_v11 = vmul.f32 %v4456_v6, %v4182_v5  ;;  %v4213_v15 = vunpack.c.l.bf16 %v4321_v9  ;;  %v4214_v16 = vunpack.c.h.bf16 %v4321_v9  ;;  %v588_v35 = vld [vmem:[#allocation2 + $0x1] sm:$0xff]  ;;  %v4106_v40 = vld [vmem:[%s5166_s3 + $0x58] sm:$0xff] }
  0x4f   : > { %4344 = vmatpush.bf16.msra.mxu1 %v4109_v2  ;;  %4345 = vmatpush.bf16.msra.mxu2 %v4109_v2  ;;  %v389_v19 = vmul.f32 %v4456_v6, %v4197_v12  ;;  %v390_v20 = vmul.f32 %v4456_v6, %v4198_v13  ;;  %v4318_v36 = vld [vmem:[%s4433_s27 + $0x40] sm:$0xff]   ;;  %v383_v39 = vmul.f32 %v4456_v6, %v4185_v31 }
  0x50   : > { %4346 = vmatpush.bf16.msra.mxu3 %v4109_v2  ;;  %813 = vmatpush.bf16.msra.mxu0 %v4109_v2  ;;  %v417_v17 = vadd.f32 %v4461_v7, %v381_v10  ;;  %v418_v18 = vadd.f32 %v4461_v7, %v382_v11  ;;  %v397_v21 = vmul.f32 %v4456_v6, %v4213_v15  ;;  %v4322_v42 = vld [vmem:[%s4433_s27 + $0x60] sm:$0xff]   ;;  %v4201_v45 = vunpack.c.l.bf16 %v4318_v36  ;;  %v4315_v10 = vld [vmem:[%s4433_s27 + $0x28] sm:$0xff]  }
  0x51   : > { %v398_v22 = vmul.f32 %v4456_v6, %v4214_v16  ;;  %v425_v26 = vadd.f32 %v4461_v7, %v389_v19  ;;  %v426_v28 = vadd.f32 %v4461_v7, %v390_v20  ;;  %v620_v43 = vpack.c.bf16 %v588_v35, %v588_v35  ;;  %v4168_v54 = vld [vmem:[%s4433_s27] sm:$0xff]   ;;  %v4104_v11 = vld [vmem:[%s5166_s3 + $0x48] sm:$0xff] }
  0x52   : > { %v4477_v24 = vmax.f32 %v417_v17, 0.0  ;;  %v4479_v25 = vmax.f32 %v418_v18, 0.0  ;;  %v433_v29 = vadd.f32 %v4461_v7, %v397_v21  ;;  %v384_v44 = vmul.f32 %v4456_v6, %v4186_v33 }
  0x53   : > { %4347 = vmatpush.bf16.msra.mxu1 %v4108_v14  ;;  %4348 = vmatpush.bf16.msra.mxu2 %v4108_v14  ;;  %v434_v30 = vadd.f32 %v4461_v7, %v398_v22  ;;  %v4489_v32 = vmax.f32 %v425_v26, 0.0  ;;  %v4492_v34 = vmax.f32 %v426_v28, 0.0  ;;  %v621_v48 = vpack.c.bf16 %v589_v38, %v589_v38  ;;  %v4103_v28 = vld [vmem:[%s5166_s3 + $0x40] sm:$0xff] }
  0x54   : > { %4349 = vmatpush.bf16.msra.mxu3 %v4108_v14  ;;  %814 = vmatpush.bf16.msra.mxu0 %v4108_v14  ;;  %482 = vst [vmem:[#allocation2 + $0x61] sm:$0xff] %v4477_v24  ;;  %v4496_v37 = vmax.f32 %v433_v29, 0.0  ;;  %v628_v46 = vpack.c.bf16 %v4477_v24, %v4477_v24  ;;  %v629_v47 = vpack.c.bf16 %v4479_v25, %v4479_v25  ;;  %v4202_v51 = vunpack.c.h.bf16 %v4318_v36  ;;  %v4319_v24 = vld [vmem:[%s4433_s27 + $0x48] sm:$0xff]  }
  0x55   : > { %483 = vst [vmem:[#allocation2 + $0x69] sm:$0xff] %v4479_v25  ;;  %v4503_v41 = vmax.f32 %v434_v30, 0.0  ;;  %v419_v49 = vadd.f32 %v4461_v7, %v383_v39  ;;  %v420_v50 = vadd.f32 %v4461_v7, %v384_v44  ;;  %v391_v52 = vmul.f32 %v4456_v6, %v4201_v45  ;;  %v4126_v39 = vld [vmem:[%s5166_s3 + $0xf8] sm:$0xff] }
  0x56   : > { %490 = vst [vmem:[#allocation2 + $0xc1] sm:$0xff] %v4489_v32  ;;  %v4217_v53 = vunpack.c.l.bf16 %v4322_v42  ;;  %v636_v56 = vpack.c.bf16 %v4489_v32, %v4489_v32  ;;  %v637_v57 = vpack.c.bf16 %v4492_v34, %v4492_v34  ;;  %v4218_v59 = vunpack.c.h.bf16 %v4322_v42 }
  0x57   : > { %4350 = vmatpush.bf16.msra.mxu1 %v4107_v27  ;;  %4351 = vmatpush.bf16.msra.mxu2 %v4107_v27  ;;  %491 = vst [vmem:[#allocation2 + $0xc9] sm:$0xff] %v4492_v34  ;;  %v4524_v58 = vmax.f32 %v419_v49, 0.0  ;;  %v4526_v60 = vmax.f32 %v420_v50, 0.0  ;;  %v392_v61 = vmul.f32 %v4456_v6, %v4202_v51  ;;  %v427_v62 = vadd.f32 %v4461_v7, %v391_v52  ;;  %v4102_v50 = vld [vmem:[%s5166_s3 + $0x38] sm:$0xff] }
  0x58   : > { %4352 = vmatpush.bf16.msra.mxu3 %v4107_v27  ;;  %815 = vmatpush.bf16.msra.mxu0 %v4107_v27  ;;  %498 = vst [vmem:[#allocation2 + $0x121] sm:$0xff] %v4496_v37  ;;  %v399_v63 = vmul.f32 %v4456_v6, %v4217_v53  ;;  %v644_v0 = vpack.c.bf16 %v4496_v37, %v4496_v37  ;;  %v4169_v2 = vunpack.c.l.bf16 %v4168_v54  ;;  %v4170_v3 = vunpack.c.h.bf16 %v4168_v54  ;;  %v4118_v37 = vld [vmem:[%s5166_s3 + $0xb8] sm:$0xff] }
  0x59   : > { %499 = vst [vmem:[#allocation2 + $0x129] sm:$0xff] %v4503_v41  ;;  %v400_v1 = vmul.f32 %v4456_v6, %v4218_v59  ;;  %v645_v4 = vpack.c.bf16 %v4503_v41, %v4503_v41  ;;  %v428_v5 = vadd.f32 %v4461_v7, %v392_v61  ;;  %v4539_v8 = vmax.f32 %v427_v62, 0.0  ;;  %v4323_v41 = vld [vmem:[%s4433_s27 + $0x68] sm:$0xff]   ;;  %v4134_v51 = vld [vmem:[%s5166_s3 + $0x138] sm:$0xff] }
  0x5a   : > { %484 = vst [vmem:[#allocation2 + $0x79] sm:$0xff] %v4524_v58  ;;  %v435_v9 = vadd.f32 %v4461_v7, %v399_v63  ;;  %v4546_v12 = vunpack.c.l.b16 %v620_v43  ;;  %v375_v14 = vmul.f32 %v4456_v6, %v4169_v2  ;;  %v376_v15 = vmul.f32 %v4456_v6, %v4170_v3 }
  0x5b   : > { %4353 = vmatpush.bf16.msra.mxu1 %v4106_v40  ;;  %4354 = vmatpush.bf16.msra.mxu2 %v4106_v40  ;;  %485 = vst [vmem:[#allocation2 + $0x81] sm:$0xff] %v4526_v60  ;;  %v436_v13 = vadd.f32 %v4461_v7, %v400_v1  ;;  %v708_v16 = vunpack.c.l.b16 %v628_v46  ;;  %v709_v17 = vunpack.c.l.b16 %v629_v47  ;;  %v4551_v18 = vunpack.c.l.b16 %v621_v48  ;;  %v4311_v46 = vld [vmem:[%s4433_s27 + $0x8] sm:$0xff]  }
  0x5c   : > { %4355 = vmatpush.bf16.msra.mxu3 %v4106_v40  ;;  %816 = vmatpush.bf16.msra.mxu0 %v4106_v40  ;;  %v4553_v19 = vmax.f32 %v428_v5, 0.0  ;;  %492 = vst [vmem:[#allocation2 + $0xd9] sm:$0xff] %v4539_v8  ;;  %v4556_v20 = vmax.f32 %v435_v9, 0.0  ;;  %v411_v21 = vadd.f32 %v4461_v7, %v375_v14  ;;  %v412_v22 = vadd.f32 %v4461_v7, %v376_v15  ;;  %v4101_v5 = vld [vmem:[%s5166_s3 + $0x30] sm:$0xff]  ;;  %v4124_v14 = vld [vmem:[%s5166_s3 + $0xe8] sm:$0xff] }
  0x5d   : > { %v4189_v23 = vunpack.c.l.bf16 %v4315_v10  ;;  %v716_v25 = vunpack.c.l.b16 %v636_v56  ;;  %v717_v26 = vunpack.c.l.b16 %v637_v57  ;;  %v4562_v27 = vmax.f32 %v436_v13, 0.0  ;;  %v4117_v56 = vld [vmem:[%s5166_s3 + $0xb0] sm:$0xff]  ;;  %v4116_v13 = vld [vmem:[%s5166_s3 + $0xa8] sm:$0xff] }
  0x5e   : > { %493 = vst [vmem:[#allocation2 + $0xe1] sm:$0xff] %v4553_v19  ;;  %v724_v29 = vunpack.c.l.b16 %v644_v0  ;;  %v725_v30 = vunpack.c.l.b16 %v645_v4  ;;  %v4568_v31 = vmax.f32 %v411_v21, 0.0  ;;  %v4190_v32 = vunpack.c.h.bf16 %v4315_v10  ;;  %v4125_v57 = vld [vmem:[%s5166_s3 + $0xf0] sm:$0xff] }
  0x5f   : > { %4356 = vmatpush.bf16.msra.mxu1 %v4105_v55  ;;  %4357 = vmatpush.bf16.msra.mxu2 %v4105_v55  ;;  %500 = vst [vmem:[#allocation2 + $0x139] sm:$0xff] %v4556_v20  ;;  %v4571_v33 = vmax.f32 %v412_v22, 0.0  ;;  %v385_v34 = vmul.f32 %v4456_v6, %v4189_v23  ;;  %v4205_v35 = vunpack.c.l.bf16 %v4319_v24  ;;  %v736_v36 = vpack.c.b16 %v709_v17, %v708_v16  ;;  %v4133_v9 = vld [vmem:[%s5166_s3 + $0x130] sm:$0xff] }
  0x60   : > { %4358 = vmatpush.bf16.msra.mxu3 %v4105_v55  ;;  %817 = vmatpush.bf16.msra.mxu0 %v4105_v55  ;;  %501 = vst [vmem:[#allocation2 + $0x141] sm:$0xff] %v4562_v27  ;;  %v732_v38 = vpack.c.b16 %v4551_v18, %v4546_v12  ;;  %v386_v40 = vmul.f32 %v4456_v6, %v4190_v32  ;;  %v4206_v44 = vunpack.c.h.bf16 %v4319_v24  ;;  %v4221_v55 = vunpack.c.l.bf16 %v4323_v41  ;;  %v4316_v18 = vld [vmem:[%s4433_s27 + $0x30] sm:$0xff]  }
  0x61   : > { %476 = vst [vmem:[#allocation2 + $0x19] sm:$0xff] %v4568_v31  ;;  %v740_v42 = vpack.c.b16 %v717_v26, %v716_v25  ;;  %v421_v43 = vadd.f32 %v4461_v7, %v385_v34  ;;  %v393_v45 = vmul.f32 %v4456_v6, %v4205_v35  ;;  %v744_v47 = vpack.c.b16 %v725_v30, %v724_v29  ;;  %v4320_v23 = vld [vmem:[%s4433_s27 + $0x50] sm:$0xff]   ;;  %v4132_v30 = vld [vmem:[%s5166_s3 + $0x128] sm:$0xff] }
  0x62   : > { %477 = vst [vmem:[#allocation2 + $0x21] sm:$0xff] %v4571_v33  ;;  %v630_v48 = vpack.c.bf16 %v4524_v58, %v4524_v58  ;;  %v422_v49 = vadd.f32 %v4461_v7, %v386_v40  ;;  %v394_v53 = vmul.f32 %v4456_v6, %v4206_v44  ;;  %v631_v58 = vpack.c.bf16 %v4526_v60, %v4526_v60  ;;  %v4324_v44 = vld [vmem:[%s4433_s27 + $0x70] sm:$0xff]  }
  0x63   : > { %4359 = vmatpush.bf16.msra.mxu1 %v4104_v11  ;;  %4360 = vmatpush.bf16.msra.mxu2 %v4104_v11  ;;  %v4598_v52 = vmax.f32 %v421_v43, 0.0  ;;  %v429_v54 = vadd.f32 %v4461_v7, %v393_v45  ;;  %v4222_v61 = vunpack.c.h.bf16 %v4323_v41  ;;  %v4173_v62 = vunpack.c.l.bf16 %v4311_v46 }
  0x64   : > { %4361 = vmatpush.bf16.msra.mxu3 %v4104_v11  ;;  %818 = vmatpush.bf16.msra.mxu0 %v4104_v11  ;;  %v4610_v59 = vmax.f32 %v422_v49, 0.0  ;;  %v638_v63 = vpack.c.bf16 %v4539_v8, %v4539_v8  ;;  %v430_v0 = vadd.f32 %v4461_v7, %v394_v53  ;;  %v4174_v2 = vunpack.c.h.bf16 %v4311_v46  ;;  %v4131_v49 = vld [vmem:[%s5166_s3 + $0x120] sm:$0xff] }
  0x65   : > { %486 = vst [vmem:[#allocation2 + $0x91] sm:$0xff] %v4598_v52  ;;  %v4616_v1 = vmax.f32 %v429_v54, 0.0  ;;  %v639_v60 = vpack.c.bf16 %v4553_v19, %v4553_v19  ;;  %v401_v3 = vmul.f32 %v4456_v6, %v4221_v55  ;;  %v402_v4 = vmul.f32 %v4456_v6, %v4222_v61  ;;  %v4312_v54 = vld [vmem:[%s4433_s27 + $0x10] sm:$0xff]  }
  0x66   : > { %487 = vst [vmem:[#allocation2 + $0x99] sm:$0xff] %v4610_v59  ;;  %v646_v8 = vpack.c.bf16 %v4556_v20, %v4556_v20  ;;  %v4631_v10 = vmax.f32 %v430_v0, 0.0  ;;  %v377_v11 = vmul.f32 %v4456_v6, %v4173_v62  ;;  %v710_v12 = vunpack.c.l.b16 %v630_v48  ;;  %v4099_v48 = vld [vmem:[%s5166_s3 + $0x20] sm:$0xff] }
  0x67   : > { %4362 = vmatpush.bf16.msra.mxu1 %v4103_v28  ;;  %4363 = vmatpush.bf16.msra.mxu2 %v4103_v28  ;;  %494 = vst [vmem:[#allocation2 + $0xf1] sm:$0xff] %v4616_v1  ;;  %v437_v15 = vadd.f32 %v4461_v7, %v401_v3  ;;  %v438_v16 = vadd.f32 %v4461_v7, %v402_v4  ;;  %v711_v19 = vunpack.c.l.b16 %v631_v58  ;;  %v4193_v22 = vunpack.c.l.bf16 %v4316_v18  ;;  %v4122_v58 = vld [vmem:[%s5166_s3 + $0xd8] sm:$0xff] }
  0x68   : > { %4364 = vmatpush.bf16.msra.mxu3 %v4103_v28  ;;  %819 = vmatpush.bf16.msra.mxu0 %v4103_v28  ;;  %v378_v17 = vmul.f32 %v4456_v6, %v4174_v2  ;;  %v647_v20 = vpack.c.bf16 %v4562_v27, %v4562_v27  ;;  %495 = vst [vmem:[#allocation2 + $0xf9] sm:$0xff] %v4631_v10  ;;  %v4657_v29 = vunpack.c.l.b16 %v638_v63  ;;  %v4100_v27 = vld [vmem:[%s5166_s3 + $0x28] sm:$0xff]  ;;  %v4194_v32 = vunpack.c.h.bf16 %v4316_v18 }
  0x69   : > { %v413_v21 = vadd.f32 %v4461_v7, %v377_v11  ;;  %v622_v24 = vpack.c.bf16 %v4568_v31, %v4568_v31  ;;  %v623_v25 = vpack.c.bf16 %v4571_v33, %v4571_v33  ;;  %v4654_v26 = vmax.f32 %v437_v15, 0.0  ;;  %v4130_v11 = vld [vmem:[%s5166_s3 + $0x118] sm:$0xff]  ;;  %v4121_v15 = vld [vmem:[%s5166_s3 + $0xd0] sm:$0xff] }
  0x6a   : > { %840 = vmatmul.bf16.vlgmr.msra.gmra.mxu1 %v736_v36  ;;  %860 = vmatmul.bf16.vlgmr.msra.gmra.mxu2 %v740_v42  ;;  %v414_v28 = vadd.f32 %v4461_v7, %v378_v17  ;;  %v4665_v31 = vmax.f32 %v438_v16, 0.0  ;;  %v387_v33 = vmul.f32 %v4456_v6, %v4193_v22  ;;  %v719_v34 = vunpack.c.l.b16 %v639_v60  ;;  %v4115_v36 = vld [vmem:[%s5166_s3 + $0xa0] sm:$0xff] }
  0x6b   : > { %1358 = vmatpush.bf16.msrb.mxu2 %v4118_v37  ;;  %880 = vmatmul.bf16.vlgmr.msra.gmra.mxu3 %v744_v47  ;;  %v4668_v35 = vunpack.c.l.b16 %v646_v8  ;;  %v4123_v37 = vld [vmem:[%s5166_s3 + $0xe0] sm:$0xff]  ;;  %502 = vst [vmem:[#allocation2 + $0x151] sm:$0xff] %v4654_v26  ;;  %v727_v40 = vunpack.c.l.b16 %v647_v20  ;;  %v388_v42 = vmul.f32 %v4456_v6, %v4194_v32  ;;  %v702_v45 = vunpack.c.l.b16 %v622_v24  ;;  %v4120_v32 = vld [vmem:[%s5166_s3 + $0xc8] sm:$0xff] }
  0x6c   : > { %1703 = vmatpush.bf16.msrb.mxu3 %v4126_v39  ;;  %820 = vmatmul.bf16.vlgmr.msra.gmra.mxu0 %v732_v38  ;;  %v4677_v38 = vmax.f32 %v413_v21, 0.0  ;;  %v4209_v39 = vunpack.c.l.bf16 %v4320_v23  ;;  %503 = vst [vmem:[#allocation2 + $0x159] sm:$0xff] %v4665_v31  ;;  %v4680_v41 = vmax.f32 %v414_v28, 0.0  ;;  %v423_v43 = vadd.f32 %v4461_v7, %v387_v33  ;;  %v4129_v28 = vld [vmem:[%s5166_s3 + $0x110] sm:$0xff] }
  0x6d   : > { %1045 = vmatpush.bf16.msrb.mxu1 %v4102_v50  ;;  %2048 = vmatpush.bf16.msrb.mxu0 %v4134_v51  ;;  %v703_v46 = vunpack.c.l.b16 %v623_v25  ;;  %v4210_v47 = vunpack.c.h.bf16 %v4320_v23  ;;  %v424_v50 = vadd.f32 %v4461_v7, %v388_v42  ;;  %v4698_v55 = vpack.c.b16 %v711_v19, %v710_v12  ;;  %v4097_v23 = vld [vmem:[%s5166_s3 + $0x10] sm:$0xff] }
  0x6e   : > { %478 = vst [vmem:[#allocation2 + $0x31] sm:$0xff] %v4677_v38  ;;  %v4694_v51 = vmax.f32 %v423_v43, 0.0  ;;  %v395_v53 = vmul.f32 %v4456_v6, %v4209_v39  ;;  %v4225_v62 = vunpack.c.l.bf16 %v4324_v44  ;;  %v745_v63 = vpack.c.b16 %v727_v40, %v4668_v35 }
  0x6f   : > { %1359 = vmatpush.bf16.msrb.mxu2 %v4117_v56  ;;  %479 = vst [vmem:[#allocation2 + $0x39] sm:$0xff] %v4680_v41  ;;  %v741_v56 = vpack.c.b16 %v719_v34, %v4657_v29  ;;  %v396_v61 = vmul.f32 %v4456_v6, %v4210_v47  ;;  %v4709_v0 = vmax.f32 %v424_v50, 0.0  ;;  %v4226_v60 = vunpack.c.h.bf16 %v4324_v44  ;;  %v4127_v47 = vld [vmem:[%s5166_s3 + $0x100] sm:$0xff] }
  0x70   : > { %1704 = vmatpush.bf16.msrb.mxu3 %v4125_v57  ;;  %v4114_v57 = vld [vmem:[%s5166_s3 + $0x98] sm:$0xff]  ;;  %488 = vst [vmem:[#allocation2 + $0xa9] sm:$0xff] %v4694_v51  ;;  %v431_v2 = vadd.f32 %v4461_v7, %v395_v53  ;;  %v4713_v3 = vpack.c.b16 %v703_v46, %v702_v45  ;;  %v4177_v8 = vunpack.c.l.bf16 %v4312_v54  ;;  %v4178_v18 = vunpack.c.h.bf16 %v4312_v54  ;;  %v4095_v46 = vld [vmem:[%s5166_s3] sm:$0xff] }
  0x71   : > { %1046 = vmatpush.bf16.msrb.mxu1 %v4101_v5  ;;  %2049 = vmatpush.bf16.msrb.mxu0 %v4133_v9  ;;  %v432_v4 = vadd.f32 %v4461_v7, %v396_v61  ;;  %v403_v5 = vmul.f32 %v4456_v6, %v4225_v62  ;;  %v4098_v9 = vld [vmem:[%s5166_s3 + $0x18] sm:$0xff]  ;;  %489 = vst [vmem:[#allocation2 + $0xb1] sm:$0xff] %v4709_v0 }
  0x72   : > { %v4724_v12 = vmax.f32 %v431_v2, 0.0  ;;  %v379_v19 = vmul.f32 %v4456_v6, %v4177_v8  ;;  %v380_v22 = vmul.f32 %v4456_v6, %v4178_v18  ;;  %v632_v29 = vpack.c.bf16 %v4598_v52, %v4598_v52  ;;  %v4150_v54 = vld [vmem:[%s5166_s3 + $0x1b8] sm:$0xff] }
  0x73   : > { %1360 = vmatpush.bf16.msrb.mxu2 %v4116_v13  ;;  %v404_v13 = vmul.f32 %v4456_v6, %v4226_v60  ;;  %v4733_v16 = vmax.f32 %v432_v4, 0.0  ;;  %v439_v17 = vadd.f32 %v4461_v7, %v403_v5  ;;  %v633_v6 = vpack.c.bf16 %v4610_v59, %v4610_v59 }
  0x74   : > { %1705 = vmatpush.bf16.msrb.mxu3 %v4124_v14  ;;  %v4113_v14 = vld [vmem:[%s5166_s3 + $0x90] sm:$0xff]  ;;  %496 = vst [vmem:[#allocation2 + $0x109] sm:$0xff] %v4724_v12  ;;  %v415_v25 = vadd.f32 %v4461_v7, %v379_v19  ;;  %v640_v52 = vpack.c.bf16 %v4616_v1, %v4616_v1  ;;  %v641_v59 = vpack.c.bf16 %v4631_v10, %v4631_v10  ;;  %v4096_v1 = vld [vmem:[%s5166_s3 + $0x8] sm:$0xff] }
  0x75   : > { %1047 = vmatpush.bf16.msrb.mxu1 %v4100_v27  ;;  %2050 = vmatpush.bf16.msrb.mxu0 %v4132_v30  ;;  %v440_v20 = vadd.f32 %v4461_v7, %v404_v13  ;;  %497 = vst [vmem:[#allocation2 + $0x111] sm:$0xff] %v4733_v16  ;;  %v4742_v21 = vmax.f32 %v439_v17, 0.0  ;;  %v4112_v27 = vld [vmem:[%s5166_s3 + $0x88] sm:$0xff]  ;;  %v416_v30 = vadd.f32 %v4461_v7, %v380_v22  ;;  %v713_v39 = vunpack.c.l.b16 %v633_v6 }
  0x76   : > { %v648_v33 = vpack.c.bf16 %v4654_v26, %v4654_v26  ;;  %v447_v34 = vmax.f32 %v415_v25, 0.0  ;;  %v649_v35 = vpack.c.bf16 %v4665_v31, %v4665_v31  ;;  %v624_v7 = vpack.c.bf16 %v4677_v38, %v4677_v38  ;;  %v4128_v10 = vld [vmem:[%s5166_s3 + $0x108] sm:$0xff]  ;;  %v4111_v26 = vld [vmem:[%s5166_s3 + $0x80] sm:$0xff] }
  0x77   : > { %1361 = vmatpush.bf16.msrb.mxu2 %v4115_v36  ;;  %v4748_v24 = vmax.f32 %v440_v20, 0.0  ;;  %504 = vst [vmem:[#allocation2 + $0x169] sm:$0xff] %v4742_v21  ;;  %v625_v36 = vpack.c.bf16 %v4680_v41, %v4680_v41  ;;  %v4119_v31 = vld [vmem:[%s5166_s3 + $0xc0] sm:$0xff]  ;;  %v712_v38 = vunpack.c.l.b16 %v632_v29  ;;  %v720_v40 = vunpack.c.l.b16 %v640_v52 }
  0x78   : > { %1706 = vmatpush.bf16.msrb.mxu3 %v4123_v37  ;;  %v448_v37 = vmax.f32 %v416_v30, 0.0  ;;  %480 = vst [vmem:[#allocation2 + $0x49] sm:$0xff] %v447_v34  ;;  %v721_v41 = vunpack.c.l.b16 %v641_v59  ;;  %v728_v42 = vunpack.c.l.b16 %v648_v33  ;;  %v729_v43 = vunpack.c.l.b16 %v649_v35  ;;  %v508_v20 = vld [vmem:[#allocation2] sm:$0xff] }
  0x79   : > { %1048 = vmatpush.bf16.msrb.mxu1 %v4099_v48  ;;  %2051 = vmatpush.bf16.msrb.mxu0 %v4131_v49  ;;  %505 = vst [vmem:[#allocation2 + $0x171] sm:$0xff] %v4748_v24  ;;  %v704_v44 = vunpack.c.l.b16 %v624_v7  ;;  %v705_v45 = vunpack.c.l.b16 %v625_v36  ;;  %v4797_v48 = vpack.c.b16 %v713_v39, %v712_v38  ;;  %v634_v61 = vpack.c.bf16 %v4694_v51, %v4694_v51  ;;  %v1134_v22 = vld [vmem:[#allocation2 + $0x2] sm:$0xff]  ;;  %v4157_v38 = vld [vmem:[%s5166_s3 + $0x1f0] sm:$0xff] }
  0x7a   : > { %845 = vmatmul.bf16.gmra.mxu1 %v4698_v55  ;;  %865 = vmatmul.bf16.gmra.mxu2 %v741_v56  ;;  %481 = vst [vmem:[#allocation2 + $0x51] sm:$0xff] %v448_v37  ;;  %v742_v49 = vpack.c.b16 %v721_v41, %v720_v40  ;;  %v746_v50 = vpack.c.b16 %v729_v43, %v728_v42  ;;  %v4158_v56 = vld [vmem:[%s5166_s3 + $0x1f8] sm:$0xff]  ;;  %v1480_v25 = vld [vmem:[#allocation2 + $0x20] sm:$0xff]  ;;  %v4141_v39 = vld [vmem:[%s5166_s3 + $0x170] sm:$0xff] }
  0x7b   : > { %1362 = vmatpush.bf16.msrb.mxu2 %v4114_v57  ;;  %885 = vmatmul.bf16.gmra.mxu3 %v745_v63  ;;  %v4799_v53 = vpack.c.b16 %v705_v45, %v704_v44  ;;  %v4142_v57 = vld [vmem:[%s5166_s3 + $0x178] sm:$0xff]  ;;  %v635_v62 = vpack.c.bf16 %v4709_v0, %v4709_v0  ;;  %v642_v63 = vpack.c.bf16 %v4724_v12, %v4724_v12  ;;  %v714_v8 = vunpack.c.l.b16 %v634_v61  ;;  %v1481_v40 = vld [vmem:[#allocation2 + $0x30] sm:$0xff] }
  0x7c   : > { %1707 = vmatpush.bf16.msrb.mxu3 %v4122_v58  ;;  %825 = vmatmul.bf16.gmra.mxu0 %v4713_v3  ;;  %v4166_v58 = vld [vmem:[%s5166_s3 + $0x238] sm:$0xff]  ;;  %v643_v2 = vpack.c.bf16 %v4733_v16, %v4733_v16  ;;  %v650_v60 = vpack.c.bf16 %v4742_v21, %v4742_v21  ;;  %v651_v4 = vpack.c.bf16 %v4748_v24, %v4748_v24  ;;  %v509_v21 = vld [vmem:[#allocation2 + $0x8] sm:$0xff]  ;;  %v4165_v42 = vld [vmem:[%s5166_s3 + $0x230] sm:$0xff] }
  0x7d   : > { %1049 = vmatpush.bf16.msrb.mxu1 %v4098_v9  ;;  %2052 = vmatpush.bf16.msrb.mxu0 %v4130_v11  ;;  %v626_v51 = vpack.c.bf16 %v447_v34, %v447_v34  ;;  %v627_v5 = vpack.c.bf16 %v448_v37, %v448_v37  ;;  %v715_v9 = vunpack.c.l.b16 %v635_v62  ;;  %v722_v11 = vunpack.c.l.b16 %v642_v63  ;;  %v1479_v24 = vld [vmem:[#allocation2 + $0x18] sm:$0xff] }
  0x7e   : > { %v723_v0 = vunpack.c.l.b16 %v643_v2  ;;  %v730_v13 = vunpack.c.l.b16 %v650_v60  ;;  %v541_v29 = vpack.c.bf16 %v509_v21, %v509_v21  ;;  %v1166_v6 = vpack.c.bf16 %v1134_v22, %v1134_v22  ;;  %v1482_v41 = vld [vmem:[#allocation2 + $0x38] sm:$0xff] }
  0x7f   : > { %1363 = vmatpush.bf16.msrb.mxu2 %v4113_v14  ;;  %v731_v14 = vunpack.c.l.b16 %v651_v4  ;;  %v706_v12 = vunpack.c.l.b16 %v626_v51  ;;  %v4827_v17 = vpack.c.b16 %v715_v9, %v714_v8  ;;  %v1511_v30 = vpack.c.bf16 %v1479_v24, %v1479_v24  ;;  %v1483_v61 = vld [vmem:[#allocation2 + $0x48] sm:$0xff] }
  0x80   : > { %1708 = vmatpush.bf16.msrb.mxu3 %v4121_v15  ;;  %v707_v15 = vunpack.c.l.b16 %v627_v5  ;;  %v743_v16 = vpack.c.b16 %v723_v0, %v722_v11  ;;  %v934_v59 = vunpack.c.l.b16 %v541_v29  ;;  %v1246_v33 = vunpack.c.l.b16 %v1166_v6  ;;  %v4164_v29 = vld [vmem:[%s5166_s3 + $0x228] sm:$0xff] }
  0x81   : > { %1050 = vmatpush.bf16.msrb.mxu1 %v4097_v23  ;;  %2053 = vmatpush.bf16.msrb.mxu0 %v4129_v28  ;;  %v747_v18 = vpack.c.b16 %v731_v14, %v730_v13  ;;  %v1135_v23 = vld [vmem:[#allocation2 + $0xa] sm:$0xff]  ;;  %v540_v28 = vpack.c.bf16 %v508_v20, %v508_v20  ;;  %v1591_v35 = vunpack.c.l.b16 %v1511_v30  ;;  %v1513_v44 = vpack.c.bf16 %v1481_v40, %v1481_v40  ;;  %v1141_v14 = vld [vmem:[#allocation2 + $0x52] sm:$0xff] }
  0x82   : > { %v4829_v19 = vpack.c.b16 %v707_v15, %v706_v12  ;;  %v1514_v45 = vpack.c.bf16 %v1482_v41, %v1482_v41  ;;  %v1484_v62 = vld [vmem:[#allocation2 + $0x50] sm:$0xff]  ;;  %v1515_v60 = vpack.c.bf16 %v1483_v61, %v1483_v61  ;;  %v4148_v12 = vld [vmem:[%s5166_s3 + $0x1a8] sm:$0xff]  ;;  %v1173_v22 = vpack.c.bf16 %v1141_v14, %v1141_v14 }
  0x83   : > { %1364 = vmatpush.bf16.msrb.mxu2 %v4112_v27  ;;  %v1167_v27 = vpack.c.bf16 %v1135_v23, %v1135_v23  ;;  %v933_v52 = vunpack.c.l.b16 %v540_v28  ;;  %v1516_v4 = vpack.c.bf16 %v1484_v62, %v1484_v62  ;;  %v1140_v13 = vld [vmem:[#allocation2 + $0x4a] sm:$0xff] }
  0x84   : > { %1709 = vmatpush.bf16.msrb.mxu3 %v4120_v32  ;;  %v1512_v32 = vpack.c.bf16 %v1480_v25, %v1480_v25  ;;  %v1595_v8 = vunpack.c.l.b16 %v1515_v60  ;;  %v4156_v15 = vld [vmem:[%s5166_s3 + $0x1e8] sm:$0xff]  ;;  %v1172_v21 = vpack.c.bf16 %v1140_v13, %v1140_v13 }
  0x85   : > { %1051 = vmatpush.bf16.msrb.mxu1 %v4096_v1  ;;  %2054 = vmatpush.bf16.msrb.mxu0 %v4128_v10  ;;  %v1247_v34 = vunpack.c.l.b16 %v1167_v27  ;;  %v965_v36 = vpack.c.b16 %v934_v59, %v933_v52  ;;  %v1136_v10 = vld [vmem:[#allocation2 + $0x1a] sm:$0xff]  ;;  %v1596_v9 = vunpack.c.l.b16 %v1516_v4  ;;  %v1831_v20 = vld [vmem:[#allocation2 + $0x69] sm:$0xff]  ;;  %v1253_v27 = vunpack.c.l.b16 %v1173_v22 }
  0x86   : > { %v1592_v7 = vunpack.c.l.b16 %v1512_v32  ;;  %v1863_v28 = vpack.c.bf16 %v1831_v20, %v1831_v20  ;;  %v1252_v6 = vunpack.c.l.b16 %v1172_v21  ;;  %v1491_v20 = vld [vmem:[#allocation2 + $0xa8] sm:$0xff]  ;;  %v1492_v21 = vld [vmem:[#allocation2 + $0xb0] sm:$0xff] }
  0x87   : > { %1365 = vmatpush.bf16.msrb.mxu2 %v4111_v26  ;;  %v1278_v37 = vpack.c.b16 %v1247_v34, %v1246_v33  ;;  %v1137_v26 = vld [vmem:[#allocation2 + $0x22] sm:$0xff]  ;;  %v1625_v0 = vpack.c.b16 %v1596_v9, %v1595_v8 }
  0x88   : > { %1710 = vmatpush.bf16.msrb.mxu3 %v4119_v31  ;;  %v1623_v1 = vpack.c.b16 %v1592_v7, %v1591_v35  ;;  %v4149_v31 = vld [vmem:[%s5166_s3 + $0x1b0] sm:$0xff]  ;;  %v1169_v43 = vpack.c.bf16 %v1137_v26, %v1137_v26  ;;  %v1943_v59 = vunpack.c.l.b16 %v1863_v28  ;;  %v1281_v33 = vpack.c.b16 %v1253_v27, %v1252_v6  ;;  %v1142_v7 = vld [vmem:[#allocation2 + $0x62] sm:$0xff] }
  0x89   : > { %1052 = vmatpush.bf16.msrb.mxu1 %v4095_v46  ;;  %2055 = vmatpush.bf16.msrb.mxu0 %v4127_v47  ;;  %v1523_v28 = vpack.c.bf16 %v1491_v20, %v1491_v20  ;;  %v1151_v20 = vld [vmem:[#allocation2 + $0xca] sm:$0xff] }
  0x8a   : > { %850 = vmatmul.bf16.gmra.mxu1 %v4797_v48  ;;  %870 = vmatmul.bf16.gmra.mxu2 %v742_v49  ;;  %v1249_v47 = vunpack.c.l.b16 %v1169_v43  ;;  %v1593_v49 = vunpack.c.l.b16 %v1513_v44 }
  0x8b   : > { %890 = vmatmul.bf16.gmra.mxu3 %v746_v50  ;;  %2739 = vmatpush.bf16.msra.mxu2 %v4150_v54  ;;  %v1594_v50 = vunpack.c.l.b16 %v1514_v45 }
  0x8c   : > { %830 = vmatmul.bf16.gmra.mxu0 %v4799_v53  ;;  %3084 = vmatpush.bf16.msra.mxu3 %v4158_v56 }
  0x8d   : > { %2393 = vmatpush.bf16.msra.mxu1 %v4142_v57  ;;  %3429 = vmatpush.bf16.msra.mxu0 %v4166_v58  ;;  %v1624_v56 = vpack.c.b16 %v1594_v50, %v1593_v49  ;;  %v1138_v57 = vld [vmem:[#allocation2 + $0x32] sm:$0xff]  ;;  %v1139_v58 = vld [vmem:[#allocation2 + $0x3a] sm:$0xff] }
  0x8e   : > { %v1170_v63 = vpack.c.bf16 %v1138_v57, %v1138_v57  ;;  %v1171_v2 = vpack.c.bf16 %v1139_v58, %v1139_v58  ;;  %v4147_v49 = vld [vmem:[%s5166_s3 + $0x1a0] sm:$0xff] }
  0x8f   : > { %2740 = vmatpush.bf16.msra.mxu2 %v4149_v31  ;;  %v4155_v50 = vld [vmem:[%s5166_s3 + $0x1e0] sm:$0xff] }
  0x90   : > { %3085 = vmatpush.bf16.msra.mxu3 %v4157_v38  ;;  %v1250_v51 = vunpack.c.l.b16 %v1170_v63  ;;  %v1251_v5 = vunpack.c.l.b16 %v1171_v2 }
  0x91   : > { %2394 = vmatpush.bf16.msra.mxu1 %v4141_v39  ;;  %3430 = vmatpush.bf16.msra.mxu0 %v4165_v42 }
  0x92   : > { %v1280_v11 = vpack.c.b16 %v1251_v5, %v1250_v51  ;;  %v4163_v51 = vld [vmem:[%s5166_s3 + $0x220] sm:$0xff] }
  0x93   : > { %2741 = vmatpush.bf16.msra.mxu2 %v4148_v12 }
  0x94   : > { %3086 = vmatpush.bf16.msra.mxu3 %v4156_v15 }
  0x95   : > { %3431 = vmatpush.bf16.msra.mxu0 %v4164_v29  ;;  %v1524_v29 = vpack.c.bf16 %v1492_v21, %v1492_v21  ;;  %v1495_v21 = vld [vmem:[#allocation2 + $0xd8] sm:$0xff] }
  0x97   : > { %2742 = vmatpush.bf16.msra.mxu2 %v4147_v49 }
  0x98   : > { %3087 = vmatpush.bf16.msra.mxu3 %v4155_v50 }
  0x99   : > { %3432 = vmatpush.bf16.msra.mxu0 %v4163_v51 }
  0x9a   : > { %855 = vmatmul.bf16.gmra.mxu1 %v4827_v17  ;;  %875 = vmatmul.bf16.gmra.mxu2 %v743_v16  ;;  %v1486_v16 = vld [vmem:[#allocation2 + $0x68] sm:$0xff] }
  0x9b   : > { %895 = vmatmul.bf16.gmra.mxu3 %v747_v18  ;;  %v1830_v18 = vld [vmem:[#allocation2 + $0x61] sm:$0xff]  ;;  %v1518_v24 = vpack.c.bf16 %v1486_v16, %v1486_v16  ;;  %v1146_v16 = vld [vmem:[#allocation2 + $0x92] sm:$0xff] }
  0x9c   : > { %835 = vmatmul.bf16.gmra.mxu0 %v4829_v19  ;;  %v1862_v25 = vpack.c.bf16 %v1830_v18, %v1830_v18  ;;  %v1147_v18 = vld [vmem:[#allocation2 + $0x9a] sm:$0xff] }
  0x9d   : > { %v1598_v32 = vunpack.c.l.b16 %v1518_v24  ;;  %v1179_v24 = vpack.c.bf16 %v1147_v18, %v1147_v18  ;;  %v1150_v18 = vld [vmem:[#allocation2 + $0xc2] sm:$0xff] }
  0x9e   : > { %v1942_v52 = vunpack.c.l.b16 %v1862_v25 }
  0xa0   : > { %v1971_v35 = vpack.c.b16 %v1943_v59, %v1942_v52 }
  0xaa   : > { %1053 = vmatmul.bf16.vlgmr.msrb.gmra.mxu1 %v965_v36  ;;  %1366 = vmatmul.bf16.vlgmr.msrb.gmra.mxu2 %v1278_v37  ;;  %v1143_v36 = vld [vmem:[#allocation2 + $0x6a] sm:$0xff]  ;;  %v1487_v37 = vld [vmem:[#allocation2 + $0x78] sm:$0xff] }
  0xab   : > { %1711 = vmatmul.bf16.vlgmr.msrb.gmra.mxu3 %v1623_v1  ;;  %v1175_v26 = vpack.c.bf16 %v1143_v36, %v1143_v36  ;;  %v1519_v31 = vpack.c.bf16 %v1487_v37, %v1487_v37  ;;  %v1148_v36 = vld [vmem:[#allocation2 + $0xaa] sm:$0xff]  ;;  %v1149_v37 = vld [vmem:[#allocation2 + $0xb2] sm:$0xff] }
  0xac   : > { %2056 = vmatmul.bf16.vlgmr.msrb.gmra.mxu0 %v4713_v3  ;;  %v1168_v3 = vpack.c.bf16 %v1136_v10, %v1136_v10  ;;  %v1174_v10 = vpack.c.bf16 %v1142_v7, %v1142_v7 }
  0xad   : > { %v1255_v40 = vunpack.c.l.b16 %v1175_v26  ;;  %v1599_v41 = vunpack.c.l.b16 %v1519_v31  ;;  %v4154_v26 = vld [vmem:[%s5166_s3 + $0x1d8] sm:$0xff]  ;;  %v1494_v31 = vld [vmem:[#allocation2 + $0xc8] sm:$0xff] }
  0xae   : > { %v1248_v46 = vunpack.c.l.b16 %v1168_v3  ;;  %v1254_v39 = vunpack.c.l.b16 %v1174_v10  ;;  %v4146_v10 = vld [vmem:[%s5166_s3 + $0x198] sm:$0xff]  ;;  %3088 = vmatpush.bf16.msra.mxu3 %v4154_v26 }
  0xaf   : > { %2743 = vmatpush.bf16.msra.mxu2 %v4146_v10 }
  0xb0   : > { %v1279_v54 = vpack.c.b16 %v1249_v47, %v1248_v46  ;;  %v1282_v3 = vpack.c.b16 %v1255_v40, %v1254_v39  ;;  %v1144_v46 = vld [vmem:[#allocation2 + $0x7a] sm:$0xff]  ;;  %v1145_v47 = vld [vmem:[#allocation2 + $0x82] sm:$0xff] }
  0xb1   : > { %v1176_v61 = vpack.c.bf16 %v1144_v46, %v1144_v46  ;;  %v1177_v62 = vpack.c.bf16 %v1145_v47, %v1145_v47  ;;  %v1839_v39 = vld [vmem:[#allocation2 + $0xc9] sm:$0xff]  ;;  %v1526_v46 = vpack.c.bf16 %v1494_v31, %v1494_v31 }
  0xb2   : > { %v1871_v49 = vpack.c.bf16 %v1839_v39, %v1839_v39 }
  0xb3   : > { %v1256_v5 = vunpack.c.l.b16 %v1176_v61  ;;  %v1257_v8 = vunpack.c.l.b16 %v1177_v62 }
  0xb4   : > { %v1951_v51 = vunpack.c.l.b16 %v1871_v49 }
  0xb5   : > { %v1283_v14 = vpack.c.b16 %v1257_v8, %v1256_v5 }
  0xba   : > { %1058 = vmatmul.bf16.gmra.mxu1 %v1623_v1  ;;  %1371 = vmatmul.bf16.gmra.mxu2 %v1279_v54  ;;  %v1488_v1 = vld [vmem:[#allocation2 + $0x80] sm:$0xff]  ;;  %v1489_v54 = vld [vmem:[#allocation2 + $0x90] sm:$0xff] }
  0xbb   : > { %1716 = vmatmul.bf16.gmra.mxu3 %v1624_v56  ;;  %v1520_v38 = vpack.c.bf16 %v1488_v1, %v1488_v1  ;;  %v1521_v2 = vpack.c.bf16 %v1489_v54, %v1489_v54  ;;  %v1493_v1 = vld [vmem:[#allocation2 + $0xc0] sm:$0xff]  ;;  %v4138_v54 = vld [vmem:[%s5166_s3 + $0x158] sm:$0xff] }
  0xbc   : > { %2061 = vmatmul.bf16.gmra.mxu0 %v4799_v53  ;;  %v1485_v53 = vld [vmem:[#allocation2 + $0x60] sm:$0xff] }
  0xbd   : > { %v1517_v23 = vpack.c.bf16 %v1485_v53, %v1485_v53  ;;  %v1600_v42 = vunpack.c.l.b16 %v1520_v38  ;;  %v1601_v9 = vunpack.c.l.b16 %v1521_v2  ;;  %v1838_v38 = vld [vmem:[#allocation2 + $0xc1] sm:$0xff]  ;;  %v1606_v2 = vunpack.c.l.b16 %v1526_v46 }
  0xbe   : > { %v1870_v47 = vpack.c.bf16 %v1838_v38, %v1838_v38 }
  0xbf   : > { %v1597_v30 = vunpack.c.l.b16 %v1517_v23  ;;  %v1627_v44 = vpack.c.b16 %v1600_v42, %v1599_v41  ;;  %v1178_v23 = vpack.c.bf16 %v1146_v16, %v1146_v16  ;;  %v1180_v42 = vpack.c.bf16 %v1148_v36, %v1148_v36 }
  0xc1   : > { %v1626_v34 = vpack.c.b16 %v1598_v32, %v1597_v30  ;;  %v1258_v27 = vunpack.c.l.b16 %v1178_v23  ;;  %v1259_v30 = vunpack.c.l.b16 %v1179_v24  ;;  %v1603_v32 = vunpack.c.l.b16 %v1523_v28  ;;  %v1496_v23 = vld [vmem:[#allocation2 + $0xe0] sm:$0xff] }
  0xc2   : > { %v1260_v61 = vunpack.c.l.b16 %v1180_v42  ;;  %v1840_v24 = vld [vmem:[#allocation2 + $0xd9] sm:$0xff]  ;;  %v1841_v28 = vld [vmem:[#allocation2 + $0xe1] sm:$0xff]  ;;  %v1528_v36 = vpack.c.bf16 %v1496_v23, %v1496_v23 }
  0xc4   : > { %v1608_v38 = vunpack.c.l.b16 %v1528_v36 }
  0xca   : > { %1063 = vmatmul.bf16.gmra.mxu1 %v1624_v56  ;;  %1376 = vmatmul.bf16.gmra.mxu2 %v1280_v11  ;;  %v1490_v56 = vld [vmem:[#allocation2 + $0x98] sm:$0xff] }
  0xcb   : > { %1721 = vmatmul.bf16.gmra.mxu3 %v1625_v0  ;;  %v1522_v60 = vpack.c.bf16 %v1490_v56, %v1490_v56  ;;  %v4162_v56 = vld [vmem:[%s5166_s3 + $0x218] sm:$0xff] }
  0xcc   : > { %2066 = vmatmul.bf16.gmra.mxu0 %v4829_v19  ;;  %v4140_v19 = vld [vmem:[%s5166_s3 + $0x168] sm:$0xff] }
  0xcd   : > { %2395 = vmatpush.bf16.msra.mxu1 %v4140_v19  ;;  %v1602_v11 = vunpack.c.l.b16 %v1522_v60  ;;  %3433 = vmatpush.bf16.msra.mxu0 %v4162_v56  ;;  %v1950_v60 = vunpack.c.l.b16 %v1870_v47 }
  0xcf   : > { %v1628_v12 = vpack.c.b16 %v1602_v11, %v1601_v9 }
  0xda   : > { %1068 = vmatmul.bf16.gmra.mxu1 %v1625_v0  ;;  %1381 = vmatmul.bf16.gmra.mxu2 %v1281_v33  ;;  %v1284_v33 = vpack.c.b16 %v1259_v30, %v1258_v27  ;;  %v1182_v30 = vpack.c.bf16 %v1150_v18, %v1150_v18  ;;  %v1843_v18 = vld [vmem:[#allocation2 + $0xf9] sm:$0xff] }
  0xdb   : > { %1726 = vmatmul.bf16.gmra.mxu3 %v1626_v34 }
  0xdc   : > { %2071 = vmatmul.bf16.gmra.mxu0 %v1971_v35  ;;  %v1262_v10 = vunpack.c.l.b16 %v1182_v30 }
  0xe7   : > { %v4860_v43 = vpop.f32.mrf.mxu1 }
  0xe9   : > { %v4862_v45 = vpop.f32.mrf.mxu0 }
  0xea   : > { %1073 = vmatmul.bf16.gmra.mxu1 %v1626_v34  ;;  %1386 = vmatmul.bf16.gmra.mxu2 %v1282_v3 }
  0xeb   : > { %1731 = vmatmul.bf16.gmra.mxu3 %v1627_v44 }
  0xec   : > { %2076 = vmatmul.bf16.gmra.mxu0 %v4698_v55  ;;  %v4139_v55 = vld [vmem:[%s5166_s3 + $0x160] sm:$0xff] }
  0xed   : > { %v4871_v57 = vpop.f32.mrf.mxu2  ;;  %2396 = vmatpush.bf16.msra.mxu1 %v4139_v55 }
  0xee   : > { %v4873_v58 = vpop.f32.mrf.mxu3 }
  0xef   : > { %v4878_v63 = vpop.f32.mrf.mxu1 }
  0xf1   : > { %v4880_v4 = vpop.f32.mrf.mxu0  ;;  %2397 = vmatpush.bf16.msra.mxu1 %v4138_v54 }
  0xf5   : > { %v4885_v0 = vpop.f32.mrf.mxu2 }
  0xf6   : > { %v4887_v13 = vpop.f32.mrf.mxu3 }
  0xf7   : > { %v4889_v53 = vpop.f32.mrf.mxu1 }
  0xf9   : > { %v4891_v15 = vpop.f32.mrf.mxu0 }
  0xfa   : > { %1078 = vmatmul.bf16.gmra.mxu1 %v1627_v44  ;;  %1391 = vmatmul.bf16.gmra.mxu2 %v1283_v14  ;;  %v1525_v44 = vpack.c.bf16 %v1493_v1, %v1493_v1 }
  0xfb   : > { %1736 = vmatmul.bf16.gmra.mxu3 %v1628_v12 }
  0xfc   : > { %2081 = vmatmul.bf16.gmra.mxu0 %v4797_v48  ;;  %v1604_v48 = vunpack.c.l.b16 %v1524_v29  ;;  %v1605_v55 = vunpack.c.l.b16 %v1525_v44 }
  0xfd   : > { %v4894_v22 = vpop.f32.mrf.mxu2 }
  0xfe   : > { %v4896_v19 = vpop.f32.mrf.mxu3  ;;  %v1629_v35 = vpack.c.b16 %v1604_v48, %v1603_v32  ;;  %v1630_v14 = vpack.c.b16 %v1606_v2, %v1605_v55  ;;  %v1183_v32 = vpack.c.bf16 %v1151_v20, %v1151_v20  ;;  %v1153_v55 = vld [vmem:[#allocation2 + $0xe2] sm:$0xff]  ;;  %v1497_v2 = vld [vmem:[#allocation2 + $0xf0] sm:$0xff] }
  0xff   : > { %v4898_v25 = vpop.f32.mrf.mxu1  ;;  %v1185_v23 = vpack.c.bf16 %v1153_v55, %v1153_v55 }
 0x100   : > { %v1263_v26 = vunpack.c.l.b16 %v1183_v32 }
 0x101   : > { %v4900_v6 = vpop.f32.mrf.mxu0 }
 0x102   : > { %v1286_v46 = vpack.c.b16 %v1263_v26, %v1262_v10  ;;  %v4137_v10 = vld [vmem:[%s5166_s3 + $0x150] sm:$0xff] }
 0x103   : > { %v4161_v26 = vld [vmem:[%s5166_s3 + $0x210] sm:$0xff]  ;;  %2398 = vmatpush.bf16.msra.mxu1 %v4137_v10 }
 0x104   : > { %3434 = vmatpush.bf16.msra.mxu0 %v4161_v26 }
 0x105   : > { %v4902_v52 = vpop.f32.mrf.mxu2 }
 0x106   : > { %v4904_v59 = vpop.f32.mrf.mxu3 }
 0x107   : > { %v4906_v34 = vpop.f32.mrf.mxu1 }
 0x109   : > { %v4908_v7 = vpop.f32.mrf.mxu0 }
 0x10a   : > { %1083 = vmatmul.bf16.gmra.mxu1 %v1628_v12  ;;  %1396 = vmatmul.bf16.gmra.mxu2 %v1284_v33  ;;  %v1975_v12 = vpack.c.b16 %v1951_v51, %v1950_v60  ;;  %v1527_v33 = vpack.c.bf16 %v1495_v21, %v1495_v21  ;;  %v4145_v60 = vld [vmem:[%s5166_s3 + $0x190] sm:$0xff] }
 0x10b   : > { %1741 = vmatmul.bf16.gmra.mxu3 %v1629_v35  ;;  %v4153_v51 = vld [vmem:[%s5166_s3 + $0x1d0] sm:$0xff]  ;;  %2744 = vmatpush.bf16.msra.mxu2 %v4145_v60 }
 0x10c   : > { %2086 = vmatmul.bf16.gmra.mxu0 %v4827_v17  ;;  %v1181_v17 = vpack.c.bf16 %v1149_v37, %v1149_v37  ;;  %v1873_v37 = vpack.c.bf16 %v1841_v28, %v1841_v28  ;;  %v1607_v31 = vunpack.c.l.b16 %v1527_v33  ;;  %3089 = vmatpush.bf16.msra.mxu3 %v4153_v51  ;;  %v1529_v28 = vpack.c.bf16 %v1497_v2, %v1497_v2 }
 0x10d   : > { %v4917_v40 = vpop.f32.mrf.mxu2  ;;  %v1875_v33 = vpack.c.bf16 %v1843_v18, %v1843_v18 }
 0x10e   : > { %v4919_v41 = vpop.f32.mrf.mxu3  ;;  %v1261_v62 = vunpack.c.l.b16 %v1181_v17  ;;  %v1953_v42 = vunpack.c.l.b16 %v1873_v37  ;;  %v1631_v49 = vpack.c.b16 %v1608_v38, %v1607_v31  ;;  %v1265_v38 = vunpack.c.l.b16 %v1185_v23  ;;  %v1844_v23 = vld [vmem:[#allocation2 + $0x109] sm:$0xff] }
 0x10f   : > { %v4921_v3 = vpop.f32.mrf.mxu1 }
 0x110   : > { %v1285_v9 = vpack.c.b16 %v1261_v62, %v1260_v61  ;;  %v1152_v62 = vld [vmem:[#allocation2 + $0xda] sm:$0xff] }
 0x111   : > { %v4923_v50 = vpop.f32.mrf.mxu0  ;;  %v1184_v21 = vpack.c.bf16 %v1152_v62, %v1152_v62 }
 0x113   : > { %v1264_v31 = vunpack.c.l.b16 %v1184_v21  ;;  %v1500_v21 = vld [vmem:[#allocation2 + $0x110] sm:$0xff] }
 0x114   : > { %v1532_v10 = vpack.c.bf16 %v1500_v21, %v1500_v21 }
 0x115   : > { %v4931_v5 = vpop.f32.mrf.mxu2  ;;  %v1287_v55 = vpack.c.b16 %v1265_v38, %v1264_v31 }
 0x116   : > { %v4933_v8 = vpop.f32.mrf.mxu3 }
 0x117   : > { %v4935_v11 = vpop.f32.mrf.mxu1 }
 0x119   : > { %v4937_v16 = vpop.f32.mrf.mxu0 }
 0x11a   : > { %1088 = vmatmul.bf16.gmra.mxu1 %v1629_v35  ;;  %1401 = vmatmul.bf16.gmra.mxu2 %v1285_v9  ;;  %v1872_v35 = vpack.c.bf16 %v1840_v24, %v1840_v24  ;;  %v1498_v9 = vld [vmem:[#allocation2 + $0xf8] sm:$0xff] }
 0x11b   : > { %1746 = vmatmul.bf16.gmra.mxu3 %v1630_v14  ;;  %v1530_v30 = vpack.c.bf16 %v1498_v9, %v1498_v9 }
 0x11c   : > { %2091 = vmatmul.bf16.gmra.mxu0 %v1975_v12  ;;  %v1952_v39 = vunpack.c.l.b16 %v1872_v35  ;;  %v1842_v12 = vld [vmem:[#allocation2 + $0xf1] sm:$0xff] }
 0x11d   : > { %v4939_v29 = vpop.f32.mrf.mxu2  ;;  %v1874_v32 = vpack.c.bf16 %v1842_v12, %v1842_v12 }
 0x11e   : > { %v4941_v27 = vpop.f32.mrf.mxu3  ;;  %v1976_v54 = vpack.c.b16 %v1953_v42, %v1952_v39  ;;  %v1609_v42 = vunpack.c.l.b16 %v1529_v28 }
 0x11f   : > { %v4943_v48 = vpop.f32.mrf.mxu1 }
 0x121   : > { %v4945_v1 = vpop.f32.mrf.mxu0 }
 0x125   : > { %v4947_v17 = vpop.f32.mrf.mxu2 }
 0x126   : > { %v4949_v44 = vpop.f32.mrf.mxu3 }
 0x127   : > { %v1054_v47 = vpop.f32.mrf.mxu1 }
 0x128   : > { %v1055_v56 = vadd.f32 %v1054_v47, %v4862_v45  ;;  %v1954_v47 = vunpack.c.l.b16 %v1874_v32 }
 0x129   : > { %v2057_v61 = vpop.f32.mrf.mxu0 }
 0x12a   : > { %1093 = vmatmul.bf16.gmra.mxu1 %v1630_v14  ;;  %1406 = vmatmul.bf16.gmra.mxu2 %v1286_v46  ;;  %v1610_v46 = vunpack.c.l.b16 %v1530_v30 }
 0x12b   : > { %1751 = vmatmul.bf16.gmra.mxu3 %v1631_v49 }
 0x12c   : > { %2096 = vmatmul.bf16.gmra.mxu0 %v1976_v54  ;;  %v1955_v54 = vunpack.c.l.b16 %v1875_v33  ;;  %v1632_v60 = vpack.c.b16 %v1610_v46, %v1609_v42 }
 0x12d   : > { %v1367_v45 = vpop.f32.mrf.mxu2 }
 0x12e   : > { %v1447_v14 = vadd.f32 %v1367_v45, %v1055_v56  ;;  %v1712_v20 = vpop.f32.mrf.mxu3  ;;  %v1977_v51 = vpack.c.b16 %v1955_v54, %v1954_v47 }
 0x12f   : > { %v1056_v24 = vpop.f32.mrf.mxu1 }
 0x130   : > { %v1792_v36 = vadd.f32 %v1712_v20, %v1447_v14  ;;  %v1057_v35 = vadd.f32 %v1056_v24, %v4880_v4  ;;  %v1155_v14 = vld [vmem:[#allocation2 + $0xfa] sm:$0xff]  ;;  %v1499_v20 = vld [vmem:[#allocation2 + $0x108] sm:$0xff]  ;;  %v1845_v24 = vld [vmem:[#allocation2 + $0x111] sm:$0xff] }
 0x131   : > { %v2059_v37 = vpop.f32.mrf.mxu0  ;;  %v1877_v26 = vpack.c.bf16 %v1845_v24, %v1845_v24 }
 0x132   : > { %v4965_v39 = vadd.f32 %v2057_v61, %v1792_v36  ;;  %v1154_v61 = vld [vmem:[#allocation2 + $0xf2] sm:$0xff]  ;;  %v1187_v36 = vpack.c.bf16 %v1155_v14, %v1155_v14 }
 0x133   : > { %v1186_v33 = vpack.c.bf16 %v1154_v61, %v1154_v61 }
 0x134   : > { %v1267_v46 = vunpack.c.l.b16 %v1187_v36  ;;  %v1847_v36 = vld [vmem:[#allocation2 + $0x129] sm:$0xff] }
 0x135   : > { %v1369_v4 = vpop.f32.mrf.mxu2  ;;  %v1266_v42 = vunpack.c.l.b16 %v1186_v33  ;;  %v1502_v33 = vld [vmem:[#allocation2 + $0x128] sm:$0xff] }
 0x136   : > { %v1448_v56 = vadd.f32 %v1369_v4, %v1057_v35  ;;  %v1714_v62 = vpop.f32.mrf.mxu3  ;;  %v1612_v4 = vunpack.c.l.b16 %v1532_v10 }
 0x137   : > { %v1059_v2 = vpop.f32.mrf.mxu1 }
 0x138   : > { %v1793_v9 = vadd.f32 %v1714_v62, %v1448_v56  ;;  %v1060_v12 = vadd.f32 %v1059_v2, %v4891_v15  ;;  %v1531_v15 = vpack.c.bf16 %v1499_v20, %v1499_v20  ;;  %v1957_v62 = vunpack.c.l.b16 %v1877_v26 }
 0x139   : > { %v2062_v18 = vpop.f32.mrf.mxu0 }
 0x13a   : > { %1098 = vmatmul.bf16.gmra.mxu1 %v1631_v49  ;;  %1411 = vmatmul.bf16.gmra.mxu2 %v1287_v55  ;;  %v4968_v45 = vadd.f32 %v2059_v37, %v1793_v9  ;;  %v1876_v49 = vpack.c.bf16 %v1844_v23, %v1844_v23  ;;  %v1611_v54 = vunpack.c.l.b16 %v1531_v15  ;;  %v1288_v9 = vpack.c.b16 %v1267_v46, %v1266_v42  ;;  %v1156_v23 = vld [vmem:[#allocation2 + $0x10a] sm:$0xff] }
 0x13b   : > { %1756 = vmatmul.bf16.gmra.mxu3 %v1632_v60  ;;  %v1188_v10 = vpack.c.bf16 %v1156_v23, %v1156_v23  ;;  %v1879_v42 = vpack.c.bf16 %v1847_v36, %v1847_v36 }
 0x13c   : > { %2101 = vmatmul.bf16.gmra.mxu0 %v1977_v51  ;;  %v1956_v56 = vunpack.c.l.b16 %v1876_v49  ;;  %v1633_v61 = vpack.c.b16 %v1612_v4, %v1611_v54 }
 0x13d   : > { %v1372_v28 = vpop.f32.mrf.mxu2 }
 0x13e   : > { %v1449_v30 = vadd.f32 %v1372_v28, %v1060_v12  ;;  %v1717_v32 = vpop.f32.mrf.mxu3  ;;  %v1978_v14 = vpack.c.b16 %v1957_v62, %v1956_v56  ;;  %v1501_v28 = vld [vmem:[#allocation2 + $0x120] sm:$0xff]  ;;  %v4136_v56 = vld [vmem:[%s5166_s3 + $0x148] sm:$0xff] }
 0x13f   : > { %v1061_v35 = vpop.f32.mrf.mxu1  ;;  %v4160_v62 = vld [vmem:[%s5166_s3 + $0x208] sm:$0xff]  ;;  %2399 = vmatpush.bf16.msra.mxu1 %v4136_v56 }
 0x140   : > { %v1794_v37 = vadd.f32 %v1717_v32, %v1449_v30  ;;  %v1062_v31 = vadd.f32 %v1061_v35, %v4900_v6  ;;  %v4144_v30 = vld [vmem:[%s5166_s3 + $0x188] sm:$0xff]  ;;  %3435 = vmatpush.bf16.msra.mxu0 %v4160_v62 }
 0x141   : > { %v2064_v38 = vpop.f32.mrf.mxu0  ;;  %v4152_v32 = vld [vmem:[%s5166_s3 + $0x1c8] sm:$0xff]  ;;  %2745 = vmatpush.bf16.msra.mxu2 %v4144_v30 }
 0x142   : > { %v4971_v47 = vadd.f32 %v2062_v18, %v1794_v37  ;;  %v1157_v18 = vld [vmem:[#allocation2 + $0x112] sm:$0xff]  ;;  %3090 = vmatpush.bf16.msra.mxu3 %v4152_v32  ;;  %v1533_v37 = vpack.c.bf16 %v1501_v28, %v1501_v28 }
 0x143   : > { %v1189_v49 = vpack.c.bf16 %v1157_v18, %v1157_v18 }
 0x145   : > { %v1374_v55 = vpop.f32.mrf.mxu2 }
 0x146   : > { %v1450_v2 = vadd.f32 %v1374_v55, %v1062_v31  ;;  %v1719_v51 = vpop.f32.mrf.mxu3  ;;  %v1534_v31 = vpack.c.bf16 %v1502_v33, %v1502_v33  ;;  %v1268_v55 = vunpack.c.l.b16 %v1188_v10  ;;  %v1504_v10 = vld [vmem:[#allocation2 + $0x140] sm:$0xff] }
 0x147   : > { %v1064_v12 = vpop.f32.mrf.mxu1 }
 0x148   : > { %v1795_v20 = vadd.f32 %v1719_v51, %v1450_v2  ;;  %v1065_v21 = vadd.f32 %v1064_v12, %v4908_v7  ;;  %v1846_v7 = vld [vmem:[#allocation2 + $0x121] sm:$0xff]  ;;  %v1269_v2 = vunpack.c.l.b16 %v1189_v49  ;;  %v1614_v12 = vunpack.c.l.b16 %v1534_v31  ;;  %v1848_v49 = vld [vmem:[#allocation2 + $0x139] sm:$0xff] }
 0x149   : > { %v2067_v6 = vpop.f32.mrf.mxu0  ;;  %v1880_v56 = vpack.c.bf16 %v1848_v49, %v1848_v49 }
 0x14a   : > { %1103 = vmatmul.bf16.gmra.mxu1 %v1632_v60  ;;  %1416 = vmatmul.bf16.gmra.mxu2 %v1288_v9  ;;  %v4974_v24 = vadd.f32 %v2064_v38, %v1795_v20  ;;  %v1878_v38 = vpack.c.bf16 %v1846_v7, %v1846_v7  ;;  %v1613_v9 = vunpack.c.l.b16 %v1533_v37  ;;  %v1959_v20 = vunpack.c.l.b16 %v1879_v42 }
 0x14b   : > { %1761 = vmatmul.bf16.gmra.mxu3 %v1633_v61  ;;  %v1289_v18 = vpack.c.b16 %v1269_v2, %v1268_v55 }
 0x14c   : > { %2106 = vmatmul.bf16.gmra.mxu0 %v1978_v14  ;;  %v1958_v14 = vunpack.c.l.b16 %v1878_v38  ;;  %v1634_v30 = vpack.c.b16 %v1614_v12, %v1613_v9 }
 0x14d   : > { %v1377_v60 = vpop.f32.mrf.mxu2 }
 0x14e   : > { %v1451_v35 = vadd.f32 %v1377_v60, %v1065_v21  ;;  %v1722_v15 = vpop.f32.mrf.mxu3  ;;  %v1979_v32 = vpack.c.b16 %v1959_v20, %v1958_v14 }
 0x14f   : > { %v1066_v26 = vpop.f32.mrf.mxu1 }
 0x150   : > { %v1796_v46 = vadd.f32 %v1722_v15, %v1451_v35  ;;  %v1067_v54 = vadd.f32 %v1066_v26, %v4923_v50  ;;  %v1159_v35 = vld [vmem:[#allocation2 + $0x12a] sm:$0xff]  ;;  %v1503_v15 = vld [vmem:[#allocation2 + $0x138] sm:$0xff]  ;;  %v1849_v26 = vld [vmem:[#allocation2 + $0x141] sm:$0xff] }
 0x151   : > { %v2069_v4 = vpop.f32.mrf.mxu0 }
 0x152   : > { %v4989_v51 = vadd.f32 %v2067_v6, %v1796_v46  ;;  %v1158_v6 = vld [vmem:[#allocation2 + $0x122] sm:$0xff]  ;;  %v1191_v46 = vpack.c.bf16 %v1159_v35, %v1159_v35 }
 0x153   : > { %v1190_v42 = vpack.c.bf16 %v1158_v6, %v1158_v6 }
 0x154   : > { %v1271_v12 = vunpack.c.l.b16 %v1191_v46 }
 0x155   : > { %v1379_v50 = vpop.f32.mrf.mxu2  ;;  %v1270_v9 = vunpack.c.l.b16 %v1190_v42  ;;  %v1161_v42 = vld [vmem:[#allocation2 + $0x142] sm:$0xff] }
 0x156   : > { %v1452_v21 = vadd.f32 %v1379_v50, %v1067_v54  ;;  %v1724_v23 = vpop.f32.mrf.mxu3 }
 0x157   : > { %v1069_v28 = vpop.f32.mrf.mxu1 }
 0x158   : > { %v1797_v33 = vadd.f32 %v1724_v23, %v1452_v21  ;;  %v1070_v7 = vadd.f32 %v1069_v28, %v4937_v16  ;;  %v1535_v16 = vpack.c.bf16 %v1503_v15, %v1503_v15  ;;  %v1960_v21 = vunpack.c.l.b16 %v1880_v56  ;;  %v4325_v28 = vld [vmem:[%s4433_s27 + $0x78] sm:$0xff]  }
 0x159   : > { %v2072_v36 = vpop.f32.mrf.mxu0  ;;  %v4229_v6 = vunpack.c.l.bf16 %v4325_v28  ;;  %v4230_v35 = vunpack.c.h.bf16 %v4325_v28  ;;  %v1193_v28 = vpack.c.bf16 %v1161_v42, %v1161_v42 }
 0x15a   : > { %1108 = vmatmul.bf16.gmra.mxu1 %v1633_v61  ;;  %1421 = vmatmul.bf16.gmra.mxu2 %v1289_v18  ;;  %v4992_v60 = vadd.f32 %v2069_v4, %v1797_v33  ;;  %v1536_v61 = vpack.c.bf16 %v1504_v10, %v1504_v10  ;;  %v1881_v4 = vpack.c.bf16 %v1849_v26, %v1849_v26  ;;  %v1615_v20 = vunpack.c.l.b16 %v1535_v16  ;;  %v4143_v16 = vld [vmem:[%s5166_s3 + $0x180] sm:$0xff] }
 0x15b   : > { %1766 = vmatmul.bf16.gmra.mxu3 %v1634_v30  ;;  %2746 = vmatpush.bf16.msra.mxu2 %v4143_v16 }
 0x15c   : > { %2111 = vmatmul.bf16.gmra.mxu0 %v1979_v32  ;;  %v1616_v50 = vunpack.c.l.b16 %v1536_v61  ;;  %v1961_v23 = vunpack.c.l.b16 %v1881_v4  ;;  %v4151_v61 = vld [vmem:[%s5166_s3 + $0x1c0] sm:$0xff] }
 0x15d   : > { %v1382_v37 = vpop.f32.mrf.mxu2  ;;  %3091 = vmatpush.bf16.msra.mxu3 %v4151_v61 }
 0x15e   : > { %v1453_v31 = vadd.f32 %v1382_v37, %v1070_v7  ;;  %v1727_v38 = vpop.f32.mrf.mxu3  ;;  %v1290_v7 = vpack.c.b16 %v1271_v12, %v1270_v9  ;;  %v1635_v10 = vpack.c.b16 %v1616_v50, %v1615_v20  ;;  %v1980_v49 = vpack.c.b16 %v1961_v23, %v1960_v21  ;;  %v1851_v9 = vld [vmem:[#allocation2 + $0x159] sm:$0xff] }
 0x15f   : > { %v1071_v54 = vpop.f32.mrf.mxu1 }
 0x160   : > { %v1798_v62 = vadd.f32 %v1727_v38, %v1453_v31  ;;  %v1072_v55 = vadd.f32 %v1071_v54, %v4945_v1  ;;  %v1160_v38 = vld [vmem:[#allocation2 + $0x13a] sm:$0xff]  ;;  %v1505_v54 = vld [vmem:[#allocation2 + $0x150] sm:$0xff] }
 0x161   : > { %v2074_v2 = vpop.f32.mrf.mxu0 }
 0x162   : > { %v4995_v14 = vadd.f32 %v2072_v36, %v1798_v62  ;;  %v4376_v36 = vld [vmem:[%s5164_s1] ss:$0 sm:$0xff] }
 0x163   : > { %v405_v37 = vmul.f32 %v4376_v36, %v4229_v6  ;;  %v406_v31 = vmul.f32 %v4376_v36, %v4230_v35  ;;  %v1883_v35 = vpack.c.bf16 %v1851_v9, %v1851_v9 }
 0x165   : > { %v1384_v18 = vpop.f32.mrf.mxu2  ;;  %v1963_v16 = vunpack.c.l.b16 %v1883_v35 }
 0x166   : > { %v1454_v32 = vadd.f32 %v1384_v18, %v1072_v55  ;;  %v1729_v33 = vpop.f32.mrf.mxu3  ;;  %v1506_v55 = vld [vmem:[#allocation2 + $0x158] sm:$0xff]  ;;  %v1192_v18 = vpack.c.bf16 %v1160_v38, %v1160_v38 }
 0x167   : > { %v1074_v15 = vpop.f32.mrf.mxu1 }
 0x168   : > { %v1799_v1 = vadd.f32 %v1729_v33, %v1454_v32  ;;  %v1075_v62 = vadd.f32 %v1074_v15, %v4860_v43  ;;  %v1537_v33 = vpack.c.bf16 %v1505_v54, %v1505_v54  ;;  %v1272_v36 = vunpack.c.l.b16 %v1192_v18  ;;  %v1163_v18 = vld [vmem:[#allocation2 + $0x15a] sm:$0xff] }
 0x169   : > { %v2077_v26 = vpop.f32.mrf.mxu0 }
 0x16a   : > { %1113 = vmatmul.bf16.gmra.mxu1 %v1634_v30  ;;  %1426 = vmatmul.bf16.gmra.mxu2 %v1290_v7  ;;  %v5001_v46 = vadd.f32 %v2074_v2, %v1799_v1  ;;  %v4377_v30 = vld [vmem:[%s5165_s2] ss:$0 sm:$0xff]  ;;  %v1850_v2 = vld [vmem:[#allocation2 + $0x151] sm:$0xff]  ;;  %v1538_v7 = vpack.c.bf16 %v1506_v55, %v1506_v55  ;;  %v1617_v38 = vunpack.c.l.b16 %v1537_v33  ;;  %v1852_v33 = vld [vmem:[#allocation2 + $0x169] sm:$0xff] }
 0x16b   : > { %1771 = vmatmul.bf16.gmra.mxu3 %v1635_v10  ;;  %v441_v56 = vadd.f32 %v4377_v30, %v405_v37  ;;  %v442_v4 = vadd.f32 %v4377_v30, %v406_v31  ;;  %v1882_v6 = vpack.c.bf16 %v1850_v2, %v1850_v2  ;;  %v4159_v1 = vld [vmem:[%s5166_s3 + $0x200] sm:$0xff]  ;;  %v1273_v37 = vunpack.c.l.b16 %v1193_v28  ;;  %v1507_v28 = vld [vmem:[#allocation2 + $0x168] sm:$0xff] }
 0x16c   : > { %2116 = vmatmul.bf16.gmra.mxu0 %v1980_v49  ;;  %v4135_v49 = vld [vmem:[%s5166_s3 + $0x140] sm:$0xff]  ;;  %v1618_v42 = vunpack.c.l.b16 %v1538_v7  ;;  %v1853_v7 = vld [vmem:[#allocation2 + $0x171] sm:$0xff] }
 0x16d   : > { %v1387_v12 = vpop.f32.mrf.mxu2  ;;  %v5013_v20 = vmax.f32 %v441_v56, 0.0  ;;  %v5015_v50 = vmax.f32 %v442_v4, 0.0  ;;  %2400 = vmatpush.bf16.msra.mxu1 %v4135_v49  ;;  %3436 = vmatpush.bf16.msra.mxu0 %v4159_v1  ;;  %v1962_v54 = vunpack.c.l.b16 %v1882_v6  ;;  %v1195_v1 = vpack.c.bf16 %v1163_v18, %v1163_v18 }
 0x16e   : > { %v1455_v21 = vadd.f32 %v1387_v12, %v1075_v62  ;;  %v1732_v23 = vpop.f32.mrf.mxu3  ;;  %v1291_v62 = vpack.c.b16 %v1273_v37, %v1272_v36  ;;  %v1636_v2 = vpack.c.b16 %v1618_v42, %v1617_v38  ;;  %v1885_v38 = vpack.c.bf16 %v1853_v7, %v1853_v7 }
 0x16f   : > { %v1076_v32 = vpop.f32.mrf.mxu1  ;;  %506 = vst [vmem:[#allocation2 + $0x181] sm:$0xff] %v5013_v20  ;;  %v1981_v9 = vpack.c.b16 %v1963_v16, %v1962_v54 }
 0x170   : > { %v1800_v43 = vadd.f32 %v1732_v23, %v1455_v21  ;;  %507 = vst [vmem:[#allocation2 + $0x189] sm:$0xff] %v5015_v50  ;;  %v1077_v61 = vadd.f32 %v1076_v32, %v4878_v63  ;;  %v1508_v32 = vld [vmem:[#allocation2 + $0x170] sm:$0xff] }
 0x171   : > { %v2079_v15 = vpop.f32.mrf.mxu0  ;;  %v1540_v37 = vpack.c.bf16 %v1508_v32, %v1508_v32 }
 0x172   : > { %v5025_v31 = vadd.f32 %v2077_v26, %v1800_v43  ;;  %v1162_v26 = vld [vmem:[#allocation2 + $0x152] sm:$0xff] }
 0x173   : > { %v1194_v49 = vpack.c.bf16 %v1162_v26, %v1162_v26 }
 0x175   : > { %v1389_v30 = vpop.f32.mrf.mxu2  ;;  %v1274_v16 = vunpack.c.l.b16 %v1194_v49 }
 0x176   : > { %v1456_v56 = vadd.f32 %v1389_v30, %v1077_v61  ;;  %v1734_v4 = vpop.f32.mrf.mxu3  ;;  %v1275_v61 = vunpack.c.l.b16 %v1195_v1 }
 0x177   : > { %v1079_v55 = vpop.f32.mrf.mxu1  ;;  %v1510_v49 = vld [vmem:[#allocation2 + $0x188] sm:$0xff] }
 0x178   : > { %v1801_v12 = vadd.f32 %v1734_v4, %v1456_v56  ;;  %v1080_v63 = vadd.f32 %v1079_v55, %v4889_v53  ;;  %v1620_v56 = vunpack.c.l.b16 %v1540_v37  ;;  %v1292_v18 = vpack.c.b16 %v1275_v61, %v1274_v16 }
 0x179   : > { %v2082_v21 = vpop.f32.mrf.mxu0  ;;  %v1542_v16 = vpack.c.bf16 %v1510_v49, %v1510_v49 }
 0x17a   : > { %1118 = vmatmul.bf16.gmra.mxu1 %v1635_v10  ;;  %1431 = vmatmul.bf16.gmra.mxu2 %v1291_v62  ;;  %v5028_v23 = vadd.f32 %v2079_v15, %v1801_v12  ;;  %v1539_v10 = vpack.c.bf16 %v1507_v28, %v1507_v28  ;;  %v1884_v15 = vpack.c.bf16 %v1852_v33, %v1852_v33  ;;  %v1965_v62 = vunpack.c.l.b16 %v1885_v38 }
 0x17b   : > { %1776 = vmatmul.bf16.gmra.mxu3 %v1636_v2 }
 0x17c   : > { %2121 = vmatmul.bf16.gmra.mxu0 %v1981_v9  ;;  %v1619_v53 = vunpack.c.l.b16 %v1539_v10  ;;  %v1964_v4 = vunpack.c.l.b16 %v1884_v15 }
 0x17d   : > { %v1392_v6 = vpop.f32.mrf.mxu2 }
 0x17e   : > { %v1457_v35 = vadd.f32 %v1392_v6, %v1080_v63  ;;  %v1737_v43 = vpop.f32.mrf.mxu3  ;;  %v1637_v63 = vpack.c.b16 %v1620_v56, %v1619_v53  ;;  %v1982_v32 = vpack.c.b16 %v1965_v62, %v1964_v4 }
 0x17f   : > { %v1081_v36 = vpop.f32.mrf.mxu1 }
 0x180   : > { %v1802_v42 = vadd.f32 %v1737_v43, %v1457_v35  ;;  %v1082_v55 = vadd.f32 %v1081_v36, %v4898_v25  ;;  %v1165_v35 = vld [vmem:[#allocation2 + $0x172] sm:$0xff]  ;;  %v1509_v25 = vld [vmem:[#allocation2 + $0x180] sm:$0xff] }
 0x181   : > { %v2084_v54 = vpop.f32.mrf.mxu0  ;;  %v1197_v15 = vpack.c.bf16 %v1165_v35, %v1165_v35 }
 0x182   : > { %v5031_v30 = vadd.f32 %v2082_v21, %v1802_v42  ;;  %v1164_v21 = vld [vmem:[#allocation2 + $0x16a] sm:$0xff]  ;;  %v1541_v42 = vpack.c.bf16 %v1509_v25, %v1509_v25  ;;  %v2169_v25 = vld [vmem:[#allocation2 + $0x1a] sm:$0xff] }
 0x183   : > { %v1196_v37 = vpack.c.bf16 %v1164_v21, %v1164_v21 }
 0x184   : > { %v1621_v62 = vunpack.c.l.b16 %v1541_v42 }
 0x185   : > { %v1394_v9 = vpop.f32.mrf.mxu2  ;;  %v1276_v56 = vunpack.c.l.b16 %v1196_v37  ;;  %v2861_v37 = vld [vmem:[#allocation2 + $0x39] sm:$0xff] }
 0x186   : > { %v1458_v12 = vadd.f32 %v1394_v9, %v1082_v55  ;;  %v1739_v26 = vpop.f32.mrf.mxu3  ;;  %v1622_v55 = vunpack.c.l.b16 %v1542_v16  ;;  %v2201_v16 = vpack.c.bf16 %v2169_v25, %v2169_v25 }
 0x187   : > { %v1084_v28 = vpop.f32.mrf.mxu1 }
 0x188   : > { %v1803_v33 = vadd.f32 %v1739_v26, %v1458_v12  ;;  %v1085_v43 = vadd.f32 %v1084_v28, %v4906_v34  ;;  %v1277_v34 = vunpack.c.l.b16 %v1197_v15  ;;  %v1638_v21 = vpack.c.b16 %v1622_v55, %v1621_v62  ;;  %v3205_v15 = vld [vmem:[#allocation2 + $0x32] sm:$0xff] }
 0x189   : > { %v2087_v7 = vpop.f32.mrf.mxu0  ;;  %v2893_v62 = vpack.c.bf16 %v2861_v37, %v2861_v37  ;;  %v3237_v55 = vpack.c.bf16 %v3205_v15, %v3205_v15 }
 0x18a   : > { %1123 = vmatmul.bf16.gmra.mxu1 %v1636_v2  ;;  %1436 = vmatmul.bf16.gmra.mxu2 %v1292_v18  ;;  %v5034_v6 = vadd.f32 %v2084_v54, %v1803_v33  ;;  %v1886_v2 = vpack.c.bf16 %v5013_v20, %v5013_v20  ;;  %v1887_v54 = vpack.c.bf16 %v5015_v50, %v5015_v50 }
 0x18b   : > { %1781 = vmatmul.bf16.gmra.mxu3 %v1637_v63  ;;  %v1293_v33 = vpack.c.b16 %v1277_v34, %v1276_v56 }
 0x18c   : > { %2126 = vmatmul.bf16.gmra.mxu0 %v1982_v32  ;;  %v1966_v9 = vunpack.c.l.b16 %v1886_v2  ;;  %v1967_v12 = vunpack.c.l.b16 %v1887_v54 }
 0x18d   : > { %v1397_v1 = vpop.f32.mrf.mxu2 }
 0x18e   : > { %v1459_v36 = vadd.f32 %v1397_v1, %v1085_v43  ;;  %v1742_v10 = vpop.f32.mrf.mxu3  ;;  %v1983_v35 = vpack.c.b16 %v1967_v12, %v1966_v9  ;;  %v2515_v1 = vld [vmem:[#allocation2 + $0x30] sm:$0xff] }
 0x18f   : > { %v1086_v38 = vpop.f32.mrf.mxu1 }
 0x190   : > { %v1804_v61 = vadd.f32 %v1742_v10, %v1459_v36  ;;  %v1087_v26 = vadd.f32 %v1086_v38, %v4921_v3  ;;  %v2516_v36 = vld [vmem:[#allocation2 + $0x38] sm:$0xff] }
 0x191   : > { %v2089_v53 = vpop.f32.mrf.mxu0  ;;  %v2860_v3 = vld [vmem:[#allocation2 + $0x31] sm:$0xff]  ;;  %v3206_v38 = vld [vmem:[#allocation2 + $0x3a] sm:$0xff]  ;;  %v2548_v56 = vpack.c.bf16 %v2516_v36, %v2516_v36 }
 0x192   : > { %v5041_v4 = vadd.f32 %v2087_v7, %v1804_v61  ;;  %v2170_v7 = vld [vmem:[#allocation2 + $0x22] sm:$0xff]  ;;  %v2547_v61 = vpack.c.bf16 %v2515_v1, %v2515_v1  ;;  %v3238_v9 = vpack.c.bf16 %v3206_v38, %v3206_v38 }
 0x195   : > { %v1399_v18 = vpop.f32.mrf.mxu2 }
 0x196   : > { %v1460_v28 = vadd.f32 %v1399_v18, %v1087_v26  ;;  %v1744_v32 = vpop.f32.mrf.mxu3  ;;  %v2281_v18 = vunpack.c.l.b16 %v2201_v16 }
 0x197   : > { %v1089_v20 = vpop.f32.mrf.mxu1 }
 0x198   : > { %v1805_v50 = vadd.f32 %v1744_v32, %v1460_v28  ;;  %v1090_v10 = vadd.f32 %v1089_v20, %v4935_v11  ;;  %v2627_v11 = vunpack.c.l.b16 %v2547_v61  ;;  %v2628_v32 = vunpack.c.l.b16 %v2548_v56  ;;  %v2863_v61 = vld [vmem:[#allocation2 + $0x51] sm:$0xff] }
 0x199   : > { %v2092_v43 = vpop.f32.mrf.mxu0  ;;  %v3207_v56 = vld [vmem:[#allocation2 + $0x4a] sm:$0xff] }
 0x19a   : > { %1128 = vmatmul.bf16.gmra.mxu1 %v1637_v63  ;;  %1441 = vmatmul.bf16.gmra.mxu2 %v1293_v33  ;;  %v5044_v49 = vadd.f32 %v2089_v53, %v1805_v50  ;;  %v2202_v63 = vpack.c.bf16 %v2170_v7, %v2170_v7  ;;  %v2892_v53 = vpack.c.bf16 %v2860_v3, %v2860_v3  ;;  %v3318_v50 = vunpack.c.l.b16 %v3238_v9 }
 0x19b   : > { %1786 = vmatmul.bf16.gmra.mxu3 %v1638_v21  ;;  %v2973_v21 = vunpack.c.l.b16 %v2893_v62 }
 0x19c   : > { %2131 = vmatmul.bf16.gmra.mxu0 %v1983_v35  ;;  %v2282_v28 = vunpack.c.l.b16 %v2202_v63  ;;  %v2972_v20 = vunpack.c.l.b16 %v2892_v53  ;;  %v3317_v35 = vunpack.c.l.b16 %v3237_v55  ;;  %v2862_v63 = vld [vmem:[#allocation2 + $0x49] sm:$0xff] }
 0x19d   : > { %v1402_v42 = vpop.f32.mrf.mxu2 }
 0x19e   : > { %v1461_v2 = vadd.f32 %v1402_v42, %v1090_v10  ;;  %v1747_v54 = vpop.f32.mrf.mxu3  ;;  %v2313_v3 = vpack.c.b16 %v2282_v28, %v2281_v18  ;;  %v2659_v10 = vpack.c.b16 %v2628_v32, %v2627_v11  ;;  %v3004_v15 = vpack.c.b16 %v2973_v21, %v2972_v20 }
 0x19f   : > { %v1091_v34 = vpop.f32.mrf.mxu1  ;;  %v3349_v38 = vpack.c.b16 %v3318_v50, %v3317_v35  ;;  %v2894_v28 = vpack.c.bf16 %v2862_v63, %v2862_v63  ;;  %v2895_v11 = vpack.c.bf16 %v2863_v61, %v2863_v61 }
 0x1a0   : > { %v1806_v12 = vadd.f32 %v1747_v54, %v1461_v2  ;;  %v1092_v25 = vadd.f32 %v1091_v34, %v4943_v48  ;;  %v2517_v2 = vld [vmem:[#allocation2 + $0x48] sm:$0xff]  ;;  %v2518_v54 = vld [vmem:[#allocation2 + $0x50] sm:$0xff] }
 0x1a1   : > { %v2094_v26 = vpop.f32.mrf.mxu0  ;;  %v3208_v34 = vld [vmem:[#allocation2 + $0x52] sm:$0xff]  ;;  %v2549_v9 = vpack.c.bf16 %v2517_v2, %v2517_v2 }
 0x1a2   : > { %v5047_v33 = vadd.f32 %v2092_v43, %v1806_v12  ;;  %v2550_v12 = vpack.c.bf16 %v2518_v54, %v2518_v54  ;;  %v3240_v32 = vpack.c.bf16 %v3208_v34, %v3208_v34  ;;  %v2520_v34 = vld [vmem:[#allocation2 + $0x68] sm:$0xff] }
 0x1a3   : > { %v2629_v35 = vunpack.c.l.b16 %v2549_v9  ;;  %v3210_v9 = vld [vmem:[#allocation2 + $0x6a] sm:$0xff] }
 0x1a4   : > { %v2630_v50 = vunpack.c.l.b16 %v2550_v12 }
 0x1a5   : > { %v1404_v7 = vpop.f32.mrf.mxu2 }
 0x1a6   : > { %v1462_v1 = vadd.f32 %v1404_v7, %v1092_v25  ;;  %v1749_v36 = vpop.f32.mrf.mxu3  ;;  %v2975_v7 = vunpack.c.l.b16 %v2895_v11 }
 0x1a7   : > { %v1094_v37 = vpop.f32.mrf.mxu1 }
 0x1a8   : > { %v1807_v42 = vadd.f32 %v1749_v36, %v1462_v1  ;;  %v1095_v48 = vadd.f32 %v1094_v37, %v4871_v57  ;;  %v2974_v57 = vunpack.c.l.b16 %v2894_v28  ;;  %v3320_v36 = vunpack.c.l.b16 %v3240_v32 }
 0x1a9   : > { %v2097_v16 = vpop.f32.mrf.mxu0 }
 0x1aa   : > { %2401 = vmatmul.bf16.vlgmr.msra.gmra.mxu1 %v2313_v3  ;;  %2747 = vmatmul.bf16.vlgmr.msra.gmra.mxu2 %v2659_v10  ;;  %v5050_v43 = vadd.f32 %v2094_v26, %v1807_v42  ;;  %v3239_v26 = vpack.c.bf16 %v3207_v56, %v3207_v56  ;;  %v2660_v42 = vpack.c.b16 %v2630_v50, %v2629_v35 }
 0x1ab   : > { %3092 = vmatmul.bf16.vlgmr.msra.gmra.mxu3 %v3004_v15  ;;  %v3005_v54 = vpack.c.b16 %v2975_v7, %v2974_v57  ;;  %v3242_v35 = vpack.c.bf16 %v3210_v9, %v3210_v9  ;;  %v2522_v9 = vld [vmem:[#allocation2 + $0x80] sm:$0xff] }
 0x1ac   : > { %3437 = vmatmul.bf16.vlgmr.msra.gmra.mxu0 %v3349_v38  ;;  %v3319_v1 = vunpack.c.l.b16 %v3239_v26  ;;  %v2552_v26 = vpack.c.bf16 %v2520_v34, %v2520_v34 }
 0x1ad   : > { %v1407_v53 = vpop.f32.mrf.mxu2 }
 0x1ae   : > { %v1463_v62 = vadd.f32 %v1407_v53, %v1095_v48  ;;  %v1752_v55 = vpop.f32.mrf.mxu3  ;;  %v3350_v63 = vpack.c.b16 %v3320_v36, %v3319_v1  ;;  %v2864_v53 = vld [vmem:[#allocation2 + $0x61] sm:$0xff]  ;;  %v2632_v1 = vunpack.c.l.b16 %v2552_v26 }
 0x1af   : > { %v1096_v18 = vpop.f32.mrf.mxu1 }
 0x1b0   : > { %v1808_v20 = vadd.f32 %v1752_v55, %v1463_v62  ;;  %v1097_v3 = vadd.f32 %v1096_v18, %v4885_v0  ;;  %v2865_v62 = vld [vmem:[#allocation2 + $0x69] sm:$0xff] }
 0x1b1   : > { %v2099_v21 = vpop.f32.mrf.mxu0  ;;  %v3209_v55 = vld [vmem:[#allocation2 + $0x62] sm:$0xff] }
 0x1b2   : > { %v5053_v25 = vadd.f32 %v2097_v16, %v1808_v20  ;;  %v2519_v16 = vld [vmem:[#allocation2 + $0x60] sm:$0xff]  ;;  %v2897_v20 = vpack.c.bf16 %v2865_v62, %v2865_v62 }
 0x1b3   : > { %v2551_v11 = vpack.c.bf16 %v2519_v16, %v2519_v16 }
 0x1b5   : > { %v1409_v10 = vpop.f32.mrf.mxu2  ;;  %v2631_v7 = vunpack.c.l.b16 %v2551_v11  ;;  %v3212_v11 = vld [vmem:[#allocation2 + $0x82] sm:$0xff] }
 0x1b6   : > { %v1464_v37 = vadd.f32 %v1409_v10, %v1097_v3  ;;  %v1754_v15 = vpop.f32.mrf.mxu3  ;;  %v2977_v3 = vunpack.c.l.b16 %v2897_v20 }
 0x1b7   : > { %v1099_v2 = vpop.f32.mrf.mxu1 }
 0x1b8   : > { %v1809_v48 = vadd.f32 %v1754_v15, %v1464_v37  ;;  %v1100_v0 = vadd.f32 %v1099_v2, %v4894_v22  ;;  %v3322_v37 = vunpack.c.l.b16 %v3242_v35 }
 0x1b9   : > { %v2102_v61 = vpop.f32.mrf.mxu0 }
 0x1ba   : > { %2406 = vmatmul.bf16.gmra.mxu1 %v3349_v38  ;;  %2752 = vmatmul.bf16.gmra.mxu2 %v2660_v42  ;;  %v5056_v56 = vadd.f32 %v2099_v21, %v1809_v48  ;;  %v2896_v38 = vpack.c.bf16 %v2864_v53, %v2864_v53  ;;  %v3241_v21 = vpack.c.bf16 %v3209_v55, %v3209_v55 }
 0x1bb   : > { %3097 = vmatmul.bf16.gmra.mxu3 %v3005_v54  ;;  %v2661_v48 = vpack.c.b16 %v2632_v1, %v2631_v7  ;;  %v3244_v7 = vpack.c.bf16 %v3212_v11, %v3212_v11  ;;  %v2524_v11 = vld [vmem:[#allocation2 + $0x98] sm:$0xff] }
 0x1bc   : > { %3442 = vmatmul.bf16.gmra.mxu0 %v3350_v63  ;;  %v2976_v22 = vunpack.c.l.b16 %v2896_v38  ;;  %v3321_v10 = vunpack.c.l.b16 %v3241_v21  ;;  %v2554_v21 = vpack.c.bf16 %v2522_v9, %v2522_v9 }
 0x1bd   : > { %v1412_v12 = vpop.f32.mrf.mxu2 }
 0x1be   : > { %v1465_v18 = vadd.f32 %v1412_v12, %v1100_v0  ;;  %v1757_v28 = vpop.f32.mrf.mxu3  ;;  %v3006_v34 = vpack.c.b16 %v2977_v3, %v2976_v22  ;;  %v3351_v53 = vpack.c.b16 %v3322_v37, %v3321_v10  ;;  %v2866_v12 = vld [vmem:[#allocation2 + $0x79] sm:$0xff]  ;;  %v2634_v10 = vunpack.c.l.b16 %v2554_v21 }
 0x1bf   : > { %v1101_v32 = vpop.f32.mrf.mxu1 }
 0x1c0   : > { %v1810_v50 = vadd.f32 %v1757_v28, %v1465_v18  ;;  %v1102_v15 = vadd.f32 %v1101_v32, %v4902_v52  ;;  %v2867_v18 = vld [vmem:[#allocation2 + $0x81] sm:$0xff] }
 0x1c1   : > { %v2104_v57 = vpop.f32.mrf.mxu0  ;;  %v3211_v28 = vld [vmem:[#allocation2 + $0x7a] sm:$0xff] }
 0x1c2   : > { %v5059_v36 = vadd.f32 %v2102_v61, %v1810_v50  ;;  %v2521_v61 = vld [vmem:[#allocation2 + $0x78] sm:$0xff]  ;;  %v2899_v50 = vpack.c.bf16 %v2867_v18, %v2867_v18 }
 0x1c3   : > { %v2553_v20 = vpack.c.bf16 %v2521_v61, %v2521_v61 }
 0x1c5   : > { %v1414_v42 = vpop.f32.mrf.mxu2  ;;  %v2633_v3 = vunpack.c.l.b16 %v2553_v20  ;;  %v3214_v20 = vld [vmem:[#allocation2 + $0x9a] sm:$0xff] }
 0x1c6   : > { %v1466_v2 = vadd.f32 %v1414_v42, %v1102_v15  ;;  %v1759_v54 = vpop.f32.mrf.mxu3  ;;  %v2979_v15 = vunpack.c.l.b16 %v2899_v50 }
 0x1c7   : > { %v1104_v16 = vpop.f32.mrf.mxu1 }
 0x1c8   : > { %v1811_v0 = vadd.f32 %v1759_v54, %v1466_v2  ;;  %v1105_v52 = vadd.f32 %v1104_v16, %v4917_v40  ;;  %v3324_v2 = vunpack.c.l.b16 %v3244_v7 }
 0x1c9   : > { %v2107_v62 = vpop.f32.mrf.mxu0 }
 0x1ca   : > { %2411 = vmatmul.bf16.gmra.mxu1 %v3350_v63  ;;  %2757 = vmatmul.bf16.gmra.mxu2 %v2661_v48  ;;  %v5062_v55 = vadd.f32 %v2104_v57, %v1811_v0  ;;  %v2898_v63 = vpack.c.bf16 %v2866_v12, %v2866_v12  ;;  %v3243_v57 = vpack.c.bf16 %v3211_v28, %v3211_v28 }
 0x1cb   : > { %3102 = vmatmul.bf16.gmra.mxu3 %v3006_v34  ;;  %v2662_v0 = vpack.c.b16 %v2634_v10, %v2633_v3  ;;  %v3246_v3 = vpack.c.bf16 %v3214_v20, %v3214_v20  ;;  %v2526_v20 = vld [vmem:[#allocation2 + $0xb0] sm:$0xff] }
 0x1cc   : > { %3447 = vmatmul.bf16.gmra.mxu0 %v3351_v53  ;;  %v2978_v40 = vunpack.c.l.b16 %v2898_v63  ;;  %v3323_v42 = vunpack.c.l.b16 %v3243_v57  ;;  %v2556_v57 = vpack.c.bf16 %v2524_v11, %v2524_v11 }
 0x1cd   : > { %v1417_v26 = vpop.f32.mrf.mxu2 }
 0x1ce   : > { %v1467_v32 = vadd.f32 %v1417_v26, %v1105_v52  ;;  %v1762_v38 = vpop.f32.mrf.mxu3  ;;  %v3007_v9 = vpack.c.b16 %v2979_v15, %v2978_v40  ;;  %v3352_v12 = vpack.c.b16 %v3324_v2, %v3323_v42  ;;  %v2868_v26 = vld [vmem:[#allocation2 + $0x91] sm:$0xff]  ;;  %v2636_v42 = vunpack.c.l.b16 %v2556_v57 }
 0x1cf   : > { %v1106_v35 = vpop.f32.mrf.mxu1 }
 0x1d0   : > { %v1812_v1 = vadd.f32 %v1762_v38, %v1467_v32  ;;  %v1107_v54 = vadd.f32 %v1106_v35, %v4931_v5  ;;  %v2869_v32 = vld [vmem:[#allocation2 + $0x99] sm:$0xff] }
 0x1d1   : > { %v2109_v22 = vpop.f32.mrf.mxu0  ;;  %v3213_v38 = vld [vmem:[#allocation2 + $0x92] sm:$0xff] }
 0x1d2   : > { %v5065_v37 = vadd.f32 %v2107_v62, %v1812_v1  ;;  %v2523_v62 = vld [vmem:[#allocation2 + $0x90] sm:$0xff]  ;;  %v2901_v1 = vpack.c.bf16 %v2869_v32, %v2869_v32 }
 0x1d3   : > { %v2555_v50 = vpack.c.bf16 %v2523_v62, %v2523_v62 }
 0x1d5   : > { %v1419_v48 = vpop.f32.mrf.mxu2  ;;  %v2635_v15 = vunpack.c.l.b16 %v2555_v50  ;;  %v3216_v50 = vld [vmem:[#allocation2 + $0xb2] sm:$0xff] }
 0x1d6   : > { %v1468_v16 = vadd.f32 %v1419_v48, %v1107_v54  ;;  %v1764_v34 = vpop.f32.mrf.mxu3  ;;  %v2981_v54 = vunpack.c.l.b16 %v2901_v1 }
 0x1d7   : > { %v1109_v61 = vpop.f32.mrf.mxu1 }
 0x1d8   : > { %v1813_v52 = vadd.f32 %v1764_v34, %v1468_v16  ;;  %v1110_v5 = vadd.f32 %v1109_v61, %v4939_v29  ;;  %v3326_v16 = vunpack.c.l.b16 %v3246_v3 }
 0x1d9   : > { %v2112_v18 = vpop.f32.mrf.mxu0 }
 0x1da   : > { %2416 = vmatmul.bf16.gmra.mxu1 %v3351_v53  ;;  %2762 = vmatmul.bf16.gmra.mxu2 %v2662_v0  ;;  %v5068_v28 = vadd.f32 %v2109_v22, %v1813_v52  ;;  %v2900_v53 = vpack.c.bf16 %v2868_v26, %v2868_v26  ;;  %v3245_v22 = vpack.c.bf16 %v3213_v38, %v3213_v38 }
 0x1db   : > { %3107 = vmatmul.bf16.gmra.mxu3 %v3007_v9  ;;  %v2663_v52 = vpack.c.b16 %v2636_v42, %v2635_v15  ;;  %v3248_v15 = vpack.c.bf16 %v3216_v50, %v3216_v50  ;;  %v2528_v50 = vld [vmem:[#allocation2 + $0xc8] sm:$0xff] }
 0x1dc   : > { %3452 = vmatmul.bf16.gmra.mxu0 %v3352_v12  ;;  %v2980_v29 = vunpack.c.l.b16 %v2900_v53  ;;  %v3325_v48 = vunpack.c.l.b16 %v3245_v22  ;;  %v2558_v22 = vpack.c.bf16 %v2526_v20, %v2526_v20 }
 0x1dd   : > { %v1422_v21 = vpop.f32.mrf.mxu2 }
 0x1de   : > { %v1469_v35 = vadd.f32 %v1422_v21, %v1110_v5  ;;  %v1767_v63 = vpop.f32.mrf.mxu3  ;;  %v3008_v11 = vpack.c.b16 %v2981_v54, %v2980_v29  ;;  %v3353_v26 = vpack.c.b16 %v3326_v16, %v3325_v48  ;;  %v2870_v21 = vld [vmem:[#allocation2 + $0xa9] sm:$0xff]  ;;  %v2638_v48 = vunpack.c.l.b16 %v2558_v22 }
 0x1df   : > { %v1111_v7 = vpop.f32.mrf.mxu1 }
 0x1e0   : > { %v1814_v10 = vadd.f32 %v1767_v63, %v1469_v35  ;;  %v1112_v34 = vadd.f32 %v1111_v7, %v4947_v17  ;;  %v2871_v35 = vld [vmem:[#allocation2 + $0xb1] sm:$0xff] }
 0x1e1   : > { %v2114_v40 = vpop.f32.mrf.mxu0  ;;  %v3215_v63 = vld [vmem:[#allocation2 + $0xaa] sm:$0xff] }
 0x1e2   : > { %v5071_v2 = vadd.f32 %v2112_v18, %v1814_v10  ;;  %v2525_v18 = vld [vmem:[#allocation2 + $0xa8] sm:$0xff]  ;;  %v2903_v10 = vpack.c.bf16 %v2871_v35, %v2871_v35 }
 0x1e3   : > { %v2557_v1 = vpack.c.bf16 %v2525_v18, %v2525_v18 }
 0x1e5   : > { %v1424_v0 = vpop.f32.mrf.mxu2  ;;  %v2637_v54 = vunpack.c.l.b16 %v2557_v1  ;;  %v3218_v1 = vld [vmem:[#allocation2 + $0xca] sm:$0xff] }
 0x1e6   : > { %v1470_v61 = vadd.f32 %v1424_v0, %v1112_v34  ;;  %v1769_v9 = vpop.f32.mrf.mxu3  ;;  %v2983_v34 = vunpack.c.l.b16 %v2903_v10 }
 0x1e7   : > { %v1114_v62 = vpop.f32.mrf.mxu1 }
 0x1e8   : > { %v1815_v5 = vadd.f32 %v1769_v9, %v1470_v61  ;;  %v1115_v17 = vadd.f32 %v1114_v62, %v4873_v58  ;;  %v3328_v61 = vunpack.c.l.b16 %v3248_v15 }
 0x1e9   : > { %v2117_v32 = vpop.f32.mrf.mxu0 }
 0x1ea   : > { %2421 = vmatmul.bf16.gmra.mxu1 %v3352_v12  ;;  %2767 = vmatmul.bf16.gmra.mxu2 %v2663_v52  ;;  %v5074_v38 = vadd.f32 %v2114_v40, %v1815_v5  ;;  %v2902_v12 = vpack.c.bf16 %v2870_v21, %v2870_v21  ;;  %v3247_v40 = vpack.c.bf16 %v3215_v63, %v3215_v63 }
 0x1eb   : > { %3112 = vmatmul.bf16.gmra.mxu3 %v3008_v11  ;;  %v2664_v5 = vpack.c.b16 %v2638_v48, %v2637_v54  ;;  %v3250_v54 = vpack.c.bf16 %v3218_v1, %v3218_v1  ;;  %v2530_v1 = vld [vmem:[#allocation2 + $0xe0] sm:$0xff] }
 0x1ec   : > { %3457 = vmatmul.bf16.gmra.mxu0 %v3353_v26  ;;  %v2982_v58 = vunpack.c.l.b16 %v2902_v12  ;;  %v3327_v0 = vunpack.c.l.b16 %v3247_v40  ;;  %v2560_v40 = vpack.c.bf16 %v2528_v50, %v2528_v50 }
 0x1ed   : > { %v1427_v57 = vpop.f32.mrf.mxu2 }
 0x1ee   : > { %v1471_v7 = vadd.f32 %v1427_v57, %v1115_v17  ;;  %v1772_v53 = vpop.f32.mrf.mxu3  ;;  %v3009_v20 = vpack.c.b16 %v2983_v34, %v2982_v58  ;;  %v3354_v21 = vpack.c.b16 %v3328_v61, %v3327_v0  ;;  %v2872_v57 = vld [vmem:[#allocation2 + $0xc1] sm:$0xff]  ;;  %v2640_v0 = vunpack.c.l.b16 %v2560_v40 }
 0x1ef   : > { %v1116_v3 = vpop.f32.mrf.mxu1 }
 0x1f0   : > { %v1816_v42 = vadd.f32 %v1772_v53, %v1471_v7  ;;  %v1117_v9 = vadd.f32 %v1116_v3, %v4887_v13  ;;  %v2873_v7 = vld [vmem:[#allocation2 + $0xc9] sm:$0xff] }
 0x1f1   : > { %v2119_v29 = vpop.f32.mrf.mxu0  ;;  %v3217_v53 = vld [vmem:[#allocation2 + $0xc2] sm:$0xff] }
 0x1f2   : > { %v5077_v16 = vadd.f32 %v2117_v32, %v1816_v42  ;;  %v2527_v32 = vld [vmem:[#allocation2 + $0xc0] sm:$0xff]  ;;  %v2905_v42 = vpack.c.bf16 %v2873_v7, %v2873_v7 }
 0x1f3   : > { %v2559_v10 = vpack.c.bf16 %v2527_v32, %v2527_v32 }
 0x1f5   : > { %v1429_v52 = vpop.f32.mrf.mxu2  ;;  %v2639_v34 = vunpack.c.l.b16 %v2559_v10  ;;  %v3220_v10 = vld [vmem:[#allocation2 + $0xe2] sm:$0xff] }
 0x1f6   : > { %v1472_v62 = vadd.f32 %v1429_v52, %v1117_v9  ;;  %v1774_v11 = vpop.f32.mrf.mxu3  ;;  %v2985_v9 = vunpack.c.l.b16 %v2905_v42 }
 0x1f7   : > { %v1119_v18 = vpop.f32.mrf.mxu1 }
 0x1f8   : > { %v1817_v17 = vadd.f32 %v1774_v11, %v1472_v62  ;;  %v1120_v13 = vadd.f32 %v1119_v18, %v4896_v19  ;;  %v3330_v62 = vunpack.c.l.b16 %v3250_v54 }
 0x1f9   : > { %v2122_v35 = vpop.f32.mrf.mxu0 }
 0x1fa   : > { %2426 = vmatmul.bf16.gmra.mxu1 %v3353_v26  ;;  %2772 = vmatmul.bf16.gmra.mxu2 %v2664_v5  ;;  %v5080_v63 = vadd.f32 %v2119_v29, %v1817_v17  ;;  %v2904_v26 = vpack.c.bf16 %v2872_v57, %v2872_v57  ;;  %v3249_v29 = vpack.c.bf16 %v3217_v53, %v3217_v53 }
 0x1fb   : > { %3117 = vmatmul.bf16.gmra.mxu3 %v3009_v20  ;;  %v2665_v17 = vpack.c.b16 %v2640_v0, %v2639_v34  ;;  %v3252_v34 = vpack.c.bf16 %v3220_v10, %v3220_v10  ;;  %v2532_v10 = vld [vmem:[#allocation2 + $0xf8] sm:$0xff] }
 0x1fc   : > { %3462 = vmatmul.bf16.gmra.mxu0 %v3354_v21  ;;  %v2984_v19 = vunpack.c.l.b16 %v2904_v26  ;;  %v3329_v52 = vunpack.c.l.b16 %v3249_v29  ;;  %v2562_v29 = vpack.c.bf16 %v2530_v1, %v2530_v1 }
 0x1fd   : > { %v1432_v22 = vpop.f32.mrf.mxu2 }
 0x1fe   : > { %v1473_v3 = vadd.f32 %v1432_v22, %v1120_v13  ;;  %v1777_v12 = vpop.f32.mrf.mxu3  ;;  %v3010_v50 = vpack.c.b16 %v2985_v9, %v2984_v19  ;;  %v3355_v57 = vpack.c.b16 %v3330_v62, %v3329_v52  ;;  %v2874_v22 = vld [vmem:[#allocation2 + $0xd9] sm:$0xff]  ;;  %v2642_v52 = vunpack.c.l.b16 %v2562_v29 }
 0x1ff   : > { %v1121_v15 = vpop.f32.mrf.mxu1 }
 0x200   : > { %v1818_v48 = vadd.f32 %v1777_v12, %v1473_v3  ;;  %v1122_v11 = vadd.f32 %v1121_v15, %v4904_v59  ;;  %v2875_v3 = vld [vmem:[#allocation2 + $0xe1] sm:$0xff] }
 0x201   : > { %v2124_v58 = vpop.f32.mrf.mxu0  ;;  %v3219_v12 = vld [vmem:[#allocation2 + $0xda] sm:$0xff] }
 0x202   : > { %v5083_v61 = vadd.f32 %v2122_v35, %v1818_v48  ;;  %v2529_v35 = vld [vmem:[#allocation2 + $0xd8] sm:$0xff]  ;;  %v2907_v48 = vpack.c.bf16 %v2875_v3, %v2875_v3 }
 0x203   : > { %v2561_v42 = vpack.c.bf16 %v2529_v35, %v2529_v35 }
 0x205   : > { %v1434_v5 = vpop.f32.mrf.mxu2  ;;  %v2641_v9 = vunpack.c.l.b16 %v2561_v42  ;;  %v3222_v42 = vld [vmem:[#allocation2 + $0xfa] sm:$0xff] }
 0x206   : > { %v1474_v18 = vadd.f32 %v1434_v5, %v1122_v11  ;;  %v1779_v20 = vpop.f32.mrf.mxu3  ;;  %v2987_v11 = vunpack.c.l.b16 %v2907_v48 }
 0x207   : > { %v1124_v32 = vpop.f32.mrf.mxu1 }
 0x208   : > { %v1819_v13 = vadd.f32 %v1779_v20, %v1474_v18  ;;  %v1125_v59 = vadd.f32 %v1124_v32, %v4919_v41  ;;  %v3332_v18 = vunpack.c.l.b16 %v3252_v34 }
 0x209   : > { %v2127_v7 = vpop.f32.mrf.mxu0 }
 0x20a   : > { %2431 = vmatmul.bf16.gmra.mxu1 %v3354_v21  ;;  %2777 = vmatmul.bf16.gmra.mxu2 %v2665_v17  ;;  %v5086_v53 = vadd.f32 %v2124_v58, %v1819_v13  ;;  %v2906_v21 = vpack.c.bf16 %v2874_v22, %v2874_v22  ;;  %v3251_v58 = vpack.c.bf16 %v3219_v12, %v3219_v12 }
 0x20b   : > { %3122 = vmatmul.bf16.gmra.mxu3 %v3010_v50  ;;  %v2666_v13 = vpack.c.b16 %v2642_v52, %v2641_v9  ;;  %v3254_v9 = vpack.c.bf16 %v3222_v42, %v3222_v42  ;;  %v2534_v42 = vld [vmem:[#allocation2 + $0x110] sm:$0xff] }
 0x20c   : > { %3467 = vmatmul.bf16.gmra.mxu0 %v3355_v57  ;;  %v2986_v41 = vunpack.c.l.b16 %v2906_v21  ;;  %v3331_v5 = vunpack.c.l.b16 %v3251_v58  ;;  %v2564_v58 = vpack.c.bf16 %v2532_v10, %v2532_v10 }
 0x20d   : > { %v1437_v40 = vpop.f32.mrf.mxu2 }
 0x20e   : > { %v1475_v15 = vadd.f32 %v1437_v40, %v1125_v59  ;;  %v1782_v26 = vpop.f32.mrf.mxu3  ;;  %v3011_v1 = vpack.c.b16 %v2987_v11, %v2986_v41  ;;  %v3356_v22 = vpack.c.b16 %v3332_v18, %v3331_v5  ;;  %v2876_v40 = vld [vmem:[#allocation2 + $0xf1] sm:$0xff]  ;;  %v2644_v5 = vunpack.c.l.b16 %v2564_v58 }
 0x20f   : > { %v1126_v54 = vpop.f32.mrf.mxu1 }
 0x210   : > { %v1820_v0 = vadd.f32 %v1782_v26, %v1475_v15  ;;  %v1127_v20 = vadd.f32 %v1126_v54, %v4933_v8  ;;  %v2877_v15 = vld [vmem:[#allocation2 + $0xf9] sm:$0xff] }
 0x211   : > { %v2129_v19 = vpop.f32.mrf.mxu0  ;;  %v3221_v26 = vld [vmem:[#allocation2 + $0xf2] sm:$0xff] }
 0x212   : > { %v5089_v62 = vadd.f32 %v2127_v7, %v1820_v0  ;;  %v2531_v7 = vld [vmem:[#allocation2 + $0xf0] sm:$0xff]  ;;  %v2909_v0 = vpack.c.bf16 %v2877_v15, %v2877_v15 }
 0x213   : > { %v2563_v48 = vpack.c.bf16 %v2531_v7, %v2531_v7 }
 0x215   : > { %v1439_v17 = vpop.f32.mrf.mxu2  ;;  %v2643_v11 = vunpack.c.l.b16 %v2563_v48 }
 0x216   : > { %v1476_v32 = vadd.f32 %v1439_v17, %v1127_v20  ;;  %v1784_v50 = vpop.f32.mrf.mxu3  ;;  %v2989_v20 = vunpack.c.l.b16 %v2909_v0  ;;  %v2566_v0 = vpack.c.bf16 %v2534_v42, %v2534_v42 }
 0x217   : > { %v1129_v35 = vpop.f32.mrf.mxu1 }
 0x218   : > { %v1821_v59 = vadd.f32 %v1784_v50, %v1476_v32  ;;  %v1130_v8 = vadd.f32 %v1129_v35, %v4941_v27  ;;  %v3334_v32 = vunpack.c.l.b16 %v3254_v9 }
 0x219   : > { %v2132_v3 = vpop.f32.mrf.mxu0 }
 0x21a   : > { %2436 = vmatmul.bf16.gmra.mxu1 %v3355_v57  ;;  %2782 = vmatmul.bf16.gmra.mxu2 %v2666_v13  ;;  %v5092_v12 = vadd.f32 %v2129_v19, %v1821_v59  ;;  %v2908_v57 = vpack.c.bf16 %v2876_v40, %v2876_v40  ;;  %v3253_v19 = vpack.c.bf16 %v3221_v26, %v3221_v26 }
 0x21b   : > { %3127 = vmatmul.bf16.gmra.mxu3 %v3011_v1  ;;  %v2667_v59 = vpack.c.b16 %v2644_v5, %v2643_v11 }
 0x21c   : > { %3472 = vmatmul.bf16.gmra.mxu0 %v3356_v22  ;;  %v2988_v27 = vunpack.c.l.b16 %v2908_v57  ;;  %v3333_v17 = vunpack.c.l.b16 %v3253_v19 }
 0x21d   : > { %v1442_v29 = vpop.f32.mrf.mxu2 }
 0x21e   : > { %v1477_v54 = vadd.f32 %v1442_v29, %v1130_v8  ;;  %v1787_v21 = vpop.f32.mrf.mxu3  ;;  %v3012_v10 = vpack.c.b16 %v2989_v20, %v2988_v27  ;;  %v3357_v40 = vpack.c.b16 %v3334_v32, %v3333_v17  ;;  %v2878_v29 = vld [vmem:[#allocation2 + $0x109] sm:$0xff]  ;;  %v2646_v20 = vunpack.c.l.b16 %v2566_v0 }
 0x21f   : > { %v1131_v34 = vpop.f32.mrf.mxu1  ;;  %v2910_v19 = vpack.c.bf16 %v2878_v29, %v2878_v29 }
 0x220   : > { %v1822_v52 = vadd.f32 %v1787_v21, %v1477_v54  ;;  %v1132_v50 = vadd.f32 %v1131_v34, %v4949_v44  ;;  %v2879_v54 = vld [vmem:[#allocation2 + $0x111] sm:$0xff] }
 0x221   : > { %v2134_v41 = vpop.f32.mrf.mxu0  ;;  %v3223_v44 = vld [vmem:[#allocation2 + $0x10a] sm:$0xff]  ;;  %v3224_v21 = vld [vmem:[#allocation2 + $0x112] sm:$0xff]  ;;  %v2990_v17 = vunpack.c.l.b16 %v2910_v19 }
 0x222   : > { %v5095_v18 = vadd.f32 %v2132_v3, %v1822_v52  ;;  %v2533_v3 = vld [vmem:[#allocation2 + $0x108] sm:$0xff]  ;;  %v2911_v52 = vpack.c.bf16 %v2879_v54, %v2879_v54  ;;  %v3256_v11 = vpack.c.bf16 %v3224_v21, %v3224_v21 }
 0x223   : > { %v2565_v57 = vpack.c.bf16 %v2533_v3, %v2533_v3 }
 0x225   : > { %v1444_v13 = vpop.f32.mrf.mxu2  ;;  %v2645_v27 = vunpack.c.l.b16 %v2565_v57 }
 0x226   : > { %v1478_v35 = vadd.f32 %v1444_v13, %v1132_v50  ;;  %v1789_v1 = vpop.f32.mrf.mxu3  ;;  %v2991_v50 = vunpack.c.l.b16 %v2911_v52  ;;  %v3226_v52 = vld [vmem:[#allocation2 + $0x12a] sm:$0xff] }
 0x227   : > { %v2402_v7 = vpop.f32.mrf.mxu1 }
 0x228   : > { %v1823_v8 = vadd.f32 %v1789_v1, %v1478_v35  ;;  %v2482_v48 = vadd.f32 %v2402_v7, %v4965_v39  ;;  %v3336_v35 = vunpack.c.l.b16 %v3256_v11  ;;  %v3013_v42 = vpack.c.b16 %v2991_v50, %v2990_v17 }
 0x229   : > { %v3438_v15 = vpop.f32.mrf.mxu0 }
 0x22a   : > { %2441 = vmatmul.bf16.gmra.mxu1 %v3356_v22  ;;  %2787 = vmatmul.bf16.gmra.mxu2 %v2667_v59  ;;  %v5098_v26 = vadd.f32 %v2134_v41, %v1823_v8  ;;  %v3255_v41 = vpack.c.bf16 %v3223_v44, %v3223_v44 }
 0x22b   : > { %3132 = vmatmul.bf16.gmra.mxu3 %v3012_v10  ;;  %v2668_v10 = vpack.c.b16 %v2646_v20, %v2645_v27 }
 0x22c   : > { %3477 = vmatmul.bf16.gmra.mxu0 %v3357_v40  ;;  %v3335_v13 = vunpack.c.l.b16 %v3255_v41 }
 0x22d   : > { %v2748_v58 = vpop.f32.mrf.mxu2 }
 0x22e   : > { %v3093_v34 = vpop.f32.mrf.mxu3  ;;  %v2828_v9 = vadd.f32 %v2748_v58, %v2482_v48  ;;  %v3358_v29 = vpack.c.b16 %v3336_v35, %v3335_v13  ;;  %v2535_v58 = vld [vmem:[#allocation2 + $0x120] sm:$0xff]  ;;  %v3258_v35 = vpack.c.bf16 %v3226_v52, %v3226_v52 }
 0x22f   : > { %v2404_v22 = vpop.f32.mrf.mxu1  ;;  %v2567_v27 = vpack.c.bf16 %v2535_v58, %v2535_v58 }
 0x230   : > { %v3173_v32 = vadd.f32 %v3093_v34, %v2828_v9  ;;  %v2483_v39 = vadd.f32 %v2404_v22, %v4968_v45  ;;  %v2536_v34 = vld [vmem:[#allocation2 + $0x128] sm:$0xff] }
 0x231   : > { %v3440_v5 = vpop.f32.mrf.mxu0  ;;  %v2880_v45 = vld [vmem:[#allocation2 + $0x121] sm:$0xff]  ;;  %v2881_v9 = vld [vmem:[#allocation2 + $0x129] sm:$0xff]  ;;  %v2568_v20 = vpack.c.bf16 %v2536_v34, %v2536_v34 }
 0x232   : > { %v3518_v8 = vadd.f32 %v3438_v15, %v3173_v32  ;;  %v3225_v22 = vld [vmem:[#allocation2 + $0x122] sm:$0xff]  ;;  %v2912_v32 = vpack.c.bf16 %v2880_v45, %v2880_v45  ;;  %v2913_v50 = vpack.c.bf16 %v2881_v9, %v2881_v9 }
 0x233   : > { %v3257_v13 = vpack.c.bf16 %v3225_v22, %v3225_v22 }
 0x234   : > { %v3655_v48 = vmul.f32 %v3518_v8, %v3518_v8 }
 0x235   : > { %v2750_v1 = vpop.f32.mrf.mxu2 }
 0x236   : > { %v2829_v59 = vadd.f32 %v2750_v1, %v2483_v39  ;;  %v3095_v7 = vpop.f32.mrf.mxu3 }
 0x237   : > { %v2407_v3 = vpop.f32.mrf.mxu1 }
 0x238   : > { %v3174_v54 = vadd.f32 %v3095_v7, %v2829_v59  ;;  %v2484_v15 = vadd.f32 %v2407_v3, %v4971_v47  ;;  %v2647_v7 = vunpack.c.l.b16 %v2567_v27  ;;  %v2648_v47 = vunpack.c.l.b16 %v2568_v20 }
 0x239   : > { %v3443_v44 = vpop.f32.mrf.mxu0  ;;  %v3337_v3 = vunpack.c.l.b16 %v3257_v13 }
 0x23a   : > { %v3519_v21 = vadd.f32 %v3440_v5, %v3174_v54  ;;  %2446 = vmatmul.bf16.gmra.mxu1 %v3357_v40  ;;  %2792 = vmatmul.bf16.gmra.mxu2 %v2668_v10  ;;  %v2992_v10 = vunpack.c.l.b16 %v2912_v32  ;;  %v3227_v32 = vld [vmem:[#allocation2 + $0x13a] sm:$0xff] }
 0x23b   : > { %3137 = vmatmul.bf16.gmra.mxu3 %v3013_v42  ;;  %v3338_v42 = vunpack.c.l.b16 %v3258_v35 }
 0x23c   : > { %3482 = vmatmul.bf16.gmra.mxu0 %v3358_v29  ;;  %v4234_v57 = vpack.c.bf16 %v3519_v21, %v3518_v8  ;;  %v3615_v0 = vadd.f32 %v3519_v21, %v3518_v8  ;;  %v3656_v19 = vmul.f32 %v3519_v21, %v3519_v21  ;;  %v2993_v8 = vunpack.c.l.b16 %v2913_v50  ;;  %v3228_v50 = vld [vmem:[#allocation2 + $0x142] sm:$0xff] }
 0x23d   : > { %v2753_v41 = vpop.f32.mrf.mxu2  ;;  %v3359_v22 = vpack.c.b16 %v3338_v42, %v3337_v3  ;;  %v3259_v3 = vpack.c.bf16 %v3227_v32, %v3227_v32  ;;  %v3260_v42 = vpack.c.bf16 %v3228_v50, %v3228_v50  ;;  %v2540_v50 = vld [vmem:[#allocation2 + $0x158] sm:$0xff] }
 0x23e   : > { %4235 = vst [vmem:[%s4438_s30] sm:$0xff] %v4234_v57   ;;  %v3687_v11 = vadd.f32 %v3656_v19, %v3655_v48  ;;  %v2830_v40 = vadd.f32 %v2753_v41, %v2484_v15  ;;  %v3098_v5 = vpop.f32.mrf.mxu3  ;;  %v2669_v19 = vpack.c.b16 %v2648_v47, %v2647_v7  ;;  %v3014_v9 = vpack.c.b16 %v2993_v8, %v2992_v10 }
 0x23f   : > { %v2409_v17 = vpop.f32.mrf.mxu1 }
 0x240   : > { %v3175_v39 = vadd.f32 %v3098_v5, %v2830_v40  ;;  %v2485_v48 = vadd.f32 %v2409_v17, %v4974_v24  ;;  %v2538_v40 = vld [vmem:[#allocation2 + $0x140] sm:$0xff] }
 0x241   : > { %v3445_v1 = vpop.f32.mrf.mxu0  ;;  %v2882_v5 = vld [vmem:[#allocation2 + $0x139] sm:$0xff]  ;;  %v2883_v17 = vld [vmem:[#allocation2 + $0x141] sm:$0xff]  ;;  %v2570_v7 = vpack.c.bf16 %v2538_v40, %v2538_v40 }
 0x242   : > { %v3520_v59 = vadd.f32 %v3443_v44, %v3175_v39  ;;  %v2914_v10 = vpack.c.bf16 %v2882_v5, %v2882_v5  ;;  %v2915_v8 = vpack.c.bf16 %v2883_v17, %v2883_v17 }
 0x244   : > { %v3616_v54 = vadd.f32 %v3615_v0, %v3520_v59  ;;  %v3657_v21 = vmul.f32 %v3520_v59, %v3520_v59  ;;  %v2537_v0 = vld [vmem:[#allocation2 + $0x138] sm:$0xff] }
 0x245   : > { %v2755_v58 = vpop.f32.mrf.mxu2 }
 0x246   : > { %v3688_v34 = vadd.f32 %v3687_v11, %v3657_v21  ;;  %v2831_v57 = vadd.f32 %v2755_v58, %v2485_v48  ;;  %v3100_v45 = vpop.f32.mrf.mxu3  ;;  %v2994_v58 = vunpack.c.l.b16 %v2914_v10 }
 0x247   : > { %v2412_v15 = vpop.f32.mrf.mxu1 }
 0x248   : > { %v3176_v52 = vadd.f32 %v3100_v45, %v2831_v57  ;;  %v2486_v20 = vadd.f32 %v2412_v15, %v4989_v51  ;;  %v2650_v51 = vunpack.c.l.b16 %v2570_v7  ;;  %v2995_v57 = vunpack.c.l.b16 %v2915_v8  ;;  %v3229_v7 = vld [vmem:[#allocation2 + $0x152] sm:$0xff] }
 0x249   : > { %v3448_v44 = vpop.f32.mrf.mxu0  ;;  %v3339_v45 = vunpack.c.l.b16 %v3259_v3 }
 0x24a   : > { %v3521_v41 = vadd.f32 %v3445_v1, %v3176_v52  ;;  %2451 = vmatmul.bf16.gmra.mxu1 %v3358_v29  ;;  %2797 = vmatmul.bf16.gmra.mxu2 %v2669_v19  ;;  %v2569_v29 = vpack.c.bf16 %v2537_v0, %v2537_v0  ;;  %v3340_v19 = vunpack.c.l.b16 %v3260_v42 }
 0x24b   : > { %3142 = vmatmul.bf16.gmra.mxu3 %v3014_v9 }
 0x24c   : > { %3487 = vmatmul.bf16.gmra.mxu0 %v3359_v22  ;;  %v4239_v24 = vpack.c.bf16 %v3521_v41, %v3520_v59  ;;  %v3617_v27 = vadd.f32 %v3616_v54, %v3521_v41  ;;  %v3658_v11 = vmul.f32 %v3521_v41, %v3521_v41  ;;  %v2649_v48 = vunpack.c.l.b16 %v2569_v29  ;;  %v2885_v29 = vld [vmem:[#allocation2 + $0x159] sm:$0xff] }
 0x24d   : > { %v2758_v13 = vpop.f32.mrf.mxu2 }
 0x24e   : > { %4326 = vst [vmem:[%s4438_s30 + $0x8] sm:$0xff] %v4239_v24   ;;  %v3689_v35 = vadd.f32 %v3688_v34, %v3658_v11  ;;  %v2832_v39 = vadd.f32 %v2758_v13, %v2486_v20  ;;  %v3103_v1 = vpop.f32.mrf.mxu3  ;;  %v2670_v5 = vpack.c.b16 %v2650_v51, %v2649_v48  ;;  %v3015_v11 = vpack.c.b16 %v2995_v57, %v2994_v58  ;;  %v2884_v13 = vld [vmem:[#allocation2 + $0x151] sm:$0xff] }
 0x24f   : > { %v2414_v47 = vpop.f32.mrf.mxu1  ;;  %v3360_v20 = vpack.c.b16 %v3340_v19, %v3339_v45  ;;  %v2916_v48 = vpack.c.bf16 %v2884_v13, %v2884_v13  ;;  %v2917_v51 = vpack.c.bf16 %v2885_v29, %v2885_v29  ;;  %v3261_v58 = vpack.c.bf16 %v3229_v7, %v3229_v7  ;;  %v2542_v29 = vld [vmem:[#allocation2 + $0x170] sm:$0xff] }
 0x250   : > { %v3177_v59 = vadd.f32 %v3103_v1, %v2832_v39  ;;  %v2487_v9 = vadd.f32 %v2414_v47, %v4992_v60  ;;  %v3230_v47 = vld [vmem:[#allocation2 + $0x15a] sm:$0xff]  ;;  %v2886_v7 = vld [vmem:[#allocation2 + $0x169] sm:$0xff] }
 0x251   : > { %v3450_v54 = vpop.f32.mrf.mxu0  ;;  %v3262_v57 = vpack.c.bf16 %v3230_v47, %v3230_v47 }
 0x252   : > { %v3522_v21 = vadd.f32 %v3448_v44, %v3177_v59  ;;  %v2572_v59 = vpack.c.bf16 %v2540_v50, %v2540_v50 }
 0x254   : > { %v3618_v15 = vadd.f32 %v3617_v27, %v3522_v21  ;;  %v3659_v34 = vmul.f32 %v3522_v21, %v3522_v21  ;;  %v2539_v27 = vld [vmem:[#allocation2 + $0x150] sm:$0xff] }
 0x255   : > { %v2760_v52 = vpop.f32.mrf.mxu2 }
 0x256   : > { %v3690_v41 = vadd.f32 %v3689_v35, %v3659_v34  ;;  %v2833_v0 = vadd.f32 %v2760_v52, %v2487_v9  ;;  %v3105_v40 = vpop.f32.mrf.mxu3  ;;  %v2996_v34 = vunpack.c.l.b16 %v2916_v48  ;;  %v2997_v9 = vunpack.c.l.b16 %v2917_v51 }
 0x257   : > { %v2417_v24 = vpop.f32.mrf.mxu1  ;;  %v3341_v52 = vunpack.c.l.b16 %v3261_v58  ;;  %v2574_v58 = vpack.c.bf16 %v2542_v29, %v2542_v29 }
 0x258   : > { %v3178_v17 = vadd.f32 %v3105_v40, %v2833_v0  ;;  %v2488_v1 = vadd.f32 %v2417_v24, %v4995_v14  ;;  %v2652_v14 = vunpack.c.l.b16 %v2572_v59  ;;  %v3342_v0 = vunpack.c.l.b16 %v3262_v57 }
 0x259   : > { %v3453_v44 = vpop.f32.mrf.mxu0  ;;  %v3016_v13 = vpack.c.b16 %v2997_v9, %v2996_v34 }
 0x25a   : > { %v3523_v32 = vadd.f32 %v3450_v54, %v3178_v17  ;;  %2456 = vmatmul.bf16.gmra.mxu1 %v3359_v22  ;;  %2802 = vmatmul.bf16.gmra.mxu2 %v2670_v5  ;;  %v2571_v22 = vpack.c.bf16 %v2539_v27, %v2539_v27 }
 0x25b   : > { %3147 = vmatmul.bf16.gmra.mxu3 %v3015_v11 }
 0x25c   : > { %3492 = vmatmul.bf16.gmra.mxu0 %v3360_v20  ;;  %v4244_v60 = vpack.c.bf16 %v3523_v32, %v3522_v21  ;;  %v3619_v39 = vadd.f32 %v3618_v15, %v3523_v32  ;;  %v3660_v35 = vmul.f32 %v3523_v32, %v3523_v32  ;;  %v2651_v15 = vunpack.c.l.b16 %v2571_v22  ;;  %v3232_v22 = vld [vmem:[#allocation2 + $0x172] sm:$0xff] }
 0x25d   : > { %v2763_v10 = vpop.f32.mrf.mxu2 }
 0x25e   : > { %4327 = vst [vmem:[%s4438_s30 + $0x10] sm:$0xff] %v4244_v60   ;;  %v3691_v8 = vadd.f32 %v3690_v41, %v3660_v35  ;;  %v2834_v3 = vadd.f32 %v2763_v10, %v2488_v1  ;;  %v3108_v42 = vpop.f32.mrf.mxu3  ;;  %v2671_v27 = vpack.c.b16 %v2652_v14, %v2651_v15  ;;  %v3361_v60 = vpack.c.b16 %v3342_v0, %v3341_v52 }
 0x25f   : > { %v2419_v54 = vpop.f32.mrf.mxu1  ;;  %v3264_v14 = vpack.c.bf16 %v3232_v22, %v3232_v22 }
 0x260   : > { %v3179_v21 = vadd.f32 %v3108_v42, %v2834_v3  ;;  %v2489_v5 = vadd.f32 %v2419_v54, %v5001_v46  ;;  %v2887_v3 = vld [vmem:[#allocation2 + $0x171] sm:$0xff] }
 0x261   : > { %v3455_v45 = vpop.f32.mrf.mxu0  ;;  %v3231_v42 = vld [vmem:[#allocation2 + $0x16a] sm:$0xff] }
 0x262   : > { %v3524_v19 = vadd.f32 %v3453_v44, %v3179_v21  ;;  %v2918_v21 = vpack.c.bf16 %v2886_v7, %v2886_v7  ;;  %v3263_v15 = vpack.c.bf16 %v3231_v42, %v3231_v42 }
 0x264   : > { %v3620_v40 = vadd.f32 %v3619_v39, %v3524_v19  ;;  %v3661_v41 = vmul.f32 %v3524_v19, %v3524_v19  ;;  %v2541_v39 = vld [vmem:[#allocation2 + $0x168] sm:$0xff]  ;;  %v2998_v0 = vunpack.c.l.b16 %v2918_v21 }
 0x265   : > { %v2765_v24 = vpop.f32.mrf.mxu2 }
 0x266   : > { %v3692_v11 = vadd.f32 %v3691_v8, %v3661_v41  ;;  %v2835_v17 = vadd.f32 %v2765_v24, %v2489_v5  ;;  %v3110_v32 = vpop.f32.mrf.mxu3  ;;  %v3343_v41 = vunpack.c.l.b16 %v3263_v15  ;;  %v3344_v5 = vunpack.c.l.b16 %v3264_v14 }
 0x267   : > { %v2422_v50 = vpop.f32.mrf.mxu1 }
 0x268   : > { %v3180_v35 = vadd.f32 %v3110_v32, %v2835_v17  ;;  %v2490_v8 = vadd.f32 %v2422_v50, %v5025_v31  ;;  %v2654_v31 = vunpack.c.l.b16 %v2574_v58  ;;  %v3362_v29 = vpack.c.b16 %v3344_v5, %v3343_v41 }
 0x269   : > { %v3458_v44 = vpop.f32.mrf.mxu0 }
 0x26a   : > { %v3525_v1 = vadd.f32 %v3455_v45, %v3180_v35  ;;  %2461 = vmatmul.bf16.gmra.mxu1 %v3360_v20  ;;  %2807 = vmatmul.bf16.gmra.mxu2 %v2671_v27  ;;  %v2573_v20 = vpack.c.bf16 %v2541_v39, %v2541_v39  ;;  %v2919_v45 = vpack.c.bf16 %v2887_v3, %v2887_v3 }
 0x26b   : > { %3152 = vmatmul.bf16.gmra.mxu3 %v3016_v13 }
 0x26c   : > { %3497 = vmatmul.bf16.gmra.mxu0 %v3361_v60  ;;  %v4249_v46 = vpack.c.bf16 %v3525_v1, %v3524_v19  ;;  %v3621_v47 = vadd.f32 %v3620_v40, %v3525_v1  ;;  %v3662_v10 = vmul.f32 %v3525_v1, %v3525_v1  ;;  %v2653_v52 = vunpack.c.l.b16 %v2573_v20 }
 0x26d   : > { %v2768_v59 = vpop.f32.mrf.mxu2  ;;  %v2999_v40 = vunpack.c.l.b16 %v2919_v45 }
 0x26e   : > { %4328 = vst [vmem:[%s4438_s30 + $0x18] sm:$0xff] %v4249_v46   ;;  %v3693_v54 = vadd.f32 %v3692_v11, %v3662_v10  ;;  %v2836_v48 = vadd.f32 %v2768_v59, %v2490_v8  ;;  %v3113_v51 = vpop.f32.mrf.mxu3  ;;  %v2672_v35 = vpack.c.b16 %v2654_v31, %v2653_v52  ;;  %v2544_v10 = vld [vmem:[#allocation2 + $0x188] sm:$0xff] }
 0x26f   : > { %v2424_v57 = vpop.f32.mrf.mxu1  ;;  %v3017_v39 = vpack.c.b16 %v2999_v40, %v2998_v0  ;;  %v2888_v8 = vld [vmem:[#allocation2 + $0x181] sm:$0xff]  ;;  %v2889_v59 = vld [vmem:[#allocation2 + $0x189] sm:$0xff]  ;;  %v2576_v21 = vpack.c.bf16 %v2544_v10, %v2544_v10 }
 0x270   : > { %v3181_v19 = vadd.f32 %v3113_v51, %v2836_v48  ;;  %v2491_v17 = vadd.f32 %v2424_v57, %v5028_v23  ;;  %v3234_v48 = vld [vmem:[#allocation2 + $0x18a] sm:$0xff]  ;;  %v2920_v15 = vpack.c.bf16 %v2888_v8, %v2888_v8  ;;  %v2921_v14 = vpack.c.bf16 %v2889_v59, %v2889_v59  ;;  %v2545_v8 = vld [vmem:[#allocation2 + $0x198] sm:$0xff] }
 0x271   : > { %v3460_v34 = vpop.f32.mrf.mxu0 }
 0x272   : > { %v3526_v9 = vadd.f32 %v3458_v44, %v3181_v19  ;;  %v3000_v40 = vunpack.c.l.b16 %v2920_v15  ;;  %v3001_v41 = vunpack.c.l.b16 %v2921_v14 }
 0x274   : > { %v3622_v24 = vadd.f32 %v3621_v47, %v3526_v9  ;;  %v3663_v11 = vmul.f32 %v3526_v9, %v3526_v9  ;;  %v2543_v47 = vld [vmem:[#allocation2 + $0x180] sm:$0xff] }
 0x275   : > { %v2770_v32 = vpop.f32.mrf.mxu2 }
 0x276   : > { %v3694_v27 = vadd.f32 %v3693_v54, %v3663_v11  ;;  %v2837_v50 = vadd.f32 %v2770_v32, %v2491_v17  ;;  %v3115_v13 = vpop.f32.mrf.mxu3  ;;  %v3233_v54 = vld [vmem:[#allocation2 + $0x182] sm:$0xff] }
 0x277   : > { %v2427_v1 = vpop.f32.mrf.mxu1  ;;  %v3265_v19 = vpack.c.bf16 %v3233_v54, %v3233_v54  ;;  %v2891_v54 = vld [vmem:[#allocation2 + $0x1a1] sm:$0xff] }
 0x278   : > { %v3182_v7 = vadd.f32 %v3115_v13, %v2837_v50  ;;  %v2492_v22 = vadd.f32 %v2427_v1, %v5031_v30  ;;  %v2656_v30 = vunpack.c.l.b16 %v2576_v21  ;;  %v2923_v14 = vpack.c.bf16 %v2891_v54, %v2891_v54 }
 0x279   : > { %v3463_v44 = vpop.f32.mrf.mxu0  ;;  %v3345_v5 = vunpack.c.l.b16 %v3265_v19 }
 0x27a   : > { %v3527_v46 = vadd.f32 %v3460_v34, %v3182_v7  ;;  %2466 = vmatmul.bf16.gmra.mxu1 %v3361_v60  ;;  %2812 = vmatmul.bf16.gmra.mxu2 %v2672_v35  ;;  %v2575_v60 = vpack.c.bf16 %v2543_v47, %v2543_v47  ;;  %v3266_v34 = vpack.c.bf16 %v3234_v48, %v3234_v48  ;;  %v3235_v48 = vld [vmem:[#allocation2 + $0x19a] sm:$0xff] }
 0x27b   : > { %3157 = vmatmul.bf16.gmra.mxu3 %v3017_v39  ;;  %v3018_v7 = vpack.c.b16 %v3001_v41, %v3000_v40  ;;  %v3267_v19 = vpack.c.bf16 %v3235_v48, %v3235_v48  ;;  %v3003_v40 = vunpack.c.l.b16 %v2923_v14 }
 0x27c   : > { %3502 = vmatmul.bf16.gmra.mxu0 %v3362_v29  ;;  %v4254_v23 = vpack.c.bf16 %v3527_v46, %v3526_v9  ;;  %v3623_v3 = vadd.f32 %v3622_v24, %v3527_v46  ;;  %v3664_v42 = vmul.f32 %v3527_v46, %v3527_v46  ;;  %v2655_v0 = vunpack.c.l.b16 %v2575_v60 }
 0x27d   : > { %v2773_v51 = vpop.f32.mrf.mxu2  ;;  %v3346_v24 = vunpack.c.l.b16 %v3266_v34  ;;  %v3347_v41 = vunpack.c.l.b16 %v3267_v19 }
 0x27e   : > { %4329 = vst [vmem:[%s4438_s30 + $0x20] sm:$0xff] %v4254_v23   ;;  %v3695_v20 = vadd.f32 %v3694_v27, %v3664_v42  ;;  %v2838_v58 = vadd.f32 %v2773_v51, %v2492_v22  ;;  %v3118_v57 = vpop.f32.mrf.mxu3  ;;  %v2673_v1 = vpack.c.b16 %v2656_v30, %v2655_v0  ;;  %v2546_v23 = vld [vmem:[#allocation2 + $0x1a0] sm:$0xff] }
 0x27f   : > { %v2429_v45 = vpop.f32.mrf.mxu1  ;;  %v3363_v46 = vpack.c.b16 %v3346_v24, %v3345_v5  ;;  %v3236_v51 = vld [vmem:[#allocation2 + $0x1a2] sm:$0xff]  ;;  %v2578_v21 = vpack.c.bf16 %v2546_v23, %v2546_v23 }
 0x280   : > { %v3183_v9 = vadd.f32 %v3118_v57, %v2838_v58  ;;  %v2493_v32 = vadd.f32 %v2429_v45, %v5034_v6  ;;  %v3268_v34 = vpack.c.bf16 %v3236_v51, %v3236_v51 }
 0x281   : > { %v3465_v52 = vpop.f32.mrf.mxu0 }
 0x282   : > { %v3528_v31 = vadd.f32 %v3463_v44, %v3183_v9  ;;  %v3348_v5 = vunpack.c.l.b16 %v3268_v34 }
 0x284   : > { %v3624_v11 = vadd.f32 %v3623_v3, %v3528_v31  ;;  %v3665_v17 = vmul.f32 %v3528_v31, %v3528_v31  ;;  %v2890_v3 = vld [vmem:[#allocation2 + $0x199] sm:$0xff] }
 0x285   : > { %v2775_v27 = vpop.f32.mrf.mxu2  ;;  %v2922_v15 = vpack.c.bf16 %v2890_v3, %v2890_v3 }
 0x286   : > { %v3696_v50 = vadd.f32 %v3695_v20, %v3665_v17  ;;  %v2839_v13 = vadd.f32 %v2775_v27, %v2493_v32  ;;  %v3120_v35 = vpop.f32.mrf.mxu3 }
 0x287   : > { %v2432_v39 = vpop.f32.mrf.mxu1  ;;  %v3002_v30 = vunpack.c.l.b16 %v2922_v15 }
 0x288   : > { %v3184_v47 = vadd.f32 %v3120_v35, %v2839_v13  ;;  %v2494_v59 = vadd.f32 %v2432_v39, %v5041_v4  ;;  %v2658_v4 = vunpack.c.l.b16 %v2578_v21 }
 0x289   : > { %v3468_v44 = vpop.f32.mrf.mxu0  ;;  %v3019_v39 = vpack.c.b16 %v3003_v40, %v3002_v30 }
 0x28a   : > { %v3529_v10 = vadd.f32 %v3465_v52, %v3184_v47  ;;  %2471 = vmatmul.bf16.gmra.mxu1 %v3362_v29  ;;  %2817 = vmatmul.bf16.gmra.mxu2 %v2673_v1  ;;  %v2577_v29 = vpack.c.bf16 %v2545_v8, %v2545_v8 }
 0x28b   : > { %3162 = vmatmul.bf16.gmra.mxu3 %v3018_v7  ;;  %v3364_v7 = vpack.c.b16 %v3348_v5, %v3347_v41 }
 0x28c   : > { %3507 = vmatmul.bf16.gmra.mxu0 %v3363_v46  ;;  %v4259_v6 = vpack.c.bf16 %v3529_v10, %v3528_v31  ;;  %v3625_v42 = vadd.f32 %v3624_v11, %v3529_v10  ;;  %v3666_v22 = vmul.f32 %v3529_v10, %v3529_v10  ;;  %v2657_v0 = vunpack.c.l.b16 %v2577_v29 }
 0x28d   : > { %v2778_v20 = vpop.f32.mrf.mxu2 }
 0x28e   : > { %4330 = vst [vmem:[%s4438_s30 + $0x28] sm:$0xff] %v4259_v6   ;;  %v3697_v58 = vadd.f32 %v3696_v50, %v3666_v22  ;;  %v2840_v57 = vadd.f32 %v2778_v20, %v2494_v59  ;;  %v3123_v60 = vpop.f32.mrf.mxu3  ;;  %v2674_v35 = vpack.c.b16 %v2658_v4, %v2657_v0 }
 0x28f   : > { %v2434_v45 = vpop.f32.mrf.mxu1 }
 0x290   : > { %v3185_v9 = vadd.f32 %v3123_v60, %v2840_v57  ;;  %v2495_v17 = vadd.f32 %v2434_v45, %v5044_v49 }
 0x291   : > { %v3470_v52 = vpop.f32.mrf.mxu0 }
 0x292   : > { %v3530_v31 = vadd.f32 %v3468_v44, %v3185_v9 }
 0x294   : > { %v3626_v24 = vadd.f32 %v3625_v42, %v3530_v31  ;;  %v3667_v11 = vmul.f32 %v3530_v31, %v3530_v31 }
 0x295   : > { %v2780_v32 = vpop.f32.mrf.mxu2 }
 0x296   : > { %v3698_v27 = vadd.f32 %v3697_v58, %v3667_v11  ;;  %v2841_v50 = vadd.f32 %v2780_v32, %v2495_v17  ;;  %v3125_v13 = vpop.f32.mrf.mxu3 }
 0x297   : > { %v2437_v1 = vpop.f32.mrf.mxu1 }
 0x298   : > { %v3186_v47 = vadd.f32 %v3125_v13, %v2841_v50  ;;  %v2496_v49 = vadd.f32 %v2437_v1, %v5047_v33 }
 0x299   : > { %v3473_v44 = vpop.f32.mrf.mxu0 }
 0x29a   : > { %v3531_v10 = vadd.f32 %v3470_v52, %v3186_v47  ;;  %2476 = vmatmul.bf16.gmra.mxu1 %v3363_v46  ;;  %2822 = vmatmul.bf16.gmra.mxu2 %v2674_v35 }
 0x29b   : > { %3167 = vmatmul.bf16.gmra.mxu3 %v3019_v39 }
 0x29c   : > { %3512 = vmatmul.bf16.gmra.mxu0 %v3364_v7  ;;  %v4264_v8 = vpack.c.bf16 %v3531_v10, %v3530_v31  ;;  %v3627_v23 = vadd.f32 %v3626_v24, %v3531_v10  ;;  %v3668_v3 = vmul.f32 %v3531_v10, %v3531_v10 }
 0x29d   : > { %v2783_v6 = vpop.f32.mrf.mxu2 }
 0x29e   : > { %4331 = vst [vmem:[%s4438_s30 + $0x30] sm:$0xff] %v4264_v8   ;;  %v3699_v42 = vadd.f32 %v3698_v27, %v3668_v3  ;;  %v2842_v22 = vadd.f32 %v2783_v6, %v2496_v49  ;;  %v3128_v59 = vpop.f32.mrf.mxu3 }
 0x29f   : > { %v2439_v54 = vpop.f32.mrf.mxu1 }
 0x2a0   : > { %v3187_v48 = vadd.f32 %v3128_v59, %v2842_v22  ;;  %v2497_v57 = vadd.f32 %v2439_v54, %v5050_v43 }
 0x2a1   : > { %v3475_v51 = vpop.f32.mrf.mxu0 }
 0x2a2   : > { %v3532_v20 = vadd.f32 %v3473_v44, %v3187_v48 }
 0x2a4   : > { %v3628_v58 = vadd.f32 %v3627_v23, %v3532_v20  ;;  %v3669_v46 = vmul.f32 %v3532_v20, %v3532_v20 }
 0x2a5   : > { %v2785_v60 = vpop.f32.mrf.mxu2 }
 0x2a6   : > { %v3700_v29 = vadd.f32 %v3699_v42, %v3669_v46  ;;  %v2843_v21 = vadd.f32 %v2785_v60, %v2497_v57  ;;  %v3130_v45 = vpop.f32.mrf.mxu3 }
 0x2a7   : > { %v2442_v15 = vpop.f32.mrf.mxu1 }
 0x2a8   : > { %v3188_v33 = vadd.f32 %v3130_v45, %v2843_v21  ;;  %v2498_v31 = vadd.f32 %v2442_v15, %v5053_v25 }
 0x2a9   : > { %v3478_v14 = vpop.f32.mrf.mxu0 }
 0x2aa   : > { %v3533_v19 = vadd.f32 %v3475_v51, %v3188_v33 }
 0x2ac   : > { %v4269_v34 = vpack.c.bf16 %v3533_v19, %v3532_v20  ;;  %v3629_v9 = vadd.f32 %v3628_v58, %v3533_v19  ;;  %v3670_v52 = vmul.f32 %v3533_v19, %v3533_v19 }
 0x2ad   : > { %v2788_v0 = vpop.f32.mrf.mxu2 }
 0x2ae   : > { %4332 = vst [vmem:[%s4438_s30 + $0x38] sm:$0xff] %v4269_v34   ;;  %v3701_v4 = vadd.f32 %v3700_v29, %v3670_v52  ;;  %v2844_v30 = vadd.f32 %v2788_v0, %v2498_v31  ;;  %v3133_v40 = vpop.f32.mrf.mxu3 }
 0x2af   : > { %v2444_v41 = vpop.f32.mrf.mxu1 }
 0x2b0   : > { %v3189_v43 = vadd.f32 %v3133_v40, %v2844_v30  ;;  %v2499_v32 = vadd.f32 %v2444_v41, %v5056_v56 }
 0x2b1   : > { %v3480_v5 = vpop.f32.mrf.mxu0 }
 0x2b2   : > { %v3534_v24 = vadd.f32 %v3478_v14, %v3189_v43 }
 0x2b4   : > { %v3630_v11 = vadd.f32 %v3629_v9, %v3534_v24  ;;  %v3671_v17 = vmul.f32 %v3534_v24, %v3534_v24 }
 0x2b5   : > { %v2790_v27 = vpop.f32.mrf.mxu2 }
 0x2b6   : > { %v3702_v50 = vadd.f32 %v3701_v4, %v3671_v17  ;;  %v2845_v13 = vadd.f32 %v2790_v27, %v2499_v32  ;;  %v3135_v35 = vpop.f32.mrf.mxu3 }
 0x2b7   : > { %v2447_v1 = vpop.f32.mrf.mxu1 }
 0x2b8   : > { %v3190_v25 = vadd.f32 %v3135_v35, %v2845_v13  ;;  %v2500_v8 = vadd.f32 %v2447_v1, %v5059_v36 }
 0x2b9   : > { %v3483_v39 = vpop.f32.mrf.mxu0 }
 0x2ba   : > { %v3535_v7 = vadd.f32 %v3480_v5, %v3190_v25 }
 0x2bc   : > { %v4274_v47 = vpack.c.bf16 %v3535_v7, %v3534_v24  ;;  %v3631_v44 = vadd.f32 %v3630_v11, %v3535_v7  ;;  %v3672_v10 = vmul.f32 %v3535_v7, %v3535_v7 }
 0x2bd   : > { %v2793_v23 = vpop.f32.mrf.mxu2 }
 0x2be   : > { %4333 = vst [vmem:[%s4438_s30 + $0x40] sm:$0xff] %v4274_v47   ;;  %v3703_v3 = vadd.f32 %v3702_v50, %v3672_v10  ;;  %v2846_v49 = vadd.f32 %v2793_v23, %v2500_v8  ;;  %v3138_v6 = vpop.f32.mrf.mxu3 }
 0x2bf   : > { %v2449_v42 = vpop.f32.mrf.mxu1 }
 0x2c0   : > { %v3191_v56 = vadd.f32 %v3138_v6, %v2846_v49  ;;  %v2501_v51 = vadd.f32 %v2449_v42, %v5062_v55 }
 0x2c1   : > { %v3485_v22 = vpop.f32.mrf.mxu0 }
 0x2c2   : > { %v3536_v59 = vadd.f32 %v3483_v39, %v3191_v56 }
 0x2c4   : > { %v3632_v54 = vadd.f32 %v3631_v44, %v3536_v59  ;;  %v3673_v48 = vmul.f32 %v3536_v59, %v3536_v59 }
 0x2c5   : > { %v2795_v20 = vpop.f32.mrf.mxu2 }
 0x2c6   : > { %v3704_v58 = vadd.f32 %v3703_v3, %v3673_v48  ;;  %v2847_v46 = vadd.f32 %v2795_v20, %v2501_v51  ;;  %v3140_v57 = vpop.f32.mrf.mxu3 }
 0x2c7   : > { %v2452_v60 = vpop.f32.mrf.mxu1 }
 0x2c8   : > { %v3192_v36 = vadd.f32 %v3140_v57, %v2847_v46  ;;  %v2502_v14 = vadd.f32 %v2452_v60, %v5065_v37 }
 0x2c9   : > { %v3488_v29 = vpop.f32.mrf.mxu0 }
 0x2ca   : > { %v3537_v21 = vadd.f32 %v3485_v22, %v3192_v36 }
 0x2cc   : > { %v4279_v45 = vpack.c.bf16 %v3537_v21, %v3536_v59  ;;  %v3633_v15 = vadd.f32 %v3632_v54, %v3537_v21  ;;  %v3674_v33 = vmul.f32 %v3537_v21, %v3537_v21 }
 0x2cd   : > { %v2798_v19 = vpop.f32.mrf.mxu2 }
 0x2ce   : > { %4334 = vst [vmem:[%s4438_s30 + $0x48] sm:$0xff] %v4279_v45   ;;  %v3705_v34 = vadd.f32 %v3704_v58, %v3674_v33  ;;  %v2848_v9 = vadd.f32 %v2798_v19, %v2502_v14  ;;  %v3143_v52 = vpop.f32.mrf.mxu3 }
 0x2cf   : > { %v2454_v31 = vpop.f32.mrf.mxu1 }
 0x2d0   : > { %v3193_v55 = vadd.f32 %v3143_v52, %v2848_v9  ;;  %v2503_v41 = vadd.f32 %v2454_v31, %v5068_v28 }
 0x2d1   : > { %v3490_v0 = vpop.f32.mrf.mxu0 }
 0x2d2   : > { %v3538_v4 = vadd.f32 %v3488_v29, %v3193_v55 }
 0x2d4   : > { %v3634_v30 = vadd.f32 %v3633_v15, %v3538_v4  ;;  %v3675_v40 = vmul.f32 %v3538_v4, %v3538_v4 }
 0x2d5   : > { %v2800_v43 = vpop.f32.mrf.mxu2 }
 0x2d6   : > { %v3706_v5 = vadd.f32 %v3705_v34, %v3675_v40  ;;  %v2849_v24 = vadd.f32 %v2800_v43, %v2503_v41  ;;  %v3145_v11 = vpop.f32.mrf.mxu3 }
 0x2d7   : > { %v2457_v17 = vpop.f32.mrf.mxu1 }
 0x2d8   : > { %v3194_v37 = vadd.f32 %v3145_v11, %v2849_v24  ;;  %v2504_v1 = vadd.f32 %v2457_v17, %v5071_v2 }
 0x2d9   : > { %v3493_v32 = vpop.f32.mrf.mxu0 }
 0x2da   : > { %v3539_v27 = vadd.f32 %v3490_v0, %v3194_v37 }
 0x2dc   : > { %v4284_v50 = vpack.c.bf16 %v3539_v27, %v3538_v4  ;;  %v3635_v13 = vadd.f32 %v3634_v30, %v3539_v27  ;;  %v3676_v35 = vmul.f32 %v3539_v27, %v3539_v27 }
 0x2dd   : > { %v2803_v25 = vpop.f32.mrf.mxu2 }
 0x2de   : > { %4335 = vst [vmem:[%s4438_s30 + $0x50] sm:$0xff] %v4284_v50   ;;  %v3707_v39 = vadd.f32 %v3706_v5, %v3676_v35  ;;  %v2850_v7 = vadd.f32 %v2803_v25, %v2504_v1  ;;  %v3148_v47 = vpop.f32.mrf.mxu3 }
 0x2df   : > { %v2459_v44 = vpop.f32.mrf.mxu1 }
 0x2e0   : > { %v3195_v28 = vadd.f32 %v3148_v47, %v2850_v7  ;;  %v2505_v49 = vadd.f32 %v2459_v44, %v5074_v38 }
 0x2e1   : > { %v3495_v10 = vpop.f32.mrf.mxu0 }
 0x2e2   : > { %v3540_v8 = vadd.f32 %v3493_v32, %v3195_v28 }
 0x2e4   : > { %v3636_v23 = vadd.f32 %v3635_v13, %v3540_v8  ;;  %v3677_v3 = vmul.f32 %v3540_v8, %v3540_v8 }
 0x2e5   : > { %v2805_v6 = vpop.f32.mrf.mxu2 }
 0x2e6   : > { %v3708_v42 = vadd.f32 %v3707_v39, %v3677_v3  ;;  %v2851_v56 = vadd.f32 %v2805_v6, %v2505_v49  ;;  %v3150_v22 = vpop.f32.mrf.mxu3 }
 0x2e7   : > { %v2462_v59 = vpop.f32.mrf.mxu1 }
 0x2e8   : > { %v3196_v2 = vadd.f32 %v3150_v22, %v2851_v56  ;;  %v2506_v46 = vadd.f32 %v2462_v59, %v5077_v16 }
 0x2e9   : > { %v3498_v54 = vpop.f32.mrf.mxu0 }
 0x2ea   : > { %v3541_v48 = vadd.f32 %v3495_v10, %v3196_v2 }
 0x2ec   : > { %v4289_v51 = vpack.c.bf16 %v3541_v48, %v3540_v8  ;;  %v3637_v20 = vadd.f32 %v3636_v23, %v3541_v48  ;;  %v3678_v58 = vmul.f32 %v3541_v48, %v3541_v48 }
 0x2ed   : > { %v2808_v57 = vpop.f32.mrf.mxu2 }
 0x2ee   : > { %4336 = vst [vmem:[%s4438_s30 + $0x58] sm:$0xff] %v4289_v51   ;;  %v3709_v60 = vadd.f32 %v3708_v42, %v3678_v58  ;;  %v2852_v36 = vadd.f32 %v2808_v57, %v2506_v46  ;;  %v3153_v29 = vpop.f32.mrf.mxu3 }
 0x2ef   : > { %v2464_v21 = vpop.f32.mrf.mxu1 }
 0x2f0   : > { %v3197_v38 = vadd.f32 %v3153_v29, %v2852_v36  ;;  %v2507_v19 = vadd.f32 %v2464_v21, %v5080_v63 }
 0x2f1   : > { %v3500_v45 = vpop.f32.mrf.mxu0 }
 0x2f2   : > { %v3542_v15 = vadd.f32 %v3498_v54, %v3197_v38 }
 0x2f4   : > { %v3638_v33 = vadd.f32 %v3637_v20, %v3542_v15  ;;  %v3679_v14 = vmul.f32 %v3542_v15, %v3542_v15 }
 0x2f5   : > { %v2810_v34 = vpop.f32.mrf.mxu2 }
 0x2f6   : > { %v3710_v9 = vadd.f32 %v3709_v60, %v3679_v14  ;;  %v2853_v52 = vadd.f32 %v2810_v34, %v2507_v19  ;;  %v3155_v31 = vpop.f32.mrf.mxu3 }
 0x2f7   : > { %v2467_v55 = vpop.f32.mrf.mxu1 }
 0x2f8   : > { %v3198_v16 = vadd.f32 %v3155_v31, %v2853_v52  ;;  %v2508_v43 = vadd.f32 %v2467_v55, %v5083_v61 }
 0x2f9   : > { %v3503_v0 = vpop.f32.mrf.mxu0 }
 0x2fa   : > { %v3543_v4 = vadd.f32 %v3500_v45, %v3198_v16 }
 0x2fc   : > { %v4294_v30 = vpack.c.bf16 %v3543_v4, %v3542_v15  ;;  %v3639_v40 = vadd.f32 %v3638_v33, %v3543_v4  ;;  %v3680_v41 = vmul.f32 %v3543_v4, %v3543_v4 }
 0x2fd   : > { %v2813_v5 = vpop.f32.mrf.mxu2 }
 0x2fe   : > { %4337 = vst [vmem:[%s4438_s30 + $0x60] sm:$0xff] %v4294_v30   ;;  %v3711_v24 = vadd.f32 %v3710_v9, %v3680_v41  ;;  %v2854_v11 = vadd.f32 %v2813_v5, %v2508_v43  ;;  %v3158_v17 = vpop.f32.mrf.mxu3 }
 0x2ff   : > { %v2469_v37 = vpop.f32.mrf.mxu1 }
 0x300   : > { %v3199_v63 = vadd.f32 %v3158_v17, %v2854_v11  ;;  %v2509_v35 = vadd.f32 %v2469_v37, %v5086_v53 }
 0x301   : > { %v3505_v32 = vpop.f32.mrf.mxu0 }
 0x302   : > { %v3544_v27 = vadd.f32 %v3503_v0, %v3199_v63 }
 0x304   : > { %v3640_v50 = vadd.f32 %v3639_v40, %v3544_v27  ;;  %v3681_v13 = vmul.f32 %v3544_v27, %v3544_v27 }
 0x305   : > { %v2815_v1 = vpop.f32.mrf.mxu2 }
 0x306   : > { %v3712_v25 = vadd.f32 %v3711_v24, %v3681_v13  ;;  %v2855_v39 = vadd.f32 %v2815_v1, %v2509_v35  ;;  %v3160_v7 = vpop.f32.mrf.mxu3 }
 0x307   : > { %v2472_v47 = vpop.f32.mrf.mxu1 }
 0x308   : > { %v3200_v61 = vadd.f32 %v3160_v7, %v2855_v39  ;;  %v2510_v3 = vadd.f32 %v2472_v47, %v5089_v62  ;;  %v3654_v47 = vld [vmem:[%s5169_s6] sm:$0x1] }
 0x309   : > { %v3508_v28 = vpop.f32.mrf.mxu0 }
 0x30a   : > { %v3545_v44 = vadd.f32 %v3505_v32, %v3200_v61 }
 0x30c   : > { %v4299_v10 = vpack.c.bf16 %v3545_v44, %v3544_v27  ;;  %v3641_v8 = vadd.f32 %v3640_v50, %v3545_v44  ;;  %v3682_v23 = vmul.f32 %v3545_v44, %v3545_v44 }
 0x30d   : > { %v2818_v49 = vpop.f32.mrf.mxu2 }
 0x30e   : > { %4338 = vst [vmem:[%s4438_s30 + $0x68] sm:$0xff] %v4299_v10   ;;  %v3713_v6 = vadd.f32 %v3712_v25, %v3682_v23  ;;  %v2856_v42 = vadd.f32 %v2818_v49, %v2510_v3  ;;  %v3163_v56 = vpop.f32.mrf.mxu3  ;;  %v3614_v25 = vld [vmem:[%s5168_s5] sm:$0x1] }
 0x30f   : > { %v2474_v22 = vpop.f32.mrf.mxu1 }
 0x310   : > { %v3201_v53 = vadd.f32 %v3163_v56, %v2856_v42  ;;  %v2511_v48 = vadd.f32 %v2474_v22, %v5092_v12 }
 0x311   : > { %v3510_v51 = vpop.f32.mrf.mxu0 }
 0x312   : > { %v3546_v59 = vadd.f32 %v3508_v28, %v3201_v53 }
 0x314   : > { %v3642_v2 = vadd.f32 %v3641_v8, %v3546_v59  ;;  %v3683_v54 = vmul.f32 %v3546_v59, %v3546_v59 }
 0x315   : > { %v2820_v20 = vpop.f32.mrf.mxu2 }
 0x316   : > { %v3714_v58 = vadd.f32 %v3713_v6, %v3683_v54  ;;  %v2857_v46 = vadd.f32 %v2820_v20, %v2511_v48  ;;  %v3165_v57 = vpop.f32.mrf.mxu3 }
 0x317   : > { %v2477_v60 = vpop.f32.mrf.mxu1 }
 0x318   : > { %v3202_v62 = vadd.f32 %v3165_v57, %v2857_v46  ;;  %v2512_v45 = vadd.f32 %v2477_v60, %v5095_v18 }
 0x319   : > { %v3513_v34 = vpop.f32.mrf.mxu0 }
 0x31a   : > { %v3547_v36 = vadd.f32 %v3510_v51, %v3202_v62 }
 0x31c   : > { %v4304_v29 = vpack.c.bf16 %v3547_v36, %v3546_v59  ;;  %v3643_v21 = vadd.f32 %v3642_v2, %v3547_v36  ;;  %v3684_v38 = vmul.f32 %v3547_v36, %v3547_v36 }
 0x31d   : > { %v2823_v15 = vpop.f32.mrf.mxu2 }
 0x31e   : > { %4339 = vst [vmem:[%s4438_s30 + $0x70] sm:$0xff] %v4304_v29   ;;  %v3715_v33 = vadd.f32 %v3714_v58, %v3684_v38  ;;  %v2858_v14 = vadd.f32 %v2823_v15, %v2512_v45  ;;  %v3168_v19 = vpop.f32.mrf.mxu3 }
 0x31f   : > { %v2479_v9 = vpop.f32.mrf.mxu1 }
 0x320   : > { %v3203_v12 = vadd.f32 %v3168_v19, %v2858_v14  ;;  %v2513_v16 = vadd.f32 %v2479_v9, %v5098_v26 }
 0x321   : > { %v3515_v18 = vpop.f32.mrf.mxu0 }
 0x322   : > { %v3548_v52 = vadd.f32 %v3513_v34, %v3203_v12 }
 0x324   : > { %v3644_v31 = vadd.f32 %v3643_v21, %v3548_v52  ;;  %v3685_v55 = vmul.f32 %v3548_v52, %v3548_v52 }
 0x325   : > { %v2825_v0 = vpop.f32.mrf.mxu2 }
 0x326   : > { %v3716_v4 = vadd.f32 %v3715_v33, %v3685_v55  ;;  %v2859_v30 = vadd.f32 %v2825_v0, %v2513_v16  ;;  %v3170_v40 = vpop.f32.mrf.mxu3 }
 0x328   : > { %v3204_v41 = vadd.f32 %v3170_v40, %v2859_v30 }
 0x32a   : > { %v3549_v43 = vadd.f32 %v3515_v18, %v3204_v41 }
 0x32c   : > { %v4309_v5 = vpack.c.bf16 %v3549_v43, %v3548_v52  ;;  %v3645_v24 = vadd.f32 %v3644_v31, %v3549_v43  ;;  %v3686_v11 = vmul.f32 %v3549_v43, %v3549_v43 }
 0x32e   : > { %4340 = vst [vmem:[%s4438_s30 + $0x78] sm:$0xff] %v4309_v5   ;;  %v3646_v17 = vrot.slane %v3645_v24, 4  ;;  %v3717_v37 = vadd.f32 %v3716_v4, %v3686_v11 }
 0x330   : > { %v3647_v63 = vadd.f32 %v3646_v17, %v3645_v24  ;;  %v3718_v32 = vrot.slane %v3717_v37, 4 }
 0x332   : > { %v3648_v27 = vrot.slane %v3647_v63, 2  ;;  %v3719_v50 = vadd.f32 %v3718_v32, %v3717_v37 }
 0x334   : > { %v3649_v13 = vadd.f32 %v3648_v27, %v3647_v63  ;;  %v3720_v35 = vrot.slane %v3719_v50, 2 }
 0x336   : > { %v3650_v26 = vrot.slane %v3649_v13, 1  ;;  %v3721_v1 = vadd.f32 %v3720_v35, %v3719_v50 }
 0x338   : > { %v3651_v39 = vadd.f32 %v3650_v26, %v3649_v13  ;;  %v3722_v7 = vrot.slane %v3721_v1, 1 }
 0x33a   : > { %v3652_v61 = vadd.f32 %v3651_v39, %v3614_v25  ;;  %v3723_v44 = vadd.f32 %v3722_v7, %v3721_v1 }
 0x33c   : > { %3653 = vst [vmem:[%s5168_s5] sm:$0x1] %v3652_v61  ;;  %v3724_v28 = vadd.f32 %v3723_v44, %v3654_v47 }
 0x33e   : > { %3725 = vst [vmem:[%s5169_s6] sm:$0x1] %v3724_v28 }
 0x33f PF: > { %s17_s21 = sadd.s32 1, %s4384_s21  }
 0x340   : > { %p14_p5 = scmp.ge.s32.totalorder %s17_s21, 4  }
 0x342   :  { %16 = sbr.rel (!%p14_p5) target bundleno = 1 (0x1), region = 88 }

// kernel: dense_block.9
= control target key start
LH: loop header
LB: loop body
LE: loop exit
PB: predicated region body
PF: predicated region fallthrough
CT: control target
= control target key end

     0   :  { %12 = vsyncpa [#allocation4], 0  ;;  %s5293_s0 = inlined_call_operand.vmem [shape: bf16[2,16,16,128], index: 0, kind: input, shape index: {}]   ;;  %s5294_s1 = inlined_call_operand.vmem [shape: f32[1,128], index: 1, kind: input, shape index: {}]   ;;  %s5295_s2 = inlined_call_operand.vmem [shape: f32[1,128], index: 2, kind: input, shape index: {}]   ;;  %s5296_s3 = inlined_call_operand.vmem [shape: bf16[1152,128], index: 3, kind: input, shape index: {}]   ;;  %s5297_s4 = inlined_call_operand.vmem [shape: bf16[2,16,16,128], index: 4, kind: output, shape index: {0}]   ;;  %s5298_s5 = inlined_call_operand.hbm [shape: f32[1,128], index: 5, kind: output, shape index: {1}]   ;;  %s5299_s6 = inlined_call_operand.hbm [shape: f32[1,128], index: 6, kind: output, shape index: {2}]  }
   0x1   :  { %13 = vsyncpa [#allocation6], 0  ;;  %s4546_s21 = smov 0  }
   0x2 LB: > { %s4552_s22 = sadd.s32 4294967295, %s4506_s21   ;;  %p3837_p0 = scmp.ge.s32.totalorder %s4506_s21, 1  ;;  %s4506_s21 = sphi %s4546_s21, %s19_s21  }
   0x3   : > { %p209_p1 = scmp.lt.s32.totalorder %s4506_s21, 3 }
   0x5   : > { %p210_p2 = pnand %p3837_p0, %p209_p1 }
   0x6   : > { %p239_p3 = scmp.lt.s32.totalorder (!%p210_p2), %s4552_s22, 1  ;;  %p3842_p4 = scmp.ne.s32.totalorder (!%p210_p2), %s4552_s22, 0 }
   0x7   : > { %213 = sbr.rel (%p210_p2) target bundleno = 837 (0x345), region = 36 }
   0xc   : > { %s240_s23 = scalar_select %p239_p3, %s4552_s22, 1 }
   0xd   : > { %252 = sbr.rel (%p3842_p4) target bundleno = 75 (0x4b), region = 40 }
   0xe   : > { %s4137_s24 = sshll.u32 %s240_s23, 7 }
   0xf   : > { %s4561_s27 = scalar_lea.vmem %s5293_s0, %s4137_s24  ;;  %s4566_s30 = scalar_lea.vmem %s5297_s4, %s4137_s24 }
  0x12   : > { %v4508_v0 = vmov 0.0  }
  0x13   : > { %253 = vst [vmem:[#allocation2] sm:$0xff] %v4508_v0 }
  0x14   : > { %254 = vst [vmem:[#allocation2 + $0x8] sm:$0xff] %v4508_v0 }
  0x15   : > { %255 = vst [vmem:[#allocation2 + $0x10] sm:$0x3] %v4508_v0 }
  0x16   : > { %256 = vst [vmem:[#allocation2 + $0x18] sm:$0xff] %v4508_v0 }
  0x17   : > { %257 = vst [vmem:[#allocation2 + $0x20] sm:$0xff] %v4508_v0 }
  0x18   : > { %258 = vst [vmem:[#allocation2 + $0x28] sm:$0x3] %v4508_v0 }
  0x19   : > { %259 = vst [vmem:[#allocation2 + $0x30] sm:$0xff] %v4508_v0 }
  0x1a   : > { %260 = vst [vmem:[#allocation2 + $0x38] sm:$0xff] %v4508_v0 }
  0x1b   : > { %261 = vst [vmem:[#allocation2 + $0x40] sm:$0x3] %v4508_v0 }
  0x1c   : > { %262 = vst [vmem:[#allocation2 + $0x48] sm:$0xff] %v4508_v0 }
  0x1d   : > { %263 = vst [vmem:[#allocation2 + $0x50] sm:$0xff] %v4508_v0 }
  0x1e   : > { %264 = vst [vmem:[#allocation2 + $0x58] sm:$0x3] %v4508_v0 }
  0x1f   : > { %265 = vst [vmem:[#allocation2 + $0x60] sm:$0xff] %v4508_v0 }
  0x20   : > { %266 = vst [vmem:[#allocation2 + $0x68] sm:$0xff] %v4508_v0 }
  0x21   : > { %267 = vst [vmem:[#allocation2 + $0x70] sm:$0x3] %v4508_v0 }
  0x22   : > { %268 = vst [vmem:[#allocation2 + $0x78] sm:$0xff] %v4508_v0 }
  0x23   : > { %269 = vst [vmem:[#allocation2 + $0x80] sm:$0xff] %v4508_v0 }
  0x24   : > { %270 = vst [vmem:[#allocation2 + $0x88] sm:$0x3] %v4508_v0 }
  0x25   : > { %271 = vst [vmem:[#allocation2 + $0x90] sm:$0xff] %v4508_v0 }
  0x26   : > { %272 = vst [vmem:[#allocation2 + $0x98] sm:$0xff] %v4508_v0 }
  0x27   : > { %273 = vst [vmem:[#allocation2 + $0xa0] sm:$0x3] %v4508_v0 }
  0x28   : > { %274 = vst [vmem:[#allocation2 + $0xa8] sm:$0xff] %v4508_v0 }
  0x29   : > { %275 = vst [vmem:[#allocation2 + $0xb0] sm:$0xff] %v4508_v0 }
  0x2a   : > { %276 = vst [vmem:[#allocation2 + $0xb8] sm:$0x3] %v4508_v0 }
  0x2b   : > { %277 = vst [vmem:[#allocation2 + $0xc0] sm:$0xff] %v4508_v0 }
  0x2c   : > { %278 = vst [vmem:[#allocation2 + $0xc8] sm:$0xff] %v4508_v0 }
  0x2d   : > { %279 = vst [vmem:[#allocation2 + $0xd0] sm:$0x3] %v4508_v0 }
  0x2e   : > { %280 = vst [vmem:[#allocation2 + $0xd8] sm:$0xff] %v4508_v0 }
  0x2f   : > { %281 = vst [vmem:[#allocation2 + $0xe0] sm:$0xff] %v4508_v0 }
  0x30   : > { %282 = vst [vmem:[#allocation2 + $0xe8] sm:$0x3] %v4508_v0 }
  0x31   : > { %283 = vst [vmem:[#allocation2 + $0xf0] sm:$0xff] %v4508_v0 }
  0x32   : > { %284 = vst [vmem:[#allocation2 + $0xf8] sm:$0xff] %v4508_v0 }
  0x33   : > { %285 = vst [vmem:[#allocation2 + $0x100] sm:$0x3] %v4508_v0 }
  0x34   : > { %286 = vst [vmem:[#allocation2 + $0x108] sm:$0xff] %v4508_v0 }
  0x35   : > { %287 = vst [vmem:[#allocation2 + $0x110] sm:$0xff] %v4508_v0 }
  0x36   : > { %288 = vst [vmem:[#allocation2 + $0x118] sm:$0x3] %v4508_v0 }
  0x37   : > { %289 = vst [vmem:[#allocation2 + $0x120] sm:$0xff] %v4508_v0 }
  0x38   : > { %290 = vst [vmem:[#allocation2 + $0x128] sm:$0xff] %v4508_v0 }
  0x39   : > { %291 = vst [vmem:[#allocation2 + $0x130] sm:$0x3] %v4508_v0 }
  0x3a   : > { %292 = vst [vmem:[#allocation2 + $0x138] sm:$0xff] %v4508_v0 }
  0x3b   : > { %293 = vst [vmem:[#allocation2 + $0x140] sm:$0xff] %v4508_v0 }
  0x3c   : > { %294 = vst [vmem:[#allocation2 + $0x148] sm:$0x3] %v4508_v0 }
  0x3d   : > { %295 = vst [vmem:[#allocation2 + $0x150] sm:$0xff] %v4508_v0 }
  0x3e   : > { %296 = vst [vmem:[#allocation2 + $0x158] sm:$0xff] %v4508_v0 }
  0x3f   : > { %297 = vst [vmem:[#allocation2 + $0x160] sm:$0x3] %v4508_v0 }
  0x40   : > { %298 = vst [vmem:[#allocation2 + $0x168] sm:$0xff] %v4508_v0 }
  0x41   : > { %299 = vst [vmem:[#allocation2 + $0x170] sm:$0xff] %v4508_v0 }
  0x42   : > { %300 = vst [vmem:[#allocation2 + $0x178] sm:$0x3] %v4508_v0 }
  0x43   : > { %301 = vst [vmem:[#allocation2 + $0x180] sm:$0xff] %v4508_v0 }
  0x44   : > { %302 = vst [vmem:[#allocation2 + $0x188] sm:$0xff] %v4508_v0 }
  0x45   : > { %303 = vst [vmem:[#allocation2 + $0x190] sm:$0x3] %v4508_v0 }
  0x46   : > { %304 = vst [vmem:[#allocation2 + $0x198] sm:$0xff] %v4508_v0 }
  0x47   : > { %305 = vst [vmem:[#allocation2 + $0x1a0] sm:$0xff] %v4508_v0 }
  0x48   : > { %306 = vst [vmem:[#allocation2 + $0x1a8] sm:$0x3] %v4508_v0 }
  0x49   : > { %307 = vst [vmem:[#allocation3] sm:$0x1] %v4508_v0 }
  0x4a   : > { %308 = vst [vmem:[#allocation5] sm:$0x1] %v4508_v0 }
  0x4b PF: > { %v4154_v1 = vld [vmem:[%s5296_s3 + $0x78] sm:$0xff]  ;;  %v4153_v2 = vld [vmem:[%s5296_s3 + $0x70] sm:$0xff]  ;;  %v4579_v6 = vld [vmem:[%s5294_s1] ss:$0 sm:$0xff]  ;;  %s4509_s18 = smov [#allocation3]   ;;  %s3744_s24 = sshll.u32 %s5298_s5, 4  ;;  %s3745_s24 = int_to_ptr.hbm [resolvable:$true] %s3744_s24 }
  0x4c   : > { %4385 = vmatpush.bf16.msra.mxu1 %v4154_v1  ;;  %4386 = vmatpush.bf16.msra.mxu2 %v4154_v1  ;;  %v4357_v3 = vld [vmem:[%s4561_s27 + $0x18] sm:$0xff]   ;;  %v4584_v7 = vld [vmem:[%s5295_s2] ss:$0 sm:$0xff]  ;;  %v4152_v14 = vld [vmem:[%s5296_s3 + $0x68] sm:$0xff]  ;;  %s3742_s19 = sshll.u32 %s4509_s18, 4  ;;  %p4417_p5 = scmp.eq.s32.totalorder %s4552_s22, 1  ;;  %s3743_s19 = int_to_ptr.vmem [resolvable:$true] %s3742_s19 }
  0x4d   : > { %4387 = vmatpush.bf16.msra.mxu3 %v4154_v1  ;;  %814 = vmatpush.bf16.msra.mxu0 %v4154_v1  ;;  %v4225_v4 = vunpack.c.l.bf16 %v4357_v3  ;;  %v4226_v5 = vunpack.c.h.bf16 %v4357_v3  ;;  %v4361_v8 = vld [vmem:[%s4561_s27 + $0x38] sm:$0xff]   ;;  %v4358_v23 = vld [vmem:[%s4561_s27 + $0x20] sm:$0xff]   ;;  %v591_v38 = vld [vmem:[#allocation2 + $0x9] sm:$0xff]  ;;  %s3756_s29 = sshll.u32 %s5299_s6, 4  ;;  %s3757_s29 = int_to_ptr.hbm [resolvable:$true] %s3756_s29 }
  0x4e   : > { %v4365_v9 = vld [vmem:[%s4561_s27 + $0x58] sm:$0xff]   ;;  %v4241_v12 = vunpack.c.l.bf16 %v4361_v8  ;;  %v4242_v13 = vunpack.c.h.bf16 %v4361_v8  ;;  %v4151_v27 = vld [vmem:[%s5296_s3 + $0x60] sm:$0xff]  ;;  %v4229_v31 = vunpack.c.l.bf16 %v4358_v23  ;;  %v4230_v33 = vunpack.c.h.bf16 %v4358_v23  ;;  %v4149_v55 = vld [vmem:[%s5296_s3 + $0x50] sm:$0xff] }
  0x4f   : > { %v383_v10 = vmul.f32 %v4579_v6, %v4225_v4  ;;  %v384_v11 = vmul.f32 %v4579_v6, %v4226_v5  ;;  %v4257_v15 = vunpack.c.l.bf16 %v4365_v9  ;;  %v4258_v16 = vunpack.c.h.bf16 %v4365_v9  ;;  %v590_v35 = vld [vmem:[#allocation2 + $0x1] sm:$0xff]  ;;  %v4150_v40 = vld [vmem:[%s5296_s3 + $0x58] sm:$0xff] }
  0x50   : > { %4388 = vmatpush.bf16.msra.mxu1 %v4153_v2  ;;  %4389 = vmatpush.bf16.msra.mxu2 %v4153_v2  ;;  %v391_v19 = vmul.f32 %v4579_v6, %v4241_v12  ;;  %v392_v20 = vmul.f32 %v4579_v6, %v4242_v13  ;;  %v4362_v36 = vld [vmem:[%s4561_s27 + $0x40] sm:$0xff]   ;;  %v385_v39 = vmul.f32 %v4579_v6, %v4229_v31 }
  0x51   : > { %4390 = vmatpush.bf16.msra.mxu3 %v4153_v2  ;;  %815 = vmatpush.bf16.msra.mxu0 %v4153_v2  ;;  %v419_v17 = vadd.f32 %v4584_v7, %v383_v10  ;;  %v420_v18 = vadd.f32 %v4584_v7, %v384_v11  ;;  %v399_v21 = vmul.f32 %v4579_v6, %v4257_v15  ;;  %v4366_v42 = vld [vmem:[%s4561_s27 + $0x60] sm:$0xff]   ;;  %v4245_v45 = vunpack.c.l.bf16 %v4362_v36  ;;  %v4359_v10 = vld [vmem:[%s4561_s27 + $0x28] sm:$0xff]  }
  0x52   : > { %v400_v22 = vmul.f32 %v4579_v6, %v4258_v16  ;;  %v427_v26 = vadd.f32 %v4584_v7, %v391_v19  ;;  %v428_v28 = vadd.f32 %v4584_v7, %v392_v20  ;;  %v622_v43 = vpack.c.bf16 %v590_v35, %v590_v35  ;;  %v4212_v54 = vld [vmem:[%s4561_s27] sm:$0xff]   ;;  %v4148_v11 = vld [vmem:[%s5296_s3 + $0x48] sm:$0xff] }
  0x53   : > { %v4600_v24 = vmax.f32 %v419_v17, 0.0  ;;  %v4602_v25 = vmax.f32 %v420_v18, 0.0  ;;  %v435_v29 = vadd.f32 %v4584_v7, %v399_v21  ;;  %v386_v44 = vmul.f32 %v4579_v6, %v4230_v33 }
  0x54   : > { %4391 = vmatpush.bf16.msra.mxu1 %v4152_v14  ;;  %4392 = vmatpush.bf16.msra.mxu2 %v4152_v14  ;;  %v436_v30 = vadd.f32 %v4584_v7, %v400_v22  ;;  %v4612_v32 = vmax.f32 %v427_v26, 0.0  ;;  %v4615_v34 = vmax.f32 %v428_v28, 0.0  ;;  %v623_v48 = vpack.c.bf16 %v591_v38, %v591_v38  ;;  %v4147_v28 = vld [vmem:[%s5296_s3 + $0x40] sm:$0xff] }
  0x55   : > { %4393 = vmatpush.bf16.msra.mxu3 %v4152_v14  ;;  %816 = vmatpush.bf16.msra.mxu0 %v4152_v14  ;;  %484 = vst [vmem:[#allocation2 + $0x61] sm:$0xff] %v4600_v24  ;;  %v4619_v37 = vmax.f32 %v435_v29, 0.0  ;;  %v630_v46 = vpack.c.bf16 %v4600_v24, %v4600_v24  ;;  %v631_v47 = vpack.c.bf16 %v4602_v25, %v4602_v25  ;;  %v4246_v51 = vunpack.c.h.bf16 %v4362_v36  ;;  %v4363_v24 = vld [vmem:[%s4561_s27 + $0x48] sm:$0xff]  }
  0x56   : > { %485 = vst [vmem:[#allocation2 + $0x69] sm:$0xff] %v4602_v25  ;;  %v4626_v41 = vmax.f32 %v436_v30, 0.0  ;;  %v421_v49 = vadd.f32 %v4584_v7, %v385_v39  ;;  %v422_v50 = vadd.f32 %v4584_v7, %v386_v44  ;;  %v393_v52 = vmul.f32 %v4579_v6, %v4245_v45  ;;  %v4170_v39 = vld [vmem:[%s5296_s3 + $0xf8] sm:$0xff] }
  0x57   : > { %492 = vst [vmem:[#allocation2 + $0xc1] sm:$0xff] %v4612_v32  ;;  %v4261_v53 = vunpack.c.l.bf16 %v4366_v42  ;;  %v638_v56 = vpack.c.bf16 %v4612_v32, %v4612_v32  ;;  %v639_v57 = vpack.c.bf16 %v4615_v34, %v4615_v34  ;;  %v4262_v59 = vunpack.c.h.bf16 %v4366_v42 }
  0x58   : > { %4394 = vmatpush.bf16.msra.mxu1 %v4151_v27  ;;  %4395 = vmatpush.bf16.msra.mxu2 %v4151_v27  ;;  %493 = vst [vmem:[#allocation2 + $0xc9] sm:$0xff] %v4615_v34  ;;  %v4647_v58 = vmax.f32 %v421_v49, 0.0  ;;  %v4649_v60 = vmax.f32 %v422_v50, 0.0  ;;  %v394_v61 = vmul.f32 %v4579_v6, %v4246_v51  ;;  %v429_v62 = vadd.f32 %v4584_v7, %v393_v52  ;;  %v4146_v50 = vld [vmem:[%s5296_s3 + $0x38] sm:$0xff] }
  0x59   : > { %4396 = vmatpush.bf16.msra.mxu3 %v4151_v27  ;;  %817 = vmatpush.bf16.msra.mxu0 %v4151_v27  ;;  %500 = vst [vmem:[#allocation2 + $0x121] sm:$0xff] %v4619_v37  ;;  %v401_v63 = vmul.f32 %v4579_v6, %v4261_v53  ;;  %v646_v0 = vpack.c.bf16 %v4619_v37, %v4619_v37  ;;  %v4213_v2 = vunpack.c.l.bf16 %v4212_v54  ;;  %v4214_v3 = vunpack.c.h.bf16 %v4212_v54  ;;  %v4162_v37 = vld [vmem:[%s5296_s3 + $0xb8] sm:$0xff] }
  0x5a   : > { %501 = vst [vmem:[#allocation2 + $0x129] sm:$0xff] %v4626_v41  ;;  %v402_v1 = vmul.f32 %v4579_v6, %v4262_v59  ;;  %v647_v4 = vpack.c.bf16 %v4626_v41, %v4626_v41  ;;  %v430_v5 = vadd.f32 %v4584_v7, %v394_v61  ;;  %v4662_v8 = vmax.f32 %v429_v62, 0.0  ;;  %v4367_v41 = vld [vmem:[%s4561_s27 + $0x68] sm:$0xff]   ;;  %v4178_v51 = vld [vmem:[%s5296_s3 + $0x138] sm:$0xff] }
  0x5b   : > { %486 = vst [vmem:[#allocation2 + $0x79] sm:$0xff] %v4647_v58  ;;  %v437_v9 = vadd.f32 %v4584_v7, %v401_v63  ;;  %v4669_v12 = vunpack.c.l.b16 %v622_v43  ;;  %v377_v14 = vmul.f32 %v4579_v6, %v4213_v2  ;;  %v378_v15 = vmul.f32 %v4579_v6, %v4214_v3 }
  0x5c   : > { %4397 = vmatpush.bf16.msra.mxu1 %v4150_v40  ;;  %4398 = vmatpush.bf16.msra.mxu2 %v4150_v40  ;;  %487 = vst [vmem:[#allocation2 + $0x81] sm:$0xff] %v4649_v60  ;;  %v438_v13 = vadd.f32 %v4584_v7, %v402_v1  ;;  %v710_v16 = vunpack.c.l.b16 %v630_v46  ;;  %v711_v17 = vunpack.c.l.b16 %v631_v47  ;;  %v4674_v18 = vunpack.c.l.b16 %v623_v48  ;;  %v4355_v46 = vld [vmem:[%s4561_s27 + $0x8] sm:$0xff]  }
  0x5d   : > { %4399 = vmatpush.bf16.msra.mxu3 %v4150_v40  ;;  %818 = vmatpush.bf16.msra.mxu0 %v4150_v40  ;;  %v4676_v19 = vmax.f32 %v430_v5, 0.0  ;;  %494 = vst [vmem:[#allocation2 + $0xd9] sm:$0xff] %v4662_v8  ;;  %v4679_v20 = vmax.f32 %v437_v9, 0.0  ;;  %v413_v21 = vadd.f32 %v4584_v7, %v377_v14  ;;  %v414_v22 = vadd.f32 %v4584_v7, %v378_v15  ;;  %v4145_v5 = vld [vmem:[%s5296_s3 + $0x30] sm:$0xff]  ;;  %v4168_v14 = vld [vmem:[%s5296_s3 + $0xe8] sm:$0xff] }
  0x5e   : > { %v4233_v23 = vunpack.c.l.bf16 %v4359_v10  ;;  %v718_v25 = vunpack.c.l.b16 %v638_v56  ;;  %v719_v26 = vunpack.c.l.b16 %v639_v57  ;;  %v4685_v27 = vmax.f32 %v438_v13, 0.0  ;;  %v4161_v56 = vld [vmem:[%s5296_s3 + $0xb0] sm:$0xff]  ;;  %v4160_v13 = vld [vmem:[%s5296_s3 + $0xa8] sm:$0xff] }
  0x5f   : > { %495 = vst [vmem:[#allocation2 + $0xe1] sm:$0xff] %v4676_v19  ;;  %v726_v29 = vunpack.c.l.b16 %v646_v0  ;;  %v727_v30 = vunpack.c.l.b16 %v647_v4  ;;  %v4691_v31 = vmax.f32 %v413_v21, 0.0  ;;  %v4234_v32 = vunpack.c.h.bf16 %v4359_v10  ;;  %v4169_v57 = vld [vmem:[%s5296_s3 + $0xf0] sm:$0xff] }
  0x60   : > { %4400 = vmatpush.bf16.msra.mxu1 %v4149_v55  ;;  %4401 = vmatpush.bf16.msra.mxu2 %v4149_v55  ;;  %502 = vst [vmem:[#allocation2 + $0x139] sm:$0xff] %v4679_v20  ;;  %v4694_v33 = vmax.f32 %v414_v22, 0.0  ;;  %v387_v34 = vmul.f32 %v4579_v6, %v4233_v23  ;;  %v4249_v35 = vunpack.c.l.bf16 %v4363_v24  ;;  %v738_v36 = vpack.c.b16 %v711_v17, %v710_v16  ;;  %v4177_v9 = vld [vmem:[%s5296_s3 + $0x130] sm:$0xff] }
  0x61   : > { %4402 = vmatpush.bf16.msra.mxu3 %v4149_v55  ;;  %819 = vmatpush.bf16.msra.mxu0 %v4149_v55  ;;  %503 = vst [vmem:[#allocation2 + $0x141] sm:$0xff] %v4685_v27  ;;  %v734_v38 = vpack.c.b16 %v4674_v18, %v4669_v12  ;;  %v388_v40 = vmul.f32 %v4579_v6, %v4234_v32  ;;  %v4250_v44 = vunpack.c.h.bf16 %v4363_v24  ;;  %v4265_v55 = vunpack.c.l.bf16 %v4367_v41  ;;  %v4360_v18 = vld [vmem:[%s4561_s27 + $0x30] sm:$0xff]  }
  0x62   : > { %478 = vst [vmem:[#allocation2 + $0x19] sm:$0xff] %v4691_v31  ;;  %v742_v42 = vpack.c.b16 %v719_v26, %v718_v25  ;;  %v423_v43 = vadd.f32 %v4584_v7, %v387_v34  ;;  %v395_v45 = vmul.f32 %v4579_v6, %v4249_v35  ;;  %v746_v47 = vpack.c.b16 %v727_v30, %v726_v29  ;;  %v4364_v23 = vld [vmem:[%s4561_s27 + $0x50] sm:$0xff]   ;;  %v4176_v30 = vld [vmem:[%s5296_s3 + $0x128] sm:$0xff] }
  0x63   : > { %479 = vst [vmem:[#allocation2 + $0x21] sm:$0xff] %v4694_v33  ;;  %v632_v48 = vpack.c.bf16 %v4647_v58, %v4647_v58  ;;  %v424_v49 = vadd.f32 %v4584_v7, %v388_v40  ;;  %v396_v53 = vmul.f32 %v4579_v6, %v4250_v44  ;;  %v633_v58 = vpack.c.bf16 %v4649_v60, %v4649_v60  ;;  %v4368_v44 = vld [vmem:[%s4561_s27 + $0x70] sm:$0xff]  }
  0x64   : > { %4403 = vmatpush.bf16.msra.mxu1 %v4148_v11  ;;  %4404 = vmatpush.bf16.msra.mxu2 %v4148_v11  ;;  %v4721_v52 = vmax.f32 %v423_v43, 0.0  ;;  %v431_v54 = vadd.f32 %v4584_v7, %v395_v45  ;;  %v4266_v61 = vunpack.c.h.bf16 %v4367_v41  ;;  %v4217_v62 = vunpack.c.l.bf16 %v4355_v46 }
  0x65   : > { %4405 = vmatpush.bf16.msra.mxu3 %v4148_v11  ;;  %820 = vmatpush.bf16.msra.mxu0 %v4148_v11  ;;  %v4733_v59 = vmax.f32 %v424_v49, 0.0  ;;  %v640_v63 = vpack.c.bf16 %v4662_v8, %v4662_v8  ;;  %v432_v0 = vadd.f32 %v4584_v7, %v396_v53  ;;  %v4218_v2 = vunpack.c.h.bf16 %v4355_v46  ;;  %v4175_v49 = vld [vmem:[%s5296_s3 + $0x120] sm:$0xff] }
  0x66   : > { %488 = vst [vmem:[#allocation2 + $0x91] sm:$0xff] %v4721_v52  ;;  %v4739_v1 = vmax.f32 %v431_v54, 0.0  ;;  %v641_v60 = vpack.c.bf16 %v4676_v19, %v4676_v19  ;;  %v403_v3 = vmul.f32 %v4579_v6, %v4265_v55  ;;  %v404_v4 = vmul.f32 %v4579_v6, %v4266_v61  ;;  %v4356_v54 = vld [vmem:[%s4561_s27 + $0x10] sm:$0xff]  }
  0x67   : > { %489 = vst [vmem:[#allocation2 + $0x99] sm:$0xff] %v4733_v59  ;;  %v648_v8 = vpack.c.bf16 %v4679_v20, %v4679_v20  ;;  %v4754_v10 = vmax.f32 %v432_v0, 0.0  ;;  %v379_v11 = vmul.f32 %v4579_v6, %v4217_v62  ;;  %v712_v12 = vunpack.c.l.b16 %v632_v48  ;;  %v4143_v48 = vld [vmem:[%s5296_s3 + $0x20] sm:$0xff] }
  0x68   : > { %4406 = vmatpush.bf16.msra.mxu1 %v4147_v28  ;;  %4407 = vmatpush.bf16.msra.mxu2 %v4147_v28  ;;  %496 = vst [vmem:[#allocation2 + $0xf1] sm:$0xff] %v4739_v1  ;;  %v439_v15 = vadd.f32 %v4584_v7, %v403_v3  ;;  %v440_v16 = vadd.f32 %v4584_v7, %v404_v4  ;;  %v713_v19 = vunpack.c.l.b16 %v633_v58  ;;  %v4237_v22 = vunpack.c.l.bf16 %v4360_v18  ;;  %v4166_v58 = vld [vmem:[%s5296_s3 + $0xd8] sm:$0xff] }
  0x69   : > { %4408 = vmatpush.bf16.msra.mxu3 %v4147_v28  ;;  %821 = vmatpush.bf16.msra.mxu0 %v4147_v28  ;;  %v380_v17 = vmul.f32 %v4579_v6, %v4218_v2  ;;  %v649_v20 = vpack.c.bf16 %v4685_v27, %v4685_v27  ;;  %497 = vst [vmem:[#allocation2 + $0xf9] sm:$0xff] %v4754_v10  ;;  %v4780_v29 = vunpack.c.l.b16 %v640_v63  ;;  %v4144_v27 = vld [vmem:[%s5296_s3 + $0x28] sm:$0xff]  ;;  %v4238_v32 = vunpack.c.h.bf16 %v4360_v18 }
  0x6a   : > { %v415_v21 = vadd.f32 %v4584_v7, %v379_v11  ;;  %v624_v24 = vpack.c.bf16 %v4691_v31, %v4691_v31  ;;  %v625_v25 = vpack.c.bf16 %v4694_v33, %v4694_v33  ;;  %v4777_v26 = vmax.f32 %v439_v15, 0.0  ;;  %v4174_v11 = vld [vmem:[%s5296_s3 + $0x118] sm:$0xff]  ;;  %v4165_v15 = vld [vmem:[%s5296_s3 + $0xd0] sm:$0xff] }
  0x6b   : > { %842 = vmatmul.bf16.vlgmr.msra.gmra.mxu1 %v738_v36  ;;  %862 = vmatmul.bf16.vlgmr.msra.gmra.mxu2 %v742_v42  ;;  %v416_v28 = vadd.f32 %v4584_v7, %v380_v17  ;;  %v4788_v31 = vmax.f32 %v440_v16, 0.0  ;;  %v389_v33 = vmul.f32 %v4579_v6, %v4237_v22  ;;  %v721_v34 = vunpack.c.l.b16 %v641_v60  ;;  %v4159_v36 = vld [vmem:[%s5296_s3 + $0xa0] sm:$0xff] }
  0x6c   : > { %1360 = vmatpush.bf16.msrb.mxu2 %v4162_v37  ;;  %882 = vmatmul.bf16.vlgmr.msra.gmra.mxu3 %v746_v47  ;;  %v4791_v35 = vunpack.c.l.b16 %v648_v8  ;;  %v4167_v37 = vld [vmem:[%s5296_s3 + $0xe0] sm:$0xff]  ;;  %504 = vst [vmem:[#allocation2 + $0x151] sm:$0xff] %v4777_v26  ;;  %v729_v40 = vunpack.c.l.b16 %v649_v20  ;;  %v390_v42 = vmul.f32 %v4579_v6, %v4238_v32  ;;  %v704_v45 = vunpack.c.l.b16 %v624_v24  ;;  %v4164_v32 = vld [vmem:[%s5296_s3 + $0xc8] sm:$0xff] }
  0x6d   : > { %1705 = vmatpush.bf16.msrb.mxu3 %v4170_v39  ;;  %822 = vmatmul.bf16.vlgmr.msra.gmra.mxu0 %v734_v38  ;;  %v4800_v38 = vmax.f32 %v415_v21, 0.0  ;;  %v4253_v39 = vunpack.c.l.bf16 %v4364_v23  ;;  %505 = vst [vmem:[#allocation2 + $0x159] sm:$0xff] %v4788_v31  ;;  %v4803_v41 = vmax.f32 %v416_v28, 0.0  ;;  %v425_v43 = vadd.f32 %v4584_v7, %v389_v33  ;;  %v4173_v28 = vld [vmem:[%s5296_s3 + $0x110] sm:$0xff] }
  0x6e   : > { %1047 = vmatpush.bf16.msrb.mxu1 %v4146_v50  ;;  %2050 = vmatpush.bf16.msrb.mxu0 %v4178_v51  ;;  %v705_v46 = vunpack.c.l.b16 %v625_v25  ;;  %v4254_v47 = vunpack.c.h.bf16 %v4364_v23  ;;  %v426_v50 = vadd.f32 %v4584_v7, %v390_v42  ;;  %v4821_v55 = vpack.c.b16 %v713_v19, %v712_v12  ;;  %v4141_v23 = vld [vmem:[%s5296_s3 + $0x10] sm:$0xff] }
  0x6f   : > { %480 = vst [vmem:[#allocation2 + $0x31] sm:$0xff] %v4800_v38  ;;  %v4817_v51 = vmax.f32 %v425_v43, 0.0  ;;  %v397_v53 = vmul.f32 %v4579_v6, %v4253_v39  ;;  %v4269_v62 = vunpack.c.l.bf16 %v4368_v44  ;;  %v747_v63 = vpack.c.b16 %v729_v40, %v4791_v35 }
  0x70   : > { %1361 = vmatpush.bf16.msrb.mxu2 %v4161_v56  ;;  %481 = vst [vmem:[#allocation2 + $0x39] sm:$0xff] %v4803_v41  ;;  %v743_v56 = vpack.c.b16 %v721_v34, %v4780_v29  ;;  %v398_v61 = vmul.f32 %v4579_v6, %v4254_v47  ;;  %v4832_v0 = vmax.f32 %v426_v50, 0.0  ;;  %v4270_v60 = vunpack.c.h.bf16 %v4368_v44  ;;  %v4171_v47 = vld [vmem:[%s5296_s3 + $0x100] sm:$0xff] }
  0x71   : > { %1706 = vmatpush.bf16.msrb.mxu3 %v4169_v57  ;;  %v4158_v57 = vld [vmem:[%s5296_s3 + $0x98] sm:$0xff]  ;;  %490 = vst [vmem:[#allocation2 + $0xa9] sm:$0xff] %v4817_v51  ;;  %v433_v2 = vadd.f32 %v4584_v7, %v397_v53  ;;  %v4836_v3 = vpack.c.b16 %v705_v46, %v704_v45  ;;  %v4221_v8 = vunpack.c.l.bf16 %v4356_v54  ;;  %v4222_v18 = vunpack.c.h.bf16 %v4356_v54  ;;  %v4139_v46 = vld [vmem:[%s5296_s3] sm:$0xff] }
  0x72   : > { %1048 = vmatpush.bf16.msrb.mxu1 %v4145_v5  ;;  %2051 = vmatpush.bf16.msrb.mxu0 %v4177_v9  ;;  %v434_v4 = vadd.f32 %v4584_v7, %v398_v61  ;;  %v405_v5 = vmul.f32 %v4579_v6, %v4269_v62  ;;  %v4142_v9 = vld [vmem:[%s5296_s3 + $0x18] sm:$0xff]  ;;  %491 = vst [vmem:[#allocation2 + $0xb1] sm:$0xff] %v4832_v0 }
  0x73   : > { %v4847_v12 = vmax.f32 %v433_v2, 0.0  ;;  %v381_v19 = vmul.f32 %v4579_v6, %v4221_v8  ;;  %v382_v22 = vmul.f32 %v4579_v6, %v4222_v18  ;;  %v634_v29 = vpack.c.bf16 %v4721_v52, %v4721_v52  ;;  %v4194_v54 = vld [vmem:[%s5296_s3 + $0x1b8] sm:$0xff] }
  0x74   : > { %1362 = vmatpush.bf16.msrb.mxu2 %v4160_v13  ;;  %v406_v13 = vmul.f32 %v4579_v6, %v4270_v60  ;;  %v4856_v16 = vmax.f32 %v434_v4, 0.0  ;;  %v441_v17 = vadd.f32 %v4584_v7, %v405_v5  ;;  %v635_v6 = vpack.c.bf16 %v4733_v59, %v4733_v59 }
  0x75   : > { %1707 = vmatpush.bf16.msrb.mxu3 %v4168_v14  ;;  %v4157_v14 = vld [vmem:[%s5296_s3 + $0x90] sm:$0xff]  ;;  %498 = vst [vmem:[#allocation2 + $0x109] sm:$0xff] %v4847_v12  ;;  %v417_v25 = vadd.f32 %v4584_v7, %v381_v19  ;;  %v642_v52 = vpack.c.bf16 %v4739_v1, %v4739_v1  ;;  %v643_v59 = vpack.c.bf16 %v4754_v10, %v4754_v10  ;;  %v4140_v1 = vld [vmem:[%s5296_s3 + $0x8] sm:$0xff] }
  0x76   : > { %1049 = vmatpush.bf16.msrb.mxu1 %v4144_v27  ;;  %2052 = vmatpush.bf16.msrb.mxu0 %v4176_v30  ;;  %v442_v20 = vadd.f32 %v4584_v7, %v406_v13  ;;  %499 = vst [vmem:[#allocation2 + $0x111] sm:$0xff] %v4856_v16  ;;  %v4865_v21 = vmax.f32 %v441_v17, 0.0  ;;  %v4156_v27 = vld [vmem:[%s5296_s3 + $0x88] sm:$0xff]  ;;  %v418_v30 = vadd.f32 %v4584_v7, %v382_v22  ;;  %v715_v39 = vunpack.c.l.b16 %v635_v6 }
  0x77   : > { %v650_v33 = vpack.c.bf16 %v4777_v26, %v4777_v26  ;;  %v449_v34 = vmax.f32 %v417_v25, 0.0  ;;  %v651_v35 = vpack.c.bf16 %v4788_v31, %v4788_v31  ;;  %v626_v7 = vpack.c.bf16 %v4800_v38, %v4800_v38  ;;  %v4172_v10 = vld [vmem:[%s5296_s3 + $0x108] sm:$0xff]  ;;  %v4155_v26 = vld [vmem:[%s5296_s3 + $0x80] sm:$0xff] }
  0x78   : > { %1363 = vmatpush.bf16.msrb.mxu2 %v4159_v36  ;;  %v4871_v24 = vmax.f32 %v442_v20, 0.0  ;;  %506 = vst [vmem:[#allocation2 + $0x169] sm:$0xff] %v4865_v21  ;;  %v627_v36 = vpack.c.bf16 %v4803_v41, %v4803_v41  ;;  %v4163_v31 = vld [vmem:[%s5296_s3 + $0xc0] sm:$0xff]  ;;  %v714_v38 = vunpack.c.l.b16 %v634_v29  ;;  %v722_v40 = vunpack.c.l.b16 %v642_v52 }
  0x79   : > { %1708 = vmatpush.bf16.msrb.mxu3 %v4167_v37  ;;  %v450_v37 = vmax.f32 %v418_v30, 0.0  ;;  %482 = vst [vmem:[#allocation2 + $0x49] sm:$0xff] %v449_v34  ;;  %v723_v41 = vunpack.c.l.b16 %v643_v59  ;;  %v730_v42 = vunpack.c.l.b16 %v650_v33  ;;  %v731_v43 = vunpack.c.l.b16 %v651_v35  ;;  %v510_v20 = vld [vmem:[#allocation2] sm:$0xff] }
  0x7a   : > { %1050 = vmatpush.bf16.msrb.mxu1 %v4143_v48  ;;  %2053 = vmatpush.bf16.msrb.mxu0 %v4175_v49  ;;  %507 = vst [vmem:[#allocation2 + $0x171] sm:$0xff] %v4871_v24  ;;  %v706_v44 = vunpack.c.l.b16 %v626_v7  ;;  %v707_v45 = vunpack.c.l.b16 %v627_v36  ;;  %v4920_v48 = vpack.c.b16 %v715_v39, %v714_v38  ;;  %v636_v61 = vpack.c.bf16 %v4817_v51, %v4817_v51  ;;  %v1136_v22 = vld [vmem:[#allocation2 + $0x2] sm:$0xff]  ;;  %v4201_v38 = vld [vmem:[%s5296_s3 + $0x1f0] sm:$0xff] }
  0x7b   : > { %847 = vmatmul.bf16.gmra.mxu1 %v4821_v55  ;;  %867 = vmatmul.bf16.gmra.mxu2 %v743_v56  ;;  %483 = vst [vmem:[#allocation2 + $0x51] sm:$0xff] %v450_v37  ;;  %v744_v49 = vpack.c.b16 %v723_v41, %v722_v40  ;;  %v748_v50 = vpack.c.b16 %v731_v43, %v730_v42  ;;  %v4202_v56 = vld [vmem:[%s5296_s3 + $0x1f8] sm:$0xff]  ;;  %v1482_v25 = vld [vmem:[#allocation2 + $0x20] sm:$0xff]  ;;  %v4185_v39 = vld [vmem:[%s5296_s3 + $0x170] sm:$0xff] }
  0x7c   : > { %1364 = vmatpush.bf16.msrb.mxu2 %v4158_v57  ;;  %887 = vmatmul.bf16.gmra.mxu3 %v747_v63  ;;  %v4922_v53 = vpack.c.b16 %v707_v45, %v706_v44  ;;  %v4186_v57 = vld [vmem:[%s5296_s3 + $0x178] sm:$0xff]  ;;  %v637_v62 = vpack.c.bf16 %v4832_v0, %v4832_v0  ;;  %v644_v63 = vpack.c.bf16 %v4847_v12, %v4847_v12  ;;  %v716_v8 = vunpack.c.l.b16 %v636_v61  ;;  %v1483_v40 = vld [vmem:[#allocation2 + $0x30] sm:$0xff] }
  0x7d   : > { %1709 = vmatpush.bf16.msrb.mxu3 %v4166_v58  ;;  %827 = vmatmul.bf16.gmra.mxu0 %v4836_v3  ;;  %v4210_v58 = vld [vmem:[%s5296_s3 + $0x238] sm:$0xff]  ;;  %v645_v2 = vpack.c.bf16 %v4856_v16, %v4856_v16  ;;  %v652_v60 = vpack.c.bf16 %v4865_v21, %v4865_v21  ;;  %v653_v4 = vpack.c.bf16 %v4871_v24, %v4871_v24  ;;  %v511_v21 = vld [vmem:[#allocation2 + $0x8] sm:$0xff]  ;;  %v4209_v42 = vld [vmem:[%s5296_s3 + $0x230] sm:$0xff] }
  0x7e   : > { %1051 = vmatpush.bf16.msrb.mxu1 %v4142_v9  ;;  %2054 = vmatpush.bf16.msrb.mxu0 %v4174_v11  ;;  %v628_v51 = vpack.c.bf16 %v449_v34, %v449_v34  ;;  %v629_v5 = vpack.c.bf16 %v450_v37, %v450_v37  ;;  %v717_v9 = vunpack.c.l.b16 %v637_v62  ;;  %v724_v11 = vunpack.c.l.b16 %v644_v63  ;;  %v1481_v24 = vld [vmem:[#allocation2 + $0x18] sm:$0xff] }
  0x7f   : > { %v725_v0 = vunpack.c.l.b16 %v645_v2  ;;  %v732_v13 = vunpack.c.l.b16 %v652_v60  ;;  %v543_v29 = vpack.c.bf16 %v511_v21, %v511_v21  ;;  %v1168_v6 = vpack.c.bf16 %v1136_v22, %v1136_v22  ;;  %v1484_v41 = vld [vmem:[#allocation2 + $0x38] sm:$0xff] }
  0x80   : > { %1365 = vmatpush.bf16.msrb.mxu2 %v4157_v14  ;;  %v733_v14 = vunpack.c.l.b16 %v653_v4  ;;  %v708_v12 = vunpack.c.l.b16 %v628_v51  ;;  %v4950_v17 = vpack.c.b16 %v717_v9, %v716_v8  ;;  %v1513_v30 = vpack.c.bf16 %v1481_v24, %v1481_v24  ;;  %v1485_v61 = vld [vmem:[#allocation2 + $0x48] sm:$0xff] }
  0x81   : > { %1710 = vmatpush.bf16.msrb.mxu3 %v4165_v15  ;;  %v709_v15 = vunpack.c.l.b16 %v629_v5  ;;  %v745_v16 = vpack.c.b16 %v725_v0, %v724_v11  ;;  %v936_v59 = vunpack.c.l.b16 %v543_v29  ;;  %v1248_v33 = vunpack.c.l.b16 %v1168_v6  ;;  %v4208_v29 = vld [vmem:[%s5296_s3 + $0x228] sm:$0xff] }
  0x82   : > { %1052 = vmatpush.bf16.msrb.mxu1 %v4141_v23  ;;  %2055 = vmatpush.bf16.msrb.mxu0 %v4173_v28  ;;  %v749_v18 = vpack.c.b16 %v733_v14, %v732_v13  ;;  %v1137_v23 = vld [vmem:[#allocation2 + $0xa] sm:$0xff]  ;;  %v542_v28 = vpack.c.bf16 %v510_v20, %v510_v20  ;;  %v1593_v35 = vunpack.c.l.b16 %v1513_v30  ;;  %v1515_v44 = vpack.c.bf16 %v1483_v40, %v1483_v40  ;;  %v1143_v14 = vld [vmem:[#allocation2 + $0x52] sm:$0xff] }
  0x83   : > { %v4952_v19 = vpack.c.b16 %v709_v15, %v708_v12  ;;  %v1516_v45 = vpack.c.bf16 %v1484_v41, %v1484_v41  ;;  %v1486_v62 = vld [vmem:[#allocation2 + $0x50] sm:$0xff]  ;;  %v1517_v60 = vpack.c.bf16 %v1485_v61, %v1485_v61  ;;  %v4192_v12 = vld [vmem:[%s5296_s3 + $0x1a8] sm:$0xff]  ;;  %v1175_v22 = vpack.c.bf16 %v1143_v14, %v1143_v14 }
  0x84   : > { %1366 = vmatpush.bf16.msrb.mxu2 %v4156_v27  ;;  %v1169_v27 = vpack.c.bf16 %v1137_v23, %v1137_v23  ;;  %v935_v52 = vunpack.c.l.b16 %v542_v28  ;;  %v1518_v4 = vpack.c.bf16 %v1486_v62, %v1486_v62  ;;  %v1142_v13 = vld [vmem:[#allocation2 + $0x4a] sm:$0xff] }
  0x85   : > { %1711 = vmatpush.bf16.msrb.mxu3 %v4164_v32  ;;  %v1514_v32 = vpack.c.bf16 %v1482_v25, %v1482_v25  ;;  %v1597_v8 = vunpack.c.l.b16 %v1517_v60  ;;  %v4200_v15 = vld [vmem:[%s5296_s3 + $0x1e8] sm:$0xff]  ;;  %v1174_v21 = vpack.c.bf16 %v1142_v13, %v1142_v13 }
  0x86   : > { %1053 = vmatpush.bf16.msrb.mxu1 %v4140_v1  ;;  %2056 = vmatpush.bf16.msrb.mxu0 %v4172_v10  ;;  %v1249_v34 = vunpack.c.l.b16 %v1169_v27  ;;  %v967_v36 = vpack.c.b16 %v936_v59, %v935_v52  ;;  %v1138_v10 = vld [vmem:[#allocation2 + $0x1a] sm:$0xff]  ;;  %v1598_v9 = vunpack.c.l.b16 %v1518_v4  ;;  %v1833_v20 = vld [vmem:[#allocation2 + $0x69] sm:$0xff]  ;;  %v1255_v27 = vunpack.c.l.b16 %v1175_v22 }
  0x87   : > { %v1594_v7 = vunpack.c.l.b16 %v1514_v32  ;;  %v1865_v28 = vpack.c.bf16 %v1833_v20, %v1833_v20  ;;  %v1254_v6 = vunpack.c.l.b16 %v1174_v21  ;;  %v1493_v20 = vld [vmem:[#allocation2 + $0xa8] sm:$0xff]  ;;  %v1494_v21 = vld [vmem:[#allocation2 + $0xb0] sm:$0xff] }
  0x88   : > { %1367 = vmatpush.bf16.msrb.mxu2 %v4155_v26  ;;  %v1280_v37 = vpack.c.b16 %v1249_v34, %v1248_v33  ;;  %v1139_v26 = vld [vmem:[#allocation2 + $0x22] sm:$0xff]  ;;  %v1627_v0 = vpack.c.b16 %v1598_v9, %v1597_v8 }
  0x89   : > { %1712 = vmatpush.bf16.msrb.mxu3 %v4163_v31  ;;  %v1625_v1 = vpack.c.b16 %v1594_v7, %v1593_v35  ;;  %v4193_v31 = vld [vmem:[%s5296_s3 + $0x1b0] sm:$0xff]  ;;  %v1171_v43 = vpack.c.bf16 %v1139_v26, %v1139_v26  ;;  %v1945_v59 = vunpack.c.l.b16 %v1865_v28  ;;  %v1283_v33 = vpack.c.b16 %v1255_v27, %v1254_v6  ;;  %v1144_v7 = vld [vmem:[#allocation2 + $0x62] sm:$0xff] }
  0x8a   : > { %1054 = vmatpush.bf16.msrb.mxu1 %v4139_v46  ;;  %2057 = vmatpush.bf16.msrb.mxu0 %v4171_v47  ;;  %v1525_v28 = vpack.c.bf16 %v1493_v20, %v1493_v20  ;;  %v1153_v20 = vld [vmem:[#allocation2 + $0xca] sm:$0xff] }
  0x8b   : > { %852 = vmatmul.bf16.gmra.mxu1 %v4920_v48  ;;  %872 = vmatmul.bf16.gmra.mxu2 %v744_v49  ;;  %v1251_v47 = vunpack.c.l.b16 %v1171_v43  ;;  %v1595_v49 = vunpack.c.l.b16 %v1515_v44 }
  0x8c   : > { %892 = vmatmul.bf16.gmra.mxu3 %v748_v50  ;;  %2741 = vmatpush.bf16.msra.mxu2 %v4194_v54  ;;  %v1596_v50 = vunpack.c.l.b16 %v1516_v45 }
  0x8d   : > { %832 = vmatmul.bf16.gmra.mxu0 %v4922_v53  ;;  %3086 = vmatpush.bf16.msra.mxu3 %v4202_v56 }
  0x8e   : > { %2395 = vmatpush.bf16.msra.mxu1 %v4186_v57  ;;  %3431 = vmatpush.bf16.msra.mxu0 %v4210_v58  ;;  %v1626_v56 = vpack.c.b16 %v1596_v50, %v1595_v49  ;;  %v1140_v57 = vld [vmem:[#allocation2 + $0x32] sm:$0xff]  ;;  %v1141_v58 = vld [vmem:[#allocation2 + $0x3a] sm:$0xff] }
  0x8f   : > { %v1172_v63 = vpack.c.bf16 %v1140_v57, %v1140_v57  ;;  %v1173_v2 = vpack.c.bf16 %v1141_v58, %v1141_v58  ;;  %v4191_v49 = vld [vmem:[%s5296_s3 + $0x1a0] sm:$0xff] }
  0x90   : > { %2742 = vmatpush.bf16.msra.mxu2 %v4193_v31  ;;  %v4199_v50 = vld [vmem:[%s5296_s3 + $0x1e0] sm:$0xff] }
  0x91   : > { %3087 = vmatpush.bf16.msra.mxu3 %v4201_v38  ;;  %v1252_v51 = vunpack.c.l.b16 %v1172_v63  ;;  %v1253_v5 = vunpack.c.l.b16 %v1173_v2 }
  0x92   : > { %2396 = vmatpush.bf16.msra.mxu1 %v4185_v39  ;;  %3432 = vmatpush.bf16.msra.mxu0 %v4209_v42 }
  0x93   : > { %v1282_v11 = vpack.c.b16 %v1253_v5, %v1252_v51  ;;  %v4207_v51 = vld [vmem:[%s5296_s3 + $0x220] sm:$0xff] }
  0x94   : > { %2743 = vmatpush.bf16.msra.mxu2 %v4192_v12 }
  0x95   : > { %3088 = vmatpush.bf16.msra.mxu3 %v4200_v15 }
  0x96   : > { %3433 = vmatpush.bf16.msra.mxu0 %v4208_v29  ;;  %v1526_v29 = vpack.c.bf16 %v1494_v21, %v1494_v21  ;;  %v1497_v21 = vld [vmem:[#allocation2 + $0xd8] sm:$0xff] }
  0x98   : > { %2744 = vmatpush.bf16.msra.mxu2 %v4191_v49 }
  0x99   : > { %3089 = vmatpush.bf16.msra.mxu3 %v4199_v50 }
  0x9a   : > { %3434 = vmatpush.bf16.msra.mxu0 %v4207_v51 }
  0x9b   : > { %857 = vmatmul.bf16.gmra.mxu1 %v4950_v17  ;;  %877 = vmatmul.bf16.gmra.mxu2 %v745_v16  ;;  %v1488_v16 = vld [vmem:[#allocation2 + $0x68] sm:$0xff] }
  0x9c   : > { %897 = vmatmul.bf16.gmra.mxu3 %v749_v18  ;;  %v1832_v18 = vld [vmem:[#allocation2 + $0x61] sm:$0xff]  ;;  %v1520_v24 = vpack.c.bf16 %v1488_v16, %v1488_v16  ;;  %v1148_v16 = vld [vmem:[#allocation2 + $0x92] sm:$0xff] }
  0x9d   : > { %837 = vmatmul.bf16.gmra.mxu0 %v4952_v19  ;;  %v1864_v25 = vpack.c.bf16 %v1832_v18, %v1832_v18  ;;  %v1149_v18 = vld [vmem:[#allocation2 + $0x9a] sm:$0xff] }
  0x9e   : > { %v1600_v32 = vunpack.c.l.b16 %v1520_v24  ;;  %v1181_v24 = vpack.c.bf16 %v1149_v18, %v1149_v18  ;;  %v1152_v18 = vld [vmem:[#allocation2 + $0xc2] sm:$0xff] }
  0x9f   : > { %v1944_v52 = vunpack.c.l.b16 %v1864_v25 }
  0xa1   : > { %v1973_v35 = vpack.c.b16 %v1945_v59, %v1944_v52 }
  0xab   : > { %1055 = vmatmul.bf16.vlgmr.msrb.gmra.mxu1 %v967_v36  ;;  %1368 = vmatmul.bf16.vlgmr.msrb.gmra.mxu2 %v1280_v37  ;;  %v1145_v36 = vld [vmem:[#allocation2 + $0x6a] sm:$0xff]  ;;  %v1489_v37 = vld [vmem:[#allocation2 + $0x78] sm:$0xff] }
  0xac   : > { %1713 = vmatmul.bf16.vlgmr.msrb.gmra.mxu3 %v1625_v1  ;;  %v1177_v26 = vpack.c.bf16 %v1145_v36, %v1145_v36  ;;  %v1521_v31 = vpack.c.bf16 %v1489_v37, %v1489_v37  ;;  %v1150_v36 = vld [vmem:[#allocation2 + $0xaa] sm:$0xff]  ;;  %v1151_v37 = vld [vmem:[#allocation2 + $0xb2] sm:$0xff] }
  0xad   : > { %2058 = vmatmul.bf16.vlgmr.msrb.gmra.mxu0 %v4836_v3  ;;  %v1170_v3 = vpack.c.bf16 %v1138_v10, %v1138_v10  ;;  %v1176_v10 = vpack.c.bf16 %v1144_v7, %v1144_v7 }
  0xae   : > { %v1257_v40 = vunpack.c.l.b16 %v1177_v26  ;;  %v1601_v41 = vunpack.c.l.b16 %v1521_v31  ;;  %v4198_v26 = vld [vmem:[%s5296_s3 + $0x1d8] sm:$0xff]  ;;  %v1496_v31 = vld [vmem:[#allocation2 + $0xc8] sm:$0xff] }
  0xaf   : > { %v1250_v46 = vunpack.c.l.b16 %v1170_v3  ;;  %v1256_v39 = vunpack.c.l.b16 %v1176_v10  ;;  %v4190_v10 = vld [vmem:[%s5296_s3 + $0x198] sm:$0xff]  ;;  %3090 = vmatpush.bf16.msra.mxu3 %v4198_v26 }
  0xb0   : > { %2745 = vmatpush.bf16.msra.mxu2 %v4190_v10 }
  0xb1   : > { %v1281_v54 = vpack.c.b16 %v1251_v47, %v1250_v46  ;;  %v1284_v3 = vpack.c.b16 %v1257_v40, %v1256_v39  ;;  %v1146_v46 = vld [vmem:[#allocation2 + $0x7a] sm:$0xff]  ;;  %v1147_v47 = vld [vmem:[#allocation2 + $0x82] sm:$0xff] }
  0xb2   : > { %v1178_v61 = vpack.c.bf16 %v1146_v46, %v1146_v46  ;;  %v1179_v62 = vpack.c.bf16 %v1147_v47, %v1147_v47  ;;  %v1841_v39 = vld [vmem:[#allocation2 + $0xc9] sm:$0xff]  ;;  %v1528_v46 = vpack.c.bf16 %v1496_v31, %v1496_v31 }
  0xb3   : > { %v1873_v49 = vpack.c.bf16 %v1841_v39, %v1841_v39 }
  0xb4   : > { %v1258_v5 = vunpack.c.l.b16 %v1178_v61  ;;  %v1259_v8 = vunpack.c.l.b16 %v1179_v62 }
  0xb5   : > { %v1953_v51 = vunpack.c.l.b16 %v1873_v49 }
  0xb6   : > { %v1285_v14 = vpack.c.b16 %v1259_v8, %v1258_v5 }
  0xbb   : > { %1060 = vmatmul.bf16.gmra.mxu1 %v1625_v1  ;;  %1373 = vmatmul.bf16.gmra.mxu2 %v1281_v54  ;;  %v1490_v1 = vld [vmem:[#allocation2 + $0x80] sm:$0xff]  ;;  %v1491_v54 = vld [vmem:[#allocation2 + $0x90] sm:$0xff] }
  0xbc   : > { %1718 = vmatmul.bf16.gmra.mxu3 %v1626_v56  ;;  %v1522_v38 = vpack.c.bf16 %v1490_v1, %v1490_v1  ;;  %v1523_v2 = vpack.c.bf16 %v1491_v54, %v1491_v54  ;;  %v1495_v1 = vld [vmem:[#allocation2 + $0xc0] sm:$0xff]  ;;  %v4182_v54 = vld [vmem:[%s5296_s3 + $0x158] sm:$0xff] }
  0xbd   : > { %2063 = vmatmul.bf16.gmra.mxu0 %v4922_v53  ;;  %v1487_v53 = vld [vmem:[#allocation2 + $0x60] sm:$0xff] }
  0xbe   : > { %v1519_v23 = vpack.c.bf16 %v1487_v53, %v1487_v53  ;;  %v1602_v42 = vunpack.c.l.b16 %v1522_v38  ;;  %v1603_v9 = vunpack.c.l.b16 %v1523_v2  ;;  %v1840_v38 = vld [vmem:[#allocation2 + $0xc1] sm:$0xff]  ;;  %v1608_v2 = vunpack.c.l.b16 %v1528_v46 }
  0xbf   : > { %v1872_v47 = vpack.c.bf16 %v1840_v38, %v1840_v38 }
  0xc0   : > { %v1599_v30 = vunpack.c.l.b16 %v1519_v23  ;;  %v1629_v44 = vpack.c.b16 %v1602_v42, %v1601_v41  ;;  %v1180_v23 = vpack.c.bf16 %v1148_v16, %v1148_v16  ;;  %v1182_v42 = vpack.c.bf16 %v1150_v36, %v1150_v36 }
  0xc2   : > { %v1628_v34 = vpack.c.b16 %v1600_v32, %v1599_v30  ;;  %v1260_v27 = vunpack.c.l.b16 %v1180_v23  ;;  %v1261_v30 = vunpack.c.l.b16 %v1181_v24  ;;  %v1605_v32 = vunpack.c.l.b16 %v1525_v28  ;;  %v1498_v23 = vld [vmem:[#allocation2 + $0xe0] sm:$0xff] }
  0xc3   : > { %v1262_v61 = vunpack.c.l.b16 %v1182_v42  ;;  %v1842_v24 = vld [vmem:[#allocation2 + $0xd9] sm:$0xff]  ;;  %v1843_v28 = vld [vmem:[#allocation2 + $0xe1] sm:$0xff]  ;;  %v1530_v36 = vpack.c.bf16 %v1498_v23, %v1498_v23 }
  0xc5   : > { %v1610_v38 = vunpack.c.l.b16 %v1530_v36 }
  0xcb   : > { %1065 = vmatmul.bf16.gmra.mxu1 %v1626_v56  ;;  %1378 = vmatmul.bf16.gmra.mxu2 %v1282_v11  ;;  %v1492_v56 = vld [vmem:[#allocation2 + $0x98] sm:$0xff] }
  0xcc   : > { %1723 = vmatmul.bf16.gmra.mxu3 %v1627_v0  ;;  %v1524_v60 = vpack.c.bf16 %v1492_v56, %v1492_v56  ;;  %v4206_v56 = vld [vmem:[%s5296_s3 + $0x218] sm:$0xff] }
  0xcd   : > { %2068 = vmatmul.bf16.gmra.mxu0 %v4952_v19  ;;  %v4184_v19 = vld [vmem:[%s5296_s3 + $0x168] sm:$0xff] }
  0xce   : > { %2397 = vmatpush.bf16.msra.mxu1 %v4184_v19  ;;  %v1604_v11 = vunpack.c.l.b16 %v1524_v60  ;;  %3435 = vmatpush.bf16.msra.mxu0 %v4206_v56  ;;  %v1952_v60 = vunpack.c.l.b16 %v1872_v47 }
  0xd0   : > { %v1630_v12 = vpack.c.b16 %v1604_v11, %v1603_v9 }
  0xdb   : > { %1070 = vmatmul.bf16.gmra.mxu1 %v1627_v0  ;;  %1383 = vmatmul.bf16.gmra.mxu2 %v1283_v33  ;;  %v1286_v33 = vpack.c.b16 %v1261_v30, %v1260_v27  ;;  %v1184_v30 = vpack.c.bf16 %v1152_v18, %v1152_v18  ;;  %v1845_v18 = vld [vmem:[#allocation2 + $0xf9] sm:$0xff] }
  0xdc   : > { %1728 = vmatmul.bf16.gmra.mxu3 %v1628_v34 }
  0xdd   : > { %2073 = vmatmul.bf16.gmra.mxu0 %v1973_v35  ;;  %v1264_v10 = vunpack.c.l.b16 %v1184_v30 }
  0xe8   : > { %v4983_v43 = vpop.f32.mrf.mxu1 }
  0xea   : > { %v4985_v45 = vpop.f32.mrf.mxu0 }
  0xeb   : > { %1075 = vmatmul.bf16.gmra.mxu1 %v1628_v34  ;;  %1388 = vmatmul.bf16.gmra.mxu2 %v1284_v3 }
  0xec   : > { %1733 = vmatmul.bf16.gmra.mxu3 %v1629_v44 }
  0xed   : > { %2078 = vmatmul.bf16.gmra.mxu0 %v4821_v55  ;;  %v4183_v55 = vld [vmem:[%s5296_s3 + $0x160] sm:$0xff] }
  0xee   : > { %v4994_v57 = vpop.f32.mrf.mxu2  ;;  %2398 = vmatpush.bf16.msra.mxu1 %v4183_v55 }
  0xef   : > { %v4996_v58 = vpop.f32.mrf.mxu3 }
  0xf0   : > { %v5001_v63 = vpop.f32.mrf.mxu1 }
  0xf2   : > { %v5003_v4 = vpop.f32.mrf.mxu0  ;;  %2399 = vmatpush.bf16.msra.mxu1 %v4182_v54 }
  0xf6   : > { %v5008_v0 = vpop.f32.mrf.mxu2 }
  0xf7   : > { %v5010_v13 = vpop.f32.mrf.mxu3 }
  0xf8   : > { %v5012_v53 = vpop.f32.mrf.mxu1 }
  0xfa   : > { %v5014_v15 = vpop.f32.mrf.mxu0 }
  0xfb   : > { %1080 = vmatmul.bf16.gmra.mxu1 %v1629_v44  ;;  %1393 = vmatmul.bf16.gmra.mxu2 %v1285_v14  ;;  %v1527_v44 = vpack.c.bf16 %v1495_v1, %v1495_v1 }
  0xfc   : > { %1738 = vmatmul.bf16.gmra.mxu3 %v1630_v12 }
  0xfd   : > { %2083 = vmatmul.bf16.gmra.mxu0 %v4920_v48  ;;  %v1606_v48 = vunpack.c.l.b16 %v1526_v29  ;;  %v1607_v55 = vunpack.c.l.b16 %v1527_v44 }
  0xfe   : > { %v5017_v22 = vpop.f32.mrf.mxu2 }
  0xff   : > { %v5019_v19 = vpop.f32.mrf.mxu3  ;;  %v1631_v35 = vpack.c.b16 %v1606_v48, %v1605_v32  ;;  %v1632_v14 = vpack.c.b16 %v1608_v2, %v1607_v55  ;;  %v1185_v32 = vpack.c.bf16 %v1153_v20, %v1153_v20  ;;  %v1155_v55 = vld [vmem:[#allocation2 + $0xe2] sm:$0xff]  ;;  %v1499_v2 = vld [vmem:[#allocation2 + $0xf0] sm:$0xff] }
 0x100   : > { %v5021_v25 = vpop.f32.mrf.mxu1  ;;  %v1187_v23 = vpack.c.bf16 %v1155_v55, %v1155_v55 }
 0x101   : > { %v1265_v26 = vunpack.c.l.b16 %v1185_v32 }
 0x102   : > { %v5023_v6 = vpop.f32.mrf.mxu0 }
 0x103   : > { %v1288_v46 = vpack.c.b16 %v1265_v26, %v1264_v10  ;;  %v4181_v10 = vld [vmem:[%s5296_s3 + $0x150] sm:$0xff] }
 0x104   : > { %v4205_v26 = vld [vmem:[%s5296_s3 + $0x210] sm:$0xff]  ;;  %2400 = vmatpush.bf16.msra.mxu1 %v4181_v10 }
 0x105   : > { %3436 = vmatpush.bf16.msra.mxu0 %v4205_v26 }
 0x106   : > { %v5025_v52 = vpop.f32.mrf.mxu2 }
 0x107   : > { %v5027_v59 = vpop.f32.mrf.mxu3 }
 0x108   : > { %v5029_v34 = vpop.f32.mrf.mxu1 }
 0x10a   : > { %v5031_v7 = vpop.f32.mrf.mxu0 }
 0x10b   : > { %1085 = vmatmul.bf16.gmra.mxu1 %v1630_v12  ;;  %1398 = vmatmul.bf16.gmra.mxu2 %v1286_v33  ;;  %v1977_v12 = vpack.c.b16 %v1953_v51, %v1952_v60  ;;  %v1529_v33 = vpack.c.bf16 %v1497_v21, %v1497_v21  ;;  %v4189_v60 = vld [vmem:[%s5296_s3 + $0x190] sm:$0xff] }
 0x10c   : > { %1743 = vmatmul.bf16.gmra.mxu3 %v1631_v35  ;;  %v4197_v51 = vld [vmem:[%s5296_s3 + $0x1d0] sm:$0xff]  ;;  %2746 = vmatpush.bf16.msra.mxu2 %v4189_v60 }
 0x10d   : > { %2088 = vmatmul.bf16.gmra.mxu0 %v4950_v17  ;;  %v1183_v17 = vpack.c.bf16 %v1151_v37, %v1151_v37  ;;  %v1875_v37 = vpack.c.bf16 %v1843_v28, %v1843_v28  ;;  %v1609_v31 = vunpack.c.l.b16 %v1529_v33  ;;  %3091 = vmatpush.bf16.msra.mxu3 %v4197_v51  ;;  %v1531_v28 = vpack.c.bf16 %v1499_v2, %v1499_v2 }
 0x10e   : > { %v5040_v40 = vpop.f32.mrf.mxu2  ;;  %v1877_v33 = vpack.c.bf16 %v1845_v18, %v1845_v18 }
 0x10f   : > { %v5042_v41 = vpop.f32.mrf.mxu3  ;;  %v1263_v62 = vunpack.c.l.b16 %v1183_v17  ;;  %v1955_v42 = vunpack.c.l.b16 %v1875_v37  ;;  %v1633_v49 = vpack.c.b16 %v1610_v38, %v1609_v31  ;;  %v1267_v38 = vunpack.c.l.b16 %v1187_v23  ;;  %v1846_v23 = vld [vmem:[#allocation2 + $0x109] sm:$0xff] }
 0x110   : > { %v5044_v3 = vpop.f32.mrf.mxu1 }
 0x111   : > { %v1287_v9 = vpack.c.b16 %v1263_v62, %v1262_v61  ;;  %v1154_v62 = vld [vmem:[#allocation2 + $0xda] sm:$0xff] }
 0x112   : > { %v5046_v50 = vpop.f32.mrf.mxu0  ;;  %v1186_v21 = vpack.c.bf16 %v1154_v62, %v1154_v62 }
 0x114   : > { %v1266_v31 = vunpack.c.l.b16 %v1186_v21  ;;  %v1502_v21 = vld [vmem:[#allocation2 + $0x110] sm:$0xff] }
 0x115   : > { %v1534_v10 = vpack.c.bf16 %v1502_v21, %v1502_v21 }
 0x116   : > { %v5054_v5 = vpop.f32.mrf.mxu2  ;;  %v1289_v55 = vpack.c.b16 %v1267_v38, %v1266_v31 }
 0x117   : > { %v5056_v8 = vpop.f32.mrf.mxu3 }
 0x118   : > { %v5058_v11 = vpop.f32.mrf.mxu1 }
 0x11a   : > { %v5060_v16 = vpop.f32.mrf.mxu0 }
 0x11b   : > { %1090 = vmatmul.bf16.gmra.mxu1 %v1631_v35  ;;  %1403 = vmatmul.bf16.gmra.mxu2 %v1287_v9  ;;  %v1874_v35 = vpack.c.bf16 %v1842_v24, %v1842_v24  ;;  %v1500_v9 = vld [vmem:[#allocation2 + $0xf8] sm:$0xff] }
 0x11c   : > { %1748 = vmatmul.bf16.gmra.mxu3 %v1632_v14  ;;  %v1532_v30 = vpack.c.bf16 %v1500_v9, %v1500_v9 }
 0x11d   : > { %2093 = vmatmul.bf16.gmra.mxu0 %v1977_v12  ;;  %v1954_v39 = vunpack.c.l.b16 %v1874_v35  ;;  %v1844_v12 = vld [vmem:[#allocation2 + $0xf1] sm:$0xff] }
 0x11e   : > { %v5062_v29 = vpop.f32.mrf.mxu2  ;;  %v1876_v32 = vpack.c.bf16 %v1844_v12, %v1844_v12 }
 0x11f   : > { %v5064_v27 = vpop.f32.mrf.mxu3  ;;  %v1978_v54 = vpack.c.b16 %v1955_v42, %v1954_v39  ;;  %v1611_v42 = vunpack.c.l.b16 %v1531_v28 }
 0x120   : > { %v5066_v48 = vpop.f32.mrf.mxu1 }
 0x122   : > { %v5068_v1 = vpop.f32.mrf.mxu0 }
 0x126   : > { %v5070_v17 = vpop.f32.mrf.mxu2 }
 0x127   : > { %v5072_v44 = vpop.f32.mrf.mxu3 }
 0x128   : > { %v1056_v47 = vpop.f32.mrf.mxu1 }
 0x129   : > { %v1057_v56 = vadd.f32 %v1056_v47, %v4985_v45  ;;  %v1956_v47 = vunpack.c.l.b16 %v1876_v32 }
 0x12a   : > { %v2059_v61 = vpop.f32.mrf.mxu0 }
 0x12b   : > { %1095 = vmatmul.bf16.gmra.mxu1 %v1632_v14  ;;  %1408 = vmatmul.bf16.gmra.mxu2 %v1288_v46  ;;  %v1612_v46 = vunpack.c.l.b16 %v1532_v30 }
 0x12c   : > { %1753 = vmatmul.bf16.gmra.mxu3 %v1633_v49 }
 0x12d   : > { %2098 = vmatmul.bf16.gmra.mxu0 %v1978_v54  ;;  %v1957_v54 = vunpack.c.l.b16 %v1877_v33  ;;  %v1634_v60 = vpack.c.b16 %v1612_v46, %v1611_v42 }
 0x12e   : > { %v1369_v45 = vpop.f32.mrf.mxu2 }
 0x12f   : > { %v1449_v14 = vadd.f32 %v1369_v45, %v1057_v56  ;;  %v1714_v20 = vpop.f32.mrf.mxu3  ;;  %v1979_v51 = vpack.c.b16 %v1957_v54, %v1956_v47 }
 0x130   : > { %v1058_v24 = vpop.f32.mrf.mxu1 }
 0x131   : > { %v1794_v36 = vadd.f32 %v1714_v20, %v1449_v14  ;;  %v1059_v35 = vadd.f32 %v1058_v24, %v5003_v4  ;;  %v1157_v14 = vld [vmem:[#allocation2 + $0xfa] sm:$0xff]  ;;  %v1501_v20 = vld [vmem:[#allocation2 + $0x108] sm:$0xff]  ;;  %v1847_v24 = vld [vmem:[#allocation2 + $0x111] sm:$0xff] }
 0x132   : > { %v2061_v37 = vpop.f32.mrf.mxu0  ;;  %v1879_v26 = vpack.c.bf16 %v1847_v24, %v1847_v24 }
 0x133   : > { %v5088_v39 = vadd.f32 %v2059_v61, %v1794_v36  ;;  %v1156_v61 = vld [vmem:[#allocation2 + $0xf2] sm:$0xff]  ;;  %v1189_v36 = vpack.c.bf16 %v1157_v14, %v1157_v14 }
 0x134   : > { %v1188_v33 = vpack.c.bf16 %v1156_v61, %v1156_v61 }
 0x135   : > { %v1269_v46 = vunpack.c.l.b16 %v1189_v36  ;;  %v1849_v36 = vld [vmem:[#allocation2 + $0x129] sm:$0xff] }
 0x136   : > { %v1371_v4 = vpop.f32.mrf.mxu2  ;;  %v1268_v42 = vunpack.c.l.b16 %v1188_v33  ;;  %v1504_v33 = vld [vmem:[#allocation2 + $0x128] sm:$0xff] }
 0x137   : > { %v1450_v56 = vadd.f32 %v1371_v4, %v1059_v35  ;;  %v1716_v62 = vpop.f32.mrf.mxu3  ;;  %v1614_v4 = vunpack.c.l.b16 %v1534_v10 }
 0x138   : > { %v1061_v2 = vpop.f32.mrf.mxu1 }
 0x139   : > { %v1795_v9 = vadd.f32 %v1716_v62, %v1450_v56  ;;  %v1062_v12 = vadd.f32 %v1061_v2, %v5014_v15  ;;  %v1533_v15 = vpack.c.bf16 %v1501_v20, %v1501_v20  ;;  %v1959_v62 = vunpack.c.l.b16 %v1879_v26 }
 0x13a   : > { %v2064_v18 = vpop.f32.mrf.mxu0 }
 0x13b   : > { %1100 = vmatmul.bf16.gmra.mxu1 %v1633_v49  ;;  %1413 = vmatmul.bf16.gmra.mxu2 %v1289_v55  ;;  %v5091_v45 = vadd.f32 %v2061_v37, %v1795_v9  ;;  %v1878_v49 = vpack.c.bf16 %v1846_v23, %v1846_v23  ;;  %v1613_v54 = vunpack.c.l.b16 %v1533_v15  ;;  %v1290_v9 = vpack.c.b16 %v1269_v46, %v1268_v42  ;;  %v1158_v23 = vld [vmem:[#allocation2 + $0x10a] sm:$0xff] }
 0x13c   : > { %1758 = vmatmul.bf16.gmra.mxu3 %v1634_v60  ;;  %v1190_v10 = vpack.c.bf16 %v1158_v23, %v1158_v23  ;;  %v1881_v42 = vpack.c.bf16 %v1849_v36, %v1849_v36 }
 0x13d   : > { %2103 = vmatmul.bf16.gmra.mxu0 %v1979_v51  ;;  %v1958_v56 = vunpack.c.l.b16 %v1878_v49  ;;  %v1635_v61 = vpack.c.b16 %v1614_v4, %v1613_v54 }
 0x13e   : > { %v1374_v28 = vpop.f32.mrf.mxu2 }
 0x13f   : > { %v1451_v30 = vadd.f32 %v1374_v28, %v1062_v12  ;;  %v1719_v32 = vpop.f32.mrf.mxu3  ;;  %v1980_v14 = vpack.c.b16 %v1959_v62, %v1958_v56  ;;  %v1503_v28 = vld [vmem:[#allocation2 + $0x120] sm:$0xff]  ;;  %v4180_v56 = vld [vmem:[%s5296_s3 + $0x148] sm:$0xff] }
 0x140   : > { %v1063_v35 = vpop.f32.mrf.mxu1  ;;  %v4204_v62 = vld [vmem:[%s5296_s3 + $0x208] sm:$0xff]  ;;  %2401 = vmatpush.bf16.msra.mxu1 %v4180_v56 }
 0x141   : > { %v1796_v37 = vadd.f32 %v1719_v32, %v1451_v30  ;;  %v1064_v31 = vadd.f32 %v1063_v35, %v5023_v6  ;;  %v4188_v30 = vld [vmem:[%s5296_s3 + $0x188] sm:$0xff]  ;;  %3437 = vmatpush.bf16.msra.mxu0 %v4204_v62 }
 0x142   : > { %v2066_v38 = vpop.f32.mrf.mxu0  ;;  %v4196_v32 = vld [vmem:[%s5296_s3 + $0x1c8] sm:$0xff]  ;;  %2747 = vmatpush.bf16.msra.mxu2 %v4188_v30 }
 0x143   : > { %v5094_v47 = vadd.f32 %v2064_v18, %v1796_v37  ;;  %v1159_v18 = vld [vmem:[#allocation2 + $0x112] sm:$0xff]  ;;  %3092 = vmatpush.bf16.msra.mxu3 %v4196_v32  ;;  %v1535_v37 = vpack.c.bf16 %v1503_v28, %v1503_v28 }
 0x144   : > { %v1191_v49 = vpack.c.bf16 %v1159_v18, %v1159_v18 }
 0x146   : > { %v1376_v55 = vpop.f32.mrf.mxu2 }
 0x147   : > { %v1452_v2 = vadd.f32 %v1376_v55, %v1064_v31  ;;  %v1721_v51 = vpop.f32.mrf.mxu3  ;;  %v1536_v31 = vpack.c.bf16 %v1504_v33, %v1504_v33  ;;  %v1270_v55 = vunpack.c.l.b16 %v1190_v10  ;;  %v1506_v10 = vld [vmem:[#allocation2 + $0x140] sm:$0xff] }
 0x148   : > { %v1066_v12 = vpop.f32.mrf.mxu1 }
 0x149   : > { %v1797_v20 = vadd.f32 %v1721_v51, %v1452_v2  ;;  %v1067_v21 = vadd.f32 %v1066_v12, %v5031_v7  ;;  %v1848_v7 = vld [vmem:[#allocation2 + $0x121] sm:$0xff]  ;;  %v1271_v2 = vunpack.c.l.b16 %v1191_v49  ;;  %v1616_v12 = vunpack.c.l.b16 %v1536_v31  ;;  %v1850_v49 = vld [vmem:[#allocation2 + $0x139] sm:$0xff] }
 0x14a   : > { %v2069_v6 = vpop.f32.mrf.mxu0  ;;  %v1882_v56 = vpack.c.bf16 %v1850_v49, %v1850_v49 }
 0x14b   : > { %1105 = vmatmul.bf16.gmra.mxu1 %v1634_v60  ;;  %1418 = vmatmul.bf16.gmra.mxu2 %v1290_v9  ;;  %v5097_v24 = vadd.f32 %v2066_v38, %v1797_v20  ;;  %v1880_v38 = vpack.c.bf16 %v1848_v7, %v1848_v7  ;;  %v1615_v9 = vunpack.c.l.b16 %v1535_v37  ;;  %v1961_v20 = vunpack.c.l.b16 %v1881_v42 }
 0x14c   : > { %1763 = vmatmul.bf16.gmra.mxu3 %v1635_v61  ;;  %v1291_v18 = vpack.c.b16 %v1271_v2, %v1270_v55 }
 0x14d   : > { %2108 = vmatmul.bf16.gmra.mxu0 %v1980_v14  ;;  %v1960_v14 = vunpack.c.l.b16 %v1880_v38  ;;  %v1636_v30 = vpack.c.b16 %v1616_v12, %v1615_v9 }
 0x14e   : > { %v1379_v60 = vpop.f32.mrf.mxu2 }
 0x14f   : > { %v1453_v35 = vadd.f32 %v1379_v60, %v1067_v21  ;;  %v1724_v15 = vpop.f32.mrf.mxu3  ;;  %v1981_v32 = vpack.c.b16 %v1961_v20, %v1960_v14 }
 0x150   : > { %v1068_v26 = vpop.f32.mrf.mxu1 }
 0x151   : > { %v1798_v46 = vadd.f32 %v1724_v15, %v1453_v35  ;;  %v1069_v54 = vadd.f32 %v1068_v26, %v5046_v50  ;;  %v1161_v35 = vld [vmem:[#allocation2 + $0x12a] sm:$0xff]  ;;  %v1505_v15 = vld [vmem:[#allocation2 + $0x138] sm:$0xff]  ;;  %v1851_v26 = vld [vmem:[#allocation2 + $0x141] sm:$0xff] }
 0x152   : > { %v2071_v4 = vpop.f32.mrf.mxu0 }
 0x153   : > { %v5112_v51 = vadd.f32 %v2069_v6, %v1798_v46  ;;  %v1160_v6 = vld [vmem:[#allocation2 + $0x122] sm:$0xff]  ;;  %v1193_v46 = vpack.c.bf16 %v1161_v35, %v1161_v35 }
 0x154   : > { %v1192_v42 = vpack.c.bf16 %v1160_v6, %v1160_v6 }
 0x155   : > { %v1273_v12 = vunpack.c.l.b16 %v1193_v46 }
 0x156   : > { %v1381_v50 = vpop.f32.mrf.mxu2  ;;  %v1272_v9 = vunpack.c.l.b16 %v1192_v42  ;;  %v1163_v42 = vld [vmem:[#allocation2 + $0x142] sm:$0xff] }
 0x157   : > { %v1454_v21 = vadd.f32 %v1381_v50, %v1069_v54  ;;  %v1726_v23 = vpop.f32.mrf.mxu3 }
 0x158   : > { %v1071_v28 = vpop.f32.mrf.mxu1 }
 0x159   : > { %v1799_v33 = vadd.f32 %v1726_v23, %v1454_v21  ;;  %v1072_v7 = vadd.f32 %v1071_v28, %v5060_v16  ;;  %v1537_v16 = vpack.c.bf16 %v1505_v15, %v1505_v15  ;;  %v1962_v21 = vunpack.c.l.b16 %v1882_v56  ;;  %v4369_v28 = vld [vmem:[%s4561_s27 + $0x78] sm:$0xff]  }
 0x15a   : > { %v2074_v36 = vpop.f32.mrf.mxu0  ;;  %v4273_v6 = vunpack.c.l.bf16 %v4369_v28  ;;  %v4274_v35 = vunpack.c.h.bf16 %v4369_v28  ;;  %v1195_v28 = vpack.c.bf16 %v1163_v42, %v1163_v42 }
 0x15b   : > { %1110 = vmatmul.bf16.gmra.mxu1 %v1635_v61  ;;  %1423 = vmatmul.bf16.gmra.mxu2 %v1291_v18  ;;  %v5115_v60 = vadd.f32 %v2071_v4, %v1799_v33  ;;  %v1538_v61 = vpack.c.bf16 %v1506_v10, %v1506_v10  ;;  %v1883_v4 = vpack.c.bf16 %v1851_v26, %v1851_v26  ;;  %v1617_v20 = vunpack.c.l.b16 %v1537_v16  ;;  %v4187_v16 = vld [vmem:[%s5296_s3 + $0x180] sm:$0xff] }
 0x15c   : > { %1768 = vmatmul.bf16.gmra.mxu3 %v1636_v30  ;;  %2748 = vmatpush.bf16.msra.mxu2 %v4187_v16 }
 0x15d   : > { %2113 = vmatmul.bf16.gmra.mxu0 %v1981_v32  ;;  %v1618_v50 = vunpack.c.l.b16 %v1538_v61  ;;  %v1963_v23 = vunpack.c.l.b16 %v1883_v4  ;;  %v4195_v61 = vld [vmem:[%s5296_s3 + $0x1c0] sm:$0xff] }
 0x15e   : > { %v1384_v37 = vpop.f32.mrf.mxu2  ;;  %3093 = vmatpush.bf16.msra.mxu3 %v4195_v61 }
 0x15f   : > { %v1455_v31 = vadd.f32 %v1384_v37, %v1072_v7  ;;  %v1729_v38 = vpop.f32.mrf.mxu3  ;;  %v1292_v7 = vpack.c.b16 %v1273_v12, %v1272_v9  ;;  %v1637_v10 = vpack.c.b16 %v1618_v50, %v1617_v20  ;;  %v1982_v49 = vpack.c.b16 %v1963_v23, %v1962_v21  ;;  %v1853_v9 = vld [vmem:[#allocation2 + $0x159] sm:$0xff] }
 0x160   : > { %v1073_v54 = vpop.f32.mrf.mxu1 }
 0x161   : > { %v1800_v62 = vadd.f32 %v1729_v38, %v1455_v31  ;;  %v1074_v55 = vadd.f32 %v1073_v54, %v5068_v1  ;;  %v1162_v38 = vld [vmem:[#allocation2 + $0x13a] sm:$0xff]  ;;  %v1507_v54 = vld [vmem:[#allocation2 + $0x150] sm:$0xff] }
 0x162   : > { %v2076_v2 = vpop.f32.mrf.mxu0 }
 0x163   : > { %v5118_v14 = vadd.f32 %v2074_v36, %v1800_v62  ;;  %v4434_v36 = vld [vmem:[%s5294_s1] ss:$0 sm:$0xff] }
 0x164   : > { %v407_v37 = vmul.f32 %v4434_v36, %v4273_v6  ;;  %v408_v31 = vmul.f32 %v4434_v36, %v4274_v35  ;;  %v1885_v35 = vpack.c.bf16 %v1853_v9, %v1853_v9 }
 0x166   : > { %v1386_v18 = vpop.f32.mrf.mxu2  ;;  %v1965_v16 = vunpack.c.l.b16 %v1885_v35 }
 0x167   : > { %v1456_v32 = vadd.f32 %v1386_v18, %v1074_v55  ;;  %v1731_v33 = vpop.f32.mrf.mxu3  ;;  %v1508_v55 = vld [vmem:[#allocation2 + $0x158] sm:$0xff]  ;;  %v1194_v18 = vpack.c.bf16 %v1162_v38, %v1162_v38 }
 0x168   : > { %v1076_v15 = vpop.f32.mrf.mxu1 }
 0x169   : > { %v1801_v1 = vadd.f32 %v1731_v33, %v1456_v32  ;;  %v1077_v62 = vadd.f32 %v1076_v15, %v4983_v43  ;;  %v1539_v33 = vpack.c.bf16 %v1507_v54, %v1507_v54  ;;  %v1274_v36 = vunpack.c.l.b16 %v1194_v18  ;;  %v1165_v18 = vld [vmem:[#allocation2 + $0x15a] sm:$0xff] }
 0x16a   : > { %v2079_v26 = vpop.f32.mrf.mxu0 }
 0x16b   : > { %1115 = vmatmul.bf16.gmra.mxu1 %v1636_v30  ;;  %1428 = vmatmul.bf16.gmra.mxu2 %v1292_v7  ;;  %v5124_v46 = vadd.f32 %v2076_v2, %v1801_v1  ;;  %v4435_v30 = vld [vmem:[%s5295_s2] ss:$0 sm:$0xff]  ;;  %v1852_v2 = vld [vmem:[#allocation2 + $0x151] sm:$0xff]  ;;  %v1540_v7 = vpack.c.bf16 %v1508_v55, %v1508_v55  ;;  %v1619_v38 = vunpack.c.l.b16 %v1539_v33  ;;  %v1854_v33 = vld [vmem:[#allocation2 + $0x169] sm:$0xff] }
 0x16c   : > { %1773 = vmatmul.bf16.gmra.mxu3 %v1637_v10  ;;  %v443_v56 = vadd.f32 %v4435_v30, %v407_v37  ;;  %v444_v4 = vadd.f32 %v4435_v30, %v408_v31  ;;  %v1884_v6 = vpack.c.bf16 %v1852_v2, %v1852_v2  ;;  %v4203_v1 = vld [vmem:[%s5296_s3 + $0x200] sm:$0xff]  ;;  %v1275_v37 = vunpack.c.l.b16 %v1195_v28  ;;  %v1509_v28 = vld [vmem:[#allocation2 + $0x168] sm:$0xff] }
 0x16d   : > { %2118 = vmatmul.bf16.gmra.mxu0 %v1982_v49  ;;  %v4179_v49 = vld [vmem:[%s5296_s3 + $0x140] sm:$0xff]  ;;  %v1620_v42 = vunpack.c.l.b16 %v1540_v7  ;;  %v1855_v7 = vld [vmem:[#allocation2 + $0x171] sm:$0xff] }
 0x16e   : > { %v1389_v12 = vpop.f32.mrf.mxu2  ;;  %v5136_v20 = vmax.f32 %v443_v56, 0.0  ;;  %v5138_v50 = vmax.f32 %v444_v4, 0.0  ;;  %2402 = vmatpush.bf16.msra.mxu1 %v4179_v49  ;;  %3438 = vmatpush.bf16.msra.mxu0 %v4203_v1  ;;  %v1964_v54 = vunpack.c.l.b16 %v1884_v6  ;;  %v1197_v1 = vpack.c.bf16 %v1165_v18, %v1165_v18 }
 0x16f   : > { %v1457_v21 = vadd.f32 %v1389_v12, %v1077_v62  ;;  %v1734_v23 = vpop.f32.mrf.mxu3  ;;  %v1293_v62 = vpack.c.b16 %v1275_v37, %v1274_v36  ;;  %v1638_v2 = vpack.c.b16 %v1620_v42, %v1619_v38  ;;  %v1887_v38 = vpack.c.bf16 %v1855_v7, %v1855_v7 }
 0x170   : > { %v1078_v32 = vpop.f32.mrf.mxu1  ;;  %508 = vst [vmem:[#allocation2 + $0x181] sm:$0xff] %v5136_v20  ;;  %v1983_v9 = vpack.c.b16 %v1965_v16, %v1964_v54 }
 0x171   : > { %v1802_v43 = vadd.f32 %v1734_v23, %v1457_v21  ;;  %509 = vst [vmem:[#allocation2 + $0x189] sm:$0xff] %v5138_v50  ;;  %v1079_v61 = vadd.f32 %v1078_v32, %v5001_v63  ;;  %v1510_v32 = vld [vmem:[#allocation2 + $0x170] sm:$0xff] }
 0x172   : > { %v2081_v15 = vpop.f32.mrf.mxu0  ;;  %v1542_v37 = vpack.c.bf16 %v1510_v32, %v1510_v32 }
 0x173   : > { %v5148_v31 = vadd.f32 %v2079_v26, %v1802_v43  ;;  %v1164_v26 = vld [vmem:[#allocation2 + $0x152] sm:$0xff] }
 0x174   : > { %v1196_v49 = vpack.c.bf16 %v1164_v26, %v1164_v26 }
 0x176   : > { %v1391_v30 = vpop.f32.mrf.mxu2  ;;  %v1276_v16 = vunpack.c.l.b16 %v1196_v49 }
 0x177   : > { %v1458_v56 = vadd.f32 %v1391_v30, %v1079_v61  ;;  %v1736_v4 = vpop.f32.mrf.mxu3  ;;  %v1277_v61 = vunpack.c.l.b16 %v1197_v1 }
 0x178   : > { %v1081_v55 = vpop.f32.mrf.mxu1  ;;  %v1512_v49 = vld [vmem:[#allocation2 + $0x188] sm:$0xff] }
 0x179   : > { %v1803_v12 = vadd.f32 %v1736_v4, %v1458_v56  ;;  %v1082_v63 = vadd.f32 %v1081_v55, %v5012_v53  ;;  %v1622_v56 = vunpack.c.l.b16 %v1542_v37  ;;  %v1294_v18 = vpack.c.b16 %v1277_v61, %v1276_v16 }
 0x17a   : > { %v2084_v21 = vpop.f32.mrf.mxu0  ;;  %v1544_v16 = vpack.c.bf16 %v1512_v49, %v1512_v49 }
 0x17b   : > { %1120 = vmatmul.bf16.gmra.mxu1 %v1637_v10  ;;  %1433 = vmatmul.bf16.gmra.mxu2 %v1293_v62  ;;  %v5151_v23 = vadd.f32 %v2081_v15, %v1803_v12  ;;  %v1541_v10 = vpack.c.bf16 %v1509_v28, %v1509_v28  ;;  %v1886_v15 = vpack.c.bf16 %v1854_v33, %v1854_v33  ;;  %v1967_v62 = vunpack.c.l.b16 %v1887_v38 }
 0x17c   : > { %1778 = vmatmul.bf16.gmra.mxu3 %v1638_v2 }
 0x17d   : > { %2123 = vmatmul.bf16.gmra.mxu0 %v1983_v9  ;;  %v1621_v53 = vunpack.c.l.b16 %v1541_v10  ;;  %v1966_v4 = vunpack.c.l.b16 %v1886_v15 }
 0x17e   : > { %v1394_v6 = vpop.f32.mrf.mxu2 }
 0x17f   : > { %v1459_v35 = vadd.f32 %v1394_v6, %v1082_v63  ;;  %v1739_v43 = vpop.f32.mrf.mxu3  ;;  %v1639_v63 = vpack.c.b16 %v1622_v56, %v1621_v53  ;;  %v1984_v32 = vpack.c.b16 %v1967_v62, %v1966_v4 }
 0x180   : > { %v1083_v36 = vpop.f32.mrf.mxu1 }
 0x181   : > { %v1804_v42 = vadd.f32 %v1739_v43, %v1459_v35  ;;  %v1084_v55 = vadd.f32 %v1083_v36, %v5021_v25  ;;  %v1167_v35 = vld [vmem:[#allocation2 + $0x172] sm:$0xff]  ;;  %v1511_v25 = vld [vmem:[#allocation2 + $0x180] sm:$0xff] }
 0x182   : > { %v2086_v54 = vpop.f32.mrf.mxu0  ;;  %v1199_v15 = vpack.c.bf16 %v1167_v35, %v1167_v35 }
 0x183   : > { %v5154_v30 = vadd.f32 %v2084_v21, %v1804_v42  ;;  %v1166_v21 = vld [vmem:[#allocation2 + $0x16a] sm:$0xff]  ;;  %v1543_v42 = vpack.c.bf16 %v1511_v25, %v1511_v25  ;;  %v2171_v25 = vld [vmem:[#allocation2 + $0x1a] sm:$0xff] }
 0x184   : > { %v1198_v37 = vpack.c.bf16 %v1166_v21, %v1166_v21 }
 0x185   : > { %v1623_v62 = vunpack.c.l.b16 %v1543_v42 }
 0x186   : > { %v1396_v9 = vpop.f32.mrf.mxu2  ;;  %v1278_v56 = vunpack.c.l.b16 %v1198_v37  ;;  %v2863_v37 = vld [vmem:[#allocation2 + $0x39] sm:$0xff] }
 0x187   : > { %v1460_v12 = vadd.f32 %v1396_v9, %v1084_v55  ;;  %v1741_v26 = vpop.f32.mrf.mxu3  ;;  %v1624_v55 = vunpack.c.l.b16 %v1544_v16  ;;  %v2203_v16 = vpack.c.bf16 %v2171_v25, %v2171_v25 }
 0x188   : > { %v1086_v28 = vpop.f32.mrf.mxu1 }
 0x189   : > { %v1805_v33 = vadd.f32 %v1741_v26, %v1460_v12  ;;  %v1087_v43 = vadd.f32 %v1086_v28, %v5029_v34  ;;  %v1279_v34 = vunpack.c.l.b16 %v1199_v15  ;;  %v1640_v21 = vpack.c.b16 %v1624_v55, %v1623_v62  ;;  %v3207_v15 = vld [vmem:[#allocation2 + $0x32] sm:$0xff] }
 0x18a   : > { %v2089_v7 = vpop.f32.mrf.mxu0  ;;  %v2895_v62 = vpack.c.bf16 %v2863_v37, %v2863_v37  ;;  %v3239_v55 = vpack.c.bf16 %v3207_v15, %v3207_v15 }
 0x18b   : > { %1125 = vmatmul.bf16.gmra.mxu1 %v1638_v2  ;;  %1438 = vmatmul.bf16.gmra.mxu2 %v1294_v18  ;;  %v5157_v6 = vadd.f32 %v2086_v54, %v1805_v33  ;;  %v1888_v2 = vpack.c.bf16 %v5136_v20, %v5136_v20  ;;  %v1889_v54 = vpack.c.bf16 %v5138_v50, %v5138_v50 }
 0x18c   : > { %1783 = vmatmul.bf16.gmra.mxu3 %v1639_v63  ;;  %v1295_v33 = vpack.c.b16 %v1279_v34, %v1278_v56 }
 0x18d   : > { %2128 = vmatmul.bf16.gmra.mxu0 %v1984_v32  ;;  %v1968_v9 = vunpack.c.l.b16 %v1888_v2  ;;  %v1969_v12 = vunpack.c.l.b16 %v1889_v54 }
 0x18e   : > { %v1399_v1 = vpop.f32.mrf.mxu2 }
 0x18f   : > { %v1461_v36 = vadd.f32 %v1399_v1, %v1087_v43  ;;  %v1744_v10 = vpop.f32.mrf.mxu3  ;;  %v1985_v35 = vpack.c.b16 %v1969_v12, %v1968_v9  ;;  %v2517_v1 = vld [vmem:[#allocation2 + $0x30] sm:$0xff] }
 0x190   : > { %v1088_v38 = vpop.f32.mrf.mxu1 }
 0x191   : > { %v1806_v61 = vadd.f32 %v1744_v10, %v1461_v36  ;;  %v1089_v26 = vadd.f32 %v1088_v38, %v5044_v3  ;;  %v2518_v36 = vld [vmem:[#allocation2 + $0x38] sm:$0xff] }
 0x192   : > { %v2091_v53 = vpop.f32.mrf.mxu0  ;;  %v2862_v3 = vld [vmem:[#allocation2 + $0x31] sm:$0xff]  ;;  %v3208_v38 = vld [vmem:[#allocation2 + $0x3a] sm:$0xff]  ;;  %v2550_v56 = vpack.c.bf16 %v2518_v36, %v2518_v36 }
 0x193   : > { %v5164_v4 = vadd.f32 %v2089_v7, %v1806_v61  ;;  %v2172_v7 = vld [vmem:[#allocation2 + $0x22] sm:$0xff]  ;;  %v2549_v61 = vpack.c.bf16 %v2517_v1, %v2517_v1  ;;  %v3240_v9 = vpack.c.bf16 %v3208_v38, %v3208_v38 }
 0x196   : > { %v1401_v18 = vpop.f32.mrf.mxu2 }
 0x197   : > { %v1462_v28 = vadd.f32 %v1401_v18, %v1089_v26  ;;  %v1746_v32 = vpop.f32.mrf.mxu3  ;;  %v2283_v18 = vunpack.c.l.b16 %v2203_v16 }
 0x198   : > { %v1091_v20 = vpop.f32.mrf.mxu1 }
 0x199   : > { %v1807_v50 = vadd.f32 %v1746_v32, %v1462_v28  ;;  %v1092_v10 = vadd.f32 %v1091_v20, %v5058_v11  ;;  %v2629_v11 = vunpack.c.l.b16 %v2549_v61  ;;  %v2630_v32 = vunpack.c.l.b16 %v2550_v56  ;;  %v2865_v61 = vld [vmem:[#allocation2 + $0x51] sm:$0xff] }
 0x19a   : > { %v2094_v43 = vpop.f32.mrf.mxu0  ;;  %v3209_v56 = vld [vmem:[#allocation2 + $0x4a] sm:$0xff] }
 0x19b   : > { %1130 = vmatmul.bf16.gmra.mxu1 %v1639_v63  ;;  %1443 = vmatmul.bf16.gmra.mxu2 %v1295_v33  ;;  %v5167_v49 = vadd.f32 %v2091_v53, %v1807_v50  ;;  %v2204_v63 = vpack.c.bf16 %v2172_v7, %v2172_v7  ;;  %v2894_v53 = vpack.c.bf16 %v2862_v3, %v2862_v3  ;;  %v3320_v50 = vunpack.c.l.b16 %v3240_v9 }
 0x19c   : > { %1788 = vmatmul.bf16.gmra.mxu3 %v1640_v21  ;;  %v2975_v21 = vunpack.c.l.b16 %v2895_v62 }
 0x19d   : > { %2133 = vmatmul.bf16.gmra.mxu0 %v1985_v35  ;;  %v2284_v28 = vunpack.c.l.b16 %v2204_v63  ;;  %v2974_v20 = vunpack.c.l.b16 %v2894_v53  ;;  %v3319_v35 = vunpack.c.l.b16 %v3239_v55  ;;  %v2864_v63 = vld [vmem:[#allocation2 + $0x49] sm:$0xff] }
 0x19e   : > { %v1404_v42 = vpop.f32.mrf.mxu2 }
 0x19f   : > { %v1463_v2 = vadd.f32 %v1404_v42, %v1092_v10  ;;  %v1749_v54 = vpop.f32.mrf.mxu3  ;;  %v2315_v3 = vpack.c.b16 %v2284_v28, %v2283_v18  ;;  %v2661_v10 = vpack.c.b16 %v2630_v32, %v2629_v11  ;;  %v3006_v15 = vpack.c.b16 %v2975_v21, %v2974_v20 }
 0x1a0   : > { %v1093_v34 = vpop.f32.mrf.mxu1  ;;  %v3351_v38 = vpack.c.b16 %v3320_v50, %v3319_v35  ;;  %v2896_v28 = vpack.c.bf16 %v2864_v63, %v2864_v63  ;;  %v2897_v11 = vpack.c.bf16 %v2865_v61, %v2865_v61 }
 0x1a1   : > { %v1808_v12 = vadd.f32 %v1749_v54, %v1463_v2  ;;  %v1094_v25 = vadd.f32 %v1093_v34, %v5066_v48  ;;  %v2519_v2 = vld [vmem:[#allocation2 + $0x48] sm:$0xff]  ;;  %v2520_v54 = vld [vmem:[#allocation2 + $0x50] sm:$0xff] }
 0x1a2   : > { %v2096_v26 = vpop.f32.mrf.mxu0  ;;  %v3210_v34 = vld [vmem:[#allocation2 + $0x52] sm:$0xff]  ;;  %v2551_v9 = vpack.c.bf16 %v2519_v2, %v2519_v2 }
 0x1a3   : > { %v5170_v33 = vadd.f32 %v2094_v43, %v1808_v12  ;;  %v2552_v12 = vpack.c.bf16 %v2520_v54, %v2520_v54  ;;  %v3242_v32 = vpack.c.bf16 %v3210_v34, %v3210_v34  ;;  %v2522_v34 = vld [vmem:[#allocation2 + $0x68] sm:$0xff] }
 0x1a4   : > { %v2631_v35 = vunpack.c.l.b16 %v2551_v9  ;;  %v3212_v9 = vld [vmem:[#allocation2 + $0x6a] sm:$0xff] }
 0x1a5   : > { %v2632_v50 = vunpack.c.l.b16 %v2552_v12 }
 0x1a6   : > { %v1406_v7 = vpop.f32.mrf.mxu2 }
 0x1a7   : > { %v1464_v1 = vadd.f32 %v1406_v7, %v1094_v25  ;;  %v1751_v36 = vpop.f32.mrf.mxu3  ;;  %v2977_v7 = vunpack.c.l.b16 %v2897_v11 }
 0x1a8   : > { %v1096_v37 = vpop.f32.mrf.mxu1 }
 0x1a9   : > { %v1809_v42 = vadd.f32 %v1751_v36, %v1464_v1  ;;  %v1097_v48 = vadd.f32 %v1096_v37, %v4994_v57  ;;  %v2976_v57 = vunpack.c.l.b16 %v2896_v28  ;;  %v3322_v36 = vunpack.c.l.b16 %v3242_v32 }
 0x1aa   : > { %v2099_v16 = vpop.f32.mrf.mxu0 }
 0x1ab   : > { %2403 = vmatmul.bf16.vlgmr.msra.gmra.mxu1 %v2315_v3  ;;  %2749 = vmatmul.bf16.vlgmr.msra.gmra.mxu2 %v2661_v10  ;;  %v5173_v43 = vadd.f32 %v2096_v26, %v1809_v42  ;;  %v3241_v26 = vpack.c.bf16 %v3209_v56, %v3209_v56  ;;  %v2662_v42 = vpack.c.b16 %v2632_v50, %v2631_v35 }
 0x1ac   : > { %3094 = vmatmul.bf16.vlgmr.msra.gmra.mxu3 %v3006_v15  ;;  %v3007_v54 = vpack.c.b16 %v2977_v7, %v2976_v57  ;;  %v3244_v35 = vpack.c.bf16 %v3212_v9, %v3212_v9  ;;  %v2524_v9 = vld [vmem:[#allocation2 + $0x80] sm:$0xff] }
 0x1ad   : > { %3439 = vmatmul.bf16.vlgmr.msra.gmra.mxu0 %v3351_v38  ;;  %v3321_v1 = vunpack.c.l.b16 %v3241_v26  ;;  %v2554_v26 = vpack.c.bf16 %v2522_v34, %v2522_v34 }
 0x1ae   : > { %v1409_v53 = vpop.f32.mrf.mxu2 }
 0x1af   : > { %v1465_v62 = vadd.f32 %v1409_v53, %v1097_v48  ;;  %v1754_v55 = vpop.f32.mrf.mxu3  ;;  %v3352_v63 = vpack.c.b16 %v3322_v36, %v3321_v1  ;;  %v2866_v53 = vld [vmem:[#allocation2 + $0x61] sm:$0xff]  ;;  %v2634_v1 = vunpack.c.l.b16 %v2554_v26 }
 0x1b0   : > { %v1098_v18 = vpop.f32.mrf.mxu1 }
 0x1b1   : > { %v1810_v20 = vadd.f32 %v1754_v55, %v1465_v62  ;;  %v1099_v3 = vadd.f32 %v1098_v18, %v5008_v0  ;;  %v2867_v62 = vld [vmem:[#allocation2 + $0x69] sm:$0xff] }
 0x1b2   : > { %v2101_v21 = vpop.f32.mrf.mxu0  ;;  %v3211_v55 = vld [vmem:[#allocation2 + $0x62] sm:$0xff] }
 0x1b3   : > { %v5176_v25 = vadd.f32 %v2099_v16, %v1810_v20  ;;  %v2521_v16 = vld [vmem:[#allocation2 + $0x60] sm:$0xff]  ;;  %v2899_v20 = vpack.c.bf16 %v2867_v62, %v2867_v62 }
 0x1b4   : > { %v2553_v11 = vpack.c.bf16 %v2521_v16, %v2521_v16 }
 0x1b6   : > { %v1411_v10 = vpop.f32.mrf.mxu2  ;;  %v2633_v7 = vunpack.c.l.b16 %v2553_v11  ;;  %v3214_v11 = vld [vmem:[#allocation2 + $0x82] sm:$0xff] }
 0x1b7   : > { %v1466_v37 = vadd.f32 %v1411_v10, %v1099_v3  ;;  %v1756_v15 = vpop.f32.mrf.mxu3  ;;  %v2979_v3 = vunpack.c.l.b16 %v2899_v20 }
 0x1b8   : > { %v1101_v2 = vpop.f32.mrf.mxu1 }
 0x1b9   : > { %v1811_v48 = vadd.f32 %v1756_v15, %v1466_v37  ;;  %v1102_v0 = vadd.f32 %v1101_v2, %v5017_v22  ;;  %v3324_v37 = vunpack.c.l.b16 %v3244_v35 }
 0x1ba   : > { %v2104_v61 = vpop.f32.mrf.mxu0 }
 0x1bb   : > { %2408 = vmatmul.bf16.gmra.mxu1 %v3351_v38  ;;  %2754 = vmatmul.bf16.gmra.mxu2 %v2662_v42  ;;  %v5179_v56 = vadd.f32 %v2101_v21, %v1811_v48  ;;  %v2898_v38 = vpack.c.bf16 %v2866_v53, %v2866_v53  ;;  %v3243_v21 = vpack.c.bf16 %v3211_v55, %v3211_v55 }
 0x1bc   : > { %3099 = vmatmul.bf16.gmra.mxu3 %v3007_v54  ;;  %v2663_v48 = vpack.c.b16 %v2634_v1, %v2633_v7  ;;  %v3246_v7 = vpack.c.bf16 %v3214_v11, %v3214_v11  ;;  %v2526_v11 = vld [vmem:[#allocation2 + $0x98] sm:$0xff] }
 0x1bd   : > { %3444 = vmatmul.bf16.gmra.mxu0 %v3352_v63  ;;  %v2978_v22 = vunpack.c.l.b16 %v2898_v38  ;;  %v3323_v10 = vunpack.c.l.b16 %v3243_v21  ;;  %v2556_v21 = vpack.c.bf16 %v2524_v9, %v2524_v9 }
 0x1be   : > { %v1414_v12 = vpop.f32.mrf.mxu2 }
 0x1bf   : > { %v1467_v18 = vadd.f32 %v1414_v12, %v1102_v0  ;;  %v1759_v28 = vpop.f32.mrf.mxu3  ;;  %v3008_v34 = vpack.c.b16 %v2979_v3, %v2978_v22  ;;  %v3353_v53 = vpack.c.b16 %v3324_v37, %v3323_v10  ;;  %v2868_v12 = vld [vmem:[#allocation2 + $0x79] sm:$0xff]  ;;  %v2636_v10 = vunpack.c.l.b16 %v2556_v21 }
 0x1c0   : > { %v1103_v32 = vpop.f32.mrf.mxu1 }
 0x1c1   : > { %v1812_v50 = vadd.f32 %v1759_v28, %v1467_v18  ;;  %v1104_v15 = vadd.f32 %v1103_v32, %v5025_v52  ;;  %v2869_v18 = vld [vmem:[#allocation2 + $0x81] sm:$0xff] }
 0x1c2   : > { %v2106_v57 = vpop.f32.mrf.mxu0  ;;  %v3213_v28 = vld [vmem:[#allocation2 + $0x7a] sm:$0xff] }
 0x1c3   : > { %v5182_v36 = vadd.f32 %v2104_v61, %v1812_v50  ;;  %v2523_v61 = vld [vmem:[#allocation2 + $0x78] sm:$0xff]  ;;  %v2901_v50 = vpack.c.bf16 %v2869_v18, %v2869_v18 }
 0x1c4   : > { %v2555_v20 = vpack.c.bf16 %v2523_v61, %v2523_v61 }
 0x1c6   : > { %v1416_v42 = vpop.f32.mrf.mxu2  ;;  %v2635_v3 = vunpack.c.l.b16 %v2555_v20  ;;  %v3216_v20 = vld [vmem:[#allocation2 + $0x9a] sm:$0xff] }
 0x1c7   : > { %v1468_v2 = vadd.f32 %v1416_v42, %v1104_v15  ;;  %v1761_v54 = vpop.f32.mrf.mxu3  ;;  %v2981_v15 = vunpack.c.l.b16 %v2901_v50 }
 0x1c8   : > { %v1106_v16 = vpop.f32.mrf.mxu1 }
 0x1c9   : > { %v1813_v0 = vadd.f32 %v1761_v54, %v1468_v2  ;;  %v1107_v52 = vadd.f32 %v1106_v16, %v5040_v40  ;;  %v3326_v2 = vunpack.c.l.b16 %v3246_v7 }
 0x1ca   : > { %v2109_v62 = vpop.f32.mrf.mxu0 }
 0x1cb   : > { %2413 = vmatmul.bf16.gmra.mxu1 %v3352_v63  ;;  %2759 = vmatmul.bf16.gmra.mxu2 %v2663_v48  ;;  %v5185_v55 = vadd.f32 %v2106_v57, %v1813_v0  ;;  %v2900_v63 = vpack.c.bf16 %v2868_v12, %v2868_v12  ;;  %v3245_v57 = vpack.c.bf16 %v3213_v28, %v3213_v28 }
 0x1cc   : > { %3104 = vmatmul.bf16.gmra.mxu3 %v3008_v34  ;;  %v2664_v0 = vpack.c.b16 %v2636_v10, %v2635_v3  ;;  %v3248_v3 = vpack.c.bf16 %v3216_v20, %v3216_v20  ;;  %v2528_v20 = vld [vmem:[#allocation2 + $0xb0] sm:$0xff] }
 0x1cd   : > { %3449 = vmatmul.bf16.gmra.mxu0 %v3353_v53  ;;  %v2980_v40 = vunpack.c.l.b16 %v2900_v63  ;;  %v3325_v42 = vunpack.c.l.b16 %v3245_v57  ;;  %v2558_v57 = vpack.c.bf16 %v2526_v11, %v2526_v11 }
 0x1ce   : > { %v1419_v26 = vpop.f32.mrf.mxu2 }
 0x1cf   : > { %v1469_v32 = vadd.f32 %v1419_v26, %v1107_v52  ;;  %v1764_v38 = vpop.f32.mrf.mxu3  ;;  %v3009_v9 = vpack.c.b16 %v2981_v15, %v2980_v40  ;;  %v3354_v12 = vpack.c.b16 %v3326_v2, %v3325_v42  ;;  %v2870_v26 = vld [vmem:[#allocation2 + $0x91] sm:$0xff]  ;;  %v2638_v42 = vunpack.c.l.b16 %v2558_v57 }
 0x1d0   : > { %v1108_v35 = vpop.f32.mrf.mxu1 }
 0x1d1   : > { %v1814_v1 = vadd.f32 %v1764_v38, %v1469_v32  ;;  %v1109_v54 = vadd.f32 %v1108_v35, %v5054_v5  ;;  %v2871_v32 = vld [vmem:[#allocation2 + $0x99] sm:$0xff] }
 0x1d2   : > { %v2111_v22 = vpop.f32.mrf.mxu0  ;;  %v3215_v38 = vld [vmem:[#allocation2 + $0x92] sm:$0xff] }
 0x1d3   : > { %v5188_v37 = vadd.f32 %v2109_v62, %v1814_v1  ;;  %v2525_v62 = vld [vmem:[#allocation2 + $0x90] sm:$0xff]  ;;  %v2903_v1 = vpack.c.bf16 %v2871_v32, %v2871_v32 }
 0x1d4   : > { %v2557_v50 = vpack.c.bf16 %v2525_v62, %v2525_v62 }
 0x1d6   : > { %v1421_v48 = vpop.f32.mrf.mxu2  ;;  %v2637_v15 = vunpack.c.l.b16 %v2557_v50  ;;  %v3218_v50 = vld [vmem:[#allocation2 + $0xb2] sm:$0xff] }
 0x1d7   : > { %v1470_v16 = vadd.f32 %v1421_v48, %v1109_v54  ;;  %v1766_v34 = vpop.f32.mrf.mxu3  ;;  %v2983_v54 = vunpack.c.l.b16 %v2903_v1 }
 0x1d8   : > { %v1111_v61 = vpop.f32.mrf.mxu1 }
 0x1d9   : > { %v1815_v52 = vadd.f32 %v1766_v34, %v1470_v16  ;;  %v1112_v5 = vadd.f32 %v1111_v61, %v5062_v29  ;;  %v3328_v16 = vunpack.c.l.b16 %v3248_v3 }
 0x1da   : > { %v2114_v18 = vpop.f32.mrf.mxu0 }
 0x1db   : > { %2418 = vmatmul.bf16.gmra.mxu1 %v3353_v53  ;;  %2764 = vmatmul.bf16.gmra.mxu2 %v2664_v0  ;;  %v5191_v28 = vadd.f32 %v2111_v22, %v1815_v52  ;;  %v2902_v53 = vpack.c.bf16 %v2870_v26, %v2870_v26  ;;  %v3247_v22 = vpack.c.bf16 %v3215_v38, %v3215_v38 }
 0x1dc   : > { %3109 = vmatmul.bf16.gmra.mxu3 %v3009_v9  ;;  %v2665_v52 = vpack.c.b16 %v2638_v42, %v2637_v15  ;;  %v3250_v15 = vpack.c.bf16 %v3218_v50, %v3218_v50  ;;  %v2530_v50 = vld [vmem:[#allocation2 + $0xc8] sm:$0xff] }
 0x1dd   : > { %3454 = vmatmul.bf16.gmra.mxu0 %v3354_v12  ;;  %v2982_v29 = vunpack.c.l.b16 %v2902_v53  ;;  %v3327_v48 = vunpack.c.l.b16 %v3247_v22  ;;  %v2560_v22 = vpack.c.bf16 %v2528_v20, %v2528_v20 }
 0x1de   : > { %v1424_v21 = vpop.f32.mrf.mxu2 }
 0x1df   : > { %v1471_v35 = vadd.f32 %v1424_v21, %v1112_v5  ;;  %v1769_v63 = vpop.f32.mrf.mxu3  ;;  %v3010_v11 = vpack.c.b16 %v2983_v54, %v2982_v29  ;;  %v3355_v26 = vpack.c.b16 %v3328_v16, %v3327_v48  ;;  %v2872_v21 = vld [vmem:[#allocation2 + $0xa9] sm:$0xff]  ;;  %v2640_v48 = vunpack.c.l.b16 %v2560_v22 }
 0x1e0   : > { %v1113_v7 = vpop.f32.mrf.mxu1 }
 0x1e1   : > { %v1816_v10 = vadd.f32 %v1769_v63, %v1471_v35  ;;  %v1114_v34 = vadd.f32 %v1113_v7, %v5070_v17  ;;  %v2873_v35 = vld [vmem:[#allocation2 + $0xb1] sm:$0xff] }
 0x1e2   : > { %v2116_v40 = vpop.f32.mrf.mxu0  ;;  %v3217_v63 = vld [vmem:[#allocation2 + $0xaa] sm:$0xff] }
 0x1e3   : > { %v5194_v2 = vadd.f32 %v2114_v18, %v1816_v10  ;;  %v2527_v18 = vld [vmem:[#allocation2 + $0xa8] sm:$0xff]  ;;  %v2905_v10 = vpack.c.bf16 %v2873_v35, %v2873_v35 }
 0x1e4   : > { %v2559_v1 = vpack.c.bf16 %v2527_v18, %v2527_v18 }
 0x1e6   : > { %v1426_v0 = vpop.f32.mrf.mxu2  ;;  %v2639_v54 = vunpack.c.l.b16 %v2559_v1  ;;  %v3220_v1 = vld [vmem:[#allocation2 + $0xca] sm:$0xff] }
 0x1e7   : > { %v1472_v61 = vadd.f32 %v1426_v0, %v1114_v34  ;;  %v1771_v9 = vpop.f32.mrf.mxu3  ;;  %v2985_v34 = vunpack.c.l.b16 %v2905_v10 }
 0x1e8   : > { %v1116_v62 = vpop.f32.mrf.mxu1 }
 0x1e9   : > { %v1817_v5 = vadd.f32 %v1771_v9, %v1472_v61  ;;  %v1117_v17 = vadd.f32 %v1116_v62, %v4996_v58  ;;  %v3330_v61 = vunpack.c.l.b16 %v3250_v15 }
 0x1ea   : > { %v2119_v32 = vpop.f32.mrf.mxu0 }
 0x1eb   : > { %2423 = vmatmul.bf16.gmra.mxu1 %v3354_v12  ;;  %2769 = vmatmul.bf16.gmra.mxu2 %v2665_v52  ;;  %v5197_v38 = vadd.f32 %v2116_v40, %v1817_v5  ;;  %v2904_v12 = vpack.c.bf16 %v2872_v21, %v2872_v21  ;;  %v3249_v40 = vpack.c.bf16 %v3217_v63, %v3217_v63 }
 0x1ec   : > { %3114 = vmatmul.bf16.gmra.mxu3 %v3010_v11  ;;  %v2666_v5 = vpack.c.b16 %v2640_v48, %v2639_v54  ;;  %v3252_v54 = vpack.c.bf16 %v3220_v1, %v3220_v1  ;;  %v2532_v1 = vld [vmem:[#allocation2 + $0xe0] sm:$0xff] }
 0x1ed   : > { %3459 = vmatmul.bf16.gmra.mxu0 %v3355_v26  ;;  %v2984_v58 = vunpack.c.l.b16 %v2904_v12  ;;  %v3329_v0 = vunpack.c.l.b16 %v3249_v40  ;;  %v2562_v40 = vpack.c.bf16 %v2530_v50, %v2530_v50 }
 0x1ee   : > { %v1429_v57 = vpop.f32.mrf.mxu2 }
 0x1ef   : > { %v1473_v7 = vadd.f32 %v1429_v57, %v1117_v17  ;;  %v1774_v53 = vpop.f32.mrf.mxu3  ;;  %v3011_v20 = vpack.c.b16 %v2985_v34, %v2984_v58  ;;  %v3356_v21 = vpack.c.b16 %v3330_v61, %v3329_v0  ;;  %v2874_v57 = vld [vmem:[#allocation2 + $0xc1] sm:$0xff]  ;;  %v2642_v0 = vunpack.c.l.b16 %v2562_v40 }
 0x1f0   : > { %v1118_v3 = vpop.f32.mrf.mxu1 }
 0x1f1   : > { %v1818_v42 = vadd.f32 %v1774_v53, %v1473_v7  ;;  %v1119_v9 = vadd.f32 %v1118_v3, %v5010_v13  ;;  %v2875_v7 = vld [vmem:[#allocation2 + $0xc9] sm:$0xff] }
 0x1f2   : > { %v2121_v29 = vpop.f32.mrf.mxu0  ;;  %v3219_v53 = vld [vmem:[#allocation2 + $0xc2] sm:$0xff] }
 0x1f3   : > { %v5200_v16 = vadd.f32 %v2119_v32, %v1818_v42  ;;  %v2529_v32 = vld [vmem:[#allocation2 + $0xc0] sm:$0xff]  ;;  %v2907_v42 = vpack.c.bf16 %v2875_v7, %v2875_v7 }
 0x1f4   : > { %v2561_v10 = vpack.c.bf16 %v2529_v32, %v2529_v32 }
 0x1f6   : > { %v1431_v52 = vpop.f32.mrf.mxu2  ;;  %v2641_v34 = vunpack.c.l.b16 %v2561_v10  ;;  %v3222_v10 = vld [vmem:[#allocation2 + $0xe2] sm:$0xff] }
 0x1f7   : > { %v1474_v62 = vadd.f32 %v1431_v52, %v1119_v9  ;;  %v1776_v11 = vpop.f32.mrf.mxu3  ;;  %v2987_v9 = vunpack.c.l.b16 %v2907_v42 }
 0x1f8   : > { %v1121_v18 = vpop.f32.mrf.mxu1 }
 0x1f9   : > { %v1819_v17 = vadd.f32 %v1776_v11, %v1474_v62  ;;  %v1122_v13 = vadd.f32 %v1121_v18, %v5019_v19  ;;  %v3332_v62 = vunpack.c.l.b16 %v3252_v54 }
 0x1fa   : > { %v2124_v35 = vpop.f32.mrf.mxu0 }
 0x1fb   : > { %2428 = vmatmul.bf16.gmra.mxu1 %v3355_v26  ;;  %2774 = vmatmul.bf16.gmra.mxu2 %v2666_v5  ;;  %v5203_v63 = vadd.f32 %v2121_v29, %v1819_v17  ;;  %v2906_v26 = vpack.c.bf16 %v2874_v57, %v2874_v57  ;;  %v3251_v29 = vpack.c.bf16 %v3219_v53, %v3219_v53 }
 0x1fc   : > { %3119 = vmatmul.bf16.gmra.mxu3 %v3011_v20  ;;  %v2667_v17 = vpack.c.b16 %v2642_v0, %v2641_v34  ;;  %v3254_v34 = vpack.c.bf16 %v3222_v10, %v3222_v10  ;;  %v2534_v10 = vld [vmem:[#allocation2 + $0xf8] sm:$0xff] }
 0x1fd   : > { %3464 = vmatmul.bf16.gmra.mxu0 %v3356_v21  ;;  %v2986_v19 = vunpack.c.l.b16 %v2906_v26  ;;  %v3331_v52 = vunpack.c.l.b16 %v3251_v29  ;;  %v2564_v29 = vpack.c.bf16 %v2532_v1, %v2532_v1 }
 0x1fe   : > { %v1434_v22 = vpop.f32.mrf.mxu2 }
 0x1ff   : > { %v1475_v3 = vadd.f32 %v1434_v22, %v1122_v13  ;;  %v1779_v12 = vpop.f32.mrf.mxu3  ;;  %v3012_v50 = vpack.c.b16 %v2987_v9, %v2986_v19  ;;  %v3357_v57 = vpack.c.b16 %v3332_v62, %v3331_v52  ;;  %v2876_v22 = vld [vmem:[#allocation2 + $0xd9] sm:$0xff]  ;;  %v2644_v52 = vunpack.c.l.b16 %v2564_v29 }
 0x200   : > { %v1123_v15 = vpop.f32.mrf.mxu1 }
 0x201   : > { %v1820_v48 = vadd.f32 %v1779_v12, %v1475_v3  ;;  %v1124_v11 = vadd.f32 %v1123_v15, %v5027_v59  ;;  %v2877_v3 = vld [vmem:[#allocation2 + $0xe1] sm:$0xff] }
 0x202   : > { %v2126_v58 = vpop.f32.mrf.mxu0  ;;  %v3221_v12 = vld [vmem:[#allocation2 + $0xda] sm:$0xff] }
 0x203   : > { %v5206_v61 = vadd.f32 %v2124_v35, %v1820_v48  ;;  %v2531_v35 = vld [vmem:[#allocation2 + $0xd8] sm:$0xff]  ;;  %v2909_v48 = vpack.c.bf16 %v2877_v3, %v2877_v3 }
 0x204   : > { %v2563_v42 = vpack.c.bf16 %v2531_v35, %v2531_v35 }
 0x206   : > { %v1436_v5 = vpop.f32.mrf.mxu2  ;;  %v2643_v9 = vunpack.c.l.b16 %v2563_v42  ;;  %v3224_v42 = vld [vmem:[#allocation2 + $0xfa] sm:$0xff] }
 0x207   : > { %v1476_v18 = vadd.f32 %v1436_v5, %v1124_v11  ;;  %v1781_v20 = vpop.f32.mrf.mxu3  ;;  %v2989_v11 = vunpack.c.l.b16 %v2909_v48 }
 0x208   : > { %v1126_v32 = vpop.f32.mrf.mxu1 }
 0x209   : > { %v1821_v13 = vadd.f32 %v1781_v20, %v1476_v18  ;;  %v1127_v59 = vadd.f32 %v1126_v32, %v5042_v41  ;;  %v3334_v18 = vunpack.c.l.b16 %v3254_v34 }
 0x20a   : > { %v2129_v7 = vpop.f32.mrf.mxu0 }
 0x20b   : > { %2433 = vmatmul.bf16.gmra.mxu1 %v3356_v21  ;;  %2779 = vmatmul.bf16.gmra.mxu2 %v2667_v17  ;;  %v5209_v53 = vadd.f32 %v2126_v58, %v1821_v13  ;;  %v2908_v21 = vpack.c.bf16 %v2876_v22, %v2876_v22  ;;  %v3253_v58 = vpack.c.bf16 %v3221_v12, %v3221_v12 }
 0x20c   : > { %3124 = vmatmul.bf16.gmra.mxu3 %v3012_v50  ;;  %v2668_v13 = vpack.c.b16 %v2644_v52, %v2643_v9  ;;  %v3256_v9 = vpack.c.bf16 %v3224_v42, %v3224_v42  ;;  %v2536_v42 = vld [vmem:[#allocation2 + $0x110] sm:$0xff] }
 0x20d   : > { %3469 = vmatmul.bf16.gmra.mxu0 %v3357_v57  ;;  %v2988_v41 = vunpack.c.l.b16 %v2908_v21  ;;  %v3333_v5 = vunpack.c.l.b16 %v3253_v58  ;;  %v2566_v58 = vpack.c.bf16 %v2534_v10, %v2534_v10 }
 0x20e   : > { %v1439_v40 = vpop.f32.mrf.mxu2 }
 0x20f   : > { %v1477_v15 = vadd.f32 %v1439_v40, %v1127_v59  ;;  %v1784_v26 = vpop.f32.mrf.mxu3  ;;  %v3013_v1 = vpack.c.b16 %v2989_v11, %v2988_v41  ;;  %v3358_v22 = vpack.c.b16 %v3334_v18, %v3333_v5  ;;  %v2878_v40 = vld [vmem:[#allocation2 + $0xf1] sm:$0xff]  ;;  %v2646_v5 = vunpack.c.l.b16 %v2566_v58 }
 0x210   : > { %v1128_v54 = vpop.f32.mrf.mxu1 }
 0x211   : > { %v1822_v0 = vadd.f32 %v1784_v26, %v1477_v15  ;;  %v1129_v20 = vadd.f32 %v1128_v54, %v5056_v8  ;;  %v2879_v15 = vld [vmem:[#allocation2 + $0xf9] sm:$0xff] }
 0x212   : > { %v2131_v19 = vpop.f32.mrf.mxu0  ;;  %v3223_v26 = vld [vmem:[#allocation2 + $0xf2] sm:$0xff] }
 0x213   : > { %v5212_v62 = vadd.f32 %v2129_v7, %v1822_v0  ;;  %v2533_v7 = vld [vmem:[#allocation2 + $0xf0] sm:$0xff]  ;;  %v2911_v0 = vpack.c.bf16 %v2879_v15, %v2879_v15 }
 0x214   : > { %v2565_v48 = vpack.c.bf16 %v2533_v7, %v2533_v7 }
 0x216   : > { %v1441_v17 = vpop.f32.mrf.mxu2  ;;  %v2645_v11 = vunpack.c.l.b16 %v2565_v48 }
 0x217   : > { %v1478_v32 = vadd.f32 %v1441_v17, %v1129_v20  ;;  %v1786_v50 = vpop.f32.mrf.mxu3  ;;  %v2991_v20 = vunpack.c.l.b16 %v2911_v0  ;;  %v2568_v0 = vpack.c.bf16 %v2536_v42, %v2536_v42 }
 0x218   : > { %v1131_v35 = vpop.f32.mrf.mxu1 }
 0x219   : > { %v1823_v59 = vadd.f32 %v1786_v50, %v1478_v32  ;;  %v1132_v8 = vadd.f32 %v1131_v35, %v5064_v27  ;;  %v3336_v32 = vunpack.c.l.b16 %v3256_v9 }
 0x21a   : > { %v2134_v3 = vpop.f32.mrf.mxu0 }
 0x21b   : > { %2438 = vmatmul.bf16.gmra.mxu1 %v3357_v57  ;;  %2784 = vmatmul.bf16.gmra.mxu2 %v2668_v13  ;;  %v5215_v12 = vadd.f32 %v2131_v19, %v1823_v59  ;;  %v2910_v57 = vpack.c.bf16 %v2878_v40, %v2878_v40  ;;  %v3255_v19 = vpack.c.bf16 %v3223_v26, %v3223_v26 }
 0x21c   : > { %3129 = vmatmul.bf16.gmra.mxu3 %v3013_v1  ;;  %v2669_v59 = vpack.c.b16 %v2646_v5, %v2645_v11 }
 0x21d   : > { %3474 = vmatmul.bf16.gmra.mxu0 %v3358_v22  ;;  %v2990_v27 = vunpack.c.l.b16 %v2910_v57  ;;  %v3335_v17 = vunpack.c.l.b16 %v3255_v19 }
 0x21e   : > { %v1444_v29 = vpop.f32.mrf.mxu2 }
 0x21f   : > { %v1479_v54 = vadd.f32 %v1444_v29, %v1132_v8  ;;  %v1789_v21 = vpop.f32.mrf.mxu3  ;;  %v3014_v10 = vpack.c.b16 %v2991_v20, %v2990_v27  ;;  %v3359_v40 = vpack.c.b16 %v3336_v32, %v3335_v17  ;;  %v2880_v29 = vld [vmem:[#allocation2 + $0x109] sm:$0xff]  ;;  %v2648_v20 = vunpack.c.l.b16 %v2568_v0 }
 0x220   : > { %v1133_v34 = vpop.f32.mrf.mxu1  ;;  %v2912_v19 = vpack.c.bf16 %v2880_v29, %v2880_v29 }
 0x221   : > { %v1824_v52 = vadd.f32 %v1789_v21, %v1479_v54  ;;  %v1134_v50 = vadd.f32 %v1133_v34, %v5072_v44  ;;  %v2881_v54 = vld [vmem:[#allocation2 + $0x111] sm:$0xff] }
 0x222   : > { %v2136_v41 = vpop.f32.mrf.mxu0  ;;  %v3225_v44 = vld [vmem:[#allocation2 + $0x10a] sm:$0xff]  ;;  %v3226_v21 = vld [vmem:[#allocation2 + $0x112] sm:$0xff]  ;;  %v2992_v17 = vunpack.c.l.b16 %v2912_v19 }
 0x223   : > { %v5218_v18 = vadd.f32 %v2134_v3, %v1824_v52  ;;  %v2535_v3 = vld [vmem:[#allocation2 + $0x108] sm:$0xff]  ;;  %v2913_v52 = vpack.c.bf16 %v2881_v54, %v2881_v54  ;;  %v3258_v11 = vpack.c.bf16 %v3226_v21, %v3226_v21 }
 0x224   : > { %v2567_v57 = vpack.c.bf16 %v2535_v3, %v2535_v3 }
 0x226   : > { %v1446_v13 = vpop.f32.mrf.mxu2  ;;  %v2647_v27 = vunpack.c.l.b16 %v2567_v57 }
 0x227   : > { %v1480_v35 = vadd.f32 %v1446_v13, %v1134_v50  ;;  %v1791_v1 = vpop.f32.mrf.mxu3  ;;  %v2993_v50 = vunpack.c.l.b16 %v2913_v52  ;;  %v3228_v52 = vld [vmem:[#allocation2 + $0x12a] sm:$0xff] }
 0x228   : > { %v2404_v7 = vpop.f32.mrf.mxu1 }
 0x229   : > { %v1825_v8 = vadd.f32 %v1791_v1, %v1480_v35  ;;  %v2484_v48 = vadd.f32 %v2404_v7, %v5088_v39  ;;  %v3338_v35 = vunpack.c.l.b16 %v3258_v11  ;;  %v3015_v42 = vpack.c.b16 %v2993_v50, %v2992_v17 }
 0x22a   : > { %v3440_v15 = vpop.f32.mrf.mxu0 }
 0x22b   : > { %2443 = vmatmul.bf16.gmra.mxu1 %v3358_v22  ;;  %2789 = vmatmul.bf16.gmra.mxu2 %v2669_v59  ;;  %v5221_v26 = vadd.f32 %v2136_v41, %v1825_v8  ;;  %v3257_v41 = vpack.c.bf16 %v3225_v44, %v3225_v44 }
 0x22c   : > { %3134 = vmatmul.bf16.gmra.mxu3 %v3014_v10  ;;  %v2670_v10 = vpack.c.b16 %v2648_v20, %v2647_v27 }
 0x22d   : > { %3479 = vmatmul.bf16.gmra.mxu0 %v3359_v40  ;;  %v3337_v13 = vunpack.c.l.b16 %v3257_v41 }
 0x22e   : > { %v2750_v58 = vpop.f32.mrf.mxu2 }
 0x22f   : > { %v3095_v34 = vpop.f32.mrf.mxu3  ;;  %v2830_v9 = vadd.f32 %v2750_v58, %v2484_v48  ;;  %v3360_v29 = vpack.c.b16 %v3338_v35, %v3337_v13  ;;  %v2537_v58 = vld [vmem:[#allocation2 + $0x120] sm:$0xff]  ;;  %v3260_v35 = vpack.c.bf16 %v3228_v52, %v3228_v52 }
 0x230   : > { %v2406_v22 = vpop.f32.mrf.mxu1  ;;  %v2569_v27 = vpack.c.bf16 %v2537_v58, %v2537_v58 }
 0x231   : > { %v3175_v32 = vadd.f32 %v3095_v34, %v2830_v9  ;;  %v2485_v39 = vadd.f32 %v2406_v22, %v5091_v45  ;;  %v2538_v34 = vld [vmem:[#allocation2 + $0x128] sm:$0xff] }
 0x232   : > { %v3442_v5 = vpop.f32.mrf.mxu0  ;;  %v2882_v45 = vld [vmem:[#allocation2 + $0x121] sm:$0xff]  ;;  %v2883_v9 = vld [vmem:[#allocation2 + $0x129] sm:$0xff]  ;;  %v2570_v20 = vpack.c.bf16 %v2538_v34, %v2538_v34 }
 0x233   : > { %v3520_v8 = vadd.f32 %v3440_v15, %v3175_v32  ;;  %v3227_v22 = vld [vmem:[#allocation2 + $0x122] sm:$0xff]  ;;  %v2914_v32 = vpack.c.bf16 %v2882_v45, %v2882_v45  ;;  %v2915_v50 = vpack.c.bf16 %v2883_v9, %v2883_v9 }
 0x234   : > { %v3259_v13 = vpack.c.bf16 %v3227_v22, %v3227_v22 }
 0x235   : > { %v3657_v48 = vmul.f32 %v3520_v8, %v3520_v8 }
 0x236   : > { %v2752_v1 = vpop.f32.mrf.mxu2 }
 0x237   : > { %v2831_v59 = vadd.f32 %v2752_v1, %v2485_v39  ;;  %v3097_v7 = vpop.f32.mrf.mxu3 }
 0x238   : > { %v2409_v3 = vpop.f32.mrf.mxu1 }
 0x239   : > { %v3176_v54 = vadd.f32 %v3097_v7, %v2831_v59  ;;  %v2486_v15 = vadd.f32 %v2409_v3, %v5094_v47  ;;  %v2649_v7 = vunpack.c.l.b16 %v2569_v27  ;;  %v2650_v47 = vunpack.c.l.b16 %v2570_v20 }
 0x23a   : > { %v3445_v44 = vpop.f32.mrf.mxu0  ;;  %v3339_v3 = vunpack.c.l.b16 %v3259_v13 }
 0x23b   : > { %v3521_v21 = vadd.f32 %v3442_v5, %v3176_v54  ;;  %2448 = vmatmul.bf16.gmra.mxu1 %v3359_v40  ;;  %2794 = vmatmul.bf16.gmra.mxu2 %v2670_v10  ;;  %v2994_v10 = vunpack.c.l.b16 %v2914_v32  ;;  %v3229_v32 = vld [vmem:[#allocation2 + $0x13a] sm:$0xff] }
 0x23c   : > { %3139 = vmatmul.bf16.gmra.mxu3 %v3015_v42  ;;  %v3340_v42 = vunpack.c.l.b16 %v3260_v35 }
 0x23d   : > { %3484 = vmatmul.bf16.gmra.mxu0 %v3360_v29  ;;  %v4278_v57 = vpack.c.bf16 %v3521_v21, %v3520_v8  ;;  %v3617_v0 = vadd.f32 %v3521_v21, %v3520_v8  ;;  %v3658_v19 = vmul.f32 %v3521_v21, %v3521_v21  ;;  %v2995_v8 = vunpack.c.l.b16 %v2915_v50  ;;  %v3230_v50 = vld [vmem:[#allocation2 + $0x142] sm:$0xff] }
 0x23e   : > { %v2755_v41 = vpop.f32.mrf.mxu2  ;;  %v3361_v22 = vpack.c.b16 %v3340_v42, %v3339_v3  ;;  %v3261_v3 = vpack.c.bf16 %v3229_v32, %v3229_v32  ;;  %v3262_v42 = vpack.c.bf16 %v3230_v50, %v3230_v50  ;;  %v2542_v50 = vld [vmem:[#allocation2 + $0x158] sm:$0xff] }
 0x23f   : > { %4279 = vst [vmem:[%s4566_s30] sm:$0xff] %v4278_v57   ;;  %v3689_v11 = vadd.f32 %v3658_v19, %v3657_v48  ;;  %v2832_v40 = vadd.f32 %v2755_v41, %v2486_v15  ;;  %v3100_v5 = vpop.f32.mrf.mxu3  ;;  %v2671_v19 = vpack.c.b16 %v2650_v47, %v2649_v7  ;;  %v3016_v9 = vpack.c.b16 %v2995_v8, %v2994_v10 }
 0x240   : > { %v2411_v17 = vpop.f32.mrf.mxu1 }
 0x241   : > { %v3177_v39 = vadd.f32 %v3100_v5, %v2832_v40  ;;  %v2487_v48 = vadd.f32 %v2411_v17, %v5097_v24  ;;  %v2540_v40 = vld [vmem:[#allocation2 + $0x140] sm:$0xff] }
 0x242   : > { %v3447_v1 = vpop.f32.mrf.mxu0  ;;  %v2884_v5 = vld [vmem:[#allocation2 + $0x139] sm:$0xff]  ;;  %v2885_v17 = vld [vmem:[#allocation2 + $0x141] sm:$0xff]  ;;  %v2572_v7 = vpack.c.bf16 %v2540_v40, %v2540_v40 }
 0x243   : > { %v3522_v59 = vadd.f32 %v3445_v44, %v3177_v39  ;;  %v2916_v10 = vpack.c.bf16 %v2884_v5, %v2884_v5  ;;  %v2917_v8 = vpack.c.bf16 %v2885_v17, %v2885_v17 }
 0x245   : > { %v3618_v54 = vadd.f32 %v3617_v0, %v3522_v59  ;;  %v3659_v21 = vmul.f32 %v3522_v59, %v3522_v59  ;;  %v2539_v0 = vld [vmem:[#allocation2 + $0x138] sm:$0xff] }
 0x246   : > { %v2757_v58 = vpop.f32.mrf.mxu2 }
 0x247   : > { %v3690_v34 = vadd.f32 %v3689_v11, %v3659_v21  ;;  %v2833_v57 = vadd.f32 %v2757_v58, %v2487_v48  ;;  %v3102_v45 = vpop.f32.mrf.mxu3  ;;  %v2996_v58 = vunpack.c.l.b16 %v2916_v10 }
 0x248   : > { %v2414_v15 = vpop.f32.mrf.mxu1 }
 0x249   : > { %v3178_v52 = vadd.f32 %v3102_v45, %v2833_v57  ;;  %v2488_v20 = vadd.f32 %v2414_v15, %v5112_v51  ;;  %v2652_v51 = vunpack.c.l.b16 %v2572_v7  ;;  %v2997_v57 = vunpack.c.l.b16 %v2917_v8  ;;  %v3231_v7 = vld [vmem:[#allocation2 + $0x152] sm:$0xff] }
 0x24a   : > { %v3450_v44 = vpop.f32.mrf.mxu0  ;;  %v3341_v45 = vunpack.c.l.b16 %v3261_v3 }
 0x24b   : > { %v3523_v41 = vadd.f32 %v3447_v1, %v3178_v52  ;;  %2453 = vmatmul.bf16.gmra.mxu1 %v3360_v29  ;;  %2799 = vmatmul.bf16.gmra.mxu2 %v2671_v19  ;;  %v2571_v29 = vpack.c.bf16 %v2539_v0, %v2539_v0  ;;  %v3342_v19 = vunpack.c.l.b16 %v3262_v42 }
 0x24c   : > { %3144 = vmatmul.bf16.gmra.mxu3 %v3016_v9 }
 0x24d   : > { %3489 = vmatmul.bf16.gmra.mxu0 %v3361_v22  ;;  %v4283_v24 = vpack.c.bf16 %v3523_v41, %v3522_v59  ;;  %v3619_v27 = vadd.f32 %v3618_v54, %v3523_v41  ;;  %v3660_v11 = vmul.f32 %v3523_v41, %v3523_v41  ;;  %v2651_v48 = vunpack.c.l.b16 %v2571_v29  ;;  %v2887_v29 = vld [vmem:[#allocation2 + $0x159] sm:$0xff] }
 0x24e   : > { %v2760_v13 = vpop.f32.mrf.mxu2 }
 0x24f   : > { %4370 = vst [vmem:[%s4566_s30 + $0x8] sm:$0xff] %v4283_v24   ;;  %v3691_v35 = vadd.f32 %v3690_v34, %v3660_v11  ;;  %v2834_v39 = vadd.f32 %v2760_v13, %v2488_v20  ;;  %v3105_v1 = vpop.f32.mrf.mxu3  ;;  %v2672_v5 = vpack.c.b16 %v2652_v51, %v2651_v48  ;;  %v3017_v11 = vpack.c.b16 %v2997_v57, %v2996_v58  ;;  %v2886_v13 = vld [vmem:[#allocation2 + $0x151] sm:$0xff] }
 0x250   : > { %v2416_v47 = vpop.f32.mrf.mxu1  ;;  %v3362_v20 = vpack.c.b16 %v3342_v19, %v3341_v45  ;;  %v2918_v48 = vpack.c.bf16 %v2886_v13, %v2886_v13  ;;  %v2919_v51 = vpack.c.bf16 %v2887_v29, %v2887_v29  ;;  %v3263_v58 = vpack.c.bf16 %v3231_v7, %v3231_v7  ;;  %v2544_v29 = vld [vmem:[#allocation2 + $0x170] sm:$0xff] }
 0x251   : > { %v3179_v59 = vadd.f32 %v3105_v1, %v2834_v39  ;;  %v2489_v9 = vadd.f32 %v2416_v47, %v5115_v60  ;;  %v3232_v47 = vld [vmem:[#allocation2 + $0x15a] sm:$0xff]  ;;  %v2888_v7 = vld [vmem:[#allocation2 + $0x169] sm:$0xff] }
 0x252   : > { %v3452_v54 = vpop.f32.mrf.mxu0  ;;  %v3264_v57 = vpack.c.bf16 %v3232_v47, %v3232_v47 }
 0x253   : > { %v3524_v21 = vadd.f32 %v3450_v44, %v3179_v59  ;;  %v2574_v59 = vpack.c.bf16 %v2542_v50, %v2542_v50 }
 0x255   : > { %v3620_v15 = vadd.f32 %v3619_v27, %v3524_v21  ;;  %v3661_v34 = vmul.f32 %v3524_v21, %v3524_v21  ;;  %v2541_v27 = vld [vmem:[#allocation2 + $0x150] sm:$0xff] }
 0x256   : > { %v2762_v52 = vpop.f32.mrf.mxu2 }
 0x257   : > { %v3692_v41 = vadd.f32 %v3691_v35, %v3661_v34  ;;  %v2835_v0 = vadd.f32 %v2762_v52, %v2489_v9  ;;  %v3107_v40 = vpop.f32.mrf.mxu3  ;;  %v2998_v34 = vunpack.c.l.b16 %v2918_v48  ;;  %v2999_v9 = vunpack.c.l.b16 %v2919_v51 }
 0x258   : > { %v2419_v24 = vpop.f32.mrf.mxu1  ;;  %v3343_v52 = vunpack.c.l.b16 %v3263_v58  ;;  %v2576_v58 = vpack.c.bf16 %v2544_v29, %v2544_v29 }
 0x259   : > { %v3180_v17 = vadd.f32 %v3107_v40, %v2835_v0  ;;  %v2490_v1 = vadd.f32 %v2419_v24, %v5118_v14  ;;  %v2654_v14 = vunpack.c.l.b16 %v2574_v59  ;;  %v3344_v0 = vunpack.c.l.b16 %v3264_v57 }
 0x25a   : > { %v3455_v44 = vpop.f32.mrf.mxu0  ;;  %v3018_v13 = vpack.c.b16 %v2999_v9, %v2998_v34 }
 0x25b   : > { %v3525_v32 = vadd.f32 %v3452_v54, %v3180_v17  ;;  %2458 = vmatmul.bf16.gmra.mxu1 %v3361_v22  ;;  %2804 = vmatmul.bf16.gmra.mxu2 %v2672_v5  ;;  %v2573_v22 = vpack.c.bf16 %v2541_v27, %v2541_v27 }
 0x25c   : > { %3149 = vmatmul.bf16.gmra.mxu3 %v3017_v11 }
 0x25d   : > { %3494 = vmatmul.bf16.gmra.mxu0 %v3362_v20  ;;  %v4288_v60 = vpack.c.bf16 %v3525_v32, %v3524_v21  ;;  %v3621_v39 = vadd.f32 %v3620_v15, %v3525_v32  ;;  %v3662_v35 = vmul.f32 %v3525_v32, %v3525_v32  ;;  %v2653_v15 = vunpack.c.l.b16 %v2573_v22  ;;  %v3234_v22 = vld [vmem:[#allocation2 + $0x172] sm:$0xff] }
 0x25e   : > { %v2765_v10 = vpop.f32.mrf.mxu2 }
 0x25f   : > { %4371 = vst [vmem:[%s4566_s30 + $0x10] sm:$0xff] %v4288_v60   ;;  %v3693_v8 = vadd.f32 %v3692_v41, %v3662_v35  ;;  %v2836_v3 = vadd.f32 %v2765_v10, %v2490_v1  ;;  %v3110_v42 = vpop.f32.mrf.mxu3  ;;  %v2673_v27 = vpack.c.b16 %v2654_v14, %v2653_v15  ;;  %v3363_v60 = vpack.c.b16 %v3344_v0, %v3343_v52 }
 0x260   : > { %v2421_v54 = vpop.f32.mrf.mxu1  ;;  %v3266_v14 = vpack.c.bf16 %v3234_v22, %v3234_v22 }
 0x261   : > { %v3181_v21 = vadd.f32 %v3110_v42, %v2836_v3  ;;  %v2491_v5 = vadd.f32 %v2421_v54, %v5124_v46  ;;  %v2889_v3 = vld [vmem:[#allocation2 + $0x171] sm:$0xff] }
 0x262   : > { %v3457_v45 = vpop.f32.mrf.mxu0  ;;  %v3233_v42 = vld [vmem:[#allocation2 + $0x16a] sm:$0xff] }
 0x263   : > { %v3526_v19 = vadd.f32 %v3455_v44, %v3181_v21  ;;  %v2920_v21 = vpack.c.bf16 %v2888_v7, %v2888_v7  ;;  %v3265_v15 = vpack.c.bf16 %v3233_v42, %v3233_v42 }
 0x265   : > { %v3622_v40 = vadd.f32 %v3621_v39, %v3526_v19  ;;  %v3663_v41 = vmul.f32 %v3526_v19, %v3526_v19  ;;  %v2543_v39 = vld [vmem:[#allocation2 + $0x168] sm:$0xff]  ;;  %v3000_v0 = vunpack.c.l.b16 %v2920_v21 }
 0x266   : > { %v2767_v24 = vpop.f32.mrf.mxu2 }
 0x267   : > { %v3694_v11 = vadd.f32 %v3693_v8, %v3663_v41  ;;  %v2837_v17 = vadd.f32 %v2767_v24, %v2491_v5  ;;  %v3112_v32 = vpop.f32.mrf.mxu3  ;;  %v3345_v41 = vunpack.c.l.b16 %v3265_v15  ;;  %v3346_v5 = vunpack.c.l.b16 %v3266_v14 }
 0x268   : > { %v2424_v50 = vpop.f32.mrf.mxu1 }
 0x269   : > { %v3182_v35 = vadd.f32 %v3112_v32, %v2837_v17  ;;  %v2492_v8 = vadd.f32 %v2424_v50, %v5148_v31  ;;  %v2656_v31 = vunpack.c.l.b16 %v2576_v58  ;;  %v3364_v29 = vpack.c.b16 %v3346_v5, %v3345_v41 }
 0x26a   : > { %v3460_v44 = vpop.f32.mrf.mxu0 }
 0x26b   : > { %v3527_v1 = vadd.f32 %v3457_v45, %v3182_v35  ;;  %2463 = vmatmul.bf16.gmra.mxu1 %v3362_v20  ;;  %2809 = vmatmul.bf16.gmra.mxu2 %v2673_v27  ;;  %v2575_v20 = vpack.c.bf16 %v2543_v39, %v2543_v39  ;;  %v2921_v45 = vpack.c.bf16 %v2889_v3, %v2889_v3 }
 0x26c   : > { %3154 = vmatmul.bf16.gmra.mxu3 %v3018_v13 }
 0x26d   : > { %3499 = vmatmul.bf16.gmra.mxu0 %v3363_v60  ;;  %v4293_v46 = vpack.c.bf16 %v3527_v1, %v3526_v19  ;;  %v3623_v47 = vadd.f32 %v3622_v40, %v3527_v1  ;;  %v3664_v10 = vmul.f32 %v3527_v1, %v3527_v1  ;;  %v2655_v52 = vunpack.c.l.b16 %v2575_v20 }
 0x26e   : > { %v2770_v59 = vpop.f32.mrf.mxu2  ;;  %v3001_v40 = vunpack.c.l.b16 %v2921_v45 }
 0x26f   : > { %4372 = vst [vmem:[%s4566_s30 + $0x18] sm:$0xff] %v4293_v46   ;;  %v3695_v54 = vadd.f32 %v3694_v11, %v3664_v10  ;;  %v2838_v48 = vadd.f32 %v2770_v59, %v2492_v8  ;;  %v3115_v51 = vpop.f32.mrf.mxu3  ;;  %v2674_v35 = vpack.c.b16 %v2656_v31, %v2655_v52  ;;  %v2546_v10 = vld [vmem:[#allocation2 + $0x188] sm:$0xff] }
 0x270   : > { %v2426_v57 = vpop.f32.mrf.mxu1  ;;  %v3019_v39 = vpack.c.b16 %v3001_v40, %v3000_v0  ;;  %v2890_v8 = vld [vmem:[#allocation2 + $0x181] sm:$0xff]  ;;  %v2891_v59 = vld [vmem:[#allocation2 + $0x189] sm:$0xff]  ;;  %v2578_v21 = vpack.c.bf16 %v2546_v10, %v2546_v10 }
 0x271   : > { %v3183_v19 = vadd.f32 %v3115_v51, %v2838_v48  ;;  %v2493_v17 = vadd.f32 %v2426_v57, %v5151_v23  ;;  %v3236_v48 = vld [vmem:[#allocation2 + $0x18a] sm:$0xff]  ;;  %v2922_v15 = vpack.c.bf16 %v2890_v8, %v2890_v8  ;;  %v2923_v14 = vpack.c.bf16 %v2891_v59, %v2891_v59  ;;  %v2547_v8 = vld [vmem:[#allocation2 + $0x198] sm:$0xff] }
 0x272   : > { %v3462_v34 = vpop.f32.mrf.mxu0 }
 0x273   : > { %v3528_v9 = vadd.f32 %v3460_v44, %v3183_v19  ;;  %v3002_v40 = vunpack.c.l.b16 %v2922_v15  ;;  %v3003_v41 = vunpack.c.l.b16 %v2923_v14 }
 0x275   : > { %v3624_v24 = vadd.f32 %v3623_v47, %v3528_v9  ;;  %v3665_v11 = vmul.f32 %v3528_v9, %v3528_v9  ;;  %v2545_v47 = vld [vmem:[#allocation2 + $0x180] sm:$0xff] }
 0x276   : > { %v2772_v32 = vpop.f32.mrf.mxu2 }
 0x277   : > { %v3696_v27 = vadd.f32 %v3695_v54, %v3665_v11  ;;  %v2839_v50 = vadd.f32 %v2772_v32, %v2493_v17  ;;  %v3117_v13 = vpop.f32.mrf.mxu3  ;;  %v3235_v54 = vld [vmem:[#allocation2 + $0x182] sm:$0xff] }
 0x278   : > { %v2429_v1 = vpop.f32.mrf.mxu1  ;;  %v3267_v19 = vpack.c.bf16 %v3235_v54, %v3235_v54  ;;  %v2893_v54 = vld [vmem:[#allocation2 + $0x1a1] sm:$0xff] }
 0x279   : > { %v3184_v7 = vadd.f32 %v3117_v13, %v2839_v50  ;;  %v2494_v22 = vadd.f32 %v2429_v1, %v5154_v30  ;;  %v2658_v30 = vunpack.c.l.b16 %v2578_v21  ;;  %v2925_v14 = vpack.c.bf16 %v2893_v54, %v2893_v54 }
 0x27a   : > { %v3465_v44 = vpop.f32.mrf.mxu0  ;;  %v3347_v5 = vunpack.c.l.b16 %v3267_v19 }
 0x27b   : > { %v3529_v46 = vadd.f32 %v3462_v34, %v3184_v7  ;;  %2468 = vmatmul.bf16.gmra.mxu1 %v3363_v60  ;;  %2814 = vmatmul.bf16.gmra.mxu2 %v2674_v35  ;;  %v2577_v60 = vpack.c.bf16 %v2545_v47, %v2545_v47  ;;  %v3268_v34 = vpack.c.bf16 %v3236_v48, %v3236_v48  ;;  %v3237_v48 = vld [vmem:[#allocation2 + $0x19a] sm:$0xff] }
 0x27c   : > { %3159 = vmatmul.bf16.gmra.mxu3 %v3019_v39  ;;  %v3020_v7 = vpack.c.b16 %v3003_v41, %v3002_v40  ;;  %v3269_v19 = vpack.c.bf16 %v3237_v48, %v3237_v48  ;;  %v3005_v40 = vunpack.c.l.b16 %v2925_v14 }
 0x27d   : > { %3504 = vmatmul.bf16.gmra.mxu0 %v3364_v29  ;;  %v4298_v23 = vpack.c.bf16 %v3529_v46, %v3528_v9  ;;  %v3625_v3 = vadd.f32 %v3624_v24, %v3529_v46  ;;  %v3666_v42 = vmul.f32 %v3529_v46, %v3529_v46  ;;  %v2657_v0 = vunpack.c.l.b16 %v2577_v60 }
 0x27e   : > { %v2775_v51 = vpop.f32.mrf.mxu2  ;;  %v3348_v24 = vunpack.c.l.b16 %v3268_v34  ;;  %v3349_v41 = vunpack.c.l.b16 %v3269_v19 }
 0x27f   : > { %4373 = vst [vmem:[%s4566_s30 + $0x20] sm:$0xff] %v4298_v23   ;;  %v3697_v20 = vadd.f32 %v3696_v27, %v3666_v42  ;;  %v2840_v58 = vadd.f32 %v2775_v51, %v2494_v22  ;;  %v3120_v57 = vpop.f32.mrf.mxu3  ;;  %v2675_v1 = vpack.c.b16 %v2658_v30, %v2657_v0  ;;  %v2548_v23 = vld [vmem:[#allocation2 + $0x1a0] sm:$0xff] }
 0x280   : > { %v2431_v45 = vpop.f32.mrf.mxu1  ;;  %v3365_v46 = vpack.c.b16 %v3348_v24, %v3347_v5  ;;  %v3238_v51 = vld [vmem:[#allocation2 + $0x1a2] sm:$0xff]  ;;  %v2580_v21 = vpack.c.bf16 %v2548_v23, %v2548_v23 }
 0x281   : > { %v3185_v9 = vadd.f32 %v3120_v57, %v2840_v58  ;;  %v2495_v32 = vadd.f32 %v2431_v45, %v5157_v6  ;;  %v3270_v34 = vpack.c.bf16 %v3238_v51, %v3238_v51 }
 0x282   : > { %v3467_v52 = vpop.f32.mrf.mxu0 }
 0x283   : > { %v3530_v31 = vadd.f32 %v3465_v44, %v3185_v9  ;;  %v3350_v5 = vunpack.c.l.b16 %v3270_v34 }
 0x285   : > { %v3626_v11 = vadd.f32 %v3625_v3, %v3530_v31  ;;  %v3667_v17 = vmul.f32 %v3530_v31, %v3530_v31  ;;  %v2892_v3 = vld [vmem:[#allocation2 + $0x199] sm:$0xff] }
 0x286   : > { %v2777_v27 = vpop.f32.mrf.mxu2  ;;  %v2924_v15 = vpack.c.bf16 %v2892_v3, %v2892_v3 }
 0x287   : > { %v3698_v50 = vadd.f32 %v3697_v20, %v3667_v17  ;;  %v2841_v13 = vadd.f32 %v2777_v27, %v2495_v32  ;;  %v3122_v35 = vpop.f32.mrf.mxu3 }
 0x288   : > { %v2434_v39 = vpop.f32.mrf.mxu1  ;;  %v3004_v30 = vunpack.c.l.b16 %v2924_v15 }
 0x289   : > { %v3186_v47 = vadd.f32 %v3122_v35, %v2841_v13  ;;  %v2496_v59 = vadd.f32 %v2434_v39, %v5164_v4  ;;  %v2660_v4 = vunpack.c.l.b16 %v2580_v21 }
 0x28a   : > { %v3470_v44 = vpop.f32.mrf.mxu0  ;;  %v3021_v39 = vpack.c.b16 %v3005_v40, %v3004_v30 }
 0x28b   : > { %v3531_v10 = vadd.f32 %v3467_v52, %v3186_v47  ;;  %2473 = vmatmul.bf16.gmra.mxu1 %v3364_v29  ;;  %2819 = vmatmul.bf16.gmra.mxu2 %v2675_v1  ;;  %v2579_v29 = vpack.c.bf16 %v2547_v8, %v2547_v8 }
 0x28c   : > { %3164 = vmatmul.bf16.gmra.mxu3 %v3020_v7  ;;  %v3366_v7 = vpack.c.b16 %v3350_v5, %v3349_v41 }
 0x28d   : > { %3509 = vmatmul.bf16.gmra.mxu0 %v3365_v46  ;;  %v4303_v6 = vpack.c.bf16 %v3531_v10, %v3530_v31  ;;  %v3627_v42 = vadd.f32 %v3626_v11, %v3531_v10  ;;  %v3668_v22 = vmul.f32 %v3531_v10, %v3531_v10  ;;  %v2659_v0 = vunpack.c.l.b16 %v2579_v29 }
 0x28e   : > { %v2780_v20 = vpop.f32.mrf.mxu2 }
 0x28f   : > { %4374 = vst [vmem:[%s4566_s30 + $0x28] sm:$0xff] %v4303_v6   ;;  %v3699_v58 = vadd.f32 %v3698_v50, %v3668_v22  ;;  %v2842_v57 = vadd.f32 %v2780_v20, %v2496_v59  ;;  %v3125_v60 = vpop.f32.mrf.mxu3  ;;  %v2676_v35 = vpack.c.b16 %v2660_v4, %v2659_v0 }
 0x290   : > { %v2436_v45 = vpop.f32.mrf.mxu1 }
 0x291   : > { %v3187_v9 = vadd.f32 %v3125_v60, %v2842_v57  ;;  %v2497_v17 = vadd.f32 %v2436_v45, %v5167_v49 }
 0x292   : > { %v3472_v52 = vpop.f32.mrf.mxu0 }
 0x293   : > { %v3532_v31 = vadd.f32 %v3470_v44, %v3187_v9 }
 0x295   : > { %v3628_v24 = vadd.f32 %v3627_v42, %v3532_v31  ;;  %v3669_v11 = vmul.f32 %v3532_v31, %v3532_v31 }
 0x296   : > { %v2782_v32 = vpop.f32.mrf.mxu2 }
 0x297   : > { %v3700_v27 = vadd.f32 %v3699_v58, %v3669_v11  ;;  %v2843_v50 = vadd.f32 %v2782_v32, %v2497_v17  ;;  %v3127_v13 = vpop.f32.mrf.mxu3 }
 0x298   : > { %v2439_v1 = vpop.f32.mrf.mxu1 }
 0x299   : > { %v3188_v47 = vadd.f32 %v3127_v13, %v2843_v50  ;;  %v2498_v49 = vadd.f32 %v2439_v1, %v5170_v33 }
 0x29a   : > { %v3475_v44 = vpop.f32.mrf.mxu0 }
 0x29b   : > { %v3533_v10 = vadd.f32 %v3472_v52, %v3188_v47  ;;  %2478 = vmatmul.bf16.gmra.mxu1 %v3365_v46  ;;  %2824 = vmatmul.bf16.gmra.mxu2 %v2676_v35 }
 0x29c   : > { %3169 = vmatmul.bf16.gmra.mxu3 %v3021_v39 }
 0x29d   : > { %3514 = vmatmul.bf16.gmra.mxu0 %v3366_v7  ;;  %v4308_v8 = vpack.c.bf16 %v3533_v10, %v3532_v31  ;;  %v3629_v23 = vadd.f32 %v3628_v24, %v3533_v10  ;;  %v3670_v3 = vmul.f32 %v3533_v10, %v3533_v10 }
 0x29e   : > { %v2785_v6 = vpop.f32.mrf.mxu2 }
 0x29f   : > { %4375 = vst [vmem:[%s4566_s30 + $0x30] sm:$0xff] %v4308_v8   ;;  %v3701_v42 = vadd.f32 %v3700_v27, %v3670_v3  ;;  %v2844_v22 = vadd.f32 %v2785_v6, %v2498_v49  ;;  %v3130_v59 = vpop.f32.mrf.mxu3 }
 0x2a0   : > { %v2441_v54 = vpop.f32.mrf.mxu1 }
 0x2a1   : > { %v3189_v48 = vadd.f32 %v3130_v59, %v2844_v22  ;;  %v2499_v57 = vadd.f32 %v2441_v54, %v5173_v43 }
 0x2a2   : > { %v3477_v51 = vpop.f32.mrf.mxu0 }
 0x2a3   : > { %v3534_v20 = vadd.f32 %v3475_v44, %v3189_v48 }
 0x2a5   : > { %v3630_v58 = vadd.f32 %v3629_v23, %v3534_v20  ;;  %v3671_v46 = vmul.f32 %v3534_v20, %v3534_v20 }
 0x2a6   : > { %v2787_v60 = vpop.f32.mrf.mxu2 }
 0x2a7   : > { %v3702_v29 = vadd.f32 %v3701_v42, %v3671_v46  ;;  %v2845_v21 = vadd.f32 %v2787_v60, %v2499_v57  ;;  %v3132_v45 = vpop.f32.mrf.mxu3 }
 0x2a8   : > { %v2444_v15 = vpop.f32.mrf.mxu1 }
 0x2a9   : > { %v3190_v33 = vadd.f32 %v3132_v45, %v2845_v21  ;;  %v2500_v31 = vadd.f32 %v2444_v15, %v5176_v25 }
 0x2aa   : > { %v3480_v14 = vpop.f32.mrf.mxu0 }
 0x2ab   : > { %v3535_v19 = vadd.f32 %v3477_v51, %v3190_v33 }
 0x2ad   : > { %v4313_v34 = vpack.c.bf16 %v3535_v19, %v3534_v20  ;;  %v3631_v9 = vadd.f32 %v3630_v58, %v3535_v19  ;;  %v3672_v52 = vmul.f32 %v3535_v19, %v3535_v19 }
 0x2ae   : > { %v2790_v0 = vpop.f32.mrf.mxu2 }
 0x2af   : > { %4376 = vst [vmem:[%s4566_s30 + $0x38] sm:$0xff] %v4313_v34   ;;  %v3703_v4 = vadd.f32 %v3702_v29, %v3672_v52  ;;  %v2846_v30 = vadd.f32 %v2790_v0, %v2500_v31  ;;  %v3135_v40 = vpop.f32.mrf.mxu3 }
 0x2b0   : > { %v2446_v41 = vpop.f32.mrf.mxu1 }
 0x2b1   : > { %v3191_v43 = vadd.f32 %v3135_v40, %v2846_v30  ;;  %v2501_v32 = vadd.f32 %v2446_v41, %v5179_v56 }
 0x2b2   : > { %v3482_v5 = vpop.f32.mrf.mxu0 }
 0x2b3   : > { %v3536_v24 = vadd.f32 %v3480_v14, %v3191_v43 }
 0x2b5   : > { %v3632_v11 = vadd.f32 %v3631_v9, %v3536_v24  ;;  %v3673_v17 = vmul.f32 %v3536_v24, %v3536_v24 }
 0x2b6   : > { %v2792_v27 = vpop.f32.mrf.mxu2 }
 0x2b7   : > { %v3704_v50 = vadd.f32 %v3703_v4, %v3673_v17  ;;  %v2847_v13 = vadd.f32 %v2792_v27, %v2501_v32  ;;  %v3137_v35 = vpop.f32.mrf.mxu3 }
 0x2b8   : > { %v2449_v1 = vpop.f32.mrf.mxu1 }
 0x2b9   : > { %v3192_v25 = vadd.f32 %v3137_v35, %v2847_v13  ;;  %v2502_v8 = vadd.f32 %v2449_v1, %v5182_v36 }
 0x2ba   : > { %v3485_v39 = vpop.f32.mrf.mxu0 }
 0x2bb   : > { %v3537_v7 = vadd.f32 %v3482_v5, %v3192_v25 }
 0x2bd   : > { %v4318_v47 = vpack.c.bf16 %v3537_v7, %v3536_v24  ;;  %v3633_v44 = vadd.f32 %v3632_v11, %v3537_v7  ;;  %v3674_v10 = vmul.f32 %v3537_v7, %v3537_v7 }
 0x2be   : > { %v2795_v23 = vpop.f32.mrf.mxu2 }
 0x2bf   : > { %4377 = vst [vmem:[%s4566_s30 + $0x40] sm:$0xff] %v4318_v47   ;;  %v3705_v3 = vadd.f32 %v3704_v50, %v3674_v10  ;;  %v2848_v49 = vadd.f32 %v2795_v23, %v2502_v8  ;;  %v3140_v6 = vpop.f32.mrf.mxu3 }
 0x2c0   : > { %v2451_v42 = vpop.f32.mrf.mxu1 }
 0x2c1   : > { %v3193_v56 = vadd.f32 %v3140_v6, %v2848_v49  ;;  %v2503_v51 = vadd.f32 %v2451_v42, %v5185_v55 }
 0x2c2   : > { %v3487_v22 = vpop.f32.mrf.mxu0 }
 0x2c3   : > { %v3538_v59 = vadd.f32 %v3485_v39, %v3193_v56 }
 0x2c5   : > { %v3634_v54 = vadd.f32 %v3633_v44, %v3538_v59  ;;  %v3675_v48 = vmul.f32 %v3538_v59, %v3538_v59 }
 0x2c6   : > { %v2797_v20 = vpop.f32.mrf.mxu2 }
 0x2c7   : > { %v3706_v58 = vadd.f32 %v3705_v3, %v3675_v48  ;;  %v2849_v46 = vadd.f32 %v2797_v20, %v2503_v51  ;;  %v3142_v57 = vpop.f32.mrf.mxu3 }
 0x2c8   : > { %v2454_v60 = vpop.f32.mrf.mxu1 }
 0x2c9   : > { %v3194_v36 = vadd.f32 %v3142_v57, %v2849_v46  ;;  %v2504_v14 = vadd.f32 %v2454_v60, %v5188_v37 }
 0x2ca   : > { %v3490_v29 = vpop.f32.mrf.mxu0 }
 0x2cb   : > { %v3539_v21 = vadd.f32 %v3487_v22, %v3194_v36 }
 0x2cd   : > { %v4323_v45 = vpack.c.bf16 %v3539_v21, %v3538_v59  ;;  %v3635_v15 = vadd.f32 %v3634_v54, %v3539_v21  ;;  %v3676_v33 = vmul.f32 %v3539_v21, %v3539_v21 }
 0x2ce   : > { %v2800_v19 = vpop.f32.mrf.mxu2 }
 0x2cf   : > { %4378 = vst [vmem:[%s4566_s30 + $0x48] sm:$0xff] %v4323_v45   ;;  %v3707_v34 = vadd.f32 %v3706_v58, %v3676_v33  ;;  %v2850_v9 = vadd.f32 %v2800_v19, %v2504_v14  ;;  %v3145_v52 = vpop.f32.mrf.mxu3 }
 0x2d0   : > { %v2456_v31 = vpop.f32.mrf.mxu1 }
 0x2d1   : > { %v3195_v55 = vadd.f32 %v3145_v52, %v2850_v9  ;;  %v2505_v41 = vadd.f32 %v2456_v31, %v5191_v28 }
 0x2d2   : > { %v3492_v0 = vpop.f32.mrf.mxu0 }
 0x2d3   : > { %v3540_v4 = vadd.f32 %v3490_v29, %v3195_v55 }
 0x2d5   : > { %v3636_v30 = vadd.f32 %v3635_v15, %v3540_v4  ;;  %v3677_v40 = vmul.f32 %v3540_v4, %v3540_v4 }
 0x2d6   : > { %v2802_v43 = vpop.f32.mrf.mxu2 }
 0x2d7   : > { %v3708_v5 = vadd.f32 %v3707_v34, %v3677_v40  ;;  %v2851_v24 = vadd.f32 %v2802_v43, %v2505_v41  ;;  %v3147_v11 = vpop.f32.mrf.mxu3 }
 0x2d8   : > { %v2459_v17 = vpop.f32.mrf.mxu1 }
 0x2d9   : > { %v3196_v37 = vadd.f32 %v3147_v11, %v2851_v24  ;;  %v2506_v1 = vadd.f32 %v2459_v17, %v5194_v2 }
 0x2da   : > { %v3495_v32 = vpop.f32.mrf.mxu0 }
 0x2db   : > { %v3541_v27 = vadd.f32 %v3492_v0, %v3196_v37 }
 0x2dd   : > { %v4328_v50 = vpack.c.bf16 %v3541_v27, %v3540_v4  ;;  %v3637_v13 = vadd.f32 %v3636_v30, %v3541_v27  ;;  %v3678_v35 = vmul.f32 %v3541_v27, %v3541_v27 }
 0x2de   : > { %v2805_v25 = vpop.f32.mrf.mxu2 }
 0x2df   : > { %4379 = vst [vmem:[%s4566_s30 + $0x50] sm:$0xff] %v4328_v50   ;;  %v3709_v39 = vadd.f32 %v3708_v5, %v3678_v35  ;;  %v2852_v7 = vadd.f32 %v2805_v25, %v2506_v1  ;;  %v3150_v47 = vpop.f32.mrf.mxu3 }
 0x2e0   : > { %v2461_v44 = vpop.f32.mrf.mxu1 }
 0x2e1   : > { %v3197_v28 = vadd.f32 %v3150_v47, %v2852_v7  ;;  %v2507_v49 = vadd.f32 %v2461_v44, %v5197_v38 }
 0x2e2   : > { %v3497_v10 = vpop.f32.mrf.mxu0 }
 0x2e3   : > { %v3542_v8 = vadd.f32 %v3495_v32, %v3197_v28 }
 0x2e5   : > { %v3638_v23 = vadd.f32 %v3637_v13, %v3542_v8  ;;  %v3679_v3 = vmul.f32 %v3542_v8, %v3542_v8 }
 0x2e6   : > { %v2807_v6 = vpop.f32.mrf.mxu2 }
 0x2e7   : > { %v3710_v42 = vadd.f32 %v3709_v39, %v3679_v3  ;;  %v2853_v56 = vadd.f32 %v2807_v6, %v2507_v49  ;;  %v3152_v22 = vpop.f32.mrf.mxu3 }
 0x2e8   : > { %v2464_v59 = vpop.f32.mrf.mxu1 }
 0x2e9   : > { %v3198_v2 = vadd.f32 %v3152_v22, %v2853_v56  ;;  %v2508_v46 = vadd.f32 %v2464_v59, %v5200_v16 }
 0x2ea   : > { %v3500_v54 = vpop.f32.mrf.mxu0 }
 0x2eb   : > { %v3543_v48 = vadd.f32 %v3497_v10, %v3198_v2 }
 0x2ed   : > { %v4333_v51 = vpack.c.bf16 %v3543_v48, %v3542_v8  ;;  %v3639_v20 = vadd.f32 %v3638_v23, %v3543_v48  ;;  %v3680_v58 = vmul.f32 %v3543_v48, %v3543_v48 }
 0x2ee   : > { %v2810_v57 = vpop.f32.mrf.mxu2 }
 0x2ef   : > { %4380 = vst [vmem:[%s4566_s30 + $0x58] sm:$0xff] %v4333_v51   ;;  %v3711_v60 = vadd.f32 %v3710_v42, %v3680_v58  ;;  %v2854_v36 = vadd.f32 %v2810_v57, %v2508_v46  ;;  %v3155_v29 = vpop.f32.mrf.mxu3 }
 0x2f0   : > { %v2466_v21 = vpop.f32.mrf.mxu1 }
 0x2f1   : > { %v3199_v38 = vadd.f32 %v3155_v29, %v2854_v36  ;;  %v2509_v19 = vadd.f32 %v2466_v21, %v5203_v63 }
 0x2f2   : > { %v3502_v45 = vpop.f32.mrf.mxu0 }
 0x2f3   : > { %v3544_v15 = vadd.f32 %v3500_v54, %v3199_v38 }
 0x2f5   : > { %v3640_v33 = vadd.f32 %v3639_v20, %v3544_v15  ;;  %v3681_v14 = vmul.f32 %v3544_v15, %v3544_v15 }
 0x2f6   : > { %v2812_v34 = vpop.f32.mrf.mxu2 }
 0x2f7   : > { %v3712_v9 = vadd.f32 %v3711_v60, %v3681_v14  ;;  %v2855_v52 = vadd.f32 %v2812_v34, %v2509_v19  ;;  %v3157_v31 = vpop.f32.mrf.mxu3 }
 0x2f8   : > { %v2469_v55 = vpop.f32.mrf.mxu1 }
 0x2f9   : > { %v3200_v16 = vadd.f32 %v3157_v31, %v2855_v52  ;;  %v2510_v43 = vadd.f32 %v2469_v55, %v5206_v61 }
 0x2fa   : > { %v3505_v0 = vpop.f32.mrf.mxu0 }
 0x2fb   : > { %v3545_v4 = vadd.f32 %v3502_v45, %v3200_v16 }
 0x2fd   : > { %v4338_v30 = vpack.c.bf16 %v3545_v4, %v3544_v15  ;;  %v3641_v40 = vadd.f32 %v3640_v33, %v3545_v4  ;;  %v3682_v41 = vmul.f32 %v3545_v4, %v3545_v4 }
 0x2fe   : > { %v2815_v5 = vpop.f32.mrf.mxu2 }
 0x2ff   : > { %4381 = vst [vmem:[%s4566_s30 + $0x60] sm:$0xff] %v4338_v30   ;;  %v3713_v24 = vadd.f32 %v3712_v9, %v3682_v41  ;;  %v2856_v11 = vadd.f32 %v2815_v5, %v2510_v43  ;;  %v3160_v17 = vpop.f32.mrf.mxu3 }
 0x300   : > { %v2471_v37 = vpop.f32.mrf.mxu1 }
 0x301   : > { %v3201_v63 = vadd.f32 %v3160_v17, %v2856_v11  ;;  %v2511_v35 = vadd.f32 %v2471_v37, %v5209_v53 }
 0x302   : > { %v3507_v32 = vpop.f32.mrf.mxu0 }
 0x303   : > { %v3546_v27 = vadd.f32 %v3505_v0, %v3201_v63 }
 0x305   : > { %v3642_v50 = vadd.f32 %v3641_v40, %v3546_v27  ;;  %v3683_v13 = vmul.f32 %v3546_v27, %v3546_v27 }
 0x306   : > { %v2817_v1 = vpop.f32.mrf.mxu2 }
 0x307   : > { %v3714_v25 = vadd.f32 %v3713_v24, %v3683_v13  ;;  %v2857_v39 = vadd.f32 %v2817_v1, %v2511_v35  ;;  %v3162_v7 = vpop.f32.mrf.mxu3 }
 0x308   : > { %v2474_v47 = vpop.f32.mrf.mxu1 }
 0x309   : > { %v3202_v61 = vadd.f32 %v3162_v7, %v2857_v39  ;;  %v2512_v3 = vadd.f32 %v2474_v47, %v5212_v62  ;;  %v3656_v47 = vld [vmem:[#allocation5] sm:$0x1] }
 0x30a   : > { %v3510_v28 = vpop.f32.mrf.mxu0 }
 0x30b   : > { %v3547_v44 = vadd.f32 %v3507_v32, %v3202_v61 }
 0x30d   : > { %v4343_v10 = vpack.c.bf16 %v3547_v44, %v3546_v27  ;;  %v3643_v8 = vadd.f32 %v3642_v50, %v3547_v44  ;;  %v3684_v23 = vmul.f32 %v3547_v44, %v3547_v44 }
 0x30e   : > { %v2820_v49 = vpop.f32.mrf.mxu2 }
 0x30f   : > { %4382 = vst [vmem:[%s4566_s30 + $0x68] sm:$0xff] %v4343_v10   ;;  %v3715_v6 = vadd.f32 %v3714_v25, %v3684_v23  ;;  %v2858_v42 = vadd.f32 %v2820_v49, %v2512_v3  ;;  %v3165_v56 = vpop.f32.mrf.mxu3  ;;  %v3616_v25 = vld [vmem:[#allocation3] sm:$0x1] }
 0x310   : > { %v2476_v22 = vpop.f32.mrf.mxu1 }
 0x311   : > { %v3203_v53 = vadd.f32 %v3165_v56, %v2858_v42  ;;  %v2513_v48 = vadd.f32 %v2476_v22, %v5215_v12 }
 0x312   : > { %v3512_v51 = vpop.f32.mrf.mxu0 }
 0x313   : > { %v3548_v59 = vadd.f32 %v3510_v28, %v3203_v53 }
 0x315   : > { %v3644_v2 = vadd.f32 %v3643_v8, %v3548_v59  ;;  %v3685_v54 = vmul.f32 %v3548_v59, %v3548_v59 }
 0x316   : > { %v2822_v20 = vpop.f32.mrf.mxu2 }
 0x317   : > { %v3716_v58 = vadd.f32 %v3715_v6, %v3685_v54  ;;  %v2859_v46 = vadd.f32 %v2822_v20, %v2513_v48  ;;  %v3167_v57 = vpop.f32.mrf.mxu3 }
 0x318   : > { %v2479_v60 = vpop.f32.mrf.mxu1 }
 0x319   : > { %v3204_v62 = vadd.f32 %v3167_v57, %v2859_v46  ;;  %v2514_v45 = vadd.f32 %v2479_v60, %v5218_v18 }
 0x31a   : > { %v3515_v34 = vpop.f32.mrf.mxu0 }
 0x31b   : > { %v3549_v36 = vadd.f32 %v3512_v51, %v3204_v62 }
 0x31d   : > { %v4348_v29 = vpack.c.bf16 %v3549_v36, %v3548_v59  ;;  %v3645_v21 = vadd.f32 %v3644_v2, %v3549_v36  ;;  %v3686_v38 = vmul.f32 %v3549_v36, %v3549_v36 }
 0x31e   : > { %v2825_v15 = vpop.f32.mrf.mxu2 }
 0x31f   : > { %4383 = vst [vmem:[%s4566_s30 + $0x70] sm:$0xff] %v4348_v29   ;;  %v3717_v33 = vadd.f32 %v3716_v58, %v3686_v38  ;;  %v2860_v14 = vadd.f32 %v2825_v15, %v2514_v45  ;;  %v3170_v19 = vpop.f32.mrf.mxu3 }
 0x320   : > { %v2481_v9 = vpop.f32.mrf.mxu1 }
 0x321   : > { %v3205_v12 = vadd.f32 %v3170_v19, %v2860_v14  ;;  %v2515_v16 = vadd.f32 %v2481_v9, %v5221_v26 }
 0x322   : > { %v3517_v18 = vpop.f32.mrf.mxu0 }
 0x323   : > { %v3550_v52 = vadd.f32 %v3515_v34, %v3205_v12 }
 0x325   : > { %v3646_v31 = vadd.f32 %v3645_v21, %v3550_v52  ;;  %v3687_v55 = vmul.f32 %v3550_v52, %v3550_v52 }
 0x326   : > { %v2827_v0 = vpop.f32.mrf.mxu2 }
 0x327   : > { %v3718_v4 = vadd.f32 %v3717_v33, %v3687_v55  ;;  %v2861_v30 = vadd.f32 %v2827_v0, %v2515_v16  ;;  %v3172_v40 = vpop.f32.mrf.mxu3 }
 0x329   : > { %v3206_v41 = vadd.f32 %v3172_v40, %v2861_v30 }
 0x32b   : > { %v3551_v43 = vadd.f32 %v3517_v18, %v3206_v41 }
 0x32d   : > { %v4353_v5 = vpack.c.bf16 %v3551_v43, %v3550_v52  ;;  %v3647_v24 = vadd.f32 %v3646_v31, %v3551_v43  ;;  %v3688_v11 = vmul.f32 %v3551_v43, %v3551_v43 }
 0x32f   : > { %4384 = vst [vmem:[%s4566_s30 + $0x78] sm:$0xff] %v4353_v5   ;;  %v3648_v17 = vrot.slane %v3647_v24, 4  ;;  %v3719_v37 = vadd.f32 %v3718_v4, %v3688_v11  ;;  %s4510_s30 = smov [#allocation5]  }
 0x330   : > { %s3754_s25 = sshll.u32 %s4510_s30, 4  ;;  %s3755_s25 = int_to_ptr.vmem [resolvable:$true] %s3754_s25 }
 0x331   : > { %v3649_v63 = vadd.f32 %v3648_v17, %v3647_v24  ;;  %v3720_v32 = vrot.slane %v3719_v37, 4 }
 0x333   : > { %v3650_v27 = vrot.slane %v3649_v63, 2  ;;  %v3721_v50 = vadd.f32 %v3720_v32, %v3719_v37 }
 0x335   : > { %v3651_v13 = vadd.f32 %v3650_v27, %v3649_v63  ;;  %v3722_v26 = vrot.slane %v3721_v50, 2 }
 0x337   : > { %v3652_v35 = vrot.slane %v3651_v13, 1  ;;  %v3723_v1 = vadd.f32 %v3722_v26, %v3721_v50 }
 0x339   : > { %v3653_v39 = vadd.f32 %v3652_v35, %v3651_v13  ;;  %v3724_v7 = vrot.slane %v3723_v1, 1 }
 0x33b   : > { %v3654_v61 = vadd.f32 %v3653_v39, %v3616_v25  ;;  %v3725_v44 = vadd.f32 %v3724_v7, %v3723_v1 }
 0x33d   : > { %3655 = vst [vmem:[#allocation3] sm:$0x1] %v3654_v61  ;;  %v3726_v28 = vadd.f32 %v3725_v44, %v3656_v47 }
 0x33e   : > { %4410 = dma.vmem_to_hbm [thread:$0]  (%p4417_p5), %s3743_s19, 16, %s3745_s24, [#allocation4]  }
 0x33f   : > { %3727 = vst [vmem:[#allocation5] sm:$0x1] %v3726_v28 }
 0x340   : > { %4412 = dma.vmem_to_hbm [thread:$0]  (%p4417_p5), %s3755_s25, 16, %s3757_s29, [#allocation6]  }
 0x341   : > { %4497 = dma.done.wait (%p4417_p5), [#allocation4], 16  }
 0x342   : > { %4499 = vsyncadd (%p4417_p5), [#allocation4], 4294967280 }
 0x343   : > { %4501 = dma.done.wait (%p4417_p5), [#allocation6], 16  }
 0x344   : > { %4503 = vsyncadd (%p4417_p5), [#allocation6], 4294967280 }
 0x345 PF: > { %s19_s21 = sadd.s32 1, %s4506_s21  }
 0x346   : > { %p16_p6 = scmp.ge.s32.totalorder %s19_s21, 4  }
 0x348   :  { %18 = sbr.rel (!%p16_p6) target bundleno = 2 (0x2), region = 89 }
 0x34d   :  { %3783 = vsyncpa [#allocation4], 1 }
 0x34e   :  { %3785 = vsyncpa [#allocation4 + $0x1], 1 }
 0x34f   :  { %3786 = vsyncpa [#allocation6], 1 }

</bundles_post_ra>
